<compile_context>
chip_gen: v6e
topology: v6e:2x2x1
jax: 0.10.0
libtpu: 0.0.40
codegen_flags: <defaults>
</compile_context>

<pallas_src>
import functools
import math

import jax
import jax.numpy as jnp
from jax import lax
from jax.experimental import pallas as pl
from jax.experimental.pallas import tpu as pltpu

HIGHEST = jax.lax.Precision.HIGHEST


def _sigmoid(v):
    return 1.0 / (1.0 + jnp.exp(-v))


def _softplus(v):  # matches torch.nn.functional.softplus (beta=1, threshold=20)
    return jnp.where(v > 20.0, v, jnp.log(1.0 + jnp.exp(jnp.minimum(v, 20.0))))


def _pick_tile(m, target=256):
    """Largest multiple-of-8 divisor of m that is <= target (fallback: m)."""
    t = min(target, m)
    t -= t % 8
    while t >= 8:
        if m % t == 0:
            return t
        t -= 8
    return m


def _pick_chunk(L):
    """Time-chunk for the scan; must divide L and satisfy the (8,128) rule."""
    if L % 16 == 0:
        return 16
    if L % 8 == 0:
        return 8
    return L  # single chunk fallback


# ----------------- kernel 1: LayerNorm(ln_1) + in_proj (x / z halves) ---------
def ln_inproj_kernel(x_ref, g_ref, b_ref, wx_ref, wz_ref, xo_ref, zo_ref, *, eps):
    x = x_ref[...]                                        # (TM, C) f32
    mu = jnp.mean(x, axis=-1, keepdims=True)
    var = jnp.mean((x - mu) ** 2, axis=-1, keepdims=True)
    xn = (x - mu) * lax.rsqrt(var + eps)
    xn = (xn * g_ref[...] + b_ref[...]).astype(jnp.bfloat16)
    xo_ref[...] = jnp.dot(xn, wx_ref[...], preferred_element_type=jnp.float32)
    zo_ref[...] = jnp.dot(xn, wz_ref[...], preferred_element_type=jnp.float32)


def ln_inproj(x2d, gamma, beta, wx_t, wz_t, eps=1e-6):
    M, C = x2d.shape
    Dm = wx_t.shape[1]
    tm = _pick_tile(M)
    return pl.pallas_call(
        functools.partial(ln_inproj_kernel, eps=eps),
        grid=(M // tm,),
        in_specs=[
            pl.BlockSpec((tm, C), lambda m: (m, 0)),
            pl.BlockSpec((1, C), lambda m: (0, 0)),
            pl.BlockSpec((1, C), lambda m: (0, 0)),
            pl.BlockSpec((C, Dm), lambda m: (0, 0)),
            pl.BlockSpec((C, Dm), lambda m: (0, 0)),
        ],
        out_specs=[
            pl.BlockSpec((tm, Dm), lambda m: (m, 0)),
            pl.BlockSpec((tm, Dm), lambda m: (m, 0)),
        ],
        out_shape=[
            jax.ShapeDtypeStruct((M, Dm), jnp.float32),
            jax.ShapeDtypeStruct((M, Dm), jnp.float32),
        ],
        compiler_params=pltpu.CompilerParams(dimension_semantics=("parallel",)),
    )(x2d, gamma.reshape(1, C), beta.reshape(1, C), wx_t, wz_t)


# ----------------- kernel 2: depthwise 3x3 conv + bias + SiLU -----------------
def dwconv_silu_kernel(xp_ref, w_ref, b_ref, o_ref, *, H, W, Cc):
    xp = xp_ref[...]                                      # (H+2, W+2, Cc)
    w = w_ref[...]                                        # (9, Cc)
    acc = jnp.zeros((H, W, Cc), jnp.float32) + b_ref[...].reshape(1, 1, Cc)
    for dy in range(3):
        for dx in range(3):
            acc = acc + xp[dy:dy + H, dx:dx + W, :] * w[dy * 3 + dx].reshape(1, 1, Cc)
    o_ref[...] = acc * _sigmoid(acc)                      # SiLU


def dwconv_silu(x_pad, w9c, bias):
    # x_pad is the zero-padded NHWC activation (pad done once by XLA in the
    # wrapper -> all in-kernel slices are plain shifted reads, no partial stores).
    B, Hp, Wp, Cc = x_pad.shape
    H, W = Hp - 2, Wp - 2
    return pl.pallas_call(
        functools.partial(dwconv_silu_kernel, H=H, W=W, Cc=Cc),
        grid=(B,),
        in_specs=[
            pl.BlockSpec((None, Hp, Wp, Cc), lambda b: (b, 0, 0, 0)),
            pl.BlockSpec((9, Cc), lambda b: (0, 0)),
            pl.BlockSpec((1, Cc), lambda b: (0, 0)),
        ],
        out_specs=pl.BlockSpec((None, H, W, Cc), lambda b: (b, 0, 0, 0)),
        out_shape=jax.ShapeDtypeStruct((B, H, W, Cc), jnp.float32),
        compiler_params=pltpu.CompilerParams(dimension_semantics=("parallel",)),
    )(x_pad, w9c, bias.reshape(1, Cc))


# -------- kernel 3: x_proj (dt_proj folded in) + fused softplus(dt + bias) ----
def xproj_kernel(xs_ref, wdt_ref, wbc_ref, dtb_ref, dt_ref, bc_ref):
    xs = xs_ref[...].astype(jnp.bfloat16)                              # (TM, d)
    dt = jnp.dot(xs, wdt_ref[...], preferred_element_type=jnp.float32)  # (TM, d)
    dt_ref[...] = _softplus(dt + dtb_ref[...])
    bc_ref[...] = jnp.dot(xs, wbc_ref[...], preferred_element_type=jnp.float32)


def xproj(xs2, w_dt_fold, w_bc, dtb, d_state):
    # xs2: (2, M, d_inner), orientation 0 = row-major, 1 = col-major.
    _, M, d_inner = xs2.shape
    K = w_dt_fold.shape[0]
    n2 = 2 * d_state
    tm = _pick_tile(M)
    return pl.pallas_call(
        xproj_kernel,
        grid=(K, M // tm),
        in_specs=[
            pl.BlockSpec((None, tm, d_inner), lambda k, m: (k % 2, m, 0)),
            pl.BlockSpec((None, d_inner, d_inner), lambda k, m: (k, 0, 0)),
            pl.BlockSpec((None, d_inner, n2), lambda k, m: (k, 0, 0)),
            pl.BlockSpec((None, 1, d_inner), lambda k, m: (k, 0, 0)),
        ],
        out_specs=[
            pl.BlockSpec((None, tm, d_inner), lambda k, m: (k, m, 0)),
            pl.BlockSpec((None, tm, n2), lambda k, m: (k, m, 0)),
        ],
        out_shape=[
            jax.ShapeDtypeStruct((K, M, d_inner), jnp.float32),
            jax.ShapeDtypeStruct((K, M, n2), jnp.float32),
        ],
        compiler_params=pltpu.CompilerParams(
            dimension_semantics=("parallel", "parallel")),
    )(xs2, w_dt_fold, w_bc, dtb)


# ------------- kernel 4: chunked selective scan (VPU/EUP/XLU only) ------------
def scan_kernel(u_ref, dt_ref, bc_ref, a_ref, dd_ref, *rest, T, ds, reverse):
    if reverse:
        yprev_ref, y_ref, h_ref = rest
    else:
        y_ref, h_ref = rest

    @pl.when(pl.program_id(2) == 0)
    def _():
        h_ref[...] = jnp.zeros_like(h_ref)

    A_T = a_ref[...]                     # (ds, d)
    dtc = dt_ref[...]                    # (T, d)  already softplus(dt + bias)
    uc = u_ref[...]                      # (T, d)
    bcT = bc_ref[...]                    # (2*ds, T): rows [0:ds]=B, [ds:2ds]=C
    dtu = dtc * uc

    h = h_ref[...]
    y_rows = [None] * T
    order = range(T - 1, -1, -1) if reverse else range(T)
    for r in order:
        dA = jnp.exp(A_T * dtc[r:r + 1, :])                 # (ds, d)  VPU + EUP
        dBu = bcT[0:ds, r:r + 1] * dtu[r:r + 1, :]          # outer prod via bcast
        h = dA * h + dBu
        y_rows[r] = jnp.sum(bcT[ds:2 * ds, r:r + 1] * h,
                            axis=0, keepdims=True)          # (1, d)  sublane reduce
    h_ref[...] = h

    y = jnp.concatenate(y_rows, axis=0) + dd_ref[...] * uc  # dense (T, d) store
    if reverse:
        y = y + yprev_ref[...]
    y_ref[...] = y


def selective_scan_dir(u2, dts, bcs_t, A_T, Dp, T, reverse, y_prev=None):
    _, B, L, d = u2.shape
    ds = A_T.shape[1]
    nchunk = L // T
    k_off = 2 if reverse else 0

    def lblk(c):
        return (nchunk - 1 - c) if reverse else c

    in_specs = [
        pl.BlockSpec((None, None, T, d), lambda k, b, c: (k, b, lblk(c), 0)),
        pl.BlockSpec((None, None, T, d), lambda k, b, c: (k + k_off, b, lblk(c), 0)),
        pl.BlockSpec((None, None, None, 2 * ds, T),
                     lambda k, b, c: (k + k_off, b, lblk(c), 0, 0)),
        pl.BlockSpec((None, ds, d), lambda k, b, c: (k + k_off, 0, 0)),
        pl.BlockSpec((None, 1, d), lambda k, b, c: (k + k_off, 0, 0)),
    ]
    args = [u2, dts, bcs_t, A_T, Dp]
    io_alias = {}
    if reverse:
        in_specs.append(
            pl.BlockSpec((None, None, T, d), lambda k, b, c: (k, b, lblk(c), 0)))
        args.append(y_prev)
        io_alias = {5: 0}   # accumulate into the forward result in place

    return pl.pallas_call(
        functools.partial(scan_kernel, T=T, ds=ds, reverse=reverse),
        grid=(2, B, nchunk),
        in_specs=in_specs,
        out_specs=pl.BlockSpec((None, None, T, d),
                               lambda k, b, c: (k, b, lblk(c), 0)),
        out_shape=jax.ShapeDtypeStruct((2, B, L, d), jnp.float32),
        scratch_shapes=[pltpu.VMEM((ds, d), jnp.float32)],
        input_output_aliases=io_alias,
        compiler_params=pltpu.CompilerParams(
            dimension_semantics=("parallel", "parallel", "arbitrary")),
    )(*args)


# -------- kernel 5: out_norm (LayerNorm) + SiLU gate + out_proj + residual ----
def out_fused_kernel(y_ref, z_ref, g_ref, b_ref, w_ref, r_ref, o_ref, *, eps):
    y = y_ref[...]                                        # (TM, d_inner)
    mu = jnp.mean(y, axis=-1, keepdims=True)
    var = jnp.mean((y - mu) ** 2, axis=-1, keepdims=True)
    yn = (y - mu) * lax.rsqrt(var + eps)
    yn = yn * g_ref[...] + b_ref[...]
    z = z_ref[...]
    gated = (yn * (z * _sigmoid(z))).astype(jnp.bfloat16)
    o_ref[...] = jnp.dot(gated, w_ref[...],
                         preferred_element_type=jnp.float32) + r_ref[...]


def out_fused(y2d, z2d, gamma, beta, w_out_t, resid, eps=1e-5):
    M, d_inner = y2d.shape
    C = w_out_t.shape[1]
    tm = _pick_tile(M)
    return pl.pallas_call(
        functools.partial(out_fused_kernel, eps=eps),
        grid=(M // tm,),
        in_specs=[
            pl.BlockSpec((tm, d_inner), lambda m: (m, 0)),
            pl.BlockSpec((tm, d_inner), lambda m: (m, 0)),
            pl.BlockSpec((1, d_inner), lambda m: (0, 0)),
            pl.BlockSpec((1, d_inner), lambda m: (0, 0)),
            pl.BlockSpec((d_inner, C), lambda m: (0, 0)),
            pl.BlockSpec((tm, C), lambda m: (m, 0)),
        ],
        out_specs=pl.BlockSpec((tm, C), lambda m: (m, 0)),
        out_shape=jax.ShapeDtypeStruct((M, C), jnp.float32),
        compiler_params=pltpu.CompilerParams(dimension_semantics=("parallel",)),
    )(y2d, z2d, gamma.reshape(1, d_inner), beta.reshape(1, d_inner), w_out_t, resid)


# ------------------------------- full forward ---------------------------------
def vss_block_with_permute(x_nchw, p, d_inner, dt_rank, d_state):
    B, C, H, W = x_nchw.shape
    L = H * W
    K = 4
    T = _pick_chunk(L)

    x_bhwc = jnp.transpose(x_nchw, (0, 2, 3, 1)).astype(jnp.float32)   # PermuteToVSS
    x2d = x_bhwc.reshape(B * L, C)

    # ln_1 + in_proj, split into x / z halves (no lane-slice copies downstream)
    wx_t = jnp.transpose(p["w_in"][:d_inner, :]).astype(jnp.bfloat16)
    wz_t = jnp.transpose(p["w_in"][d_inner:, :]).astype(jnp.bfloat16)
    xc2d, z2d = ln_inproj(x2d, p["ln1_g"], p["ln1_b"], wx_t, wz_t, eps=1e-6)

    # depthwise conv + SiLU (zero halo added once by XLA, kernel only reads)
    w9c = p["w_conv"].reshape(d_inner, 9).T                            # (9, d_inner)
    x_pad = jnp.pad(xc2d.reshape(B, H, W, d_inner),
                    ((0, 0), (1, 1), (1, 1), (0, 0)))
    xconv = dwconv_silu(x_pad, w9c, p["b_conv"])

    # only two orientations are materialised (row-major / col-major);
    # the reversed directions are produced inside the scan via index maps.
    u_row = xconv.reshape(B, L, d_inner)
    u_col = jnp.transpose(xconv, (0, 2, 1, 3)).reshape(B, L, d_inner)
    u2 = jnp.stack([u_row, u_col], axis=0)                             # (2, B, L, d)

    # x_proj with dt_proj folded in (removes the degenerate rank-R matmul and
    # the unaligned lane slicing); softplus(dt + bias) fused here too.
    w_dt_fold = jnp.einsum("kdr,kre->ked", p["dt_w"],
                           p["x_proj_w"][:, :dt_rank, :],
                           precision=HIGHEST).astype(jnp.bfloat16)     # (K, d, d)
    w_bc = jnp.transpose(p["x_proj_w"][:, dt_rank:, :],
                         (0, 2, 1)).astype(jnp.bfloat16)               # (K, d, 2N)
    dtb = p["dt_b"].reshape(K, 1, d_inner)
    dts, bcs = xproj(u2.reshape(2, B * L, d_inner), w_dt_fold, w_bc, dtb, d_state)

    dts = dts.reshape(K, B, L, d_inner)
    # chunk-transposed B/C slab (K, B, L//T, 2*d_state, T): d_state lands on the
    # sublane axis so the scan needs no in-kernel transposes.
    bcs_t = jnp.transpose(
        bcs.reshape(K, B, L // T, T, 2 * d_state), (0, 1, 2, 4, 3))

    A_T = -jnp.exp(jnp.transpose(p["A_logs"], (0, 2, 1)))              # (K, ds, d)
    Dp = p["Ds"].reshape(K, 1, d_inner)

    ys_fwd = selective_scan_dir(u2, dts, bcs_t, A_T, Dp, T, reverse=False)
    ys = selective_scan_dir(u2, dts, bcs_t, A_T, Dp, T, reverse=True,
                            y_prev=ys_fwd)                             # (2, B, L, d)

    y_row = ys[0]                                                      # row-major (k=0 + k=2)
    y_col = jnp.transpose(ys[1].reshape(B, W, H, d_inner),
                          (0, 2, 1, 3)).reshape(B, L, d_inner)         # col-major (k=1 + k=3)
    y = (y_row + y_col).reshape(B * L, d_inner)

    w_out_t = jnp.transpose(p["w_out"]).astype(jnp.bfloat16)
    out2d = out_fused(y, z2d, p["lno_g"], p["lno_b"], w_out_t, x2d, eps=1e-5)
    out = out2d.reshape(B, H, W, C)
    return jnp.transpose(out, (0, 3, 1, 2))                            # PermuteBack


# --------------------------- pure-JAX reference --------------------------------
def reference_forward(x_nchw, p, d_inner, dt_rank, d_state):
    B, C, H, W = x_nchw.shape
    L = H * W
    x_bhwc = jnp.transpose(x_nchw, (0, 2, 3, 1)).astype(jnp.float32)
    mu = jnp.mean(x_bhwc, -1, keepdims=True)
    var = jnp.mean((x_bhwc - mu) ** 2, -1, keepdims=True)
    xn = (x_bhwc - mu) / jnp.sqrt(var + 1e-6) * p["ln1_g"] + p["ln1_b"]
    xz = jnp.matmul(xn, p["w_in"].T, precision=HIGHEST)
    xc, z = xz[..., :d_inner], xz[..., d_inner:]
    xpad = jnp.pad(xc, ((0, 0), (1, 1), (1, 1), (0, 0)))
    conv = jnp.zeros_like(xc) + p["b_conv"]
    for dy in range(3):
        for dx in range(3):
            conv = conv + xpad[:, dy:dy + H, dx:dx + W, :] * p["w_conv"][:, dy, dx]
    xconv = conv * _sigmoid(conv)
    x_hw = xconv.reshape(B, L, d_inner)
    x_wh = jnp.transpose(xconv, (0, 2, 1, 3)).reshape(B, L, d_inner)
    xs = jnp.stack([x_hw, x_wh, x_hw[:, ::-1], x_wh[:, ::-1]], axis=0)
    xdbl = jnp.einsum("kbld,kcd->kblc", xs, p["x_proj_w"], precision=HIGHEST)
    dts_r = xdbl[..., :dt_rank]
    Bs = xdbl[..., dt_rank:dt_rank + d_state]
    Cs = xdbl[..., dt_rank + d_state:]
    dts = jnp.einsum("kblr,kdr->kbld", dts_r, p["dt_w"], precision=HIGHEST)
    A = -jnp.exp(p["A_logs"])
    delta = _softplus(dts + p["dt_b"][:, None, None, :])

    def scan_one(u, dl, Bm, Cm, Ak, Dk):
        def step(h, inp):
            u_l, d_l, b_l, c_l = inp
            dA = jnp.exp(d_l[:, None] * Ak)
            h = dA * h + (d_l * u_l)[:, None] * b_l[None, :]
            y = (h * c_l[None, :]).sum(-1) + Dk * u_l
            return h, y
        _, ys = lax.scan(step, jnp.zeros((d_inner, d_state)), (u, dl, Bm, Cm))
        return ys

    scan_kb = jax.vmap(jax.vmap(scan_one, in_axes=(0, 0, 0, 0, None, None)),
                       in_axes=(0, 0, 0, 0, 0, 0))
    ys = scan_kb(xs, delta, Bs, Cs, A, p["Ds"])
    y1 = ys[0]
    y2 = ys[2][:, ::-1]
    y3 = jnp.transpose(ys[1].reshape(B, W, H, d_inner), (0, 2, 1, 3)).reshape(B, L, d_inner)
    y4 = jnp.transpose(ys[3][:, ::-1].reshape(B, W, H, d_inner),
                       (0, 2, 1, 3)).reshape(B, L, d_inner)
    y = (y1 + y2 + y3 + y4).reshape(B, H, W, d_inner)
    mu = jnp.mean(y, -1, keepdims=True)
    var = jnp.mean((y - mu) ** 2, -1, keepdims=True)
    yn = (y - mu) / jnp.sqrt(var + 1e-5) * p["lno_g"] + p["lno_b"]
    out = jnp.matmul(yn * (z * _sigmoid(z)), p["w_out"].T, precision=HIGHEST) + x_bhwc
    return jnp.transpose(out, (0, 3, 1, 2))


# ------------------------------ parameter init ---------------------------------
def init_params(key, d_model, d_state=16, expand=2,
                dt_min=0.001, dt_max=0.1, dt_init_floor=1e-4):
    d_inner = int(expand * d_model)
    dt_rank = math.ceil(d_model / 16)
    K = 4
    keys = jax.random.split(key, 8)
    p = {}
    p["ln1_g"] = jnp.ones((d_model,), jnp.float32)
    p["ln1_b"] = jnp.zeros((d_model,), jnp.float32)
    p["w_in"] = (jax.random.normal(keys[0], (2 * d_inner, d_model)) * 0.1).astype(jnp.float32)
    p["w_conv"] = (jax.random.normal(keys[1], (d_inner, 3, 3)) * 0.2).astype(jnp.float32)
    p["b_conv"] = (jax.random.normal(keys[2], (d_inner,)) * 0.05).astype(jnp.float32)
    p["x_proj_w"] = (jax.random.normal(keys[3], (K, dt_rank + 2 * d_state, d_inner)) * 0.1
                     ).astype(jnp.float32)
    dt_std = dt_rank ** -0.5
    p["dt_w"] = jax.random.uniform(keys[4], (K, d_inner, dt_rank),
                                   minval=-dt_std, maxval=dt_std).astype(jnp.float32)
    dt = jnp.exp(jax.random.uniform(keys[5], (K, d_inner)) *
                 (math.log(dt_max) - math.log(dt_min)) + math.log(dt_min))
    dt = jnp.maximum(dt, dt_init_floor)
    p["dt_b"] = (dt + jnp.log(-jnp.expm1(-dt))).astype(jnp.float32)
    Arange = jnp.arange(1, d_state + 1, dtype=jnp.float32)
    p["A_logs"] = jnp.log(jnp.broadcast_to(Arange, (K, d_inner, d_state)))
    p["Ds"] = jnp.ones((K, d_inner), jnp.float32)
    p["lno_g"] = jnp.ones((d_inner,), jnp.float32)
    p["lno_b"] = jnp.zeros((d_inner,), jnp.float32)
    p["w_out"] = (jax.random.normal(keys[6], (d_model, d_inner)) * 0.1).astype(jnp.float32)
    return p, d_inner, dt_rank, d_state


if __name__ == "__main__":
    # hidden_dim = 32 -> d_inner = 64, d_state = 16, dt_rank = 2
    B, C, H, W = 2, 32, 16, 16
    x = jax.random.normal(jax.random.PRNGKey(0), (B, C, H, W), dtype=jnp.float32)
    params, d_inner, dt_rank, d_state = init_params(jax.random.PRNGKey(42), C)

    fwd = jax.jit(lambda xx: vss_block_with_permute(xx, params, d_inner, dt_rank, d_state))
    out = jax.block_until_ready(fwd(x))

    ref_fn = jax.jit(lambda xx: reference_forward(xx, params, d_inner, dt_rank, d_state))
    ref = jax.block_until_ready(ref_fn(x))

    if out.shape != (B, C, H, W):
        raise AssertionError(f"bad output shape {out.shape}")
    if not jnp.allclose(out, ref, atol=2e-2, rtol=2e-2):
        raise AssertionError(
            f"mismatch vs reference, max abs diff = {float(jnp.max(jnp.abs(out - ref)))}")
    print("KERNEL_OK")
</pallas_src>

<mosaic_0001>
module attributes {stable_mosaic.version = 11 : i64} {
  func.func @ln_inproj_kernel(%arg0: i32, %arg1: memref<256x32xf32, #tpu.memory_space<vmem>>, %arg2: memref<1x32xf32, #tpu.memory_space<vmem>>, %arg3: memref<1x32xf32, #tpu.memory_space<vmem>>, %arg4: memref<32x64xbf16, #tpu.memory_space<vmem>>, %arg5: memref<32x64xbf16, #tpu.memory_space<vmem>>, %arg6: memref<256x64xf32, #tpu.memory_space<vmem>>, %arg7: memref<256x64xf32, #tpu.memory_space<vmem>>) attributes {dimension_semantics = [#tpu.dimension_semantics<parallel>], iteration_bounds = array<i64: 2>, scalar_prefetch = 0 : i64, scratch_operands = 0 : i64, tpu.core_type = #tpu.core_type<tc>, window_params = [{transform_indices = @transform_0, window_bounds = array<i64: 256, 32>}, {pipeline_mode = #tpu.pipeline_mode<synchronous>, transform_indices = @transform_1, window_bounds = array<i64: 1, 32>}, {pipeline_mode = #tpu.pipeline_mode<synchronous>, transform_indices = @transform_2, window_bounds = array<i64: 1, 32>}, {pipeline_mode = #tpu.pipeline_mode<synchronous>, transform_indices = @transform_3, window_bounds = array<i64: 32, 64>}, {pipeline_mode = #tpu.pipeline_mode<synchronous>, transform_indices = @transform_4, window_bounds = array<i64: 32, 64>}, {transform_indices = @transform_5, window_bounds = array<i64: 256, 64>}, {transform_indices = @transform_6, window_bounds = array<i64: 256, 64>}]} {
    %c0 = arith.constant 0 : index
    %c0_0 = arith.constant 0 : index
    %0 = vector.load %arg1[%c0, %c0_0] : memref<256x32xf32, #tpu.memory_space<vmem>>, vector<256x32xf32>
    %cst = arith.constant dense<0.000000e+00> : vector<256xf32>
    %1 = vector.multi_reduction <add>, %0, %cst [1] : vector<256x32xf32> to vector<256xf32>
    %2 = vector.shape_cast %1 : vector<256xf32> to vector<256x1xf32>
    %cst_1 = arith.constant 3.200000e+01 : f32
    %3 = vector.broadcast %cst_1 : f32 to vector<256x1xf32>
    %4 = arith.divf %2, %3 : vector<256x1xf32>
    %5 = vector.broadcast %4 : vector<256x1xf32> to vector<256x32xf32>
    %6 = arith.subf %0, %5 : vector<256x32xf32>
    %7 = arith.mulf %6, %6 : vector<256x32xf32>
    %cst_2 = arith.constant dense<0.000000e+00> : vector<256xf32>
    %8 = vector.multi_reduction <add>, %7, %cst_2 [1] : vector<256x32xf32> to vector<256xf32>
    %9 = vector.shape_cast %8 : vector<256xf32> to vector<256x1xf32>
    %cst_3 = arith.constant 3.200000e+01 : f32
    %10 = vector.broadcast %cst_3 : f32 to vector<256x1xf32>
    %11 = arith.divf %9, %10 : vector<256x1xf32>
    %12 = vector.broadcast %4 : vector<256x1xf32> to vector<256x32xf32>
    %13 = arith.subf %0, %12 : vector<256x32xf32>
    %cst_4 = arith.constant 9.99999997E-7 : f32
    %14 = vector.broadcast %cst_4 : f32 to vector<256x1xf32>
    %15 = arith.addf %11, %14 : vector<256x1xf32>
    %16 = math.rsqrt %15 : vector<256x1xf32>
    %17 = vector.broadcast %16 : vector<256x1xf32> to vector<256x32xf32>
    %18 = arith.mulf %13, %17 : vector<256x32xf32>
    %c0_5 = arith.constant 0 : index
    %c0_6 = arith.constant 0 : index
    %19 = vector.load %arg2[%c0_5, %c0_6] : memref<1x32xf32, #tpu.memory_space<vmem>>, vector<1x32xf32>
    %20 = vector.broadcast %19 : vector<1x32xf32> to vector<256x32xf32>
    %21 = arith.mulf %18, %20 : vector<256x32xf32>
    %c0_7 = arith.constant 0 : index
    %c0_8 = arith.constant 0 : index
    %22 = vector.load %arg3[%c0_7, %c0_8] : memref<1x32xf32, #tpu.memory_space<vmem>>, vector<1x32xf32>
    %23 = vector.broadcast %22 : vector<1x32xf32> to vector<256x32xf32>
    %24 = arith.addf %21, %23 : vector<256x32xf32>
    %25 = arith.truncf %24 : vector<256x32xf32> to vector<256x32xbf16>
    %c0_9 = arith.constant 0 : index
    %c0_10 = arith.constant 0 : index
    %26 = vector.load %arg4[%c0_9, %c0_10] : memref<32x64xbf16, #tpu.memory_space<vmem>>, vector<32x64xbf16>
    %cst_11 = arith.constant dense<0.000000e+00> : vector<256x64xf32>
    %27 = tpu.matmul %25, %26, %cst_11 {dimension_numbers = #tpu.dot_dimension_numbers<[1], [0], [0], [1], [0, 0, 1, 1], [], []>} : vector<256x32xbf16>, vector<32x64xbf16>, vector<256x64xf32> -> vector<256x64xf32>
    %c0_12 = arith.constant 0 : index
    %c0_13 = arith.constant 0 : index
    %28 = vector.load %arg6[%c0_12, %c0_13] : memref<256x64xf32, #tpu.memory_space<vmem>>, vector<256x64xf32>
    tpu.vector_store %arg6[%c0_12, %c0_13], %27 {strides = array<i32>} : memref<256x64xf32, #tpu.memory_space<vmem>>, vector<256x64xf32>,
    %c0_14 = arith.constant 0 : index
    %c0_15 = arith.constant 0 : index
    %29 = vector.load %arg5[%c0_14, %c0_15] : memref<32x64xbf16, #tpu.memory_space<vmem>>, vector<32x64xbf16>
    %cst_16 = arith.constant dense<0.000000e+00> : vector<256x64xf32>
    %30 = tpu.matmul %25, %29, %cst_16 {dimension_numbers = #tpu.dot_dimension_numbers<[1], [0], [0], [1], [0, 0, 1, 1], [], []>} : vector<256x32xbf16>, vector<32x64xbf16>, vector<256x64xf32> -> vector<256x64xf32>
    %c0_17 = arith.constant 0 : index
    %c0_18 = arith.constant 0 : index
    %31 = vector.load %arg7[%c0_17, %c0_18] : memref<256x64xf32, #tpu.memory_space<vmem>>, vector<256x64xf32>
    tpu.vector_store %arg7[%c0_17, %c0_18], %30 {strides = array<i32>} : memref<256x64xf32, #tpu.memory_space<vmem>>, vector<256x64xf32>,
    return
  }
  func.func @transform_0(%arg0: i32) -> (i32, i32) {
    %c0_i32 = arith.constant 0 : i32
    %c0_i32_0 = arith.constant 0 : i32
    return %arg0, %c0_i32 : i32, i32
  }
  func.func @transform_1(%arg0: i32) -> (i32, i32) {
    %c0_i32 = arith.constant 0 : i32
    %c0_i32_0 = arith.constant 0 : i32
    %c0_i32_1 = arith.constant 0 : i32
    return %c0_i32, %c0_i32_0 : i32, i32
  }
  func.func @transform_2(%arg0: i32) -> (i32, i32) {
    %c0_i32 = arith.constant 0 : i32
    %c0_i32_0 = arith.constant 0 : i32
    %c0_i32_1 = arith.constant 0 : i32
    return %c0_i32, %c0_i32_0 : i32, i32
  }
  func.func @transform_3(%arg0: i32) -> (i32, i32) {
    %c0_i32 = arith.constant 0 : i32
    %c0_i32_0 = arith.constant 0 : i32
    %c0_i32_1 = arith.constant 0 : i32
    return %c0_i32, %c0_i32_0 : i32, i32
  }
  func.func @transform_4(%arg0: i32) -> (i32, i32) {
    %c0_i32 = arith.constant 0 : i32
    %c0_i32_0 = arith.constant 0 : i32
    %c0_i32_1 = arith.constant 0 : i32
    return %c0_i32, %c0_i32_0 : i32, i32
  }
  func.func @transform_5(%arg0: i32) -> (i32, i32) {
    %c0_i32 = arith.constant 0 : i32
    %c0_i32_0 = arith.constant 0 : i32
    return %arg0, %c0_i32 : i32, i32
  }
  func.func @transform_6(%arg0: i32) -> (i32, i32) {
    %c0_i32 = arith.constant 0 : i32
    %c0_i32_0 = arith.constant 0 : i32
    return %arg0, %c0_i32 : i32, i32
  }
}

module attributes {stable_mosaic.version = 11 : i64} {
  func.func @dwconv_silu_kernel(%arg0: i32, %arg1: memref<1x18x18x64xf32, #tpu.memory_space<vmem>>, %arg2: memref<9x64xf32, #tpu.memory_space<vmem>>, %arg3: memref<1x64xf32, #tpu.memory_space<vmem>>, %arg4: memref<1x16x16x64xf32, #tpu.memory_space<vmem>>) attributes {dimension_semantics = [#tpu.dimension_semantics<parallel>], iteration_bounds = array<i64: 2>, scalar_prefetch = 0 : i64, scratch_operands = 0 : i64, tpu.core_type = #tpu.core_type<tc>, window_params = [{transform_indices = @transform_0, window_bounds = array<i64: 1, 18, 18, 64>}, {pipeline_mode = #tpu.pipeline_mode<synchronous>, transform_indices = @transform_1, window_bounds = array<i64: 9, 64>}, {pipeline_mode = #tpu.pipeline_mode<synchronous>, transform_indices = @transform_2, window_bounds = array<i64: 1, 64>}, {transform_indices = @transform_3, window_bounds = array<i64: 1, 16, 16, 64>}]} {
    %c0 = arith.constant 0 : index
    %c0_0 = arith.constant 0 : index
    %c0_1 = arith.constant 0 : index
    %c0_2 = arith.constant 0 : index
    %0 = vector.load %arg1[%c0, %c0_0, %c0_1, %c0_2] : memref<1x18x18x64xf32, #tpu.memory_space<vmem>>, vector<1x18x18x64xf32>
    %1 = vector.shape_cast %0 : vector<1x18x18x64xf32> to vector<18x18x64xf32>
    %c0_3 = arith.constant 0 : index
    %c0_4 = arith.constant 0 : index
    %2 = vector.load %arg2[%c0_3, %c0_4] : memref<9x64xf32, #tpu.memory_space<vmem>>, vector<9x64xf32>
    %cst = arith.constant 0.000000e+00 : f32
    %3 = vector.broadcast %cst : f32 to vector<16x16x64xf32>
    %c0_5 = arith.constant 0 : index
    %c0_6 = arith.constant 0 : index
    %4 = vector.load %arg3[%c0_5, %c0_6] : memref<1x64xf32, #tpu.memory_space<vmem>>, vector<1x64xf32>
    %5 = vector.shape_cast %4 : vector<1x64xf32> to vector<1x1x64xf32>
    %6 = vector.broadcast %5 : vector<1x1x64xf32> to vector<16x16x64xf32>
    %7 = arith.addf %3, %6 : vector<16x16x64xf32>
    %8 = vector.extract_strided_slice %1 {offsets = [0, 0, 0], sizes = [16, 16, 64], strides = [1, 1, 1]} : vector<18x18x64xf32> to vector<16x16x64xf32>
    %9 = vector.extract_strided_slice %2 {offsets = [0, 0], sizes = [1, 64], strides = [1, 1]} : vector<9x64xf32> to vector<1x64xf32>
    %10 = vector.shape_cast %9 : vector<1x64xf32> to vector<64xf32>
    %11 = vector.shape_cast %10 : vector<64xf32> to vector<1x1x64xf32>
    %12 = vector.broadcast %11 : vector<1x1x64xf32> to vector<16x16x64xf32>
    %13 = arith.mulf %8, %12 : vector<16x16x64xf32>
    %14 = arith.addf %7, %13 : vector<16x16x64xf32>
    %15 = vector.extract_strided_slice %1 {offsets = [0, 1, 0], sizes = [16, 16, 64], strides = [1, 1, 1]} : vector<18x18x64xf32> to vector<16x16x64xf32>
    %16 = vector.extract_strided_slice %2 {offsets = [1, 0], sizes = [1, 64], strides = [1, 1]} : vector<9x64xf32> to vector<1x64xf32>
    %17 = vector.shape_cast %16 : vector<1x64xf32> to vector<64xf32>
    %18 = vector.shape_cast %17 : vector<64xf32> to vector<1x1x64xf32>
    %19 = vector.broadcast %18 : vector<1x1x64xf32> to vector<16x16x64xf32>
    %20 = arith.mulf %15, %19 : vector<16x16x64xf32>
    %21 = arith.addf %14, %20 : vector<16x16x64xf32>
    %22 = vector.extract_strided_slice %1 {offsets = [0, 2, 0], sizes = [16, 16, 64], strides = [1, 1, 1]} : vector<18x18x64xf32> to vector<16x16x64xf32>
    %23 = vector.extract_strided_slice %2 {offsets = [2, 0], sizes = [1, 64], strides = [1, 1]} : vector<9x64xf32> to vector<1x64xf32>
    %24 = vector.shape_cast %23 : vector<1x64xf32> to vector<64xf32>
    %25 = vector.shape_cast %24 : vector<64xf32> to vector<1x1x64xf32>
    %26 = vector.broadcast %25 : vector<1x1x64xf32> to vector<16x16x64xf32>
    %27 = arith.mulf %22, %26 : vector<16x16x64xf32>
    %28 = arith.addf %21, %27 : vector<16x16x64xf32>
    %29 = vector.extract_strided_slice %1 {offsets = [1, 0, 0], sizes = [16, 16, 64], strides = [1, 1, 1]} : vector<18x18x64xf32> to vector<16x16x64xf32>
    %30 = vector.extract_strided_slice %2 {offsets = [3, 0], sizes = [1, 64], strides = [1, 1]} : vector<9x64xf32> to vector<1x64xf32>
    %31 = vector.shape_cast %30 : vector<1x64xf32> to vector<64xf32>
    %32 = vector.shape_cast %31 : vector<64xf32> to vector<1x1x64xf32>
    %33 = vector.broadcast %32 : vector<1x1x64xf32> to vector<16x16x64xf32>
    %34 = arith.mulf %29, %33 : vector<16x16x64xf32>
    %35 = arith.addf %28, %34 : vector<16x16x64xf32>
    %36 = vector.extract_strided_slice %1 {offsets = [1, 1, 0], sizes = [16, 16, 64], strides = [1, 1, 1]} : vector<18x18x64xf32> to vector<16x16x64xf32>
    %37 = vector.extract_strided_slice %2 {offsets = [4, 0], sizes = [1, 64], strides = [1, 1]} : vector<9x64xf32> to vector<1x64xf32>
    %38 = vector.shape_cast %37 : vector<1x64xf32> to vector<64xf32>
    %39 = vector.shape_cast %38 : vector<64xf32> to vector<1x1x64xf32>
    %40 = vector.broadcast %39 : vector<1x1x64xf32> to vector<16x16x64xf32>
    %41 = arith.mulf %36, %40 : vector<16x16x64xf32>
    %42 = arith.addf %35, %41 : vector<16x16x64xf32>
    %43 = vector.extract_strided_slice %1 {offsets = [1, 2, 0], sizes = [16, 16, 64], strides = [1, 1, 1]} : vector<18x18x64xf32> to vector<16x16x64xf32>
    %44 = vector.extract_strided_slice %2 {offsets = [5, 0], sizes = [1, 64], strides = [1, 1]} : vector<9x64xf32> to vector<1x64xf32>
    %45 = vector.shape_cast %44 : vector<1x64xf32> to vector<64xf32>
    %46 = vector.shape_cast %45 : vector<64xf32> to vector<1x1x64xf32>
    %47 = vector.broadcast %46 : vector<1x1x64xf32> to vector<16x16x64xf32>
    %48 = arith.mulf %43, %47 : vector<16x16x64xf32>
    %49 = arith.addf %42, %48 : vector<16x16x64xf32>
    %50 = vector.extract_strided_slice %1 {offsets = [2, 0, 0], sizes = [16, 16, 64], strides = [1, 1, 1]} : vector<18x18x64xf32> to vector<16x16x64xf32>
    %51 = vector.extract_strided_slice %2 {offsets = [6, 0], sizes = [1, 64], strides = [1, 1]} : vector<9x64xf32> to vector<1x64xf32>
    %52 = vector.shape_cast %51 : vector<1x64xf32> to vector<64xf32>
    %53 = vector.shape_cast %52 : vector<64xf32> to vector<1x1x64xf32>
    %54 = vector.broadcast %53 : vector<1x1x64xf32> to vector<16x16x64xf32>
    %55 = arith.mulf %50, %54 : vector<16x16x64xf32>
    %56 = arith.addf %49, %55 : vector<16x16x64xf32>
    %57 = vector.extract_strided_slice %1 {offsets = [2, 1, 0], sizes = [16, 16, 64], strides = [1, 1, 1]} : vector<18x18x64xf32> to vector<16x16x64xf32>
    %58 = vector.extract_strided_slice %2 {offsets = [7, 0], sizes = [1, 64], strides = [1, 1]} : vector<9x64xf32> to vector<1x64xf32>
    %59 = vector.shape_cast %58 : vector<1x64xf32> to vector<64xf32>
    %60 = vector.shape_cast %59 : vector<64xf32> to vector<1x1x64xf32>
    %61 = vector.broadcast %60 : vector<1x1x64xf32> to vector<16x16x64xf32>
    %62 = arith.mulf %57, %61 : vector<16x16x64xf32>
    %63 = arith.addf %56, %62 : vector<16x16x64xf32>
    %64 = vector.extract_strided_slice %1 {offsets = [2, 2, 0], sizes = [16, 16, 64], strides = [1, 1, 1]} : vector<18x18x64xf32> to vector<16x16x64xf32>
    %65 = vector.extract_strided_slice %2 {offsets = [8, 0], sizes = [1, 64], strides = [1, 1]} : vector<9x64xf32> to vector<1x64xf32>
    %66 = vector.shape_cast %65 : vector<1x64xf32> to vector<64xf32>
    %67 = vector.shape_cast %66 : vector<64xf32> to vector<1x1x64xf32>
    %68 = vector.broadcast %67 : vector<1x1x64xf32> to vector<16x16x64xf32>
    %69 = arith.mulf %64, %68 : vector<16x16x64xf32>
    %70 = arith.addf %63, %69 : vector<16x16x64xf32>
    %cst_7 = arith.constant 0.000000e+00 : f32
    %71 = vector.broadcast %cst_7 : f32 to vector<16x16x64xf32>
    %72 = arith.subf %71, %70 : vector<16x16x64xf32>
    %73 = math.exp %72 : vector<16x16x64xf32>
    %cst_8 = arith.constant 1.000000e+00 : f32
    %74 = vector.broadcast %cst_8 : f32 to vector<16x16x64xf32>
    %75 = arith.addf %74, %73 : vector<16x16x64xf32>
    %cst_9 = arith.constant 1.000000e+00 : f32
    %76 = vector.broadcast %cst_9 : f32 to vector<16x16x64xf32>
    %77 = arith.divf %76, %75 : vector<16x16x64xf32>
    %78 = arith.mulf %70, %77 : vector<16x16x64xf32>
    %c0_10 = arith.constant 0 : index
    %c0_11 = arith.constant 0 : index
    %c0_12 = arith.constant 0 : index
    %c0_13 = arith.constant 0 : index
    %79 = vector.load %arg4[%c0_10, %c0_11, %c0_12, %c0_13] : memref<1x16x16x64xf32, #tpu.memory_space<vmem>>, vector<1x16x16x64xf32>
    %80 = vector.shape_cast %79 : vector<1x16x16x64xf32> to vector<16x16x64xf32>
    %81 = vector.shape_cast %78 : vector<16x16x64xf32> to vector<1x16x16x64xf32>
    tpu.vector_store %arg4[%c0_10, %c0_11, %c0_12, %c0_13], %81 {strides = array<i32>} : memref<1x16x16x64xf32, #tpu.memory_space<vmem>>, vector<1x16x16x64xf32>,
    return
  }
  func.func @transform_0(%arg0: i32) -> (i32, i32, i32, i32) {
    %c0_i32 = arith.constant 0 : i32
    %c0_i32_0 = arith.constant 0 : i32
    %c0_i32_1 = arith.constant 0 : i32
    %c0_i32_2 = arith.constant 0 : i32
    return %arg0, %c0_i32, %c0_i32_0, %c0_i32_1 : i32, i32, i32, i32
  }
  func.func @transform_1(%arg0: i32) -> (i32, i32) {
    %c0_i32 = arith.constant 0 : i32
    %c0_i32_0 = arith.constant 0 : i32
    %c0_i32_1 = arith.constant 0 : i32
    return %c0_i32, %c0_i32_0 : i32, i32
  }
  func.func @transform_2(%arg0: i32) -> (i32, i32) {
    %c0_i32 = arith.constant 0 : i32
    %c0_i32_0 = arith.constant 0 : i32
    %c0_i32_1 = arith.constant 0 : i32
    return %c0_i32, %c0_i32_0 : i32, i32
  }
  func.func @transform_3(%arg0: i32) -> (i32, i32, i32, i32) {
    %c0_i32 = arith.constant 0 : i32
    %c0_i32_0 = arith.constant 0 : i32
    %c0_i32_1 = arith.constant 0 : i32
    %c0_i32_2 = arith.constant 0 : i32
    return %arg0, %c0_i32, %c0_i32_0, %c0_i32_1 : i32, i32, i32, i32
  }
}

module attributes {stable_mosaic.version = 11 : i64} {
  func.func @xproj_kernel(%arg0: i32, %arg1: i32, %arg2: memref<1x256x64xf32, #tpu.memory_space<vmem>>, %arg3: memref<1x64x64xbf16, #tpu.memory_space<vmem>>, %arg4: memref<1x64x32xbf16, #tpu.memory_space<vmem>>, %arg5: memref<1x1x64xf32, #tpu.memory_space<vmem>>, %arg6: memref<1x256x64xf32, #tpu.memory_space<vmem>>, %arg7: memref<1x256x32xf32, #tpu.memory_space<vmem>>) attributes {dimension_semantics = [#tpu.dimension_semantics<parallel>, #tpu.dimension_semantics<parallel>], iteration_bounds = array<i64: 4, 2>, scalar_prefetch = 0 : i64, scratch_operands = 0 : i64, tpu.core_type = #tpu.core_type<tc>, window_params = [{transform_indices = @transform_0, window_bounds = array<i64: 1, 256, 64>}, {transform_indices = @transform_1, window_bounds = array<i64: 1, 64, 64>}, {transform_indices = @transform_2, window_bounds = array<i64: 1, 64, 32>}, {transform_indices = @transform_3, window_bounds = array<i64: 1, 1, 64>}, {transform_indices = @transform_4, window_bounds = array<i64: 1, 256, 64>}, {transform_indices = @transform_5, window_bounds = array<i64: 1, 256, 32>}]} {
    %c0 = arith.constant 0 : index
    %c0_0 = arith.constant 0 : index
    %c0_1 = arith.constant 0 : index
    %0 = vector.load %arg2[%c0, %c0_0, %c0_1] : memref<1x256x64xf32, #tpu.memory_space<vmem>>, vector<1x256x64xf32>
    %1 = vector.shape_cast %0 : vector<1x256x64xf32> to vector<256x64xf32>
    %2 = arith.truncf %1 : vector<256x64xf32> to vector<256x64xbf16>
    %c0_2 = arith.constant 0 : index
    %c0_3 = arith.constant 0 : index
    %c0_4 = arith.constant 0 : index
    %3 = vector.load %arg3[%c0_2, %c0_3, %c0_4] : memref<1x64x64xbf16, #tpu.memory_space<vmem>>, vector<1x64x64xbf16>
    %4 = vector.shape_cast %3 : vector<1x64x64xbf16> to vector<64x64xbf16>
    %cst = arith.constant dense<0.000000e+00> : vector<256x64xf32>
    %5 = tpu.matmul %2, %4, %cst {dimension_numbers = #tpu.dot_dimension_numbers<[1], [0], [0], [1], [0, 0, 1, 1], [], []>} : vector<256x64xbf16>, vector<64x64xbf16>, vector<256x64xf32> -> vector<256x64xf32>
    %c0_5 = arith.constant 0 : index
    %c0_6 = arith.constant 0 : index
    %c0_7 = arith.constant 0 : index
    %6 = vector.load %arg5[%c0_5, %c0_6, %c0_7] : memref<1x1x64xf32, #tpu.memory_space<vmem>>, vector<1x1x64xf32>
    %7 = vector.shape_cast %6 : vector<1x1x64xf32> to vector<1x64xf32>
    %8 = vector.broadcast %7 : vector<1x64xf32> to vector<256x64xf32>
    %9 = arith.addf %5, %8 : vector<256x64xf32>
    %cst_8 = arith.constant 2.000000e+01 : f32
    %10 = vector.broadcast %cst_8 : f32 to vector<256x64xf32>
    %11 = arith.cmpf ogt, %9, %10 : vector<256x64xf32>
    %cst_9 = arith.constant 2.000000e+01 : f32
    %12 = vector.broadcast %cst_9 : f32 to vector<256x64xf32>
    %13 = arith.minimumf %9, %12 : vector<256x64xf32>
    %14 = math.exp %13 : vector<256x64xf32>
    %cst_10 = arith.constant 1.000000e+00 : f32
    %15 = vector.broadcast %cst_10 : f32 to vector<256x64xf32>
    %16 = arith.addf %15, %14 : vector<256x64xf32>
    %17 = math.log %16 : vector<256x64xf32>
    %18 = arith.select %11, %9, %17 : vector<256x64xi1>, vector<256x64xf32>
    %c0_11 = arith.constant 0 : index
    %c0_12 = arith.constant 0 : index
    %c0_13 = arith.constant 0 : index
    %19 = vector.load %arg6[%c0_11, %c0_12, %c0_13] : memref<1x256x64xf32, #tpu.memory_space<vmem>>, vector<1x256x64xf32>
    %20 = vector.shape_cast %19 : vector<1x256x64xf32> to vector<256x64xf32>
    %21 = vector.shape_cast %18 : vector<256x64xf32> to vector<1x256x64xf32>
    tpu.vector_store %arg6[%c0_11, %c0_12, %c0_13], %21 {strides = array<i32>} : memref<1x256x64xf32, #tpu.memory_space<vmem>>, vector<1x256x64xf32>,
    %c0_14 = arith.constant 0 : index
    %c0_15 = arith.constant 0 : index
    %c0_16 = arith.constant 0 : index
    %22 = vector.load %arg4[%c0_14, %c0_15, %c0_16] : memref<1x64x32xbf16, #tpu.memory_space<vmem>>, vector<1x64x32xbf16>
    %23 = vector.shape_cast %22 : vector<1x64x32xbf16> to vector<64x32xbf16>
    %cst_17 = arith.constant dense<0.000000e+00> : vector<256x32xf32>
    %24 = tpu.matmul %2, %23, %cst_17 {dimension_numbers = #tpu.dot_dimension_numbers<[1], [0], [0], [1], [0, 0, 1, 1], [], []>} : vector<256x64xbf16>, vector<64x32xbf16>, vector<256x32xf32> -> vector<256x32xf32>
    %c0_18 = arith.constant 0 : index
    %c0_19 = arith.constant 0 : index
    %c0_20 = arith.constant 0 : index
    %25 = vector.load %arg7[%c0_18, %c0_19, %c0_20] : memref<1x256x32xf32, #tpu.memory_space<vmem>>, vector<1x256x32xf32>
    %26 = vector.shape_cast %25 : vector<1x256x32xf32> to vector<256x32xf32>
    %27 = vector.shape_cast %24 : vector<256x32xf32> to vector<1x256x32xf32>
    tpu.vector_store %arg7[%c0_18, %c0_19, %c0_20], %27 {strides = array<i32>} : memref<1x256x32xf32, #tpu.memory_space<vmem>>, vector<1x256x32xf32>,
    return
  }
  func.func @transform_0(%arg0: i32, %arg1: i32) -> (i32, i32, i32) {
    %c2_i32 = arith.constant 2 : i32
    %c0_i32 = arith.constant 0 : i32
    %0 = arith.cmpi eq, %c2_i32, %c0_i32 : i32
    %c1_i32 = arith.constant 1 : i32
    %1 = arith.select %0, %c1_i32, %c2_i32 : i32
    %2 = arith.remsi %arg0, %1 : i32
    %c0_i32_0 = arith.constant 0 : i32
    %3 = arith.cmpi ne, %2, %c0_i32_0 : i32
    %c0_i32_1 = arith.constant 0 : i32
    %4 = arith.cmpi slt, %2, %c0_i32_1 : i32
    %c0_i32_2 = arith.constant 0 : i32
    %5 = arith.cmpi slt, %1, %c0_i32_2 : i32
    %6 = arith.xori %4, %5 : i1
    %7 = arith.andi %6, %3 : i1
    %8 = arith.addi %2, %1 : i32
    %9 = arith.select %7, %8, %2 : i32
    %c0_i32_3 = arith.constant 0 : i32
    %c0_i32_4 = arith.constant 0 : i32
    return %9, %arg1, %c0_i32_3 : i32, i32, i32
  }
  func.func @transform_1(%arg0: i32, %arg1: i32) -> (i32, i32, i32) {
    %c0_i32 = arith.constant 0 : i32
    %c0_i32_0 = arith.constant 0 : i32
    %c0_i32_1 = arith.constant 0 : i32
    return %arg0, %c0_i32, %c0_i32_0 : i32, i32, i32
  }
  func.func @transform_2(%arg0: i32, %arg1: i32) -> (i32, i32, i32) {
    %c0_i32 = arith.constant 0 : i32
    %c0_i32_0 = arith.constant 0 : i32
    %c0_i32_1 = arith.constant 0 : i32
    return %arg0, %c0_i32, %c0_i32_0 : i32, i32, i32
  }
  func.func @transform_3(%arg0: i32, %arg1: i32) -> (i32, i32, i32) {
    %c0_i32 = arith.constant 0 : i32
    %c0_i32_0 = arith.constant 0 : i32
    %c0_i32_1 = arith.constant 0 : i32
    return %arg0, %c0_i32, %c0_i32_0 : i32, i32, i32
  }
  func.func @transform_4(%arg0: i32, %arg1: i32) -> (i32, i32, i32) {
    %c0_i32 = arith.constant 0 : i32
    %c0_i32_0 = arith.constant 0 : i32
    return %arg0, %arg1, %c0_i32 : i32, i32, i32
  }
  func.func @transform_5(%arg0: i32, %arg1: i32) -> (i32, i32, i32) {
    %c0_i32 = arith.constant 0 : i32
    %c0_i32_0 = arith.constant 0 : i32
    return %arg0, %arg1, %c0_i32 : i32, i32, i32
  }
}

module attributes {stable_mosaic.version = 11 : i64} {
  func.func @scan_kernel(%arg0: i32, %arg1: i32, %arg2: i32, %arg3: memref<1x1x16x64xf32, #tpu.memory_space<vmem>>, %arg4: memref<1x1x16x64xf32, #tpu.memory_space<vmem>>, %arg5: memref<1x1x1x32x16xf32, #tpu.memory_space<vmem>>, %arg6: memref<1x16x64xf32, #tpu.memory_space<vmem>>, %arg7: memref<1x1x64xf32, #tpu.memory_space<vmem>>, %arg8: memref<1x1x16x64xf32, #tpu.memory_space<vmem>>, %arg9: memref<16x64xf32, #tpu.memory_space<vmem>>) attributes {dimension_semantics = [#tpu.dimension_semantics<parallel>, #tpu.dimension_semantics<parallel>, #tpu.dimension_semantics<arbitrary>], iteration_bounds = array<i64: 2, 2, 16>, scalar_prefetch = 0 : i64, scratch_operands = 1 : i64, tpu.core_type = #tpu.core_type<tc>, window_params = [{transform_indices = @transform_0, window_bounds = array<i64: 1, 1, 16, 64>}, {transform_indices = @transform_1, window_bounds = array<i64: 1, 1, 16, 64>}, {transform_indices = @transform_2, window_bounds = array<i64: 1, 1, 1, 32, 16>}, {transform_indices = @transform_3, window_bounds = array<i64: 1, 16, 64>}, {transform_indices = @transform_4, window_bounds = array<i64: 1, 1, 64>}, {transform_indices = @transform_5, window_bounds = array<i64: 1, 1, 16, 64>}]} {
    %c0_i32 = arith.constant 0 : i32
    %0 = arith.cmpi eq, %arg2, %c0_i32 : i32
    %1 = arith.extui %0 : i1 to i32
    %c0_i32_0 = arith.constant 0 : i32
    %2 = arith.cmpi ne, %1, %c0_i32_0 : i32
    scf.if %2 {
      %cst_42 = arith.constant 0.000000e+00 : f32
      %279 = vector.broadcast %cst_42 : f32 to vector<16x64xf32>
      %c0_43 = arith.constant 0 : index
      %c0_44 = arith.constant 0 : index
      %280 = vector.load %arg9[%c0_43, %c0_44] : memref<16x64xf32, #tpu.memory_space<vmem>>, vector<16x64xf32>
      tpu.vector_store %arg9[%c0_43, %c0_44], %279 {strides = array<i32>} : memref<16x64xf32, #tpu.memory_space<vmem>>, vector<16x64xf32>,
    } else {
    }
    %c0 = arith.constant 0 : index
    %c0_1 = arith.constant 0 : index
    %c0_2 = arith.constant 0 : index
    %3 = vector.load %arg6[%c0, %c0_1, %c0_2] : memref<1x16x64xf32, #tpu.memory_space<vmem>>, vector<1x16x64xf32>
    %4 = vector.shape_cast %3 : vector<1x16x64xf32> to vector<16x64xf32>
    %c0_3 = arith.constant 0 : index
    %c0_4 = arith.constant 0 : index
    %c0_5 = arith.constant 0 : index
    %c0_6 = arith.constant 0 : index
    %5 = vector.load %arg4[%c0_3, %c0_4, %c0_5, %c0_6] : memref<1x1x16x64xf32, #tpu.memory_space<vmem>>, vector<1x1x16x64xf32>
    %6 = vector.shape_cast %5 : vector<1x1x16x64xf32> to vector<16x64xf32>
    %c0_7 = arith.constant 0 : index
    %c0_8 = arith.constant 0 : index
    %c0_9 = arith.constant 0 : index
    %c0_10 = arith.constant 0 : index
    %7 = vector.load %arg3[%c0_7, %c0_8, %c0_9, %c0_10] : memref<1x1x16x64xf32, #tpu.memory_space<vmem>>, vector<1x1x16x64xf32>
    %8 = vector.shape_cast %7 : vector<1x1x16x64xf32> to vector<16x64xf32>
    %c0_11 = arith.constant 0 : index
    %c0_12 = arith.constant 0 : index
    %c0_13 = arith.constant 0 : index
    %c0_14 = arith.constant 0 : index
    %c0_15 = arith.constant 0 : index
    %9 = vector.load %arg5[%c0_11, %c0_12, %c0_13, %c0_14, %c0_15] : memref<1x1x1x32x16xf32, #tpu.memory_space<vmem>>, vector<1x1x1x32x16xf32>
    %10 = vector.shape_cast %9 : vector<1x1x1x32x16xf32> to vector<32x16xf32>
    %11 = arith.mulf %6, %8 : vector<16x64xf32>
    %c0_16 = arith.constant 0 : index
    %c0_17 = arith.constant 0 : index
    %12 = vector.load %arg9[%c0_16, %c0_17] : memref<16x64xf32, #tpu.memory_space<vmem>>, vector<16x64xf32>
    %13 = vector.extract_strided_slice %6 {offsets = [0, 0], sizes = [1, 64], strides = [1, 1]} : vector<16x64xf32> to vector<1x64xf32>
    %14 = vector.broadcast %13 : vector<1x64xf32> to vector<16x64xf32>
    %15 = arith.mulf %4, %14 : vector<16x64xf32>
    %16 = math.exp %15 : vector<16x64xf32>
    %17 = vector.extract_strided_slice %10 {offsets = [0, 0], sizes = [16, 1], strides = [1, 1]} : vector<32x16xf32> to vector<16x1xf32>
    %18 = vector.extract_strided_slice %11 {offsets = [0, 0], sizes = [1, 64], strides = [1, 1]} : vector<16x64xf32> to vector<1x64xf32>
    %19 = vector.broadcast %17 : vector<16x1xf32> to vector<16x64xf32>
    %20 = vector.broadcast %18 : vector<1x64xf32> to vector<16x64xf32>
    %21 = arith.mulf %19, %20 : vector<16x64xf32>
    %22 = arith.mulf %16, %12 : vector<16x64xf32>
    %23 = arith.addf %22, %21 : vector<16x64xf32>
    %24 = vector.extract_strided_slice %10 {offsets = [16, 0], sizes = [16, 1], strides = [1, 1]} : vector<32x16xf32> to vector<16x1xf32>
    %25 = vector.broadcast %24 : vector<16x1xf32> to vector<16x64xf32>
    %26 = arith.mulf %25, %23 : vector<16x64xf32>
    %cst = arith.constant dense<0.000000e+00> : vector<64xf32>
    %27 = vector.multi_reduction <add>, %26, %cst [0] : vector<16x64xf32> to vector<64xf32>
    %28 = vector.shape_cast %27 : vector<64xf32> to vector<1x64xf32>
    %29 = vector.extract_strided_slice %6 {offsets = [1, 0], sizes = [1, 64], strides = [1, 1]} : vector<16x64xf32> to vector<1x64xf32>
    %30 = vector.broadcast %29 : vector<1x64xf32> to vector<16x64xf32>
    %31 = arith.mulf %4, %30 : vector<16x64xf32>
    %32 = math.exp %31 : vector<16x64xf32>
    %33 = vector.extract_strided_slice %10 {offsets = [0, 1], sizes = [16, 1], strides = [1, 1]} : vector<32x16xf32> to vector<16x1xf32>
    %34 = vector.extract_strided_slice %11 {offsets = [1, 0], sizes = [1, 64], strides = [1, 1]} : vector<16x64xf32> to vector<1x64xf32>
    %35 = vector.broadcast %33 : vector<16x1xf32> to vector<16x64xf32>
    %36 = vector.broadcast %34 : vector<1x64xf32> to vector<16x64xf32>
    %37 = arith.mulf %35, %36 : vector<16x64xf32>
    %38 = arith.mulf %32, %23 : vector<16x64xf32>
    %39 = arith.addf %38, %37 : vector<16x64xf32>
    %40 = vector.extract_strided_slice %10 {offsets = [16, 1], sizes = [16, 1], strides = [1, 1]} : vector<32x16xf32> to vector<16x1xf32>
    %41 = vector.broadcast %40 : vector<16x1xf32> to vector<16x64xf32>
    %42 = arith.mulf %41, %39 : vector<16x64xf32>
    %cst_18 = arith.constant dense<0.000000e+00> : vector<64xf32>
    %43 = vector.multi_reduction <add>, %42, %cst_18 [0] : vector<16x64xf32> to vector<64xf32>
    %44 = vector.shape_cast %43 : vector<64xf32> to vector<1x64xf32>
    %45 = vector.extract_strided_slice %6 {offsets = [2, 0], sizes = [1, 64], strides = [1, 1]} : vector<16x64xf32> to vector<1x64xf32>
    %46 = vector.broadcast %45 : vector<1x64xf32> to vector<16x64xf32>
    %47 = arith.mulf %4, %46 : vector<16x64xf32>
    %48 = math.exp %47 : vector<16x64xf32>
    %49 = vector.extract_strided_slice %10 {offsets = [0, 2], sizes = [16, 1], strides = [1, 1]} : vector<32x16xf32> to vector<16x1xf32>
    %50 = vector.extract_strided_slice %11 {offsets = [2, 0], sizes = [1, 64], strides = [1, 1]} : vector<16x64xf32> to vector<1x64xf32>
    %51 = vector.broadcast %49 : vector<16x1xf32> to vector<16x64xf32>
    %52 = vector.broadcast %50 : vector<1x64xf32> to vector<16x64xf32>
    %53 = arith.mulf %51, %52 : vector<16x64xf32>
    %54 = arith.mulf %48, %39 : vector<16x64xf32>
    %55 = arith.addf %54, %53 : vector<16x64xf32>
    %56 = vector.extract_strided_slice %10 {offsets = [16, 2], sizes = [16, 1], strides = [1, 1]} : vector<32x16xf32> to vector<16x1xf32>
    %57 = vector.broadcast %56 : vector<16x1xf32> to vector<16x64xf32>
    %58 = arith.mulf %57, %55 : vector<16x64xf32>
    %cst_19 = arith.constant dense<0.000000e+00> : vector<64xf32>
    %59 = vector.multi_reduction <add>, %58, %cst_19 [0] : vector<16x64xf32> to vector<64xf32>
    %60 = vector.shape_cast %59 : vector<64xf32> to vector<1x64xf32>
    %61 = vector.extract_strided_slice %6 {offsets = [3, 0], sizes = [1, 64], strides = [1, 1]} : vector<16x64xf32> to vector<1x64xf32>
    %62 = vector.broadcast %61 : vector<1x64xf32> to vector<16x64xf32>
    %63 = arith.mulf %4, %62 : vector<16x64xf32>
    %64 = math.exp %63 : vector<16x64xf32>
    %65 = vector.extract_strided_slice %10 {offsets = [0, 3], sizes = [16, 1], strides = [1, 1]} : vector<32x16xf32> to vector<16x1xf32>
    %66 = vector.extract_strided_slice %11 {offsets = [3, 0], sizes = [1, 64], strides = [1, 1]} : vector<16x64xf32> to vector<1x64xf32>
    %67 = vector.broadcast %65 : vector<16x1xf32> to vector<16x64xf32>
    %68 = vector.broadcast %66 : vector<1x64xf32> to vector<16x64xf32>
    %69 = arith.mulf %67, %68 : vector<16x64xf32>
    %70 = arith.mulf %64, %55 : vector<16x64xf32>
    %71 = arith.addf %70, %69 : vector<16x64xf32>
    %72 = vector.extract_strided_slice %10 {offsets = [16, 3], sizes = [16, 1], strides = [1, 1]} : vector<32x16xf32> to vector<16x1xf32>
    %73 = vector.broadcast %72 : vector<16x1xf32> to vector<16x64xf32>
    %74 = arith.mulf %73, %71 : vector<16x64xf32>
    %cst_20 = arith.constant dense<0.000000e+00> : vector<64xf32>
    %75 = vector.multi_reduction <add>, %74, %cst_20 [0] : vector<16x64xf32> to vector<64xf32>
    %76 = vector.shape_cast %75 : vector<64xf32> to vector<1x64xf32>
    %77 = vector.extract_strided_slice %6 {offsets = [4, 0], sizes = [1, 64], strides = [1, 1]} : vector<16x64xf32> to vector<1x64xf32>
    %78 = vector.broadcast %77 : vector<1x64xf32> to vector<16x64xf32>
    %79 = arith.mulf %4, %78 : vector<16x64xf32>
    %80 = math.exp %79 : vector<16x64xf32>
    %81 = vector.extract_strided_slice %10 {offsets = [0, 4], sizes = [16, 1], strides = [1, 1]} : vector<32x16xf32> to vector<16x1xf32>
    %82 = vector.extract_strided_slice %11 {offsets = [4, 0], sizes = [1, 64], strides = [1, 1]} : vector<16x64xf32> to vector<1x64xf32>
    %83 = vector.broadcast %81 : vector<16x1xf32> to vector<16x64xf32>
    %84 = vector.broadcast %82 : vector<1x64xf32> to vector<16x64xf32>
    %85 = arith.mulf %83, %84 : vector<16x64xf32>
    %86 = arith.mulf %80, %71 : vector<16x64xf32>
    %87 = arith.addf %86, %85 : vector<16x64xf32>
    %88 = vector.extract_strided_slice %10 {offsets = [16, 4], sizes = [16, 1], strides = [1, 1]} : vector<32x16xf32> to vector<16x1xf32>
    %89 = vector.broadcast %88 : vector<16x1xf32> to vector<16x64xf32>
    %90 = arith.mulf %89, %87 : vector<16x64xf32>
    %cst_21 = arith.constant dense<0.000000e+00> : vector<64xf32>
    %91 = vector.multi_reduction <add>, %90, %cst_21 [0] : vector<16x64xf32> to vector<64xf32>
    %92 = vector.shape_cast %91 : vector<64xf32> to vector<1x64xf32>
    %93 = vector.extract_strided_slice %6 {offsets = [5, 0], sizes = [1, 64], strides = [1, 1]} : vector<16x64xf32> to vector<1x64xf32>
    %94 = vector.broadcast %93 : vector<1x64xf32> to vector<16x64xf32>
    %95 = arith.mulf %4, %94 : vector<16x64xf32>
    %96 = math.exp %95 : vector<16x64xf32>
    %97 = vector.extract_strided_slice %10 {offsets = [0, 5], sizes = [16, 1], strides = [1, 1]} : vector<32x16xf32> to vector<16x1xf32>
    %98 = vector.extract_strided_slice %11 {offsets = [5, 0], sizes = [1, 64], strides = [1, 1]} : vector<16x64xf32> to vector<1x64xf32>
    %99 = vector.broadcast %97 : vector<16x1xf32> to vector<16x64xf32>
    %100 = vector.broadcast %98 : vector<1x64xf32> to vector<16x64xf32>
    %101 = arith.mulf %99, %100 : vector<16x64xf32>
    %102 = arith.mulf %96, %87 : vector<16x64xf32>
    %103 = arith.addf %102, %101 : vector<16x64xf32>
    %104 = vector.extract_strided_slice %10 {offsets = [16, 5], sizes = [16, 1], strides = [1, 1]} : vector<32x16xf32> to vector<16x1xf32>
    %105 = vector.broadcast %104 : vector<16x1xf32> to vector<16x64xf32>
    %106 = arith.mulf %105, %103 : vector<16x64xf32>
    %cst_22 = arith.constant dense<0.000000e+00> : vector<64xf32>
    %107 = vector.multi_reduction <add>, %106, %cst_22 [0] : vector<16x64xf32> to vector<64xf32>
    %108 = vector.shape_cast %107 : vector<64xf32> to vector<1x64xf32>
    %109 = vector.extract_strided_slice %6 {offsets = [6, 0], sizes = [1, 64], strides = [1, 1]} : vector<16x64xf32> to vector<1x64xf32>
    %110 = vector.broadcast %109 : vector<1x64xf32> to vector<16x64xf32>
    %111 = arith.mulf %4, %110 : vector<16x64xf32>
    %112 = math.exp %111 : vector<16x64xf32>
    %113 = vector.extract_strided_slice %10 {offsets = [0, 6], sizes = [16, 1], strides = [1, 1]} : vector<32x16xf32> to vector<16x1xf32>
    %114 = vector.extract_strided_slice %11 {offsets = [6, 0], sizes = [1, 64], strides = [1, 1]} : vector<16x64xf32> to vector<1x64xf32>
    %115 = vector.broadcast %113 : vector<16x1xf32> to vector<16x64xf32>
    %116 = vector.broadcast %114 : vector<1x64xf32> to vector<16x64xf32>
    %117 = arith.mulf %115, %116 : vector<16x64xf32>
    %118 = arith.mulf %112, %103 : vector<16x64xf32>
    %119 = arith.addf %118, %117 : vector<16x64xf32>
    %120 = vector.extract_strided_slice %10 {offsets = [16, 6], sizes = [16, 1], strides = [1, 1]} : vector<32x16xf32> to vector<16x1xf32>
    %121 = vector.broadcast %120 : vector<16x1xf32> to vector<16x64xf32>
    %122 = arith.mulf %121, %119 : vector<16x64xf32>
    %cst_23 = arith.constant dense<0.000000e+00> : vector<64xf32>
    %123 = vector.multi_reduction <add>, %122, %cst_23 [0] : vector<16x64xf32> to vector<64xf32>
    %124 = vector.shape_cast %123 : vector<64xf32> to vector<1x64xf32>
    %125 = vector.extract_strided_slice %6 {offsets = [7, 0], sizes = [1, 64], strides = [1, 1]} : vector<16x64xf32> to vector<1x64xf32>
    %126 = vector.broadcast %125 : vector<1x64xf32> to vector<16x64xf32>
    %127 = arith.mulf %4, %126 : vector<16x64xf32>
    %128 = math.exp %127 : vector<16x64xf32>
    %129 = vector.extract_strided_slice %10 {offsets = [0, 7], sizes = [16, 1], strides = [1, 1]} : vector<32x16xf32> to vector<16x1xf32>
    %130 = vector.extract_strided_slice %11 {offsets = [7, 0], sizes = [1, 64], strides = [1, 1]} : vector<16x64xf32> to vector<1x64xf32>
    %131 = vector.broadcast %129 : vector<16x1xf32> to vector<16x64xf32>
    %132 = vector.broadcast %130 : vector<1x64xf32> to vector<16x64xf32>
    %133 = arith.mulf %131, %132 : vector<16x64xf32>
    %134 = arith.mulf %128, %119 : vector<16x64xf32>
    %135 = arith.addf %134, %133 : vector<16x64xf32>
    %136 = vector.extract_strided_slice %10 {offsets = [16, 7], sizes = [16, 1], strides = [1, 1]} : vector<32x16xf32> to vector<16x1xf32>
    %137 = vector.broadcast %136 : vector<16x1xf32> to vector<16x64xf32>
    %138 = arith.mulf %137, %135 : vector<16x64xf32>
    %cst_24 = arith.constant dense<0.000000e+00> : vector<64xf32>
    %139 = vector.multi_reduction <add>, %138, %cst_24 [0] : vector<16x64xf32> to vector<64xf32>
    %140 = vector.shape_cast %139 : vector<64xf32> to vector<1x64xf32>
    %141 = vector.extract_strided_slice %6 {offsets = [8, 0], sizes = [1, 64], strides = [1, 1]} : vector<16x64xf32> to vector<1x64xf32>
    %142 = vector.broadcast %141 : vector<1x64xf32> to vector<16x64xf32>
    %143 = arith.mulf %4, %142 : vector<16x64xf32>
    %144 = math.exp %143 : vector<16x64xf32>
    %145 = vector.extract_strided_slice %10 {offsets = [0, 8], sizes = [16, 1], strides = [1, 1]} : vector<32x16xf32> to vector<16x1xf32>
    %146 = vector.extract_strided_slice %11 {offsets = [8, 0], sizes = [1, 64], strides = [1, 1]} : vector<16x64xf32> to vector<1x64xf32>
    %147 = vector.broadcast %145 : vector<16x1xf32> to vector<16x64xf32>
    %148 = vector.broadcast %146 : vector<1x64xf32> to vector<16x64xf32>
    %149 = arith.mulf %147, %148 : vector<16x64xf32>
    %150 = arith.mulf %144, %135 : vector<16x64xf32>
    %151 = arith.addf %150, %149 : vector<16x64xf32>
    %152 = vector.extract_strided_slice %10 {offsets = [16, 8], sizes = [16, 1], strides = [1, 1]} : vector<32x16xf32> to vector<16x1xf32>
    %153 = vector.broadcast %152 : vector<16x1xf32> to vector<16x64xf32>
    %154 = arith.mulf %153, %151 : vector<16x64xf32>
    %cst_25 = arith.constant dense<0.000000e+00> : vector<64xf32>
    %155 = vector.multi_reduction <add>, %154, %cst_25 [0] : vector<16x64xf32> to vector<64xf32>
    %156 = vector.shape_cast %155 : vector<64xf32> to vector<1x64xf32>
    %157 = vector.extract_strided_slice %6 {offsets = [9, 0], sizes = [1, 64], strides = [1, 1]} : vector<16x64xf32> to vector<1x64xf32>
    %158 = vector.broadcast %157 : vector<1x64xf32> to vector<16x64xf32>
    %159 = arith.mulf %4, %158 : vector<16x64xf32>
    %160 = math.exp %159 : vector<16x64xf32>
    %161 = vector.extract_strided_slice %10 {offsets = [0, 9], sizes = [16, 1], strides = [1, 1]} : vector<32x16xf32> to vector<16x1xf32>
    %162 = vector.extract_strided_slice %11 {offsets = [9, 0], sizes = [1, 64], strides = [1, 1]} : vector<16x64xf32> to vector<1x64xf32>
    %163 = vector.broadcast %161 : vector<16x1xf32> to vector<16x64xf32>
    %164 = vector.broadcast %162 : vector<1x64xf32> to vector<16x64xf32>
    %165 = arith.mulf %163, %164 : vector<16x64xf32>
    %166 = arith.mulf %160, %151 : vector<16x64xf32>
    %167 = arith.addf %166, %165 : vector<16x64xf32>
    %168 = vector.extract_strided_slice %10 {offsets = [16, 9], sizes = [16, 1], strides = [1, 1]} : vector<32x16xf32> to vector<16x1xf32>
    %169 = vector.broadcast %168 : vector<16x1xf32> to vector<16x64xf32>
    %170 = arith.mulf %169, %167 : vector<16x64xf32>
    %cst_26 = arith.constant dense<0.000000e+00> : vector<64xf32>
    %171 = vector.multi_reduction <add>, %170, %cst_26 [0] : vector<16x64xf32> to vector<64xf32>
    %172 = vector.shape_cast %171 : vector<64xf32> to vector<1x64xf32>
    %173 = vector.extract_strided_slice %6 {offsets = [10, 0], sizes = [1, 64], strides = [1, 1]} : vector<16x64xf32> to vector<1x64xf32>
    %174 = vector.broadcast %173 : vector<1x64xf32> to vector<16x64xf32>
    %175 = arith.mulf %4, %174 : vector<16x64xf32>
    %176 = math.exp %175 : vector<16x64xf32>
    %177 = vector.extract_strided_slice %10 {offsets = [0, 10], sizes = [16, 1], strides = [1, 1]} : vector<32x16xf32> to vector<16x1xf32>
    %178 = vector.extract_strided_slice %11 {offsets = [10, 0], sizes = [1, 64], strides = [1, 1]} : vector<16x64xf32> to vector<1x64xf32>
    %179 = vector.broadcast %177 : vector<16x1xf32> to vector<16x64xf32>
    %180 = vector.broadcast %178 : vector<1x64xf32> to vector<16x64xf32>
    %181 = arith.mulf %179, %180 : vector<16x64xf32>
    %182 = arith.mulf %176, %167 : vector<16x64xf32>
    %183 = arith.addf %182, %181 : vector<16x64xf32>
    %184 = vector.extract_strided_slice %10 {offsets = [16, 10], sizes = [16, 1], strides = [1, 1]} : vector<32x16xf32> to vector<16x1xf32>
    %185 = vector.broadcast %184 : vector<16x1xf32> to vector<16x64xf32>
    %186 = arith.mulf %185, %183 : vector<16x64xf32>
    %cst_27 = arith.constant dense<0.000000e+00> : vector<64xf32>
    %187 = vector.multi_reduction <add>, %186, %cst_27 [0] : vector<16x64xf32> to vector<64xf32>
    %188 = vector.shape_cast %187 : vector<64xf32> to vector<1x64xf32>
    %189 = vector.extract_strided_slice %6 {offsets = [11, 0], sizes = [1, 64], strides = [1, 1]} : vector<16x64xf32> to vector<1x64xf32>
    %190 = vector.broadcast %189 : vector<1x64xf32> to vector<16x64xf32>
    %191 = arith.mulf %4, %190 : vector<16x64xf32>
    %192 = math.exp %191 : vector<16x64xf32>
    %193 = vector.extract_strided_slice %10 {offsets = [0, 11], sizes = [16, 1], strides = [1, 1]} : vector<32x16xf32> to vector<16x1xf32>
    %194 = vector.extract_strided_slice %11 {offsets = [11, 0], sizes = [1, 64], strides = [1, 1]} : vector<16x64xf32> to vector<1x64xf32>
    %195 = vector.broadcast %193 : vector<16x1xf32> to vector<16x64xf32>
    %196 = vector.broadcast %194 : vector<1x64xf32> to vector<16x64xf32>
    %197 = arith.mulf %195, %196 : vector<16x64xf32>
    %198 = arith.mulf %192, %183 : vector<16x64xf32>
    %199 = arith.addf %198, %197 : vector<16x64xf32>
    %200 = vector.extract_strided_slice %10 {offsets = [16, 11], sizes = [16, 1], strides = [1, 1]} : vector<32x16xf32> to vector<16x1xf32>
    %201 = vector.broadcast %200 : vector<16x1xf32> to vector<16x64xf32>
    %202 = arith.mulf %201, %199 : vector<16x64xf32>
    %cst_28 = arith.constant dense<0.000000e+00> : vector<64xf32>
    %203 = vector.multi_reduction <add>, %202, %cst_28 [0] : vector<16x64xf32> to vector<64xf32>
    %204 = vector.shape_cast %203 : vector<64xf32> to vector<1x64xf32>
    %205 = vector.extract_strided_slice %6 {offsets = [12, 0], sizes = [1, 64], strides = [1, 1]} : vector<16x64xf32> to vector<1x64xf32>
    %206 = vector.broadcast %205 : vector<1x64xf32> to vector<16x64xf32>
    %207 = arith.mulf %4, %206 : vector<16x64xf32>
    %208 = math.exp %207 : vector<16x64xf32>
    %209 = vector.extract_strided_slice %10 {offsets = [0, 12], sizes = [16, 1], strides = [1, 1]} : vector<32x16xf32> to vector<16x1xf32>
    %210 = vector.extract_strided_slice %11 {offsets = [12, 0], sizes = [1, 64], strides = [1, 1]} : vector<16x64xf32> to vector<1x64xf32>
    %211 = vector.broadcast %209 : vector<16x1xf32> to vector<16x64xf32>
    %212 = vector.broadcast %210 : vector<1x64xf32> to vector<16x64xf32>
    %213 = arith.mulf %211, %212 : vector<16x64xf32>
    %214 = arith.mulf %208, %199 : vector<16x64xf32>
    %215 = arith.addf %214, %213 : vector<16x64xf32>
    %216 = vector.extract_strided_slice %10 {offsets = [16, 12], sizes = [16, 1], strides = [1, 1]} : vector<32x16xf32> to vector<16x1xf32>
    %217 = vector.broadcast %216 : vector<16x1xf32> to vector<16x64xf32>
    %218 = arith.mulf %217, %215 : vector<16x64xf32>
    %cst_29 = arith.constant dense<0.000000e+00> : vector<64xf32>
    %219 = vector.multi_reduction <add>, %218, %cst_29 [0] : vector<16x64xf32> to vector<64xf32>
    %220 = vector.shape_cast %219 : vector<64xf32> to vector<1x64xf32>
    %221 = vector.extract_strided_slice %6 {offsets = [13, 0], sizes = [1, 64], strides = [1, 1]} : vector<16x64xf32> to vector<1x64xf32>
    %222 = vector.broadcast %221 : vector<1x64xf32> to vector<16x64xf32>
    %223 = arith.mulf %4, %222 : vector<16x64xf32>
    %224 = math.exp %223 : vector<16x64xf32>
    %225 = vector.extract_strided_slice %10 {offsets = [0, 13], sizes = [16, 1], strides = [1, 1]} : vector<32x16xf32> to vector<16x1xf32>
    %226 = vector.extract_strided_slice %11 {offsets = [13, 0], sizes = [1, 64], strides = [1, 1]} : vector<16x64xf32> to vector<1x64xf32>
    %227 = vector.broadcast %225 : vector<16x1xf32> to vector<16x64xf32>
    %228 = vector.broadcast %226 : vector<1x64xf32> to vector<16x64xf32>
    %229 = arith.mulf %227, %228 : vector<16x64xf32>
    %230 = arith.mulf %224, %215 : vector<16x64xf32>
    %231 = arith.addf %230, %229 : vector<16x64xf32>
    %232 = vector.extract_strided_slice %10 {offsets = [16, 13], sizes = [16, 1], strides = [1, 1]} : vector<32x16xf32> to vector<16x1xf32>
    %233 = vector.broadcast %232 : vector<16x1xf32> to vector<16x64xf32>
    %234 = arith.mulf %233, %231 : vector<16x64xf32>
    %cst_30 = arith.constant dense<0.000000e+00> : vector<64xf32>
    %235 = vector.multi_reduction <add>, %234, %cst_30 [0] : vector<16x64xf32> to vector<64xf32>
    %236 = vector.shape_cast %235 : vector<64xf32> to vector<1x64xf32>
    %237 = vector.extract_strided_slice %6 {offsets = [14, 0], sizes = [1, 64], strides = [1, 1]} : vector<16x64xf32> to vector<1x64xf32>
    %238 = vector.broadcast %237 : vector<1x64xf32> to vector<16x64xf32>
    %239 = arith.mulf %4, %238 : vector<16x64xf32>
    %240 = math.exp %239 : vector<16x64xf32>
    %241 = vector.extract_strided_slice %10 {offsets = [0, 14], sizes = [16, 1], strides = [1, 1]} : vector<32x16xf32> to vector<16x1xf32>
    %242 = vector.extract_strided_slice %11 {offsets = [14, 0], sizes = [1, 64], strides = [1, 1]} : vector<16x64xf32> to vector<1x64xf32>
    %243 = vector.broadcast %241 : vector<16x1xf32> to vector<16x64xf32>
    %244 = vector.broadcast %242 : vector<1x64xf32> to vector<16x64xf32>
    %245 = arith.mulf %243, %244 : vector<16x64xf32>
    %246 = arith.mulf %240, %231 : vector<16x64xf32>
    %247 = arith.addf %246, %245 : vector<16x64xf32>
    %248 = vector.extract_strided_slice %10 {offsets = [16, 14], sizes = [16, 1], strides = [1, 1]} : vector<32x16xf32> to vector<16x1xf32>
    %249 = vector.broadcast %248 : vector<16x1xf32> to vector<16x64xf32>
    %250 = arith.mulf %249, %247 : vector<16x64xf32>
    %cst_31 = arith.constant dense<0.000000e+00> : vector<64xf32>
    %251 = vector.multi_reduction <add>, %250, %cst_31 [0] : vector<16x64xf32> to vector<64xf32>
    %252 = vector.shape_cast %251 : vector<64xf32> to vector<1x64xf32>
    %253 = vector.extract_strided_slice %6 {offsets = [15, 0], sizes = [1, 64], strides = [1, 1]} : vector<16x64xf32> to vector<1x64xf32>
    %254 = vector.broadcast %253 : vector<1x64xf32> to vector<16x64xf32>
    %255 = arith.mulf %4, %254 : vector<16x64xf32>
    %256 = math.exp %255 : vector<16x64xf32>
    %257 = vector.extract_strided_slice %10 {offsets = [0, 15], sizes = [16, 1], strides = [1, 1]} : vector<32x16xf32> to vector<16x1xf32>
    %258 = vector.extract_strided_slice %11 {offsets = [15, 0], sizes = [1, 64], strides = [1, 1]} : vector<16x64xf32> to vector<1x64xf32>
    %259 = vector.broadcast %257 : vector<16x1xf32> to vector<16x64xf32>
    %260 = vector.broadcast %258 : vector<1x64xf32> to vector<16x64xf32>
    %261 = arith.mulf %259, %260 : vector<16x64xf32>
    %262 = arith.mulf %256, %247 : vector<16x64xf32>
    %263 = arith.addf %262, %261 : vector<16x64xf32>
    %264 = vector.extract_strided_slice %10 {offsets = [16, 15], sizes = [16, 1], strides = [1, 1]} : vector<32x16xf32> to vector<16x1xf32>
    %265 = vector.broadcast %264 : vector<16x1xf32> to vector<16x64xf32>
    %266 = arith.mulf %265, %263 : vector<16x64xf32>
    %cst_32 = arith.constant dense<0.000000e+00> : vector<64xf32>
    %267 = vector.multi_reduction <add>, %266, %cst_32 [0] : vector<16x64xf32> to vector<64xf32>
    %268 = vector.shape_cast %267 : vector<64xf32> to vector<1x64xf32>
    %c0_33 = arith.constant 0 : index
    %c0_34 = arith.constant 0 : index
    %269 = vector.load %arg9[%c0_33, %c0_34] : memref<16x64xf32, #tpu.memory_space<vmem>>, vector<16x64xf32>
    tpu.vector_store %arg9[%c0_33, %c0_34], %263 {strides = array<i32>} : memref<16x64xf32, #tpu.memory_space<vmem>>, vector<16x64xf32>,
    %270 = tpu.concatenate %28, %44, %60, %76, %92, %108, %124, %140, %156, %172, %188, %204, %220, %236, %252, %268 in 0 : vector<1x64xf32>, vector<1x64xf32>, vector<1x64xf32>, vector<1x64xf32>, vector<1x64xf32>, vector<1x64xf32>, vector<1x64xf32>, vector<1x64xf32>, vector<1x64xf32>, vector<1x64xf32>, vector<1x64xf32>, vector<1x64xf32>, vector<1x64xf32>, vector<1x64xf32>, vector<1x64xf32>, vector<1x64xf32> -> vector<16x64xf32>
    %c0_35 = arith.constant 0 : index
    %c0_36 = arith.constant 0 : index
    %c0_37 = arith.constant 0 : index
    %271 = vector.load %arg7[%c0_35, %c0_36, %c0_37] : memref<1x1x64xf32, #tpu.memory_space<vmem>>, vector<1x1x64xf32>
    %272 = vector.shape_cast %271 : vector<1x1x64xf32> to vector<1x64xf32>
    %273 = vector.broadcast %272 : vector<1x64xf32> to vector<16x64xf32>
    %274 = arith.mulf %273, %8 : vector<16x64xf32>
    %275 = arith.addf %270, %274 : vector<16x64xf32>
    %c0_38 = arith.constant 0 : index
    %c0_39 = arith.constant 0 : index
    %c0_40 = arith.constant 0 : index
    %c0_41 = arith.constant 0 : index
    %276 = vector.load %arg8[%c0_38, %c0_39, %c0_40, %c0_41] : memref<1x1x16x64xf32, #tpu.memory_space<vmem>>, vector<1x1x16x64xf32>
    %277 = vector.shape_cast %276 : vector<1x1x16x64xf32> to vector<16x64xf32>
    %278 = vector.shape_cast %275 : vector<16x64xf32> to vector<1x1x16x64xf32>
    tpu.vector_store %arg8[%c0_38, %c0_39, %c0_40, %c0_41], %278 {strides = array<i32>} : memref<1x1x16x64xf32, #tpu.memory_space<vmem>>, vector<1x1x16x64xf32>,
    return
  }
  func.func @transform_0(%arg0: i32, %arg1: i32, %arg2: i32) -> (i32, i32, i32, i32) {
    %c0_i32 = arith.constant 0 : i32
    %c0_i32_0 = arith.constant 0 : i32
    return %arg0, %arg1, %arg2, %c0_i32 : i32, i32, i32, i32
  }
  func.func @transform_1(%arg0: i32, %arg1: i32, %arg2: i32) -> (i32, i32, i32, i32) {
    %c0_i32 = arith.constant 0 : i32
    %0 = arith.addi %arg0, %c0_i32 : i32
    %c0_i32_0 = arith.constant 0 : i32
    %c0_i32_1 = arith.constant 0 : i32
    return %0, %arg1, %arg2, %c0_i32_0 : i32, i32, i32, i32
  }
  func.func @transform_2(%arg0: i32, %arg1: i32, %arg2: i32) -> (i32, i32, i32, i32, i32) {
    %c0_i32 = arith.constant 0 : i32
    %0 = arith.addi %arg0, %c0_i32 : i32
    %c0_i32_0 = arith.constant 0 : i32
    %c0_i32_1 = arith.constant 0 : i32
    %c0_i32_2 = arith.constant 0 : i32
    return %0, %arg1, %arg2, %c0_i32_0, %c0_i32_1 : i32, i32, i32, i32, i32
  }
  func.func @transform_3(%arg0: i32, %arg1: i32, %arg2: i32) -> (i32, i32, i32) {
    %c0_i32 = arith.constant 0 : i32
    %0 = arith.addi %arg0, %c0_i32 : i32
    %c0_i32_0 = arith.constant 0 : i32
    %c0_i32_1 = arith.constant 0 : i32
    %c0_i32_2 = arith.constant 0 : i32
    return %0, %c0_i32_0, %c0_i32_1 : i32, i32, i32
  }
  func.func @transform_4(%arg0: i32, %arg1: i32, %arg2: i32) -> (i32, i32, i32) {
    %c0_i32 = arith.constant 0 : i32
    %0 = arith.addi %arg0, %c0_i32 : i32
    %c0_i32_0 = arith.constant 0 : i32
    %c0_i32_1 = arith.constant 0 : i32
    %c0_i32_2 = arith.constant 0 : i32
    return %0, %c0_i32_0, %c0_i32_1 : i32, i32, i32
  }
  func.func @transform_5(%arg0: i32, %arg1: i32, %arg2: i32) -> (i32, i32, i32, i32) {
    %c0_i32 = arith.constant 0 : i32
    %c0_i32_0 = arith.constant 0 : i32
    return %arg0, %arg1, %arg2, %c0_i32 : i32, i32, i32, i32
  }
}

module attributes {stable_mosaic.version = 11 : i64} {
  func.func @scan_kernel(%arg0: i32, %arg1: i32, %arg2: i32, %arg3: memref<1x1x16x64xf32, #tpu.memory_space<vmem>>, %arg4: memref<1x1x16x64xf32, #tpu.memory_space<vmem>>, %arg5: memref<1x1x1x32x16xf32, #tpu.memory_space<vmem>>, %arg6: memref<1x16x64xf32, #tpu.memory_space<vmem>>, %arg7: memref<1x1x64xf32, #tpu.memory_space<vmem>>, %arg8: memref<1x1x16x64xf32, #tpu.memory_space<vmem>>, %arg9: memref<1x1x16x64xf32, #tpu.memory_space<vmem>>, %arg10: memref<16x64xf32, #tpu.memory_space<vmem>>) attributes {dimension_semantics = [#tpu.dimension_semantics<parallel>, #tpu.dimension_semantics<parallel>, #tpu.dimension_semantics<arbitrary>], iteration_bounds = array<i64: 2, 2, 16>, scalar_prefetch = 0 : i64, scratch_operands = 1 : i64, tpu.core_type = #tpu.core_type<tc>, window_params = [{transform_indices = @transform_0, window_bounds = array<i64: 1, 1, 16, 64>}, {transform_indices = @transform_1, window_bounds = array<i64: 1, 1, 16, 64>}, {transform_indices = @transform_2, window_bounds = array<i64: 1, 1, 1, 32, 16>}, {transform_indices = @transform_3, window_bounds = array<i64: 1, 16, 64>}, {transform_indices = @transform_4, window_bounds = array<i64: 1, 1, 64>}, {transform_indices = @transform_5, window_bounds = array<i64: 1, 1, 16, 64>}, {transform_indices = @transform_6, window_bounds = array<i64: 1, 1, 16, 64>}]} {
    %c0_i32 = arith.constant 0 : i32
    %0 = arith.cmpi eq, %arg2, %c0_i32 : i32
    %1 = arith.extui %0 : i1 to i32
    %c0_i32_0 = arith.constant 0 : i32
    %2 = arith.cmpi ne, %1, %c0_i32_0 : i32
    scf.if %2 {
      %cst_46 = arith.constant 0.000000e+00 : f32
      %282 = vector.broadcast %cst_46 : f32 to vector<16x64xf32>
      %c0_47 = arith.constant 0 : index
      %c0_48 = arith.constant 0 : index
      %283 = vector.load %arg10[%c0_47, %c0_48] : memref<16x64xf32, #tpu.memory_space<vmem>>, vector<16x64xf32>
      tpu.vector_store %arg10[%c0_47, %c0_48], %282 {strides = array<i32>} : memref<16x64xf32, #tpu.memory_space<vmem>>, vector<16x64xf32>,
    } else {
    }
    %c0 = arith.constant 0 : index
    %c0_1 = arith.constant 0 : index
    %c0_2 = arith.constant 0 : index
    %3 = vector.load %arg6[%c0, %c0_1, %c0_2] : memref<1x16x64xf32, #tpu.memory_space<vmem>>, vector<1x16x64xf32>
    %4 = vector.shape_cast %3 : vector<1x16x64xf32> to vector<16x64xf32>
    %c0_3 = arith.constant 0 : index
    %c0_4 = arith.constant 0 : index
    %c0_5 = arith.constant 0 : index
    %c0_6 = arith.constant 0 : index
    %5 = vector.load %arg4[%c0_3, %c0_4, %c0_5, %c0_6] : memref<1x1x16x64xf32, #tpu.memory_space<vmem>>, vector<1x1x16x64xf32>
    %6 = vector.shape_cast %5 : vector<1x1x16x64xf32> to vector<16x64xf32>
    %c0_7 = arith.constant 0 : index
    %c0_8 = arith.constant 0 : index
    %c0_9 = arith.constant 0 : index
    %c0_10 = arith.constant 0 : index
    %7 = vector.load %arg3[%c0_7, %c0_8, %c0_9, %c0_10] : memref<1x1x16x64xf32, #tpu.memory_space<vmem>>, vector<1x1x16x64xf32>
    %8 = vector.shape_cast %7 : vector<1x1x16x64xf32> to vector<16x64xf32>
    %c0_11 = arith.constant 0 : index
    %c0_12 = arith.constant 0 : index
    %c0_13 = arith.constant 0 : index
    %c0_14 = arith.constant 0 : index
    %c0_15 = arith.constant 0 : index
    %9 = vector.load %arg5[%c0_11, %c0_12, %c0_13, %c0_14, %c0_15] : memref<1x1x1x32x16xf32, #tpu.memory_space<vmem>>, vector<1x1x1x32x16xf32>
    %10 = vector.shape_cast %9 : vector<1x1x1x32x16xf32> to vector<32x16xf32>
    %11 = arith.mulf %6, %8 : vector<16x64xf32>
    %c0_16 = arith.constant 0 : index
    %c0_17 = arith.constant 0 : index
    %12 = vector.load %arg10[%c0_16, %c0_17] : memref<16x64xf32, #tpu.memory_space<vmem>>, vector<16x64xf32>
    %13 = vector.extract_strided_slice %6 {offsets = [15, 0], sizes = [1, 64], strides = [1, 1]} : vector<16x64xf32> to vector<1x64xf32>
    %14 = vector.broadcast %13 : vector<1x64xf32> to vector<16x64xf32>
    %15 = arith.mulf %4, %14 : vector<16x64xf32>
    %16 = math.exp %15 : vector<16x64xf32>
    %17 = vector.extract_strided_slice %10 {offsets = [0, 15], sizes = [16, 1], strides = [1, 1]} : vector<32x16xf32> to vector<16x1xf32>
    %18 = vector.extract_strided_slice %11 {offsets = [15, 0], sizes = [1, 64], strides = [1, 1]} : vector<16x64xf32> to vector<1x64xf32>
    %19 = vector.broadcast %17 : vector<16x1xf32> to vector<16x64xf32>
    %20 = vector.broadcast %18 : vector<1x64xf32> to vector<16x64xf32>
    %21 = arith.mulf %19, %20 : vector<16x64xf32>
    %22 = arith.mulf %16, %12 : vector<16x64xf32>
    %23 = arith.addf %22, %21 : vector<16x64xf32>
    %24 = vector.extract_strided_slice %10 {offsets = [16, 15], sizes = [16, 1], strides = [1, 1]} : vector<32x16xf32> to vector<16x1xf32>
    %25 = vector.broadcast %24 : vector<16x1xf32> to vector<16x64xf32>
    %26 = arith.mulf %25, %23 : vector<16x64xf32>
    %cst = arith.constant dense<0.000000e+00> : vector<64xf32>
    %27 = vector.multi_reduction <add>, %26, %cst [0] : vector<16x64xf32> to vector<64xf32>
    %28 = vector.shape_cast %27 : vector<64xf32> to vector<1x64xf32>
    %29 = vector.extract_strided_slice %6 {offsets = [14, 0], sizes = [1, 64], strides = [1, 1]} : vector<16x64xf32> to vector<1x64xf32>
    %30 = vector.broadcast %29 : vector<1x64xf32> to vector<16x64xf32>
    %31 = arith.mulf %4, %30 : vector<16x64xf32>
    %32 = math.exp %31 : vector<16x64xf32>
    %33 = vector.extract_strided_slice %10 {offsets = [0, 14], sizes = [16, 1], strides = [1, 1]} : vector<32x16xf32> to vector<16x1xf32>
    %34 = vector.extract_strided_slice %11 {offsets = [14, 0], sizes = [1, 64], strides = [1, 1]} : vector<16x64xf32> to vector<1x64xf32>
    %35 = vector.broadcast %33 : vector<16x1xf32> to vector<16x64xf32>
    %36 = vector.broadcast %34 : vector<1x64xf32> to vector<16x64xf32>
    %37 = arith.mulf %35, %36 : vector<16x64xf32>
    %38 = arith.mulf %32, %23 : vector<16x64xf32>
    %39 = arith.addf %38, %37 : vector<16x64xf32>
    %40 = vector.extract_strided_slice %10 {offsets = [16, 14], sizes = [16, 1], strides = [1, 1]} : vector<32x16xf32> to vector<16x1xf32>
    %41 = vector.broadcast %40 : vector<16x1xf32> to vector<16x64xf32>
    %42 = arith.mulf %41, %39 : vector<16x64xf32>
    %cst_18 = arith.constant dense<0.000000e+00> : vector<64xf32>
    %43 = vector.multi_reduction <add>, %42, %cst_18 [0] : vector<16x64xf32> to vector<64xf32>
    %44 = vector.shape_cast %43 : vector<64xf32> to vector<1x64xf32>
    %45 = vector.extract_strided_slice %6 {offsets = [13, 0], sizes = [1, 64], strides = [1, 1]} : vector<16x64xf32> to vector<1x64xf32>
    %46 = vector.broadcast %45 : vector<1x64xf32> to vector<16x64xf32>
    %47 = arith.mulf %4, %46 : vector<16x64xf32>
    %48 = math.exp %47 : vector<16x64xf32>
    %49 = vector.extract_strided_slice %10 {offsets = [0, 13], sizes = [16, 1], strides = [1, 1]} : vector<32x16xf32> to vector<16x1xf32>
    %50 = vector.extract_strided_slice %11 {offsets = [13, 0], sizes = [1, 64], strides = [1, 1]} : vector<16x64xf32> to vector<1x64xf32>
    %51 = vector.broadcast %49 : vector<16x1xf32> to vector<16x64xf32>
    %52 = vector.broadcast %50 : vector<1x64xf32> to vector<16x64xf32>
    %53 = arith.mulf %51, %52 : vector<16x64xf32>
    %54 = arith.mulf %48, %39 : vector<16x64xf32>
    %55 = arith.addf %54, %53 : vector<16x64xf32>
    %56 = vector.extract_strided_slice %10 {offsets = [16, 13], sizes = [16, 1], strides = [1, 1]} : vector<32x16xf32> to vector<16x1xf32>
    %57 = vector.broadcast %56 : vector<16x1xf32> to vector<16x64xf32>
    %58 = arith.mulf %57, %55 : vector<16x64xf32>
    %cst_19 = arith.constant dense<0.000000e+00> : vector<64xf32>
    %59 = vector.multi_reduction <add>, %58, %cst_19 [0] : vector<16x64xf32> to vector<64xf32>
    %60 = vector.shape_cast %59 : vector<64xf32> to vector<1x64xf32>
    %61 = vector.extract_strided_slice %6 {offsets = [12, 0], sizes = [1, 64], strides = [1, 1]} : vector<16x64xf32> to vector<1x64xf32>
    %62 = vector.broadcast %61 : vector<1x64xf32> to vector<16x64xf32>
    %63 = arith.mulf %4, %62 : vector<16x64xf32>
    %64 = math.exp %63 : vector<16x64xf32>
    %65 = vector.extract_strided_slice %10 {offsets = [0, 12], sizes = [16, 1], strides = [1, 1]} : vector<32x16xf32> to vector<16x1xf32>
    %66 = vector.extract_strided_slice %11 {offsets = [12, 0], sizes = [1, 64], strides = [1, 1]} : vector<16x64xf32> to vector<1x64xf32>
    %67 = vector.broadcast %65 : vector<16x1xf32> to vector<16x64xf32>
    %68 = vector.broadcast %66 : vector<1x64xf32> to vector<16x64xf32>
    %69 = arith.mulf %67, %68 : vector<16x64xf32>
    %70 = arith.mulf %64, %55 : vector<16x64xf32>
    %71 = arith.addf %70, %69 : vector<16x64xf32>
    %72 = vector.extract_strided_slice %10 {offsets = [16, 12], sizes = [16, 1], strides = [1, 1]} : vector<32x16xf32> to vector<16x1xf32>
    %73 = vector.broadcast %72 : vector<16x1xf32> to vector<16x64xf32>
    %74 = arith.mulf %73, %71 : vector<16x64xf32>
    %cst_20 = arith.constant dense<0.000000e+00> : vector<64xf32>
    %75 = vector.multi_reduction <add>, %74, %cst_20 [0] : vector<16x64xf32> to vector<64xf32>
    %76 = vector.shape_cast %75 : vector<64xf32> to vector<1x64xf32>
    %77 = vector.extract_strided_slice %6 {offsets = [11, 0], sizes = [1, 64], strides = [1, 1]} : vector<16x64xf32> to vector<1x64xf32>
    %78 = vector.broadcast %77 : vector<1x64xf32> to vector<16x64xf32>
    %79 = arith.mulf %4, %78 : vector<16x64xf32>
    %80 = math.exp %79 : vector<16x64xf32>
    %81 = vector.extract_strided_slice %10 {offsets = [0, 11], sizes = [16, 1], strides = [1, 1]} : vector<32x16xf32> to vector<16x1xf32>
    %82 = vector.extract_strided_slice %11 {offsets = [11, 0], sizes = [1, 64], strides = [1, 1]} : vector<16x64xf32> to vector<1x64xf32>
    %83 = vector.broadcast %81 : vector<16x1xf32> to vector<16x64xf32>
    %84 = vector.broadcast %82 : vector<1x64xf32> to vector<16x64xf32>
    %85 = arith.mulf %83, %84 : vector<16x64xf32>
    %86 = arith.mulf %80, %71 : vector<16x64xf32>
    %87 = arith.addf %86, %85 : vector<16x64xf32>
    %88 = vector.extract_strided_slice %10 {offsets = [16, 11], sizes = [16, 1], strides = [1, 1]} : vector<32x16xf32> to vector<16x1xf32>
    %89 = vector.broadcast %88 : vector<16x1xf32> to vector<16x64xf32>
    %90 = arith.mulf %89, %87 : vector<16x64xf32>
    %cst_21 = arith.constant dense<0.000000e+00> : vector<64xf32>
    %91 = vector.multi_reduction <add>, %90, %cst_21 [0] : vector<16x64xf32> to vector<64xf32>
    %92 = vector.shape_cast %91 : vector<64xf32> to vector<1x64xf32>
    %93 = vector.extract_strided_slice %6 {offsets = [10, 0], sizes = [1, 64], strides = [1, 1]} : vector<16x64xf32> to vector<1x64xf32>
    %94 = vector.broadcast %93 : vector<1x64xf32> to vector<16x64xf32>
    %95 = arith.mulf %4, %94 : vector<16x64xf32>
    %96 = math.exp %95 : vector<16x64xf32>
    %97 = vector.extract_strided_slice %10 {offsets = [0, 10], sizes = [16, 1], strides = [1, 1]} : vector<32x16xf32> to vector<16x1xf32>
    %98 = vector.extract_strided_slice %11 {offsets = [10, 0], sizes = [1, 64], strides = [1, 1]} : vector<16x64xf32> to vector<1x64xf32>
    %99 = vector.broadcast %97 : vector<16x1xf32> to vector<16x64xf32>
    %100 = vector.broadcast %98 : vector<1x64xf32> to vector<16x64xf32>
    %101 = arith.mulf %99, %100 : vector<16x64xf32>
    %102 = arith.mulf %96, %87 : vector<16x64xf32>
    %103 = arith.addf %102, %101 : vector<16x64xf32>
    %104 = vector.extract_strided_slice %10 {offsets = [16, 10], sizes = [16, 1], strides = [1, 1]} : vector<32x16xf32> to vector<16x1xf32>
    %105 = vector.broadcast %104 : vector<16x1xf32> to vector<16x64xf32>
    %106 = arith.mulf %105, %103 : vector<16x64xf32>
    %cst_22 = arith.constant dense<0.000000e+00> : vector<64xf32>
    %107 = vector.multi_reduction <add>, %106, %cst_22 [0] : vector<16x64xf32> to vector<64xf32>
    %108 = vector.shape_cast %107 : vector<64xf32> to vector<1x64xf32>
    %109 = vector.extract_strided_slice %6 {offsets = [9, 0], sizes = [1, 64], strides = [1, 1]} : vector<16x64xf32> to vector<1x64xf32>
    %110 = vector.broadcast %109 : vector<1x64xf32> to vector<16x64xf32>
    %111 = arith.mulf %4, %110 : vector<16x64xf32>
    %112 = math.exp %111 : vector<16x64xf32>
    %113 = vector.extract_strided_slice %10 {offsets = [0, 9], sizes = [16, 1], strides = [1, 1]} : vector<32x16xf32> to vector<16x1xf32>
    %114 = vector.extract_strided_slice %11 {offsets = [9, 0], sizes = [1, 64], strides = [1, 1]} : vector<16x64xf32> to vector<1x64xf32>
    %115 = vector.broadcast %113 : vector<16x1xf32> to vector<16x64xf32>
    %116 = vector.broadcast %114 : vector<1x64xf32> to vector<16x64xf32>
    %117 = arith.mulf %115, %116 : vector<16x64xf32>
    %118 = arith.mulf %112, %103 : vector<16x64xf32>
    %119 = arith.addf %118, %117 : vector<16x64xf32>
    %120 = vector.extract_strided_slice %10 {offsets = [16, 9], sizes = [16, 1], strides = [1, 1]} : vector<32x16xf32> to vector<16x1xf32>
    %121 = vector.broadcast %120 : vector<16x1xf32> to vector<16x64xf32>
    %122 = arith.mulf %121, %119 : vector<16x64xf32>
    %cst_23 = arith.constant dense<0.000000e+00> : vector<64xf32>
    %123 = vector.multi_reduction <add>, %122, %cst_23 [0] : vector<16x64xf32> to vector<64xf32>
    %124 = vector.shape_cast %123 : vector<64xf32> to vector<1x64xf32>
    %125 = vector.extract_strided_slice %6 {offsets = [8, 0], sizes = [1, 64], strides = [1, 1]} : vector<16x64xf32> to vector<1x64xf32>
    %126 = vector.broadcast %125 : vector<1x64xf32> to vector<16x64xf32>
    %127 = arith.mulf %4, %126 : vector<16x64xf32>
    %128 = math.exp %127 : vector<16x64xf32>
    %129 = vector.extract_strided_slice %10 {offsets = [0, 8], sizes = [16, 1], strides = [1, 1]} : vector<32x16xf32> to vector<16x1xf32>
    %130 = vector.extract_strided_slice %11 {offsets = [8, 0], sizes = [1, 64], strides = [1, 1]} : vector<16x64xf32> to vector<1x64xf32>
    %131 = vector.broadcast %129 : vector<16x1xf32> to vector<16x64xf32>
    %132 = vector.broadcast %130 : vector<1x64xf32> to vector<16x64xf32>
    %133 = arith.mulf %131, %132 : vector<16x64xf32>
    %134 = arith.mulf %128, %119 : vector<16x64xf32>
    %135 = arith.addf %134, %133 : vector<16x64xf32>
    %136 = vector.extract_strided_slice %10 {offsets = [16, 8], sizes = [16, 1], strides = [1, 1]} : vector<32x16xf32> to vector<16x1xf32>
    %137 = vector.broadcast %136 : vector<16x1xf32> to vector<16x64xf32>
    %138 = arith.mulf %137, %135 : vector<16x64xf32>
    %cst_24 = arith.constant dense<0.000000e+00> : vector<64xf32>
    %139 = vector.multi_reduction <add>, %138, %cst_24 [0] : vector<16x64xf32> to vector<64xf32>
    %140 = vector.shape_cast %139 : vector<64xf32> to vector<1x64xf32>
    %141 = vector.extract_strided_slice %6 {offsets = [7, 0], sizes = [1, 64], strides = [1, 1]} : vector<16x64xf32> to vector<1x64xf32>
    %142 = vector.broadcast %141 : vector<1x64xf32> to vector<16x64xf32>
    %143 = arith.mulf %4, %142 : vector<16x64xf32>
    %144 = math.exp %143 : vector<16x64xf32>
    %145 = vector.extract_strided_slice %10 {offsets = [0, 7], sizes = [16, 1], strides = [1, 1]} : vector<32x16xf32> to vector<16x1xf32>
    %146 = vector.extract_strided_slice %11 {offsets = [7, 0], sizes = [1, 64], strides = [1, 1]} : vector<16x64xf32> to vector<1x64xf32>
    %147 = vector.broadcast %145 : vector<16x1xf32> to vector<16x64xf32>
    %148 = vector.broadcast %146 : vector<1x64xf32> to vector<16x64xf32>
    %149 = arith.mulf %147, %148 : vector<16x64xf32>
    %150 = arith.mulf %144, %135 : vector<16x64xf32>
    %151 = arith.addf %150, %149 : vector<16x64xf32>
    %152 = vector.extract_strided_slice %10 {offsets = [16, 7], sizes = [16, 1], strides = [1, 1]} : vector<32x16xf32> to vector<16x1xf32>
    %153 = vector.broadcast %152 : vector<16x1xf32> to vector<16x64xf32>
    %154 = arith.mulf %153, %151 : vector<16x64xf32>
    %cst_25 = arith.constant dense<0.000000e+00> : vector<64xf32>
    %155 = vector.multi_reduction <add>, %154, %cst_25 [0] : vector<16x64xf32> to vector<64xf32>
    %156 = vector.shape_cast %155 : vector<64xf32> to vector<1x64xf32>
    %157 = vector.extract_strided_slice %6 {offsets = [6, 0], sizes = [1, 64], strides = [1, 1]} : vector<16x64xf32> to vector<1x64xf32>
    %158 = vector.broadcast %157 : vector<1x64xf32> to vector<16x64xf32>
    %159 = arith.mulf %4, %158 : vector<16x64xf32>
    %160 = math.exp %159 : vector<16x64xf32>
    %161 = vector.extract_strided_slice %10 {offsets = [0, 6], sizes = [16, 1], strides = [1, 1]} : vector<32x16xf32> to vector<16x1xf32>
    %162 = vector.extract_strided_slice %11 {offsets = [6, 0], sizes = [1, 64], strides = [1, 1]} : vector<16x64xf32> to vector<1x64xf32>
    %163 = vector.broadcast %161 : vector<16x1xf32> to vector<16x64xf32>
    %164 = vector.broadcast %162 : vector<1x64xf32> to vector<16x64xf32>
    %165 = arith.mulf %163, %164 : vector<16x64xf32>
    %166 = arith.mulf %160, %151 : vector<16x64xf32>
    %167 = arith.addf %166, %165 : vector<16x64xf32>
    %168 = vector.extract_strided_slice %10 {offsets = [16, 6], sizes = [16, 1], strides = [1, 1]} : vector<32x16xf32> to vector<16x1xf32>
    %169 = vector.broadcast %168 : vector<16x1xf32> to vector<16x64xf32>
    %170 = arith.mulf %169, %167 : vector<16x64xf32>
    %cst_26 = arith.constant dense<0.000000e+00> : vector<64xf32>
    %171 = vector.multi_reduction <add>, %170, %cst_26 [0] : vector<16x64xf32> to vector<64xf32>
    %172 = vector.shape_cast %171 : vector<64xf32> to vector<1x64xf32>
    %173 = vector.extract_strided_slice %6 {offsets = [5, 0], sizes = [1, 64], strides = [1, 1]} : vector<16x64xf32> to vector<1x64xf32>
    %174 = vector.broadcast %173 : vector<1x64xf32> to vector<16x64xf32>
    %175 = arith.mulf %4, %174 : vector<16x64xf32>
    %176 = math.exp %175 : vector<16x64xf32>
    %177 = vector.extract_strided_slice %10 {offsets = [0, 5], sizes = [16, 1], strides = [1, 1]} : vector<32x16xf32> to vector<16x1xf32>
    %178 = vector.extract_strided_slice %11 {offsets = [5, 0], sizes = [1, 64], strides = [1, 1]} : vector<16x64xf32> to vector<1x64xf32>
    %179 = vector.broadcast %177 : vector<16x1xf32> to vector<16x64xf32>
    %180 = vector.broadcast %178 : vector<1x64xf32> to vector<16x64xf32>
    %181 = arith.mulf %179, %180 : vector<16x64xf32>
    %182 = arith.mulf %176, %167 : vector<16x64xf32>
    %183 = arith.addf %182, %181 : vector<16x64xf32>
    %184 = vector.extract_strided_slice %10 {offsets = [16, 5], sizes = [16, 1], strides = [1, 1]} : vector<32x16xf32> to vector<16x1xf32>
    %185 = vector.broadcast %184 : vector<16x1xf32> to vector<16x64xf32>
    %186 = arith.mulf %185, %183 : vector<16x64xf32>
    %cst_27 = arith.constant dense<0.000000e+00> : vector<64xf32>
    %187 = vector.multi_reduction <add>, %186, %cst_27 [0] : vector<16x64xf32> to vector<64xf32>
    %188 = vector.shape_cast %187 : vector<64xf32> to vector<1x64xf32>
    %189 = vector.extract_strided_slice %6 {offsets = [4, 0], sizes = [1, 64], strides = [1, 1]} : vector<16x64xf32> to vector<1x64xf32>
    %190 = vector.broadcast %189 : vector<1x64xf32> to vector<16x64xf32>
    %191 = arith.mulf %4, %190 : vector<16x64xf32>
    %192 = math.exp %191 : vector<16x64xf32>
    %193 = vector.extract_strided_slice %10 {offsets = [0, 4], sizes = [16, 1], strides = [1, 1]} : vector<32x16xf32> to vector<16x1xf32>
    %194 = vector.extract_strided_slice %11 {offsets = [4, 0], sizes = [1, 64], strides = [1, 1]} : vector<16x64xf32> to vector<1x64xf32>
    %195 = vector.broadcast %193 : vector<16x1xf32> to vector<16x64xf32>
    %196 = vector.broadcast %194 : vector<1x64xf32> to vector<16x64xf32>
    %197 = arith.mulf %195, %196 : vector<16x64xf32>
    %198 = arith.mulf %192, %183 : vector<16x64xf32>
    %199 = arith.addf %198, %197 : vector<16x64xf32>
    %200 = vector.extract_strided_slice %10 {offsets = [16, 4], sizes = [16, 1], strides = [1, 1]} : vector<32x16xf32> to vector<16x1xf32>
    %201 = vector.broadcast %200 : vector<16x1xf32> to vector<16x64xf32>
    %202 = arith.mulf %201, %199 : vector<16x64xf32>
    %cst_28 = arith.constant dense<0.000000e+00> : vector<64xf32>
    %203 = vector.multi_reduction <add>, %202, %cst_28 [0] : vector<16x64xf32> to vector<64xf32>
    %204 = vector.shape_cast %203 : vector<64xf32> to vector<1x64xf32>
    %205 = vector.extract_strided_slice %6 {offsets = [3, 0], sizes = [1, 64], strides = [1, 1]} : vector<16x64xf32> to vector<1x64xf32>
    %206 = vector.broadcast %205 : vector<1x64xf32> to vector<16x64xf32>
    %207 = arith.mulf %4, %206 : vector<16x64xf32>
    %208 = math.exp %207 : vector<16x64xf32>
    %209 = vector.extract_strided_slice %10 {offsets = [0, 3], sizes = [16, 1], strides = [1, 1]} : vector<32x16xf32> to vector<16x1xf32>
    %210 = vector.extract_strided_slice %11 {offsets = [3, 0], sizes = [1, 64], strides = [1, 1]} : vector<16x64xf32> to vector<1x64xf32>
    %211 = vector.broadcast %209 : vector<16x1xf32> to vector<16x64xf32>
    %212 = vector.broadcast %210 : vector<1x64xf32> to vector<16x64xf32>
    %213 = arith.mulf %211, %212 : vector<16x64xf32>
    %214 = arith.mulf %208, %199 : vector<16x64xf32>
    %215 = arith.addf %214, %213 : vector<16x64xf32>
    %216 = vector.extract_strided_slice %10 {offsets = [16, 3], sizes = [16, 1], strides = [1, 1]} : vector<32x16xf32> to vector<16x1xf32>
    %217 = vector.broadcast %216 : vector<16x1xf32> to vector<16x64xf32>
    %218 = arith.mulf %217, %215 : vector<16x64xf32>
    %cst_29 = arith.constant dense<0.000000e+00> : vector<64xf32>
    %219 = vector.multi_reduction <add>, %218, %cst_29 [0] : vector<16x64xf32> to vector<64xf32>
    %220 = vector.shape_cast %219 : vector<64xf32> to vector<1x64xf32>
    %221 = vector.extract_strided_slice %6 {offsets = [2, 0], sizes = [1, 64], strides = [1, 1]} : vector<16x64xf32> to vector<1x64xf32>
    %222 = vector.broadcast %221 : vector<1x64xf32> to vector<16x64xf32>
    %223 = arith.mulf %4, %222 : vector<16x64xf32>
    %224 = math.exp %223 : vector<16x64xf32>
    %225 = vector.extract_strided_slice %10 {offsets = [0, 2], sizes = [16, 1], strides = [1, 1]} : vector<32x16xf32> to vector<16x1xf32>
    %226 = vector.extract_strided_slice %11 {offsets = [2, 0], sizes = [1, 64], strides = [1, 1]} : vector<16x64xf32> to vector<1x64xf32>
    %227 = vector.broadcast %225 : vector<16x1xf32> to vector<16x64xf32>
    %228 = vector.broadcast %226 : vector<1x64xf32> to vector<16x64xf32>
    %229 = arith.mulf %227, %228 : vector<16x64xf32>
    %230 = arith.mulf %224, %215 : vector<16x64xf32>
    %231 = arith.addf %230, %229 : vector<16x64xf32>
    %232 = vector.extract_strided_slice %10 {offsets = [16, 2], sizes = [16, 1], strides = [1, 1]} : vector<32x16xf32> to vector<16x1xf32>
    %233 = vector.broadcast %232 : vector<16x1xf32> to vector<16x64xf32>
    %234 = arith.mulf %233, %231 : vector<16x64xf32>
    %cst_30 = arith.constant dense<0.000000e+00> : vector<64xf32>
    %235 = vector.multi_reduction <add>, %234, %cst_30 [0] : vector<16x64xf32> to vector<64xf32>
    %236 = vector.shape_cast %235 : vector<64xf32> to vector<1x64xf32>
    %237 = vector.extract_strided_slice %6 {offsets = [1, 0], sizes = [1, 64], strides = [1, 1]} : vector<16x64xf32> to vector<1x64xf32>
    %238 = vector.broadcast %237 : vector<1x64xf32> to vector<16x64xf32>
    %239 = arith.mulf %4, %238 : vector<16x64xf32>
    %240 = math.exp %239 : vector<16x64xf32>
    %241 = vector.extract_strided_slice %10 {offsets = [0, 1], sizes = [16, 1], strides = [1, 1]} : vector<32x16xf32> to vector<16x1xf32>
    %242 = vector.extract_strided_slice %11 {offsets = [1, 0], sizes = [1, 64], strides = [1, 1]} : vector<16x64xf32> to vector<1x64xf32>
    %243 = vector.broadcast %241 : vector<16x1xf32> to vector<16x64xf32>
    %244 = vector.broadcast %242 : vector<1x64xf32> to vector<16x64xf32>
    %245 = arith.mulf %243, %244 : vector<16x64xf32>
    %246 = arith.mulf %240, %231 : vector<16x64xf32>
    %247 = arith.addf %246, %245 : vector<16x64xf32>
    %248 = vector.extract_strided_slice %10 {offsets = [16, 1], sizes = [16, 1], strides = [1, 1]} : vector<32x16xf32> to vector<16x1xf32>
    %249 = vector.broadcast %248 : vector<16x1xf32> to vector<16x64xf32>
    %250 = arith.mulf %249, %247 : vector<16x64xf32>
    %cst_31 = arith.constant dense<0.000000e+00> : vector<64xf32>
    %251 = vector.multi_reduction <add>, %250, %cst_31 [0] : vector<16x64xf32> to vector<64xf32>
    %252 = vector.shape_cast %251 : vector<64xf32> to vector<1x64xf32>
    %253 = vector.extract_strided_slice %6 {offsets = [0, 0], sizes = [1, 64], strides = [1, 1]} : vector<16x64xf32> to vector<1x64xf32>
    %254 = vector.broadcast %253 : vector<1x64xf32> to vector<16x64xf32>
    %255 = arith.mulf %4, %254 : vector<16x64xf32>
    %256 = math.exp %255 : vector<16x64xf32>
    %257 = vector.extract_strided_slice %10 {offsets = [0, 0], sizes = [16, 1], strides = [1, 1]} : vector<32x16xf32> to vector<16x1xf32>
    %258 = vector.extract_strided_slice %11 {offsets = [0, 0], sizes = [1, 64], strides = [1, 1]} : vector<16x64xf32> to vector<1x64xf32>
    %259 = vector.broadcast %257 : vector<16x1xf32> to vector<16x64xf32>
    %260 = vector.broadcast %258 : vector<1x64xf32> to vector<16x64xf32>
    %261 = arith.mulf %259, %260 : vector<16x64xf32>
    %262 = arith.mulf %256, %247 : vector<16x64xf32>
    %263 = arith.addf %262, %261 : vector<16x64xf32>
    %264 = vector.extract_strided_slice %10 {offsets = [16, 0], sizes = [16, 1], strides = [1, 1]} : vector<32x16xf32> to vector<16x1xf32>
    %265 = vector.broadcast %264 : vector<16x1xf32> to vector<16x64xf32>
    %266 = arith.mulf %265, %263 : vector<16x64xf32>
    %cst_32 = arith.constant dense<0.000000e+00> : vector<64xf32>
    %267 = vector.multi_reduction <add>, %266, %cst_32 [0] : vector<16x64xf32> to vector<64xf32>
    %268 = vector.shape_cast %267 : vector<64xf32> to vector<1x64xf32>
    %c0_33 = arith.constant 0 : index
    %c0_34 = arith.constant 0 : index
    %269 = vector.load %arg10[%c0_33, %c0_34] : memref<16x64xf32, #tpu.memory_space<vmem>>, vector<16x64xf32>
    tpu.vector_store %arg10[%c0_33, %c0_34], %263 {strides = array<i32>} : memref<16x64xf32, #tpu.memory_space<vmem>>, vector<16x64xf32>,
    %270 = tpu.concatenate %268, %252, %236, %220, %204, %188, %172, %156, %140, %124, %108, %92, %76, %60, %44, %28 in 0 : vector<1x64xf32>, vector<1x64xf32>, vector<1x64xf32>, vector<1x64xf32>, vector<1x64xf32>, vector<1x64xf32>, vector<1x64xf32>, vector<1x64xf32>, vector<1x64xf32>, vector<1x64xf32>, vector<1x64xf32>, vector<1x64xf32>, vector<1x64xf32>, vector<1x64xf32>, vector<1x64xf32>, vector<1x64xf32> -> vector<16x64xf32>
    %c0_35 = arith.constant 0 : index
    %c0_36 = arith.constant 0 : index
    %c0_37 = arith.constant 0 : index
    %271 = vector.load %arg7[%c0_35, %c0_36, %c0_37] : memref<1x1x64xf32, #tpu.memory_space<vmem>>, vector<1x1x64xf32>
    %272 = vector.shape_cast %271 : vector<1x1x64xf32> to vector<1x64xf32>
    %273 = vector.broadcast %272 : vector<1x64xf32> to vector<16x64xf32>
    %274 = arith.mulf %273, %8 : vector<16x64xf32>
    %275 = arith.addf %270, %274 : vector<16x64xf32>
    %c0_38 = arith.constant 0 : index
    %c0_39 = arith.constant 0 : index
    %c0_40 = arith.constant 0 : index
    %c0_41 = arith.constant 0 : index
    %276 = vector.load %arg8[%c0_38, %c0_39, %c0_40, %c0_41] : memref<1x1x16x64xf32, #tpu.memory_space<vmem>>, vector<1x1x16x64xf32>
    %277 = vector.shape_cast %276 : vector<1x1x16x64xf32> to vector<16x64xf32>
    %278 = arith.addf %275, %277 : vector<16x64xf32>
    %c0_42 = arith.constant 0 : index
    %c0_43 = arith.constant 0 : index
    %c0_44 = arith.constant 0 : index
    %c0_45 = arith.constant 0 : index
    %279 = vector.load %arg9[%c0_42, %c0_43, %c0_44, %c0_45] : memref<1x1x16x64xf32, #tpu.memory_space<vmem>>, vector<1x1x16x64xf32>
    %280 = vector.shape_cast %279 : vector<1x1x16x64xf32> to vector<16x64xf32>
    %281 = vector.shape_cast %278 : vector<16x64xf32> to vector<1x1x16x64xf32>
    tpu.vector_store %arg9[%c0_42, %c0_43, %c0_44, %c0_45], %281 {strides = array<i32>} : memref<1x1x16x64xf32, #tpu.memory_space<vmem>>, vector<1x1x16x64xf32>,
    return
  }
  func.func @transform_0(%arg0: i32, %arg1: i32, %arg2: i32) -> (i32, i32, i32, i32) {
    %c15_i32 = arith.constant 15 : i32
    %0 = arith.subi %c15_i32, %arg2 : i32
    %c0_i32 = arith.constant 0 : i32
    %c0_i32_0 = arith.constant 0 : i32
    return %arg0, %arg1, %0, %c0_i32 : i32, i32, i32, i32
  }
  func.func @transform_1(%arg0: i32, %arg1: i32, %arg2: i32) -> (i32, i32, i32, i32) {
    %c2_i32 = arith.constant 2 : i32
    %0 = arith.addi %arg0, %c2_i32 : i32
    %c15_i32 = arith.constant 15 : i32
    %1 = arith.subi %c15_i32, %arg2 : i32
    %c0_i32 = arith.constant 0 : i32
    %c0_i32_0 = arith.constant 0 : i32
    return %0, %arg1, %1, %c0_i32 : i32, i32, i32, i32
  }
  func.func @transform_2(%arg0: i32, %arg1: i32, %arg2: i32) -> (i32, i32, i32, i32, i32) {
    %c2_i32 = arith.constant 2 : i32
    %0 = arith.addi %arg0, %c2_i32 : i32
    %c15_i32 = arith.constant 15 : i32
    %1 = arith.subi %c15_i32, %arg2 : i32
    %c0_i32 = arith.constant 0 : i32
    %c0_i32_0 = arith.constant 0 : i32
    %c0_i32_1 = arith.constant 0 : i32
    return %0, %arg1, %1, %c0_i32, %c0_i32_0 : i32, i32, i32, i32, i32
  }
  func.func @transform_3(%arg0: i32, %arg1: i32, %arg2: i32) -> (i32, i32, i32) {
    %c2_i32 = arith.constant 2 : i32
    %0 = arith.addi %arg0, %c2_i32 : i32
    %c0_i32 = arith.constant 0 : i32
    %c0_i32_0 = arith.constant 0 : i32
    %c0_i32_1 = arith.constant 0 : i32
    return %0, %c0_i32, %c0_i32_0 : i32, i32, i32
  }
  func.func @transform_4(%arg0: i32, %arg1: i32, %arg2: i32) -> (i32, i32, i32) {
    %c2_i32 = arith.constant 2 : i32
    %0 = arith.addi %arg0, %c2_i32 : i32
    %c0_i32 = arith.constant 0 : i32
    %c0_i32_0 = arith.constant 0 : i32
    %c0_i32_1 = arith.constant 0 : i32
    return %0, %c0_i32, %c0_i32_0 : i32, i32, i32
  }
  func.func @transform_5(%arg0: i32, %arg1: i32, %arg2: i32) -> (i32, i32, i32, i32) {
    %c15_i32 = arith.constant 15 : i32
    %0 = arith.subi %c15_i32, %arg2 : i32
    %c0_i32 = arith.constant 0 : i32
    %c0_i32_0 = arith.constant 0 : i32
    return %arg0, %arg1, %0, %c0_i32 : i32, i32, i32, i32
  }
  func.func @transform_6(%arg0: i32, %arg1: i32, %arg2: i32) -> (i32, i32, i32, i32) {
    %c15_i32 = arith.constant 15 : i32
    %0 = arith.subi %c15_i32, %arg2 : i32
    %c0_i32 = arith.constant 0 : i32
    %c0_i32_0 = arith.constant 0 : i32
    return %arg0, %arg1, %0, %c0_i32 : i32, i32, i32, i32
  }
}

module attributes {stable_mosaic.version = 11 : i64} {
  func.func @out_fused_kernel(%arg0: i32, %arg1: memref<256x64xf32, #tpu.memory_space<vmem>>, %arg2: memref<256x64xf32, #tpu.memory_space<vmem>>, %arg3: memref<1x64xf32, #tpu.memory_space<vmem>>, %arg4: memref<1x64xf32, #tpu.memory_space<vmem>>, %arg5: memref<64x32xbf16, #tpu.memory_space<vmem>>, %arg6: memref<256x32xf32, #tpu.memory_space<vmem>>, %arg7: memref<256x32xf32, #tpu.memory_space<vmem>>) attributes {dimension_semantics = [#tpu.dimension_semantics<parallel>], iteration_bounds = array<i64: 2>, scalar_prefetch = 0 : i64, scratch_operands = 0 : i64, tpu.core_type = #tpu.core_type<tc>, window_params = [{transform_indices = @transform_0, window_bounds = array<i64: 256, 64>}, {transform_indices = @transform_1, window_bounds = array<i64: 256, 64>}, {pipeline_mode = #tpu.pipeline_mode<synchronous>, transform_indices = @transform_2, window_bounds = array<i64: 1, 64>}, {pipeline_mode = #tpu.pipeline_mode<synchronous>, transform_indices = @transform_3, window_bounds = array<i64: 1, 64>}, {pipeline_mode = #tpu.pipeline_mode<synchronous>, transform_indices = @transform_4, window_bounds = array<i64: 64, 32>}, {transform_indices = @transform_5, window_bounds = array<i64: 256, 32>}, {transform_indices = @transform_6, window_bounds = array<i64: 256, 32>}]} {
    %c0 = arith.constant 0 : index
    %c0_0 = arith.constant 0 : index
    %0 = vector.load %arg1[%c0, %c0_0] : memref<256x64xf32, #tpu.memory_space<vmem>>, vector<256x64xf32>
    %cst = arith.constant dense<0.000000e+00> : vector<256xf32>
    %1 = vector.multi_reduction <add>, %0, %cst [1] : vector<256x64xf32> to vector<256xf32>
    %2 = vector.shape_cast %1 : vector<256xf32> to vector<256x1xf32>
    %cst_1 = arith.constant 6.400000e+01 : f32
    %3 = vector.broadcast %cst_1 : f32 to vector<256x1xf32>
    %4 = arith.divf %2, %3 : vector<256x1xf32>
    %5 = vector.broadcast %4 : vector<256x1xf32> to vector<256x64xf32>
    %6 = arith.subf %0, %5 : vector<256x64xf32>
    %7 = arith.mulf %6, %6 : vector<256x64xf32>
    %cst_2 = arith.constant dense<0.000000e+00> : vector<256xf32>
    %8 = vector.multi_reduction <add>, %7, %cst_2 [1] : vector<256x64xf32> to vector<256xf32>
    %9 = vector.shape_cast %8 : vector<256xf32> to vector<256x1xf32>
    %cst_3 = arith.constant 6.400000e+01 : f32
    %10 = vector.broadcast %cst_3 : f32 to vector<256x1xf32>
    %11 = arith.divf %9, %10 : vector<256x1xf32>
    %12 = vector.broadcast %4 : vector<256x1xf32> to vector<256x64xf32>
    %13 = arith.subf %0, %12 : vector<256x64xf32>
    %cst_4 = arith.constant 9.99999974E-6 : f32
    %14 = vector.broadcast %cst_4 : f32 to vector<256x1xf32>
    %15 = arith.addf %11, %14 : vector<256x1xf32>
    %16 = math.rsqrt %15 : vector<256x1xf32>
    %17 = vector.broadcast %16 : vector<256x1xf32> to vector<256x64xf32>
    %18 = arith.mulf %13, %17 : vector<256x64xf32>
    %c0_5 = arith.constant 0 : index
    %c0_6 = arith.constant 0 : index
    %19 = vector.load %arg3[%c0_5, %c0_6] : memref<1x64xf32, #tpu.memory_space<vmem>>, vector<1x64xf32>
    %20 = vector.broadcast %19 : vector<1x64xf32> to vector<256x64xf32>
    %21 = arith.mulf %18, %20 : vector<256x64xf32>
    %c0_7 = arith.constant 0 : index
    %c0_8 = arith.constant 0 : index
    %22 = vector.load %arg4[%c0_7, %c0_8] : memref<1x64xf32, #tpu.memory_space<vmem>>, vector<1x64xf32>
    %23 = vector.broadcast %22 : vector<1x64xf32> to vector<256x64xf32>
    %24 = arith.addf %21, %23 : vector<256x64xf32>
    %c0_9 = arith.constant 0 : index
    %c0_10 = arith.constant 0 : index
    %25 = vector.load %arg2[%c0_9, %c0_10] : memref<256x64xf32, #tpu.memory_space<vmem>>, vector<256x64xf32>
    %cst_11 = arith.constant 0.000000e+00 : f32
    %26 = vector.broadcast %cst_11 : f32 to vector<256x64xf32>
    %27 = arith.subf %26, %25 : vector<256x64xf32>
    %28 = math.exp %27 : vector<256x64xf32>
    %cst_12 = arith.constant 1.000000e+00 : f32
    %29 = vector.broadcast %cst_12 : f32 to vector<256x64xf32>
    %30 = arith.addf %29, %28 : vector<256x64xf32>
    %cst_13 = arith.constant 1.000000e+00 : f32
    %31 = vector.broadcast %cst_13 : f32 to vector<256x64xf32>
    %32 = arith.divf %31, %30 : vector<256x64xf32>
    %33 = arith.mulf %25, %32 : vector<256x64xf32>
    %34 = arith.mulf %24, %33 : vector<256x64xf32>
    %35 = arith.truncf %34 : vector<256x64xf32> to vector<256x64xbf16>
    %c0_14 = arith.constant 0 : index
    %c0_15 = arith.constant 0 : index
    %36 = vector.load %arg5[%c0_14, %c0_15] : memref<64x32xbf16, #tpu.memory_space<vmem>>, vector<64x32xbf16>
    %cst_16 = arith.constant dense<0.000000e+00> : vector<256x32xf32>
    %37 = tpu.matmul %35, %36, %cst_16 {dimension_numbers = #tpu.dot_dimension_numbers<[1], [0], [0], [1], [0, 0, 1, 1], [], []>} : vector<256x64xbf16>, vector<64x32xbf16>, vector<256x32xf32> -> vector<256x32xf32>
    %c0_17 = arith.constant 0 : index
    %c0_18 = arith.constant 0 : index
    %38 = vector.load %arg6[%c0_17, %c0_18] : memref<256x32xf32, #tpu.memory_space<vmem>>, vector<256x32xf32>
    %39 = arith.addf %37, %38 : vector<256x32xf32>
    %c0_19 = arith.constant 0 : index
    %c0_20 = arith.constant 0 : index
    %40 = vector.load %arg7[%c0_19, %c0_20] : memref<256x32xf32, #tpu.memory_space<vmem>>, vector<256x32xf32>
    tpu.vector_store %arg7[%c0_19, %c0_20], %39 {strides = array<i32>} : memref<256x32xf32, #tpu.memory_space<vmem>>, vector<256x32xf32>,
    return
  }
  func.func @transform_0(%arg0: i32) -> (i32, i32) {
    %c0_i32 = arith.constant 0 : i32
    %c0_i32_0 = arith.constant 0 : i32
    return %arg0, %c0_i32 : i32, i32
  }
  func.func @transform_1(%arg0: i32) -> (i32, i32) {
    %c0_i32 = arith.constant 0 : i32
    %c0_i32_0 = arith.constant 0 : i32
    return %arg0, %c0_i32 : i32, i32
  }
  func.func @transform_2(%arg0: i32) -> (i32, i32) {
    %c0_i32 = arith.constant 0 : i32
    %c0_i32_0 = arith.constant 0 : i32
    %c0_i32_1 = arith.constant 0 : i32
    return %c0_i32, %c0_i32_0 : i32, i32
  }
  func.func @transform_3(%arg0: i32) -> (i32, i32) {
    %c0_i32 = arith.constant 0 : i32
    %c0_i32_0 = arith.constant 0 : i32
    %c0_i32_1 = arith.constant 0 : i32
    return %c0_i32, %c0_i32_0 : i32, i32
  }
  func.func @transform_4(%arg0: i32) -> (i32, i32) {
    %c0_i32 = arith.constant 0 : i32
    %c0_i32_0 = arith.constant 0 : i32
    %c0_i32_1 = arith.constant 0 : i32
    return %c0_i32, %c0_i32_0 : i32, i32
  }
  func.func @transform_5(%arg0: i32) -> (i32, i32) {
    %c0_i32 = arith.constant 0 : i32
    %c0_i32_0 = arith.constant 0 : i32
    return %arg0, %c0_i32 : i32, i32
  }
  func.func @transform_6(%arg0: i32) -> (i32, i32) {
    %c0_i32 = arith.constant 0 : i32
    %c0_i32_0 = arith.constant 0 : i32
    return %arg0, %c0_i32 : i32, i32
  }
}

</mosaic_0001>

<bundles_post_ra>
// kernel: _lambda_.6
= control target key start
LH: loop header
LB: loop body
LE: loop exit
PB: predicated region body
PF: predicated region fallthrough
CT: control target
= control target key end

     0   :  { %12 = vsyncpa [#allocation3], 0  ;;  %s2676_s0 = inlined_call_operand.hbm [shape: f32[512,32], index: 0, kind: input, shape index: {}]   ;;  %s2677_s1 = inlined_call_operand.vmem [shape: f32[1,32], index: 1, kind: input, shape index: {}]   ;;  %s2678_s2 = inlined_call_operand.vmem [shape: f32[1,32], index: 2, kind: input, shape index: {}]   ;;  %s2679_s3 = inlined_call_operand.hbm [shape: bf16[32,64], index: 3, kind: input, shape index: {}]   ;;  %s2680_s4 = inlined_call_operand.hbm [shape: bf16[32,64], index: 4, kind: input, shape index: {}]   ;;  %s2681_s5 = inlined_call_operand.vmem [shape: f32[512,64], index: 5, kind: output, shape index: {0}]   ;;  %s2682_s6 = inlined_call_operand.vmem [shape: f32[512,64], index: 6, kind: output, shape index: {1}]  }
   0x1   :  { %14 = vsyncpa [#allocation3 + $0x1], 0 }
   0x2   :  { %15 = vsyncpa [#allocation5], 0  ;;  %s1909_s21 = smov 0   ;;  %s1911_s22 = smov 0  }
   0x3   :  { %s1913_s23 = smov 0   ;;  %s1915_s24 = smov 0  }
   0x4 LB: > { %s1449_s25 = sadd.s32 4294967295, %s1865_s24   ;;  %p41_p0 = scmp.ne.s32.totalorder %s1857_s22, %s1853_s21  ;;  %s1865_s24 = sphi %s1915_s24, %s2698_s24   ;;  %s1861_s23 = sphi %s1913_s23, %s2697_s23   ;;  %s1857_s22 = sphi %s1911_s22, %s2696_s22   ;;  %s1853_s21 = sphi %s1909_s21, %s2695_s21  }
   0x5   : > { %p1931_p1 = scmp.eq.s32.totalorder %s1449_s25, 0  ;;  %p1451_p2 = scmp.ge.s32.totalorder %s1865_s24, 1 }
   0x6   : > { %p188_p3 = scmp.lt.s32.totalorder %s1865_s24, 3  ;;  %s1867_s29 = smov [#allocation4]  }
   0x7   : > { %s2687_s26 = scalar_select %p1931_p1, 1, 0 }
   0x8   : > { %p1939_p4 = por %p1931_p1, %p41_p0  ;;  %p1943_p5 = pnand %p1451_p2, %p188_p3 }
   0x9   : > { %s206_s30 = sshll.u32 %s1867_s29, 4  ;;  %s1868_s8 = smov [#allocation6]   ;;  %s207_s30 = int_to_ptr.vmem [resolvable:$true] %s206_s30 }
   0xa   : > { %s2688_s27 = scalar_select %p1939_p4, 1, 0 }
   0xb   : > { %s2689_s28 = scalar_select %p1943_p5, 1, 0 }
   0xc   : > { %p1625_p6 = pneg %p1943_p5  ;;  %s219_s9 = sshll.u32 %s1868_s8, 4  ;;  %s220_s9 = int_to_ptr.vmem [resolvable:$true] %s219_s9 }
   0xd   : > { %s1758_s10 = scalar_lea.vmem %s207_s30, 256  ;;  %p1766_p12 = scmp.lt.s32.totalorder %s207_s30, %s207_s30 }
   0xe   : > { %p1951_p7 = pnand %p1625_p6, %p1931_p1  ;;  %p1759_p9 = scmp.ne.s32.totalorder %s207_s30, %s1758_s10 }
   0xf   : > { %p1767_p13 = scmp.lt.s32.totalorder %s1758_s10, %s1758_s10 }
  0x10   : > { %p1749_p8 = pneg %p1951_p7 }
  0x11   : > { %p1768_p0 = por %p1767_p13, %p1766_p12 }
  0x12   : > { %p1761_p10 = pnand %p1759_p9, %p1749_p8 }
  0x14   : > { %p1762_p11 = pneg %p1761_p10 }
  0x16   : > { %p1769_p2 = pnand %p1768_p0, %p1762_p11 }
  0x18   : > { %1772 = shalt.err (!%p1769_p2)
}
  0x19   : > { %s1869_s11 = smov 64   ;;  %s1870_s12 = smov 4  }
  0x1a   : > { %1628 = dma.hbm_to_vmem [thread:$0]  (!%p1951_p7), %s2679_s3, 256, %s207_s30, [#allocation5], %s1869_s11, %s1869_s11, %s1870_s12  }
  0x1b   : > { %s1784_s15 = scalar_lea.vmem %s220_s9, 256  ;;  %p1792_p10 = scmp.lt.s32.totalorder %s220_s9, %s220_s9 }
  0x1c   : > { %p1785_p3 = scmp.ne.s32.totalorder %s220_s9, %s1784_s15  ;;  %p1793_p1 = scmp.lt.s32.totalorder %s1784_s15, %s1784_s15 }
  0x1e   : > { %p1787_p6 = pnand %p1785_p3, %p1749_p8  ;;  %p1794_p12 = por %p1793_p1, %p1792_p10 }
  0x20   : > { %p1788_p9 = pneg %p1787_p6 }
  0x22   : > { %p1795_p11 = pnand %p1794_p12, %p1788_p9 }
  0x24   : > { %1798 = shalt.err (!%p1795_p11)
}
  0x25   : > { %1631 = dma.hbm_to_vmem [thread:$0]  (!%p1951_p7), %s2680_s4, 256, %s220_s9, [#allocation5], %s1869_s11, %s1869_s11, %s1870_s12  }
  0x26   : > { %s1974_s18 = sadd.s32 1, %s1865_s24   ;;  %s28_s19 = sadd.s32 1, %s1861_s23 }
  0x27   : > { %s25_s20 = ssub.s32 %s1865_s24, %s1974_s18  ;;  %p35_p1 = scmp.ne.s32.totalorder %s1861_s23, %s1857_s22 }
  0x28   : > { %p26_p8 = scmp.eq.s32.totalorder %s25_s20, 0  ;;  %p36_p13 = scmp.eq.s32.totalorder %s1865_s24, 0 }
  0x29   : > { %p1638_p0 = scmp.lt.s32.totalorder %s1865_s24, 2  ;;  %s233_s21 = sand.u32 1, %s1861_s23  }
  0x2a   : > { %s1985_s29 = scalar_select %p26_p8, %s1861_s23, %s28_s19  }
  0x2b   : > { %p37_p2 = por %p36_p13, %p35_p1  ;;  %s1455_s30 = sshll.u32 %s233_s21, 8 }
  0x2c   : > { %s1506_s7 = sshll.u32 %s1865_s24, 12  ;;  %s237_s9 = scalar_lea.vmem [#allocation2], %s1455_s30 }
  0x2d   : > { %s1991_s13 = scalar_lea.hbm %s2676_s0, %s1506_s7  ;;  %s244_s11 = sshll.u32 %s237_s9, 4  ;;  %s1997_s11 = int_to_ptr.vmem [resolvable:$true] %s244_s11 }
  0x2e   : > { %p1993_p7 = pnand %p1638_p0, %p37_p2  ;;  %s1999_s14 = scalar_lea.sflag [#allocation3], %s233_s21 }
  0x2f   : > { %s1799_s15 = scalar_lea.hbm %s1991_s13, 4096  ;;  %s1804_s19 = scalar_lea.hbm %s2676_s0, 8192 }
  0x30   : > { %p1800_p3 = scmp.ne.s32.totalorder %s1991_s13, %s1799_s15  ;;  %p1801_p6 = pneg %p1993_p7 }
  0x31   : > { %p1805_p12 = scmp.lt.s32.totalorder %s1991_s13, %s2676_s0  ;;  %p1806_p11 = scmp.lt.s32.totalorder %s1804_s19, %s1799_s15 }
  0x32   : > { %p1802_p9 = pnand %p1801_p6, %p1800_p3 }
  0x33   : > { %p1807_p1 = por %p1806_p11, %p1805_p12 }
  0x34   : > { %p1803_p10 = pneg %p1802_p9 }
  0x36   : > { %p1808_p8 = pnand %p1807_p1, %p1803_p10 }
  0x38   : > { %1811 = shalt.err (!%p1808_p8)
}
  0x39   : > { %s1812_s21 = scalar_lea.vmem %s1997_s11, 4096  ;;  %s1871_s7 = smov [#allocation2]  }
  0x3a   : > { %p1813_p13 = scmp.ne.s32.totalorder %s1997_s11, %s1812_s21  ;;  %s1817_s8 = sshll.u32 %s1871_s7, 4  ;;  %s1818_s8 = int_to_ptr.vmem [resolvable:$false] %s1817_s8 }
  0x3b   : > { %s1819_s10 = scalar_lea.vmem %s1818_s8, 8192  ;;  %p1820_p3 = scmp.lt.s32.totalorder %s1997_s11, %s1818_s8 }
  0x3c   : > { %p1815_p0 = pnand %p1813_p13, %p1801_p6  ;;  %p1821_p9 = scmp.lt.s32.totalorder %s1819_s10, %s1812_s21 }
  0x3e   : > { %p1816_p2 = pneg %p1815_p0  ;;  %p1822_p4 = por %p1821_p9, %p1820_p3 }
  0x40   : > { %p1823_p5 = pnand %p1822_p4, %p1816_p2 }
  0x42   : > { %1826 = shalt.err (!%p1823_p5)
}
  0x43   : > { %s1872_s9 = smov 128   ;;  %s1873_s15 = smov 8  }
  0x44   : > { %1635 = dma.hbm_to_vmem [thread:$0]  (!%p1993_p7), %s1991_s13, 4096, %s1997_s11, %s1999_s14, %s1872_s9, %s1872_s9, %s1873_s15  }
  0x45   : > { %p2692_p6 = scmp.ne.s32.totalorder %s2689_s28, 0 }
  0x46   : > { %s258_s16 = sand.u32 (!%p2692_p6), 1, %s1857_s22   ;;  %p2693_p4 = scmp.ne.s32.totalorder (!%p2692_p6), %s2688_s27, 0 }
  0x47   : > { %256 = sbr.rel (%p2692_p6) target bundleno = 656 (0x290), region = 40  ;;  %s1459_s17 = sshll.u32 (!%p2692_p6), %s258_s16, 8 }
  0x48   : > { %s259_s19 = scalar_lea.sflag (!%p2692_p6), [#allocation3], %s258_s16  ;;  %s2023_s20 = scalar_lea.vmem (!%p2692_p6), [#allocation2], %s1459_s17 }
  0x4c   : > { %1844 = dma.done.wait (%p2693_p4), %s259_s19, 4096  }
  0x4d   : > { %1846 = vsyncadd (%p2693_p4), %s259_s19, 4294963200  ;;  %p2694_p5 = scmp.ne.s32.totalorder %s2687_s26, 0 }
  0x4f   : > { %1848 = dma.done.wait (%p2694_p5), [#allocation5], 512  }
  0x50   : > { %1850 = vsyncadd (%p2694_p5), [#allocation5], 4294966784  ;;  %vm350_vm0 = vcmask 261120   ;;  %v2034_v0 = vld [vmem:[%s2023_s20] sm:$0xff]  ;;  %v2037_v1 = vld [vmem:[%s2023_s20 + $0x10] sm:$0xff]  ;;  %s1462_s11 = sshll.u32 %s1449_s25, 5 }
  0x51   : > { %v2040_v2 = vld [vmem:[%s2023_s20 + $0x8] sm:$0xff]  ;;  %v351_v3 = vsel %vm350_vm0, %v2034_v0, 0.0  ;;  %v357_v4 = vsel %vm350_vm0, %v2037_v1, 0.0  ;;  %v2047_v5 = vld [vmem:[%s2023_s20 + $0x18] sm:$0xff]  ;;  %v2054_v8 = vld [vmem:[%s2023_s20 + $0x20] sm:$0xff]  ;;  %p306_p7 = scmp.lt.s32.totalorder %s1462_s11, 63 }
  0x52   : > { %352 = vadd.xlane.f32.xlu0 %v351_v3  ;;  %358 = vadd.xlane.f32.xlu1 %v357_v4  ;;  %v354_v6 = vsel %vm350_vm0, %v2040_v2, 0.0  ;;  %v360_v7 = vsel %vm350_vm0, %v2047_v5, 0.0  ;;  %v2057_v9 = vld [vmem:[%s2023_s20 + $0x28] sm:$0xff]  ;;  %v363_v10 = vsel %vm350_vm0, %v2054_v8, 0.0  ;;  %v2064_v12 = vld [vmem:[%s2023_s20 + $0x30] sm:$0xff]  ;;  %v2067_v13 = vld [vmem:[%s2023_s20 + $0x38] sm:$0xff] }
  0x53   : > { %v366_v11 = vsel %vm350_vm0, %v2057_v9, 0.0  ;;  %v369_v14 = vsel %vm350_vm0, %v2064_v12, 0.0  ;;  %v2072_v15 = vld [vmem:[%s2023_s20 + $0x40] sm:$0xff]  ;;  %v372_v16 = vsel %vm350_vm0, %v2067_v13, 0.0  ;;  %v2077_v17 = vld [vmem:[%s2023_s20 + $0x48] sm:$0xff]  ;;  %v2084_v20 = vld [vmem:[%s2023_s20 + $0x50] sm:$0xff] }
  0x54   : > { %v375_v18 = vsel %vm350_vm0, %v2072_v15, 0.0  ;;  %v378_v19 = vsel %vm350_vm0, %v2077_v17, 0.0  ;;  %v2087_v21 = vld [vmem:[%s2023_s20 + $0x58] sm:$0xff]  ;;  %v381_v22 = vsel %vm350_vm0, %v2084_v20, 0.0  ;;  %v2094_v24 = vld [vmem:[%s2023_s20 + $0x60] sm:$0xff]  ;;  %v2097_v25 = vld [vmem:[%s2023_s20 + $0x68] sm:$0xff] }
  0x55   : > { %v384_v23 = vsel %vm350_vm0, %v2087_v21, 0.0  ;;  %v387_v26 = vsel %vm350_vm0, %v2094_v24, 0.0  ;;  %v390_v27 = vsel %vm350_vm0, %v2097_v25, 0.0  ;;  %v2104_v28 = vld [vmem:[%s2023_s20 + $0x70] sm:$0xff]  ;;  %v2107_v29 = vld [vmem:[%s2023_s20 + $0x78] sm:$0xff]  ;;  %v2114_v32 = vld [vmem:[%s2023_s20 + $0x80] sm:$0xff] }
  0x56   : > { %355 = vadd.xlane.f32.xlu0 %v354_v6  ;;  %361 = vadd.xlane.f32.xlu1 %v360_v7  ;;  %v393_v30 = vsel %vm350_vm0, %v2104_v28, 0.0  ;;  %v396_v31 = vsel %vm350_vm0, %v2107_v29, 0.0  ;;  %v2117_v33 = vld [vmem:[%s2023_s20 + $0x88] sm:$0xff]  ;;  %v399_v34 = vsel %vm350_vm0, %v2114_v32, 0.0  ;;  %v2124_v36 = vld [vmem:[%s2023_s20 + $0x90] sm:$0xff]  ;;  %v2127_v37 = vld [vmem:[%s2023_s20 + $0x98] sm:$0xff] }
  0x57   : > { %v402_v35 = vsel %vm350_vm0, %v2117_v33, 0.0  ;;  %v405_v38 = vsel %vm350_vm0, %v2124_v36, 0.0  ;;  %v408_v39 = vsel %vm350_vm0, %v2127_v37, 0.0  ;;  %v2134_v40 = vld [vmem:[%s2023_s20 + $0xa0] sm:$0xff]  ;;  %v2137_v41 = vld [vmem:[%s2023_s20 + $0xa8] sm:$0xff]  ;;  %v2144_v44 = vld [vmem:[%s2023_s20 + $0xb0] sm:$0xff] }
  0x58   : > { %v411_v42 = vsel %vm350_vm0, %v2134_v40, 0.0  ;;  %v414_v43 = vsel %vm350_vm0, %v2137_v41, 0.0  ;;  %v2147_v45 = vld [vmem:[%s2023_s20 + $0xb8] sm:$0xff]  ;;  %v417_v46 = vsel %vm350_vm0, %v2144_v44, 0.0  ;;  %v2154_v48 = vld [vmem:[%s2023_s20 + $0xc0] sm:$0xff]  ;;  %v2157_v49 = vld [vmem:[%s2023_s20 + $0xc8] sm:$0xff] }
  0x59   : > { %v420_v47 = vsel %vm350_vm0, %v2147_v45, 0.0  ;;  %v423_v50 = vsel %vm350_vm0, %v2154_v48, 0.0  ;;  %v426_v51 = vsel %vm350_vm0, %v2157_v49, 0.0  ;;  %v2164_v52 = vld [vmem:[%s2023_s20 + $0xd0] sm:$0xff]  ;;  %v2167_v53 = vld [vmem:[%s2023_s20 + $0xd8] sm:$0xff]  ;;  %v2174_v56 = vld [vmem:[%s2023_s20 + $0xe0] sm:$0xff] }
  0x5a   : > { %364 = vadd.xlane.f32.xlu0 %v363_v10  ;;  %367 = vadd.xlane.f32.xlu1 %v366_v11  ;;  %v429_v54 = vsel %vm350_vm0, %v2164_v52, 0.0  ;;  %v432_v55 = vsel %vm350_vm0, %v2167_v53, 0.0  ;;  %v2177_v57 = vld [vmem:[%s2023_s20 + $0xe8] sm:$0xff]  ;;  %v435_v58 = vsel %vm350_vm0, %v2174_v56, 0.0  ;;  %v2184_v60 = vld [vmem:[%s2023_s20 + $0xf0] sm:$0xff]  ;;  %v2187_v61 = vld [vmem:[%s2023_s20 + $0xf8] sm:$0xff] }
  0x5b   : > { %v438_v59 = vsel %vm350_vm0, %v2177_v57, 0.0  ;;  %v441_v62 = vsel %vm350_vm0, %v2184_v60, 0.0  ;;  %v444_v63 = vsel %vm350_vm0, %v2187_v61, 0.0  ;;  %s2700_s11 = smov (!%p306_p7, %s1462_s11), 63  ;;  %vm1087_vm1 = vcmask 523264  }
  0x5c   : > { %s1463_s12 = sshll.u32 %s2700_s11, 3 }
  0x5d   : > { %s2528_s21 = scalar_lea.vmem %s2681_s5, %s1463_s12  ;;  %s2533_s10 = scalar_lea.vmem %s2682_s6, %s1463_s12 }
  0x5e   : > { %370 = vadd.xlane.f32.xlu0 %v369_v14  ;;  %373 = vadd.xlane.f32.xlu1 %v372_v16 }
  0x62   : > { %376 = vadd.xlane.f32.xlu0 %v375_v18  ;;  %379 = vadd.xlane.f32.xlu1 %v378_v19 }
  0x66   : > { %382 = vadd.xlane.f32.xlu0 %v381_v22  ;;  %385 = vadd.xlane.f32.xlu1 %v384_v23 }
  0x6a   : > { %388 = vadd.xlane.f32.xlu0 %v387_v26  ;;  %391 = vadd.xlane.f32.xlu1 %v390_v27 }
  0x6e   : > { %394 = vadd.xlane.f32.xlu0 %v393_v30  ;;  %397 = vadd.xlane.f32.xlu1 %v396_v31 }
  0x72   : > { %400 = vadd.xlane.f32.xlu0 %v399_v34  ;;  %403 = vadd.xlane.f32.xlu1 %v402_v35 }
  0x76   : > { %406 = vadd.xlane.f32.xlu0 %v405_v38  ;;  %409 = vadd.xlane.f32.xlu1 %v408_v39 }
  0x7a   : > { %412 = vadd.xlane.f32.xlu0 %v411_v42  ;;  %415 = vadd.xlane.f32.xlu1 %v414_v43 }
  0x7e   : > { %418 = vadd.xlane.f32.xlu0 %v417_v46  ;;  %421 = vadd.xlane.f32.xlu1 %v420_v47 }
  0x82   : > { %424 = vadd.xlane.f32.xlu0 %v423_v50  ;;  %427 = vadd.xlane.f32.xlu1 %v426_v51 }
  0x86   : > { %430 = vadd.xlane.f32.xlu0 %v429_v54  ;;  %433 = vadd.xlane.f32.xlu1 %v432_v55 }
  0x8a   : > { %436 = vadd.xlane.f32.xlu0 %v435_v58  ;;  %439 = vadd.xlane.f32.xlu1 %v438_v59 }
  0x8e   : > { %442 = vadd.xlane.f32.xlu0 %v441_v62  ;;  %445 = vadd.xlane.f32.xlu1 %v444_v63 }
  0xdb   : > { %v353_v3 = vpop.xlane.xlu0 %352  ;;  %v359_v4 = vpop.xlane.xlu1 %358 }
  0xdc   : > { %v448_v6 = vmul.f32 0.03125, %v353_v3  ;;  %v450_v7 = vmul.f32 0.03125, %v359_v4 }
  0xde   : > { %v2194_v10 = vsub.f32 %v2034_v0, %v448_v6  ;;  %v2197_v11 = vsub.f32 %v2037_v1, %v450_v7 }
  0xdf   : > { %v356_v14 = vpop.xlane.xlu0 %355  ;;  %v362_v16 = vpop.xlane.xlu1 %361 }
  0xe0   : > { %v449_v18 = vmul.f32 0.03125, %v356_v14  ;;  %v451_v19 = vmul.f32 0.03125, %v362_v16  ;;  %v512_v22 = vmul.f32 %v2194_v10, %v2194_v10  ;;  %v514_v23 = vmul.f32 %v2197_v11, %v2197_v11 }
  0xe2   : > { %v2204_v26 = vsub.f32 %v2040_v2, %v449_v18  ;;  %v2207_v27 = vsub.f32 %v2047_v5, %v451_v19  ;;  %v544_v0 = vsel %vm350_vm0, %v512_v22, 0.0  ;;  %v550_v31 = vsel %vm350_vm0, %v514_v23, 0.0 }
  0xe3   : > { %545 = vadd.xlane.f32.xlu0 %v544_v0  ;;  %v365_v1 = vpop.xlane.xlu0 %364  ;;  %v368_v30 = vpop.xlane.xlu1 %367 }
  0xe4   : > { %v452_v34 = vmul.f32 0.03125, %v365_v1  ;;  %v453_v35 = vmul.f32 0.03125, %v368_v30  ;;  %v513_v38 = vmul.f32 %v2204_v26, %v2204_v26  ;;  %v515_v39 = vmul.f32 %v2207_v27, %v2207_v27 }
  0xe6   : > { %v2216_v2 = vsub.f32 %v2054_v8, %v452_v34  ;;  %v2219_v5 = vsub.f32 %v2057_v9, %v453_v35  ;;  %v547_v42 = vsel %vm350_vm0, %v513_v38, 0.0  ;;  %v553_v47 = vsel %vm350_vm0, %v515_v39, 0.0 }
  0xe7   : > { %551 = vadd.xlane.f32.xlu0 %v550_v31  ;;  %548 = vadd.xlane.f32.xlu1 %v547_v42  ;;  %v371_v43 = vpop.xlane.xlu0 %370  ;;  %v374_v46 = vpop.xlane.xlu1 %373 }
  0xe8   : > { %v454_v50 = vmul.f32 0.03125, %v371_v43  ;;  %v455_v51 = vmul.f32 0.03125, %v374_v46  ;;  %v516_v54 = vmul.f32 %v2216_v2, %v2216_v2  ;;  %v517_v8 = vmul.f32 %v2219_v5, %v2219_v5 }
  0xea   : > { %v2228_v55 = vsub.f32 %v2064_v12, %v454_v50  ;;  %v2231_v9 = vsub.f32 %v2067_v13, %v455_v51  ;;  %v556_v58 = vsel %vm350_vm0, %v516_v54, 0.0  ;;  %v559_v63 = vsel %vm350_vm0, %v517_v8, 0.0 }
  0xeb   : > { %554 = vadd.xlane.f32.xlu1 %v553_v47  ;;  %557 = vadd.xlane.f32.xlu0 %v556_v58  ;;  %v377_v59 = vpop.xlane.xlu0 %376  ;;  %v380_v62 = vpop.xlane.xlu1 %379 }
  0xec   : > { %v456_v3 = vmul.f32 0.03125, %v377_v59  ;;  %v457_v4 = vmul.f32 0.03125, %v380_v62  ;;  %v518_v6 = vmul.f32 %v2228_v55, %v2228_v55  ;;  %v519_v12 = vmul.f32 %v2231_v9, %v2231_v9 }
  0xee   : > { %v2240_v7 = vsub.f32 %v2072_v15, %v456_v3  ;;  %v2243_v13 = vsub.f32 %v2077_v17, %v457_v4  ;;  %v562_v14 = vsel %vm350_vm0, %v518_v6, 0.0  ;;  %v565_v19 = vsel %vm350_vm0, %v519_v12, 0.0 }
  0xef   : > { %560 = vadd.xlane.f32.xlu1 %v559_v63  ;;  %563 = vadd.xlane.f32.xlu0 %v562_v14  ;;  %v383_v16 = vpop.xlane.xlu0 %382  ;;  %v386_v18 = vpop.xlane.xlu1 %385 }
  0xf0   : > { %v458_v22 = vmul.f32 0.03125, %v383_v16  ;;  %v459_v23 = vmul.f32 0.03125, %v386_v18  ;;  %v520_v0 = vmul.f32 %v2240_v7, %v2240_v7  ;;  %v521_v15 = vmul.f32 %v2243_v13, %v2243_v13 }
  0xf2   : > { %v2252_v1 = vsub.f32 %v2084_v20, %v458_v22  ;;  %v2255_v17 = vsub.f32 %v2087_v21, %v459_v23  ;;  %v568_v30 = vsel %vm350_vm0, %v520_v0, 0.0  ;;  %v571_v35 = vsel %vm350_vm0, %v521_v15, 0.0 }
  0xf3   : > { %566 = vadd.xlane.f32.xlu1 %v565_v19  ;;  %569 = vadd.xlane.f32.xlu0 %v568_v30  ;;  %v389_v31 = vpop.xlane.xlu0 %388  ;;  %v392_v34 = vpop.xlane.xlu1 %391 }
  0xf4   : > { %v460_v38 = vmul.f32 0.03125, %v389_v31  ;;  %v461_v39 = vmul.f32 0.03125, %v392_v34  ;;  %v522_v42 = vmul.f32 %v2252_v1, %v2252_v1  ;;  %v523_v20 = vmul.f32 %v2255_v17, %v2255_v17 }
  0xf6   : > { %v2264_v43 = vsub.f32 %v2094_v24, %v460_v38  ;;  %v2267_v21 = vsub.f32 %v2097_v25, %v461_v39  ;;  %v574_v46 = vsel %vm350_vm0, %v522_v42, 0.0  ;;  %v577_v51 = vsel %vm350_vm0, %v523_v20, 0.0 }
  0xf7   : > { %572 = vadd.xlane.f32.xlu1 %v571_v35  ;;  %575 = vadd.xlane.f32.xlu0 %v574_v46  ;;  %v395_v47 = vpop.xlane.xlu0 %394  ;;  %v398_v50 = vpop.xlane.xlu1 %397 }
  0xf8   : > { %v462_v54 = vmul.f32 0.03125, %v395_v47  ;;  %v463_v8 = vmul.f32 0.03125, %v398_v50  ;;  %v524_v58 = vmul.f32 %v2264_v43, %v2264_v43  ;;  %v525_v24 = vmul.f32 %v2267_v21, %v2267_v21 }
  0xfa   : > { %v2276_v59 = vsub.f32 %v2104_v28, %v462_v54  ;;  %v2279_v25 = vsub.f32 %v2107_v29, %v463_v8  ;;  %v580_v62 = vsel %vm350_vm0, %v524_v58, 0.0  ;;  %v583_v4 = vsel %vm350_vm0, %v525_v24, 0.0  ;;  %v1680_v54 = vld [vmem:[#allocation6 + $0x8] sm:$0xff]  }
  0xfb   : > { %578 = vadd.xlane.f32.xlu1 %v577_v51  ;;  %581 = vadd.xlane.f32.xlu0 %v580_v62  ;;  %v401_v63 = vpop.xlane.xlu0 %400  ;;  %v404_v3 = vpop.xlane.xlu1 %403  ;;  %v1679_v51 = vld [vmem:[#allocation4 + $0x8] sm:$0xff]  }
  0xfc   : > { %v464_v6 = vmul.f32 0.03125, %v401_v63  ;;  %v465_v12 = vmul.f32 0.03125, %v404_v3  ;;  %v526_v14 = vmul.f32 %v2276_v59, %v2276_v59  ;;  %v527_v28 = vmul.f32 %v2279_v25, %v2279_v25  ;;  %1543 = vmatprep.subr.bf16.mxu0 %v1679_v51  ;;  %1579 = vmatprep.subr.bf16.mxu1 %v1680_v54 }
  0xfd   : > { %1544 = vmatpush3.bf16.msra.mxu0 %v1679_v51  ;;  %1580 = vmatpush3.bf16.msra.mxu1 %v1680_v54 }
  0xfe   : > { %v2288_v16 = vsub.f32 %v2114_v32, %v464_v6  ;;  %v2291_v29 = vsub.f32 %v2117_v33, %v465_v12  ;;  %v586_v18 = vsel %vm350_vm0, %v526_v14, 0.0  ;;  %v589_v23 = vsel %vm350_vm0, %v527_v28, 0.0  ;;  %v1681_v12 = vld [vmem:[#allocation4] sm:$0xff]   ;;  %v1682_v14 = vld [vmem:[#allocation6] sm:$0xff]  }
  0xff   : > { %584 = vadd.xlane.f32.xlu1 %v583_v4  ;;  %587 = vadd.xlane.f32.xlu0 %v586_v18  ;;  %v407_v19 = vpop.xlane.xlu0 %406  ;;  %v410_v22 = vpop.xlane.xlu1 %409 }
 0x100   : > { %v466_v0 = vmul.f32 0.03125, %v407_v19  ;;  %v467_v15 = vmul.f32 0.03125, %v410_v22  ;;  %v528_v30 = vmul.f32 %v2288_v16, %v2288_v16  ;;  %v529_v32 = vmul.f32 %v2291_v29, %v2291_v29  ;;  %1545 = vmatprep.subr.bf16.mxu0 %v1681_v12  ;;  %1581 = vmatprep.subr.bf16.mxu1 %v1682_v14 }
 0x101   : > { %1546 = vmatpush3.bf16.msra.mxu0 %v1681_v12  ;;  %1582 = vmatpush3.bf16.msra.mxu1 %v1682_v14 }
 0x102   : > { %v2300_v31 = vsub.f32 %v2124_v36, %v466_v0  ;;  %v2303_v33 = vsub.f32 %v2127_v37, %v467_v15  ;;  %v592_v34 = vsel %vm350_vm0, %v528_v30, 0.0  ;;  %v595_v39 = vsel %vm350_vm0, %v529_v32, 0.0 }
 0x103   : > { %590 = vadd.xlane.f32.xlu1 %v589_v23  ;;  %593 = vadd.xlane.f32.xlu0 %v592_v34  ;;  %v413_v35 = vpop.xlane.xlu0 %412  ;;  %v416_v38 = vpop.xlane.xlu1 %415 }
 0x104   : > { %v468_v42 = vmul.f32 0.03125, %v413_v35  ;;  %v469_v20 = vmul.f32 0.03125, %v416_v38  ;;  %v530_v46 = vmul.f32 %v2300_v31, %v2300_v31  ;;  %v531_v36 = vmul.f32 %v2303_v33, %v2303_v33 }
 0x106   : > { %v2312_v47 = vsub.f32 %v2134_v40, %v468_v42  ;;  %v2315_v37 = vsub.f32 %v2137_v41, %v469_v20  ;;  %v598_v50 = vsel %vm350_vm0, %v530_v46, 0.0  ;;  %v601_v24 = vsel %vm350_vm0, %v531_v36, 0.0 }
 0x107   : > { %596 = vadd.xlane.f32.xlu1 %v595_v39  ;;  %599 = vadd.xlane.f32.xlu0 %v598_v50  ;;  %v419_v8 = vpop.xlane.xlu0 %418  ;;  %v422_v58 = vpop.xlane.xlu1 %421 }
 0x108   : > { %v470_v62 = vmul.f32 0.03125, %v419_v8  ;;  %v471_v63 = vmul.f32 0.03125, %v422_v58  ;;  %v532_v3 = vmul.f32 %v2312_v47, %v2312_v47  ;;  %v533_v40 = vmul.f32 %v2315_v37, %v2315_v37 }
 0x10a   : > { %v2324_v41 = vsub.f32 %v2144_v44, %v470_v62  ;;  %v2327_v4 = vsub.f32 %v2147_v45, %v471_v63  ;;  %v604_v6 = vsel %vm350_vm0, %v532_v3, 0.0  ;;  %v607_v19 = vsel %vm350_vm0, %v533_v40, 0.0 }
 0x10b   : > { %602 = vadd.xlane.f32.xlu1 %v601_v24  ;;  %605 = vadd.xlane.f32.xlu0 %v604_v6  ;;  %v425_v28 = vpop.xlane.xlu0 %424  ;;  %v428_v18 = vpop.xlane.xlu1 %427 }
 0x10c   : > { %v472_v22 = vmul.f32 0.03125, %v425_v28  ;;  %v473_v23 = vmul.f32 0.03125, %v428_v18  ;;  %v534_v0 = vmul.f32 %v2324_v41, %v2324_v41  ;;  %v535_v44 = vmul.f32 %v2327_v4, %v2327_v4 }
 0x10e   : > { %v2336_v45 = vsub.f32 %v2154_v48, %v472_v22  ;;  %v2339_v15 = vsub.f32 %v2157_v49, %v473_v23  ;;  %v610_v30 = vsel %vm350_vm0, %v534_v0, 0.0  ;;  %v613_v35 = vsel %vm350_vm0, %v535_v44, 0.0 }
 0x10f   : > { %608 = vadd.xlane.f32.xlu1 %v607_v19  ;;  %611 = vadd.xlane.f32.xlu0 %v610_v30  ;;  %v431_v32 = vpop.xlane.xlu0 %430  ;;  %v434_v34 = vpop.xlane.xlu1 %433 }
 0x110   : > { %v474_v38 = vmul.f32 0.03125, %v431_v32  ;;  %v475_v39 = vmul.f32 0.03125, %v434_v34  ;;  %v536_v42 = vmul.f32 %v2336_v45, %v2336_v45  ;;  %v537_v48 = vmul.f32 %v2339_v15, %v2339_v15 }
 0x112   : > { %v2348_v20 = vsub.f32 %v2164_v52, %v474_v38  ;;  %v2351_v49 = vsub.f32 %v2167_v53, %v475_v39  ;;  %v616_v46 = vsel %vm350_vm0, %v536_v42, 0.0  ;;  %v619_v51 = vsel %vm350_vm0, %v537_v48, 0.0 }
 0x113   : > { %614 = vadd.xlane.f32.xlu1 %v613_v35  ;;  %617 = vadd.xlane.f32.xlu0 %v616_v46  ;;  %v437_v36 = vpop.xlane.xlu0 %436  ;;  %v440_v50 = vpop.xlane.xlu1 %439 }
 0x114   : > { %v476_v54 = vmul.f32 0.03125, %v437_v36  ;;  %v477_v8 = vmul.f32 0.03125, %v440_v50  ;;  %v538_v58 = vmul.f32 %v2348_v20, %v2348_v20  ;;  %v539_v52 = vmul.f32 %v2351_v49, %v2351_v49 }
 0x116   : > { %v2360_v24 = vsub.f32 %v2174_v56, %v476_v54  ;;  %v2363_v53 = vsub.f32 %v2177_v57, %v477_v8  ;;  %v622_v62 = vsel %vm350_vm0, %v538_v58, 0.0  ;;  %v625_v40 = vsel %vm350_vm0, %v539_v52, 0.0 }
 0x117   : > { %620 = vadd.xlane.f32.xlu1 %v619_v51  ;;  %623 = vadd.xlane.f32.xlu0 %v622_v62  ;;  %v443_v63 = vpop.xlane.xlu0 %442  ;;  %v446_v3 = vpop.xlane.xlu1 %445 }
 0x118   : > { %v478_v6 = vmul.f32 0.03125, %v443_v63  ;;  %v479_v12 = vmul.f32 0.03125, %v446_v3  ;;  %v540_v14 = vmul.f32 %v2360_v24, %v2360_v24  ;;  %v541_v56 = vmul.f32 %v2363_v53, %v2363_v53 }
 0x11a   : > { %v2372_v28 = vsub.f32 %v2184_v60, %v478_v6  ;;  %v2375_v57 = vsub.f32 %v2187_v61, %v479_v12  ;;  %v628_v18 = vsel %vm350_vm0, %v540_v14, 0.0  ;;  %v631_v19 = vsel %vm350_vm0, %v541_v56, 0.0 }
 0x11b   : > { %626 = vadd.xlane.f32.xlu1 %v625_v40  ;;  %629 = vadd.xlane.f32.xlu0 %v628_v18 }
 0x11c   : > { %v542_v22 = vmul.f32 %v2372_v28, %v2372_v28  ;;  %v543_v23 = vmul.f32 %v2375_v57, %v2375_v57 }
 0x11e   : > { %v634_v0 = vsel %vm350_vm0, %v542_v22, 0.0  ;;  %v637_v60 = vsel %vm350_vm0, %v543_v23, 0.0  ;;  %v2389_v23 = vld [vmem:[%s2677_s1] ss:$0 sm:$0xff] }
 0x11f   : > { %632 = vadd.xlane.f32.xlu1 %v631_v19  ;;  %635 = vadd.xlane.f32.xlu0 %v634_v0 }
 0x123   : > { %638 = vadd.xlane.f32.xlu1 %v637_v60 }
 0x16c   : > { %v546_v61 = vpop.xlane.xlu0 %545 }
 0x16d   : > { %v640_v44 = vmul.f32 0.03125, %v546_v61 }
 0x16f   : > { %v672_v30 = vadd.f32 1e-06, %v640_v44 }
 0x170   : > { %v549_v32 = vpop.xlane.xlu1 %548  ;;  %v552_v34 = vpop.xlane.xlu0 %551 }
 0x171   : > { %1683 = vrsqrt.f32 %v672_v30  ;;  %v641_v35 = vmul.f32 0.03125, %v549_v32  ;;  %v642_v38 = vmul.f32 0.03125, %v552_v34 }
 0x173   : > { %v673_v39 = vadd.f32 1e-06, %v641_v35  ;;  %v674_v42 = vadd.f32 1e-06, %v642_v38 }
 0x174   : > { %v555_v48 = vpop.xlane.xlu1 %554  ;;  %v558_v46 = vpop.xlane.xlu0 %557 }
 0x175   : > { %1685 = vrsqrt.f32 %v673_v39  ;;  %v643_v36 = vmul.f32 0.03125, %v555_v48  ;;  %v644_v50 = vmul.f32 0.03125, %v558_v46 }
 0x176   : > { %1687 = vrsqrt.f32 %v674_v42 }
 0x177   : > { %v675_v51 = vadd.f32 1e-06, %v643_v36  ;;  %v676_v54 = vadd.f32 1e-06, %v644_v50 }
 0x178   : > { %v561_v8 = vpop.xlane.xlu1 %560  ;;  %v564_v58 = vpop.xlane.xlu0 %563 }
 0x179   : > { %1689 = vrsqrt.f32 %v675_v51  ;;  %v645_v52 = vmul.f32 0.03125, %v561_v8  ;;  %v646_v62 = vmul.f32 0.03125, %v564_v58 }
 0x17a   : > { %1691 = vrsqrt.f32 %v676_v54 }
 0x17b   : > { %v677_v63 = vadd.f32 1e-06, %v645_v52  ;;  %v678_v3 = vadd.f32 1e-06, %v646_v62 }
 0x17c   : > { %v567_v40 = vpop.xlane.xlu1 %566  ;;  %v570_v6 = vpop.xlane.xlu0 %569 }
 0x17d   : > { %1693 = vrsqrt.f32 %v677_v63  ;;  %v647_v12 = vmul.f32 0.03125, %v567_v40  ;;  %v648_v14 = vmul.f32 0.03125, %v570_v6 }
 0x17e   : > { %v1684_v56 = vpop.eup %1683  ;;  %1695 = vrsqrt.f32 %v678_v3 }
 0x17f   : > { %v679_v18 = vadd.f32 1e-06, %v647_v12  ;;  %v680_v19 = vadd.f32 1e-06, %v648_v14  ;;  %v736_v22 = vmul.f32 %v1684_v56, %v2194_v10  ;;  %v2396_v10 = vld [vmem:[%s2678_s2] ss:$0 sm:$0xff] }
 0x180   : > { %v573_v0 = vpop.xlane.xlu1 %572  ;;  %v576_v60 = vpop.xlane.xlu0 %575 }
 0x181   : > { %1697 = vrsqrt.f32 %v679_v18  ;;  %v649_v61 = vmul.f32 0.03125, %v573_v0  ;;  %v650_v44 = vmul.f32 0.03125, %v576_v60  ;;  %v775_v32 = vmul.f32 %v2389_v23, %v736_v22 }
 0x182   : > { %v1686_v30 = vpop.eup %1685  ;;  %1699 = vrsqrt.f32 %v680_v19 }
 0x183   : > { %v1688_v34 = vpop.eup %1687  ;;  %v681_v35 = vadd.f32 1e-06, %v649_v61  ;;  %v682_v38 = vadd.f32 1e-06, %v650_v44  ;;  %v737_v39 = vmul.f32 %v1686_v30, %v2204_v26  ;;  %v814_v8 = vadd.f32 %v2396_v10, %v775_v32 }
 0x184   : > { %v579_v42 = vpop.xlane.xlu1 %578  ;;  %v582_v48 = vpop.xlane.xlu0 %581  ;;  %v738_v46 = vmul.f32 %v1688_v34, %v2197_v11 }
 0x185   : > { %1701 = vrsqrt.f32 %v681_v35  ;;  %v651_v36 = vmul.f32 0.03125, %v579_v42  ;;  %v652_v50 = vmul.f32 0.03125, %v582_v48  ;;  %v776_v51 = vmul.f32 %v2389_v23, %v737_v39 }
 0x186   : > { %v1690_v54 = vpop.eup %1689  ;;  %1703 = vrsqrt.f32 %v682_v38  ;;  %v777_v11 = vmul.f32 %v2389_v23, %v738_v46 }
 0x187   : > { %v1692_v58 = vpop.eup %1691  ;;  %v683_v26 = vadd.f32 1e-06, %v651_v36  ;;  %v684_v52 = vadd.f32 1e-06, %v652_v50  ;;  %v815_v62 = vadd.f32 %v2396_v10, %v776_v51  ;;  %v739_v63 = vmul.f32 %v1690_v54, %v2207_v27 }
 0x188   : > { %v585_v3 = vpop.xlane.xlu1 %584  ;;  %v588_v40 = vpop.xlane.xlu0 %587  ;;  %v740_v6 = vmul.f32 %v1692_v58, %v2216_v2  ;;  %v816_v30 = vadd.f32 %v2396_v10, %v777_v11 }
 0x189   : > { %1705 = vrsqrt.f32 %v683_v26  ;;  %v653_v12 = vmul.f32 0.03125, %v585_v3  ;;  %v654_v14 = vmul.f32 0.03125, %v588_v40  ;;  %v846_v56 = vpack.c.bf16 %v815_v62, %v814_v8 }
 0x18a   : > { %v1694_v18 = vpop.eup %1693  ;;  %1707 = vrsqrt.f32 %v684_v52  ;;  %v778_v19 = vmul.f32 %v2389_v23, %v739_v63  ;;  %v779_v22 = vmul.f32 %v2389_v23, %v740_v6 }
 0x18b   : > { %v1696_v0 = vpop.eup %1695  ;;  %v685_v60 = vadd.f32 1e-06, %v653_v12  ;;  %v686_v61 = vadd.f32 1e-06, %v654_v14  ;;  %1547 = vmatprep.mubr.msk.bf16.mxu0 %vm350_vm0, %v846_v56  ;;  %1583 = vmatprep.mubr.msk.bf16.mxu1 %vm350_vm0, %v846_v56  ;;  %v741_v27 = vmul.f32 %v1694_v18, %v2219_v5 }
 0x18c   : > { %v591_v2 = vpop.xlane.xlu1 %590  ;;  %v594_v44 = vpop.xlane.xlu0 %593  ;;  %v817_v32 = vadd.f32 %v2396_v10, %v778_v19  ;;  %v742_v34 = vmul.f32 %v1696_v0, %v2228_v55  ;;  %v818_v46 = vadd.f32 %v2396_v10, %v779_v22 }
 0x18d   : > { %1709 = vrsqrt.f32 %v685_v60  ;;  %v655_v35 = vmul.f32 0.03125, %v591_v2  ;;  %v656_v38 = vmul.f32 0.03125, %v594_v44  ;;  %v780_v39 = vmul.f32 %v2389_v23, %v741_v27 }
 0x18e   : > { %v1698_v42 = vpop.eup %1697  ;;  %1711 = vrsqrt.f32 %v686_v61  ;;  %v847_v48 = vpack.c.bf16 %v817_v32, %v816_v30  ;;  %v781_v58 = vmul.f32 %v2389_v23, %v742_v34 }
 0x18f   : > { %v1700_v36 = vpop.eup %1699  ;;  %v687_v5 = vadd.f32 1e-06, %v655_v35  ;;  %v688_v50 = vadd.f32 1e-06, %v656_v38  ;;  %v819_v51 = vadd.f32 %v2396_v10, %v780_v39  ;;  %v743_v54 = vmul.f32 %v1698_v42, %v2231_v9 }
 0x190   : > { %1548 = vmatmul.mubr.msk.bf16.vlgmr.msra.gmra.mxu0 %vm350_vm0, %v847_v48  ;;  %1584 = vmatmul.mubr.msk.bf16.vlgmr.msra.gmra.mxu1 %vm350_vm0, %v847_v48  ;;  %v597_v55 = vpop.xlane.xlu1 %596  ;;  %v600_v8 = vpop.xlane.xlu0 %599  ;;  %v744_v26 = vmul.f32 %v1700_v36, %v2240_v7  ;;  %v820_v18 = vadd.f32 %v2396_v10, %v781_v58 }
 0x191   : > { %1713 = vrsqrt.f32 %v687_v5  ;;  %v657_v52 = vmul.f32 0.03125, %v597_v55  ;;  %v658_v62 = vmul.f32 0.03125, %v600_v8  ;;  %v848_v63 = vpack.c.bf16 %v819_v51, %v818_v46 }
 0x192   : > { %v1702_v3 = vpop.eup %1701  ;;  %1715 = vrsqrt.f32 %v688_v50  ;;  %v782_v40 = vmul.f32 %v2389_v23, %v743_v54  ;;  %v783_v9 = vmul.f32 %v2389_v23, %v744_v26 }
 0x193   : > { %v1704_v11 = vpop.eup %1703  ;;  %v689_v6 = vadd.f32 1e-06, %v657_v52  ;;  %v690_v12 = vadd.f32 1e-06, %v658_v62  ;;  %1551 = vmatprep.mubr.msk.bf16.mxu0 %vm350_vm0, %v848_v63  ;;  %1587 = vmatprep.mubr.msk.bf16.mxu1 %vm350_vm0, %v848_v63  ;;  %v745_v14 = vmul.f32 %v1702_v3, %v2243_v13 }
 0x194   : > { %v603_v7 = vpop.xlane.xlu1 %602  ;;  %v606_v56 = vpop.xlane.xlu0 %605  ;;  %v821_v19 = vadd.f32 %v2396_v10, %v782_v40  ;;  %v746_v22 = vmul.f32 %v1704_v11, %v2252_v1  ;;  %v822_v44 = vadd.f32 %v2396_v10, %v783_v9 }
 0x195   : > { %1717 = vrsqrt.f32 %v689_v6  ;;  %v659_v0 = vmul.f32 0.03125, %v603_v7  ;;  %v660_v60 = vmul.f32 0.03125, %v606_v56  ;;  %v784_v61 = vmul.f32 %v2389_v23, %v745_v14 }
 0x196   : > { %v1706_v27 = vpop.eup %1705  ;;  %1719 = vrsqrt.f32 %v690_v12  ;;  %v849_v2 = vpack.c.bf16 %v821_v19, %v820_v18  ;;  %v785_v39 = vmul.f32 %v2389_v23, %v746_v22 }
 0x197   : > { %v1708_v30 = vpop.eup %1707  ;;  %v691_v13 = vadd.f32 1e-06, %v659_v0  ;;  %v692_v32 = vadd.f32 1e-06, %v660_v60  ;;  %v823_v34 = vadd.f32 %v2396_v10, %v784_v61  ;;  %v747_v35 = vmul.f32 %v1706_v27, %v2255_v17 }
 0x198   : > { %1552 = vmatmul.mubr.msk.bf16.gmra.mxu0 %vm350_vm0, %v849_v2  ;;  %1588 = vmatmul.mubr.msk.bf16.gmra.mxu1 %vm350_vm0, %v849_v2  ;;  %v609_v1 = vpop.xlane.xlu1 %608  ;;  %v612_v38 = vpop.xlane.xlu0 %611  ;;  %v748_v42 = vmul.f32 %v1708_v30, %v2264_v43  ;;  %v824_v26 = vadd.f32 %v2396_v10, %v785_v39 }
 0x199   : > { %1721 = vrsqrt.f32 %v691_v13  ;;  %v661_v48 = vmul.f32 0.03125, %v609_v1  ;;  %v662_v46 = vmul.f32 0.03125, %v612_v38  ;;  %v850_v36 = vpack.c.bf16 %v823_v34, %v822_v44 }
 0x19a   : > { %v1710_v5 = vpop.eup %1709  ;;  %1723 = vrsqrt.f32 %v692_v32  ;;  %v786_v50 = vmul.f32 %v2389_v23, %v747_v35  ;;  %v787_v17 = vmul.f32 %v2389_v23, %v748_v42 }
 0x19b   : > { %v1712_v51 = vpop.eup %1711  ;;  %v693_v54 = vadd.f32 1e-06, %v661_v48  ;;  %v694_v55 = vadd.f32 1e-06, %v662_v46  ;;  %1555 = vmatprep.mubr.msk.bf16.mxu0 %vm350_vm0, %v850_v36  ;;  %1591 = vmatprep.mubr.msk.bf16.mxu1 %vm350_vm0, %v850_v36  ;;  %v749_v8 = vmul.f32 %v1710_v5, %v2267_v21 }
 0x19c   : > { %v615_v43 = vpop.xlane.xlu1 %614  ;;  %v618_v58 = vpop.xlane.xlu0 %617  ;;  %v825_v52 = vadd.f32 %v2396_v10, %v786_v50  ;;  %v750_v62 = vmul.f32 %v1712_v51, %v2276_v59  ;;  %v826_v6 = vadd.f32 %v2396_v10, %v787_v17 }
 0x19d   : > { %1725 = vrsqrt.f32 %v693_v54  ;;  %v663_v63 = vmul.f32 0.03125, %v615_v43  ;;  %v664_v3 = vmul.f32 0.03125, %v618_v58  ;;  %v788_v40 = vmul.f32 %v2389_v23, %v749_v8 }
 0x19e   : > { %v1714_v9 = vpop.eup %1713  ;;  %1727 = vrsqrt.f32 %v694_v55  ;;  %v851_v11 = vpack.c.bf16 %v825_v52, %v824_v26  ;;  %v789_v19 = vmul.f32 %v2389_v23, %v750_v62 }
 0x19f   : > { %v1716_v12 = vpop.eup %1715  ;;  %v695_v21 = vadd.f32 1e-06, %v663_v63  ;;  %v696_v14 = vadd.f32 1e-06, %v664_v3  ;;  %v827_v7 = vadd.f32 %v2396_v10, %v788_v40  ;;  %v751_v56 = vmul.f32 %v1714_v9, %v2279_v25 }
 0x1a0   : > { %1556 = vmatmul.mubr.msk.bf16.gmra.mxu0 %vm350_vm0, %v851_v11  ;;  %1592 = vmatmul.mubr.msk.bf16.gmra.mxu1 %vm350_vm0, %v851_v11  ;;  %v621_v59 = vpop.xlane.xlu1 %620  ;;  %v624_v18 = vpop.xlane.xlu0 %623  ;;  %v752_v22 = vmul.f32 %v1716_v12, %v2288_v16  ;;  %v828_v35 = vadd.f32 %v2396_v10, %v789_v19 }
 0x1a1   : > { %1729 = vrsqrt.f32 %v695_v21  ;;  %v665_v0 = vmul.f32 0.03125, %v621_v59  ;;  %v666_v60 = vmul.f32 0.03125, %v624_v18  ;;  %v852_v61 = vpack.c.bf16 %v827_v7, %v826_v6 }
 0x1a2   : > { %v1718_v27 = vpop.eup %1717  ;;  %1731 = vrsqrt.f32 %v696_v14  ;;  %v790_v2 = vmul.f32 %v2389_v23, %v751_v56  ;;  %v791_v25 = vmul.f32 %v2389_v23, %v752_v22 }
 0x1a3   : > { %v1720_v44 = vpop.eup %1719  ;;  %v697_v30 = vadd.f32 1e-06, %v665_v0  ;;  %v698_v13 = vadd.f32 1e-06, %v666_v60  ;;  %1559 = vmatprep.mubr.msk.bf16.mxu0 %vm350_vm0, %v852_v61  ;;  %1595 = vmatprep.mubr.msk.bf16.mxu1 %vm350_vm0, %v852_v61  ;;  %v753_v32 = vmul.f32 %v1718_v27, %v2291_v29 }
 0x1a4   : > { %v627_v16 = vpop.xlane.xlu1 %626  ;;  %v630_v34 = vpop.xlane.xlu0 %629  ;;  %v829_v1 = vadd.f32 %v2396_v10, %v790_v2  ;;  %v754_v38 = vmul.f32 %v1720_v44, %v2300_v31  ;;  %v830_v5 = vadd.f32 %v2396_v10, %v791_v25 }
 0x1a5   : > { %1733 = vrsqrt.f32 %v697_v30  ;;  %v667_v39 = vmul.f32 0.03125, %v627_v16  ;;  %v668_v42 = vmul.f32 0.03125, %v630_v34  ;;  %v792_v48 = vmul.f32 %v2389_v23, %v753_v32 }
 0x1a6   : > { %v1722_v46 = vpop.eup %1721  ;;  %1735 = vrsqrt.f32 %v698_v13  ;;  %v853_v36 = vpack.c.bf16 %v829_v1, %v828_v35  ;;  %v793_v8 = vmul.f32 %v2389_v23, %v754_v38 }
 0x1a7   : > { %v1724_v50 = vpop.eup %1723  ;;  %v699_v29 = vadd.f32 1e-06, %v667_v39  ;;  %v700_v17 = vadd.f32 1e-06, %v668_v42  ;;  %v831_v51 = vadd.f32 %v2396_v10, %v792_v48  ;;  %v755_v54 = vmul.f32 %v1722_v46, %v2303_v33 }
 0x1a8   : > { %1560 = vmatmul.mubr.msk.bf16.gmra.mxu0 %vm350_vm0, %v853_v36  ;;  %1596 = vmatmul.mubr.msk.bf16.gmra.mxu1 %vm350_vm0, %v853_v36  ;;  %v633_v31 = vpop.xlane.xlu1 %632  ;;  %v636_v55 = vpop.xlane.xlu0 %635  ;;  %v756_v43 = vmul.f32 %v1724_v50, %v2312_v47  ;;  %v832_v6 = vadd.f32 %v2396_v10, %v793_v8 }
 0x1a9   : > { %1737 = vrsqrt.f32 %v699_v29  ;;  %v669_v58 = vmul.f32 0.03125, %v633_v31  ;;  %v670_v26 = vmul.f32 0.03125, %v636_v55  ;;  %v854_v52 = vpack.c.bf16 %v831_v51, %v830_v5 }
 0x1aa   : > { %v1726_v62 = vpop.eup %1725  ;;  %1739 = vrsqrt.f32 %v700_v17  ;;  %v794_v63 = vmul.f32 %v2389_v23, %v755_v54  ;;  %v795_v11 = vmul.f32 %v2389_v23, %v756_v43 }
 0x1ab   : > { %v1728_v3 = vpop.eup %1727  ;;  %v701_v33 = vadd.f32 1e-06, %v669_v58  ;;  %v702_v40 = vadd.f32 1e-06, %v670_v26  ;;  %1563 = vmatprep.mubr.msk.bf16.mxu0 %vm350_vm0, %v854_v52  ;;  %1599 = vmatprep.mubr.msk.bf16.mxu1 %vm350_vm0, %v854_v52  ;;  %v757_v9 = vmul.f32 %v1726_v62, %v2315_v37 }
 0x1ac   : > { %v639_v47 = vpop.xlane.xlu1 %638  ;;  %v833_v12 = vadd.f32 %v2396_v10, %v794_v63  ;;  %v758_v21 = vmul.f32 %v1728_v3, %v2324_v41  ;;  %v834_v22 = vadd.f32 %v2396_v10, %v795_v11 }
 0x1ad   : > { %1741 = vrsqrt.f32 %v701_v33  ;;  %v671_v14 = vmul.f32 0.03125, %v639_v47  ;;  %v796_v7 = vmul.f32 %v2389_v23, %v757_v9 }
 0x1ae   : > { %v1730_v56 = vpop.eup %1729  ;;  %1743 = vrsqrt.f32 %v702_v40  ;;  %v855_v59 = vpack.c.bf16 %v833_v12, %v832_v6  ;;  %v797_v18 = vmul.f32 %v2389_v23, %v758_v21 }
 0x1af   : > { %v1732_v19 = vpop.eup %1731  ;;  %v703_v37 = vadd.f32 1e-06, %v671_v14  ;;  %v835_v0 = vadd.f32 %v2396_v10, %v796_v7  ;;  %v759_v60 = vmul.f32 %v1730_v56, %v2327_v4 }
 0x1b0   : > { %1564 = vmatmul.mubr.msk.bf16.gmra.mxu0 %vm350_vm0, %v855_v59  ;;  %1600 = vmatmul.mubr.msk.bf16.gmra.mxu1 %vm350_vm0, %v855_v59  ;;  %v760_v41 = vmul.f32 %v1732_v19, %v2336_v45  ;;  %v836_v25 = vadd.f32 %v2396_v10, %v797_v18 }
 0x1b1   : > { %1745 = vrsqrt.f32 %v703_v37  ;;  %v856_v61 = vpack.c.bf16 %v835_v0, %v834_v22  ;;  %v798_v27 = vmul.f32 %v2389_v23, %v759_v60 }
 0x1b2   : > { %v1734_v2 = vpop.eup %1733  ;;  %v799_v13 = vmul.f32 %v2389_v23, %v760_v41 }
 0x1b3   : > { %v1736_v44 = vpop.eup %1735  ;;  %1567 = vmatprep.mubr.msk.bf16.mxu0 %vm350_vm0, %v856_v61  ;;  %1603 = vmatprep.mubr.msk.bf16.mxu1 %vm350_vm0, %v856_v61  ;;  %v837_v4 = vadd.f32 %v2396_v10, %v798_v27  ;;  %v761_v30 = vmul.f32 %v1734_v2, %v2339_v15 }
 0x1b4   : > { %v762_v45 = vmul.f32 %v1736_v44, %v2348_v20  ;;  %v838_v38 = vadd.f32 %v2396_v10, %v799_v13 }
 0x1b5   : > { %v857_v32 = vpack.c.bf16 %v837_v4, %v836_v25  ;;  %v800_v16 = vmul.f32 %v2389_v23, %v761_v30 }
 0x1b6   : > { %v1738_v34 = vpop.eup %1737  ;;  %v801_v35 = vmul.f32 %v2389_v23, %v762_v45 }
 0x1b7   : > { %v1740_v1 = vpop.eup %1739  ;;  %v839_v39 = vadd.f32 %v2396_v10, %v800_v16  ;;  %v763_v42 = vmul.f32 %v1738_v34, %v2351_v49 }
 0x1b8   : > { %1568 = vmatmul.mubr.msk.bf16.gmra.mxu0 %vm350_vm0, %v857_v32  ;;  %1604 = vmatmul.mubr.msk.bf16.gmra.mxu1 %vm350_vm0, %v857_v32  ;;  %v764_v15 = vmul.f32 %v1740_v1, %v2360_v24  ;;  %v840_v36 = vadd.f32 %v2396_v10, %v801_v35 }
 0x1b9   : > { %v858_v20 = vpack.c.bf16 %v839_v39, %v838_v38  ;;  %v802_v48 = vmul.f32 %v2389_v23, %v763_v42 }
 0x1ba   : > { %v1742_v46 = vpop.eup %1741  ;;  %v803_v29 = vmul.f32 %v2389_v23, %v764_v15 }
 0x1bb   : > { %v1744_v5 = vpop.eup %1743  ;;  %1571 = vmatprep.mubr.msk.bf16.mxu0 %vm350_vm0, %v858_v20  ;;  %1607 = vmatprep.mubr.msk.bf16.mxu1 %vm350_vm0, %v858_v20  ;;  %v841_v50 = vadd.f32 %v2396_v10, %v802_v48  ;;  %v765_v49 = vmul.f32 %v1742_v46, %v2363_v53 }
 0x1bc   : > { %v766_v17 = vmul.f32 %v1744_v5, %v2372_v28  ;;  %v842_v31 = vadd.f32 %v2396_v10, %v803_v29 }
 0x1bd   : > { %v859_v24 = vpack.c.bf16 %v841_v50, %v840_v36  ;;  %v804_v51 = vmul.f32 %v2389_v23, %v765_v49 }
 0x1be   : > { %v1746_v54 = vpop.eup %1745  ;;  %v805_v43 = vmul.f32 %v2389_v23, %v766_v17 }
 0x1bf   : > { %v843_v55 = vadd.f32 %v2396_v10, %v804_v51  ;;  %v767_v8 = vmul.f32 %v1746_v54, %v2375_v57 }
 0x1c0   : > { %1572 = vmatmul.mubr.msk.bf16.gmra.mxu0 %vm350_vm0, %v859_v24  ;;  %1608 = vmatmul.mubr.msk.bf16.gmra.mxu1 %vm350_vm0, %v859_v24  ;;  %v844_v58 = vadd.f32 %v2396_v10, %v805_v43 }
 0x1c1   : > { %v860_v53 = vpack.c.bf16 %v843_v55, %v842_v31  ;;  %v806_v28 = vmul.f32 %v2389_v23, %v767_v8 }
 0x1c3   : > { %1575 = vmatprep.mubr.msk.bf16.mxu0 %vm350_vm0, %v860_v53  ;;  %1611 = vmatprep.mubr.msk.bf16.mxu1 %vm350_vm0, %v860_v53  ;;  %v845_v26 = vadd.f32 %v2396_v10, %v806_v28 }
 0x1c5   : > { %v861_v52 = vpack.c.bf16 %v845_v26, %v844_v58 }
 0x1c8   : > { %1576 = vmatmul.mubr.msk.bf16.gmra.mxu0 %vm350_vm0, %v861_v52  ;;  %1612 = vmatmul.mubr.msk.bf16.gmra.mxu1 %vm350_vm0, %v861_v52 }
 0x250   : > { %v1549_v57 = vpop.f32.mrf.mxu0  ;;  %v1585_v23 = vpop.f32.mrf.mxu1 }
 0x251   : > { %1090 = vst.msk [vmem:[%s2528_s21 + $0x10] sm:$0xff] %vm1087_vm1, %v1549_v57  ;;  %1299 = vst.msk [vmem:[%s2533_s10 + $0x10] sm:$0xff] %vm1087_vm1, %v1585_v23 }
 0x252   : > { %v960_v10 = vpop.f32.mrf.mxu0  ;;  %v1170_v62 = vpop.f32.mrf.mxu1 }
 0x253   : > { %1088 = vst.msk [vmem:[%s2528_s21] sm:$0xff] %vm1087_vm1, %v960_v10  ;;  %1297 = vst.msk [vmem:[%s2533_s10] sm:$0xff] %vm1087_vm1, %v1170_v62 }
 0x254   : > { %v1550_v63 = vpop.f32.mrf.mxu0  ;;  %v1586_v3 = vpop.f32.mrf.mxu1 }
 0x255   : > { %1091 = vst.msk [vmem:[%s2528_s21 + $0x18] sm:$0xff] %vm1087_vm1, %v1550_v63  ;;  %1300 = vst.msk [vmem:[%s2533_s10 + $0x18] sm:$0xff] %vm1087_vm1, %v1586_v3 }
 0x256   : > { %v963_v33 = vpop.f32.mrf.mxu0  ;;  %v1173_v40 = vpop.f32.mrf.mxu1 }
 0x257   : > { %1089 = vst.msk [vmem:[%s2528_s21 + $0x8] sm:$0xff] %vm1087_vm1, %v963_v33  ;;  %1298 = vst.msk [vmem:[%s2533_s10 + $0x8] sm:$0xff] %vm1087_vm1, %v1173_v40 }
 0x258   : > { %v1553_v9 = vpop.f32.mrf.mxu0  ;;  %v1589_v11 = vpop.f32.mrf.mxu1 }
 0x259   : > { %1094 = vst.msk [vmem:[%s2528_s21 + $0x30] sm:$0xff] %vm1087_vm1, %v1553_v9  ;;  %1303 = vst.msk [vmem:[%s2533_s10 + $0x30] sm:$0xff] %vm1087_vm1, %v1589_v11 }
 0x25a   : > { %v976_v47 = vpop.f32.mrf.mxu0  ;;  %v1186_v6 = vpop.f32.mrf.mxu1 }
 0x25b   : > { %1092 = vst.msk [vmem:[%s2528_s21 + $0x20] sm:$0xff] %vm1087_vm1, %v976_v47  ;;  %1301 = vst.msk [vmem:[%s2533_s10 + $0x20] sm:$0xff] %vm1087_vm1, %v1186_v6 }
 0x25c   : > { %v1554_v12 = vpop.f32.mrf.mxu0  ;;  %v1590_v21 = vpop.f32.mrf.mxu1 }
 0x25d   : > { %1095 = vst.msk [vmem:[%s2528_s21 + $0x38] sm:$0xff] %vm1087_vm1, %v1554_v12  ;;  %1304 = vst.msk [vmem:[%s2533_s10 + $0x38] sm:$0xff] %vm1087_vm1, %v1590_v21 }
 0x25e   : > { %v979_v14 = vpop.f32.mrf.mxu0  ;;  %v1189_v7 = vpop.f32.mrf.mxu1 }
 0x25f   : > { %1093 = vst.msk [vmem:[%s2528_s21 + $0x28] sm:$0xff] %vm1087_vm1, %v979_v14  ;;  %1302 = vst.msk [vmem:[%s2533_s10 + $0x28] sm:$0xff] %vm1087_vm1, %v1189_v7 }
 0x260   : > { %v1557_v56 = vpop.f32.mrf.mxu0  ;;  %v1593_v59 = vpop.f32.mrf.mxu1 }
 0x261   : > { %1098 = vst.msk [vmem:[%s2528_s21 + $0x50] sm:$0xff] %vm1087_vm1, %v1557_v56  ;;  %1307 = vst.msk [vmem:[%s2533_s10 + $0x50] sm:$0xff] %vm1087_vm1, %v1593_v59 }
 0x262   : > { %v992_v18 = vpop.f32.mrf.mxu0  ;;  %v1202_v19 = vpop.f32.mrf.mxu1 }
 0x263   : > { %1096 = vst.msk [vmem:[%s2528_s21 + $0x40] sm:$0xff] %vm1087_vm1, %v992_v18  ;;  %1305 = vst.msk [vmem:[%s2533_s10 + $0x40] sm:$0xff] %vm1087_vm1, %v1202_v19 }
 0x264   : > { %v1558_v37 = vpop.f32.mrf.mxu0  ;;  %v1594_v22 = vpop.f32.mrf.mxu1 }
 0x265   : > { %1099 = vst.msk [vmem:[%s2528_s21 + $0x58] sm:$0xff] %vm1087_vm1, %v1558_v37  ;;  %1308 = vst.msk [vmem:[%s2533_s10 + $0x58] sm:$0xff] %vm1087_vm1, %v1594_v22 }
 0x266   : > { %v995_v0 = vpop.f32.mrf.mxu0  ;;  %v1205_v60 = vpop.f32.mrf.mxu1 }
 0x267   : > { %1097 = vst.msk [vmem:[%s2528_s21 + $0x48] sm:$0xff] %vm1087_vm1, %v995_v0  ;;  %1306 = vst.msk [vmem:[%s2533_s10 + $0x48] sm:$0xff] %vm1087_vm1, %v1205_v60 }
 0x268   : > { %v1561_v41 = vpop.f32.mrf.mxu0  ;;  %v1597_v61 = vpop.f32.mrf.mxu1 }
 0x269   : > { %1102 = vst.msk [vmem:[%s2528_s21 + $0x70] sm:$0xff] %vm1087_vm1, %v1561_v41  ;;  %1311 = vst.msk [vmem:[%s2533_s10 + $0x70] sm:$0xff] %vm1087_vm1, %v1597_v61 }
 0x26a   : > { %v1008_v27 = vpop.f32.mrf.mxu0  ;;  %v1218_v2 = vpop.f32.mrf.mxu1 }
 0x26b   : > { %1100 = vst.msk [vmem:[%s2528_s21 + $0x60] sm:$0xff] %vm1087_vm1, %v1008_v27  ;;  %1309 = vst.msk [vmem:[%s2533_s10 + $0x60] sm:$0xff] %vm1087_vm1, %v1218_v2 }
 0x26c   : > { %v1562_v25 = vpop.f32.mrf.mxu0  ;;  %v1598_v44 = vpop.f32.mrf.mxu1 }
 0x26d   : > { %1103 = vst.msk [vmem:[%s2528_s21 + $0x78] sm:$0xff] %vm1087_vm1, %v1562_v25  ;;  %1312 = vst.msk [vmem:[%s2533_s10 + $0x78] sm:$0xff] %vm1087_vm1, %v1598_v44 }
 0x26e   : > { %v1011_v4 = vpop.f32.mrf.mxu0  ;;  %v1221_v30 = vpop.f32.mrf.mxu1 }
 0x26f   : > { %1101 = vst.msk [vmem:[%s2528_s21 + $0x68] sm:$0xff] %vm1087_vm1, %v1011_v4  ;;  %1310 = vst.msk [vmem:[%s2533_s10 + $0x68] sm:$0xff] %vm1087_vm1, %v1221_v30 }
 0x270   : > { %v1565_v13 = vpop.f32.mrf.mxu0  ;;  %v1601_v45 = vpop.f32.mrf.mxu1 }
 0x271   : > { %1106 = vst.msk [vmem:[%s2528_s21 + $0x90] sm:$0xff] %vm1087_vm1, %v1565_v13  ;;  %1315 = vst.msk [vmem:[%s2533_s10 + $0x90] sm:$0xff] %vm1087_vm1, %v1601_v45 }
 0x272   : > { %v1024_v32 = vpop.f32.mrf.mxu0  ;;  %v1234_v16 = vpop.f32.mrf.mxu1 }
 0x273   : > { %1104 = vst.msk [vmem:[%s2528_s21 + $0x80] sm:$0xff] %vm1087_vm1, %v1024_v32  ;;  %1313 = vst.msk [vmem:[%s2533_s10 + $0x80] sm:$0xff] %vm1087_vm1, %v1234_v16 }
 0x274   : > { %v1566_v34 = vpop.f32.mrf.mxu0  ;;  %v1602_v35 = vpop.f32.mrf.mxu1 }
 0x275   : > { %1107 = vst.msk [vmem:[%s2528_s21 + $0x98] sm:$0xff] %vm1087_vm1, %v1566_v34  ;;  %1316 = vst.msk [vmem:[%s2533_s10 + $0x98] sm:$0xff] %vm1087_vm1, %v1602_v35 }
 0x276   : > { %v1027_v1 = vpop.f32.mrf.mxu0  ;;  %v1237_v38 = vpop.f32.mrf.mxu1 }
 0x277   : > { %1105 = vst.msk [vmem:[%s2528_s21 + $0x88] sm:$0xff] %vm1087_vm1, %v1027_v1  ;;  %1314 = vst.msk [vmem:[%s2533_s10 + $0x88] sm:$0xff] %vm1087_vm1, %v1237_v38 }
 0x278   : > { %v1569_v39 = vpop.f32.mrf.mxu0  ;;  %v1605_v42 = vpop.f32.mrf.mxu1 }
 0x279   : > { %1110 = vst.msk [vmem:[%s2528_s21 + $0xb0] sm:$0xff] %vm1087_vm1, %v1569_v39  ;;  %1319 = vst.msk [vmem:[%s2533_s10 + $0xb0] sm:$0xff] %vm1087_vm1, %v1605_v42 }
 0x27a   : > { %v1040_v15 = vpop.f32.mrf.mxu0  ;;  %v1250_v20 = vpop.f32.mrf.mxu1 }
 0x27b   : > { %1108 = vst.msk [vmem:[%s2528_s21 + $0xa0] sm:$0xff] %vm1087_vm1, %v1040_v15  ;;  %1317 = vst.msk [vmem:[%s2533_s10 + $0xa0] sm:$0xff] %vm1087_vm1, %v1250_v20 }
 0x27c   : > { %v1570_v48 = vpop.f32.mrf.mxu0  ;;  %v1606_v46 = vpop.f32.mrf.mxu1 }
 0x27d   : > { %1111 = vst.msk [vmem:[%s2528_s21 + $0xb8] sm:$0xff] %vm1087_vm1, %v1570_v48  ;;  %1320 = vst.msk [vmem:[%s2533_s10 + $0xb8] sm:$0xff] %vm1087_vm1, %v1606_v46 }
 0x27e   : > { %v1043_v36 = vpop.f32.mrf.mxu0  ;;  %v1253_v5 = vpop.f32.mrf.mxu1 }
 0x27f   : > { %1109 = vst.msk [vmem:[%s2528_s21 + $0xa8] sm:$0xff] %vm1087_vm1, %v1043_v36  ;;  %1318 = vst.msk [vmem:[%s2533_s10 + $0xa8] sm:$0xff] %vm1087_vm1, %v1253_v5 }
 0x280   : > { %v1573_v50 = vpop.f32.mrf.mxu0  ;;  %v1609_v49 = vpop.f32.mrf.mxu1 }
 0x281   : > { %1114 = vst.msk [vmem:[%s2528_s21 + $0xd0] sm:$0xff] %vm1087_vm1, %v1573_v50  ;;  %1323 = vst.msk [vmem:[%s2533_s10 + $0xd0] sm:$0xff] %vm1087_vm1, %v1609_v49 }
 0x282   : > { %v1056_v29 = vpop.f32.mrf.mxu0  ;;  %v1266_v17 = vpop.f32.mrf.mxu1 }
 0x283   : > { %1112 = vst.msk [vmem:[%s2528_s21 + $0xc0] sm:$0xff] %vm1087_vm1, %v1056_v29  ;;  %1321 = vst.msk [vmem:[%s2533_s10 + $0xc0] sm:$0xff] %vm1087_vm1, %v1266_v17 }
 0x284   : > { %v1574_v24 = vpop.f32.mrf.mxu0  ;;  %v1610_v51 = vpop.f32.mrf.mxu1 }
 0x285   : > { %1115 = vst.msk [vmem:[%s2528_s21 + $0xd8] sm:$0xff] %vm1087_vm1, %v1574_v24  ;;  %1324 = vst.msk [vmem:[%s2533_s10 + $0xd8] sm:$0xff] %vm1087_vm1, %v1610_v51 }
 0x286   : > { %v1059_v54 = vpop.f32.mrf.mxu0  ;;  %v1269_v31 = vpop.f32.mrf.mxu1 }
 0x287   : > { %1113 = vst.msk [vmem:[%s2528_s21 + $0xc8] sm:$0xff] %vm1087_vm1, %v1059_v54  ;;  %1322 = vst.msk [vmem:[%s2533_s10 + $0xc8] sm:$0xff] %vm1087_vm1, %v1269_v31 }
 0x288   : > { %v1577_v55 = vpop.f32.mrf.mxu0  ;;  %v1613_v8 = vpop.f32.mrf.mxu1 }
 0x289   : > { %1118 = vst.msk [vmem:[%s2528_s21 + $0xf0] sm:$0xff] %vm1087_vm1, %v1577_v55  ;;  %1327 = vst.msk [vmem:[%s2533_s10 + $0xf0] sm:$0xff] %vm1087_vm1, %v1613_v8 }
 0x28a   : > { %v1072_v43 = vpop.f32.mrf.mxu0  ;;  %v1282_v53 = vpop.f32.mrf.mxu1 }
 0x28b   : > { %1116 = vst.msk [vmem:[%s2528_s21 + $0xe0] sm:$0xff] %vm1087_vm1, %v1072_v43  ;;  %1325 = vst.msk [vmem:[%s2533_s10 + $0xe0] sm:$0xff] %vm1087_vm1, %v1282_v53 }
 0x28c   : > { %v1578_v28 = vpop.f32.mrf.mxu0  ;;  %v1614_v58 = vpop.f32.mrf.mxu1 }
 0x28d   : > { %1119 = vst.msk [vmem:[%s2528_s21 + $0xf8] sm:$0xff] %vm1087_vm1, %v1578_v28  ;;  %1328 = vst.msk [vmem:[%s2533_s10 + $0xf8] sm:$0xff] %vm1087_vm1, %v1614_v58 }
 0x28e   : > { %v1075_v26 = vpop.f32.mrf.mxu0  ;;  %v1285_v52 = vpop.f32.mrf.mxu1 }
 0x28f   : > { %1117 = vst.msk [vmem:[%s2528_s21 + $0xe8] sm:$0xff] %vm1087_vm1, %v1075_v26  ;;  %1326 = vst.msk [vmem:[%s2533_s10 + $0xe8] sm:$0xff] %vm1087_vm1, %v1285_v52 }
 0x290 PF: > { %p18_p10 = scmp.ge.s32.totalorder %s1974_s18, 4   ;;  %s2695_s21 = smov %s1857_s22 }
 0x291   : > { %s2696_s22 = smov %s1861_s23  ;;  %s2697_s23 = smov %s1985_s29 }
 0x292   : > { %s2698_s24 = smov %s1974_s18  ;;  %20 = sbr.rel (!%p18_p10) target bundleno = 4 (0x4), region = 100 }
 0x297   :  { %1368 = vsyncpa [#allocation3], 1 }
 0x298   :  { %1370 = vsyncpa [#allocation3 + $0x1], 1 }
 0x299   :  { %1371 = vsyncpa [#allocation5], 1 }

// kernel: _lambda_.7
= control target key start
LH: loop header
LB: loop body
LE: loop exit
PB: predicated region body
PF: predicated region fallthrough
CT: control target
= control target key end

     0   :  { %8 = vsyncpa [#allocation3], 0  ;;  %s4160_s0 = inlined_call_operand.vmem [shape: f32[2,18,18,64], index: 0, kind: input, shape index: {}]   ;;  %s4161_s1 = inlined_call_operand.hbm [shape: f32[9,64], index: 1, kind: input, shape index: {}]   ;;  %s4162_s2 = inlined_call_operand.hbm [shape: f32[1,64], index: 2, kind: input, shape index: {}]   ;;  %s4163_s3 = inlined_call_operand.vmem [shape: f32[2,16,16,64], index: 3, kind: output, shape index: {}]  }
   0x1   :  { %9 = vsyncpa [#allocation5], 0  ;;  %s2540_s12 = smov 0  }
   0x2 LB: > { %s2546_s13 = sadd.s32 4294967295, %s2514_s12   ;;  %p2269_p0 = scmp.ge.s32.totalorder %s2514_s12, 1  ;;  %s2514_s12 = sphi %s2540_s12, %s15_s12  }
   0x3   : > { %p114_p1 = scmp.lt.s32.totalorder %s2514_s12, 3  ;;  %s2516_s14 = smov [#allocation2]  }
   0x4   : > { %s126_s15 = sshll.u32 %s2516_s14, 4  ;;  %p2300_p3 = scmp.eq.s32.totalorder %s2546_s13, 0  ;;  %s127_s15 = int_to_ptr.vmem [resolvable:$true] %s126_s15 }
   0x5   : > { %p2550_p2 = pnand %p2269_p0, %p114_p1  ;;  %s2517_s17 = smov [#allocation4]  }
   0x6   : > { %s140_s18 = sshll.u32 %s2517_s17, 4  ;;  %s2459_s20 = scalar_lea.vmem %s127_s15, 256  ;;  %s141_s18 = int_to_ptr.vmem [resolvable:$true] %s140_s18 }
   0x7   : > { %p2293_p4 = pneg %p2550_p2  ;;  %p2460_p7 = scmp.ne.s32.totalorder %s127_s15, %s2459_s20 }
   0x8   : > { %p2467_p10 = scmp.lt.s32.totalorder %s127_s15, %s127_s15  ;;  %p2468_p11 = scmp.lt.s32.totalorder %s2459_s20, %s2459_s20 }
   0x9   : > { %p2559_p5 = pnand %p2300_p3, %p2293_p4 }
   0xa   : > { %p2469_p12 = por %p2468_p11, %p2467_p10 }
   0xb   : > { %p2450_p6 = pneg %p2559_p5 }
   0xd   : > { %p2462_p8 = pnand %p2460_p7, %p2450_p6 }
   0xf   : > { %p2463_p9 = pneg %p2462_p8 }
  0x11   : > { %p2470_p13 = pnand %p2469_p12, %p2463_p9 }
  0x13   : > { %2473 = shalt.err (!%p2470_p13)
}
  0x14   : > { %s2518_s21 = smov 128   ;;  %s2519_s22 = smov 8  }
  0x15   : > { %2296 = dma.hbm_to_vmem [thread:$0]  (!%p2559_p5), %s4161_s1, 256, %s127_s15, [#allocation3], %s2518_s21, %s2518_s21, %s2519_s22  }
  0x16   : > { %s2485_s25 = scalar_lea.vmem %s141_s18, 16  ;;  %s2492_s26 = scalar_lea.vmem %s141_s18, 32 }
  0x17   : > { %p2486_p0 = scmp.ne.s32.totalorder %s141_s18, %s2485_s25  ;;  %p2493_p7 = scmp.lt.s32.totalorder %s141_s18, %s141_s18 }
  0x18   : > { %p2494_p8 = scmp.lt.s32.totalorder %s2492_s26, %s2485_s25 }
  0x19   : > { %p2488_p1 = pnand %p2486_p0, %p2450_p6 }
  0x1a   : > { %p2495_p9 = por %p2494_p8, %p2493_p7 }
  0x1b   : > { %p2489_p4 = pneg %p2488_p1 }
  0x1d   : > { %p2496_p10 = pnand %p2495_p9, %p2489_p4 }
  0x1f   : > { %2499 = shalt.err (!%p2496_p10)
}
  0x20   : > { %2299 = dma.hbm_to_vmem [thread:$0]  (!%p2559_p5), %s4162_s2, 16, %s141_s18, [#allocation5]  }
  0x21   : > { %161 = sbr.rel (%p2550_p2) target bundleno = 428 (0x1ac), region = 32 }
  0x26   : > { %2505 = dma.done.wait (%p2300_p3), [#allocation3], 256  }
  0x27   : > { %2507 = vsyncadd (%p2300_p3), [#allocation3], 4294967040 }
  0x28   : > { %2509 = dma.done.wait (%p2300_p3), [#allocation5], 16  }
  0x29   : > { %2511 = vsyncadd (%p2300_p3), [#allocation5], 4294967280  ;;  %p189_p6 = scmp.lt.s32.totalorder %s2546_s13, 1  ;;  %v263_v0 = vlaneseq  ;;  %v253_v12 = vld [vmem:[#allocation2] sm:$0xff]  ;;  %vm431_vm0 = vcmask 1046528   ;;  %vm676_vm1 = vcmask 1045504  }
  0x2a   : > { %v2611_v17 = vld [vmem:[#allocation4] ss:$0 sm:$0xff]  ;;  %v2642_v37 = vld [vmem:[#allocation2 + $0x8] ss:$0 sm:$0xff]  ;;  %vm2157_vm2 = vcmask 523264  }
  0x2b   : > { %s4167_s13 = smov (!%p189_p6, %s2546_s13), 1  ;;  %v264_v1 = vshrl.u32 %v263_v0, 7 }
  0x2c   : > { %s2284_s29 = smul.u32 432, %s4167_s13  ;;  %s2283_s6 = sshll.u32 %s4167_s13, 8 }
  0x2d   : > { %v265_v2 = vsub.s32 0, %v264_v1  ;;  %v333_v3 = vsub.s32 1, %v264_v1  ;;  %v578_v4 = vsub.s32 2, %v264_v1  ;;  %v823_v5 = vsub.s32 3, %v264_v1  ;;  %s2863_s9 = scalar_lea.vmem %s4163_s3, %s2283_s6 }
  0x2e   : > { %s2599_s5 = scalar_lea.vmem %s4160_s0, %s2284_s29  ;;  %v891_v6 = vsub.s32 4, %v264_v1  ;;  %v1135_v7 = vsub.s32 5, %v264_v1  ;;  %v1379_v8 = vsub.s32 6, %v264_v1  ;;  %v1447_v9 = vsub.s32 7, %v264_v1 }
  0x2f   : > { %v199_v10 = vld [vmem:[%s2599_s5] sm:$0xff]  ;;  %v200_v11 = vld [vmem:[%s2599_s5 + $0x8] sm:$0xff]  ;;  %v2603_v13 = vrot.slane %v253_v12, %v265_v2  ;;  %v2605_v14 = vrot.slane %v253_v12, %v333_v3  ;;  %v2607_v15 = vrot.slane %v253_v12, %v578_v4  ;;  %v2609_v16 = vrot.slane %v253_v12, %v823_v5  ;;  %v2622_v22 = vld [vmem:[%s2599_s5 + $0x18] sm:$0xff] }
  0x30   : > { %v2613_v18 = vrot.slane %v253_v12, %v891_v6  ;;  %v2615_v19 = vrot.slane %v253_v12, %v1135_v7  ;;  %v2617_v20 = vrot.slane %v253_v12, %v1379_v8  ;;  %v2619_v21 = vrot.slane %v253_v12, %v1447_v9  ;;  %v2625_v23 = vld [vmem:[%s2599_s5 + $0x20] sm:$0xff]  ;;  %v2640_v36 = vld [vmem:[%s2599_s5 + $0x30] sm:$0xff]  ;;  %v2655_v47 = vld [vmem:[%s2599_s5 + $0x38] sm:$0xff] }
  0x31   : > { %v267_v24 = vmul.f32 %v2603_v13, %v199_v10  ;;  %v335_v25 = vmul.f32 %v2605_v14, %v199_v10  ;;  %v336_v26 = vmul.f32 %v2605_v14, %v200_v11  ;;  %v580_v27 = vmul.f32 %v2607_v15, %v199_v10  ;;  %v201_v46 = vld [vmem:[%s2599_s5 + $0x10] sm:$0x3]  ;;  %v2670_v2 = vld [vmem:[%s2599_s5 + $0x28] sm:$0x3] }
  0x32   : > { %v581_v28 = vmul.f32 %v2607_v15, %v200_v11  ;;  %v825_v29 = vmul.f32 %v2609_v16, %v2622_v22  ;;  %v893_v30 = vmul.f32 %v2613_v18, %v2622_v22  ;;  %v894_v31 = vmul.f32 %v2613_v18, %v2625_v23 }
  0x33   : > { %v299_v32 = vadd.f32 %v2611_v17, %v267_v24  ;;  %v432_v33 = vrot.slane %v335_v25, 1  ;;  %v433_v34 = vrot.slane %v336_v26, 1  ;;  %v677_v35 = vrot.slane %v580_v27, 2  ;;  %v2683_v24 = vld [vmem:[%s2599_s5 + $0x40] sm:$0x3] }
  0x34   : > { %v678_v38 = vrot.slane %v581_v28, 2  ;;  %v989_v39 = vrot.slane %v893_v30, 1  ;;  %v990_v40 = vrot.slane %v894_v31, 1  ;;  %v1137_v41 = vmul.f32 %v2615_v19, %v2622_v22 }
  0x35   : > { %v434_v42 = vsel %vm431_vm0, %v432_v33, %v433_v34  ;;  %v1138_v43 = vmul.f32 %v2615_v19, %v2625_v23  ;;  %v1381_v44 = vmul.f32 %v2617_v20, %v2640_v36  ;;  %v1449_v45 = vmul.f32 %v2619_v21, %v2640_v36 }
  0x36   : > { %v544_v48 = vadd.f32 %v434_v42, %v299_v32  ;;  %v679_v49 = vsel %vm676_vm1, %v677_v35, %v678_v38  ;;  %v991_v50 = vsel %vm431_vm0, %v989_v39, %v990_v40  ;;  %v1233_v51 = vrot.slane %v1137_v41, 2 }
  0x37   : > { %v1234_v52 = vrot.slane %v1138_v43, 2  ;;  %v1450_v53 = vmul.f32 %v2619_v21, %v2655_v47  ;;  %v1545_v54 = vrot.slane %v1449_v45, 1  ;;  %v1693_v55 = vmul.f32 %v2642_v37, %v2640_v36 }
  0x38   : > { %v789_v56 = vadd.f32 %v679_v49, %v544_v48  ;;  %v1694_v57 = vmul.f32 %v2642_v37, %v2655_v47  ;;  %v268_v58 = vmul.f32 %v2603_v13, %v200_v11  ;;  %v337_v59 = vmul.f32 %v2605_v14, %v201_v46 }
  0x39   : > { %v1235_v60 = vsel %vm676_vm1, %v1233_v51, %v1234_v52  ;;  %v1546_v61 = vrot.slane %v1450_v53, 1  ;;  %v1789_v62 = vrot.slane %v1693_v55, 2  ;;  %v582_v63 = vmul.f32 %v2607_v15, %v201_v46 }
  0x3a   : > { %v857_v0 = vadd.f32 %v825_v29, %v789_v56  ;;  %v1790_v1 = vrot.slane %v1694_v57, 2  ;;  %v300_v3 = vadd.f32 %v2611_v17, %v268_v58  ;;  %v435_v4 = vrot.slane %v337_v59, 1 }
  0x3b   : > { %v1547_v5 = vsel %vm431_vm0, %v1545_v54, %v1546_v61  ;;  %v680_v6 = vrot.slane %v582_v63, 2  ;;  %v826_v7 = vmul.f32 %v2609_v16, %v2625_v23  ;;  %v895_v8 = vmul.f32 %v2613_v18, %v2670_v2 }
  0x3c   : > { %v1101_v9 = vadd.f32 %v991_v50, %v857_v0  ;;  %v1791_v10 = vsel %vm676_vm1, %v1789_v62, %v1790_v1  ;;  %v436_v11 = vsel %vm431_vm0, %v433_v34, %v435_v4  ;;  %v1139_v12 = vmul.f32 %v2615_v19, %v2670_v2 }
  0x3d   : > { %v545_v25 = vadd.f32 %v436_v11, %v300_v3  ;;  %v681_v26 = vsel %vm676_vm1, %v678_v38, %v680_v6  ;;  %v992_v27 = vrot.slane %v895_v8, 1  ;;  %v1382_v28 = vmul.f32 %v2617_v20, %v2655_v47 }
  0x3e   : > { %v1345_v29 = vadd.f32 %v1235_v60, %v1101_v9  ;;  %v1236_v30 = vrot.slane %v1139_v12, 2  ;;  %v1451_v31 = vmul.f32 %v2619_v21, %v2683_v24  ;;  %v1695_v32 = vmul.f32 %v2642_v37, %v2683_v24 }
  0x3f   : > { %v790_v33 = vadd.f32 %v681_v26, %v545_v25  ;;  %v993_v34 = vsel %vm431_vm0, %v990_v40, %v992_v27  ;;  %v269_v35 = vmul.f32 %v2603_v13, %v2622_v22  ;;  %v338_v38 = vmul.f32 %v2605_v14, %v2622_v22 }
  0x40   : > { %v1413_v39 = vadd.f32 %v1381_v44, %v1345_v29  ;;  %v1237_v41 = vsel %vm676_vm1, %v1234_v52, %v1236_v30  ;;  %v1548_v42 = vrot.slane %v1451_v31, 1  ;;  %v1792_v43 = vrot.slane %v1695_v32, 2 }
  0x41   : > { %v858_v45 = vadd.f32 %v826_v7, %v790_v33  ;;  %v301_v46 = vadd.f32 %v2611_v17, %v269_v35  ;;  %v2701_v48 = vmul.f32 %v2605_v14, %v2625_v23  ;;  %v437_v49 = vrot.slane %v338_v38, 1 }
  0x42   : > { %v1657_v40 = vadd.f32 %v1547_v5, %v1413_v39  ;;  %v1549_v50 = vsel %vm431_vm0, %v1546_v61, %v1548_v42  ;;  %v1793_v51 = vsel %vm676_vm1, %v1790_v1, %v1792_v43  ;;  %v583_v44 = vmul.f32 %v2607_v15, %v2622_v22  ;;  %v2723_v5 = vld [vmem:[%s2599_s5 + $0x48] sm:$0xff] }
  0x43   : > { %v1102_v53 = vadd.f32 %v993_v34, %v858_v45  ;;  %v438_v52 = vrot.slane %v2701_v48, 1  ;;  %v584_v54 = vmul.f32 %v2607_v15, %v2625_v23  ;;  %v827_v55 = vmul.f32 %v2609_v16, %v2640_v36 }
  0x44   : > { %v2712_v56 = vadd.f32 %v1791_v10, %v1657_v40  ;;  %v682_v57 = vrot.slane %v583_v44, 2  ;;  %v896_v58 = vmul.f32 %v2613_v18, %v2640_v36  ;;  %v897_v22 = vmul.f32 %v2613_v18, %v2655_v47  ;;  %v2729_v10 = vld [vmem:[%s2599_s5 + $0x50] sm:$0xff] }
  0x45   : > { %v1346_v59 = vadd.f32 %v1237_v41, %v1102_v53  ;;  %v439_v60 = vsel %vm431_vm0, %v437_v49, %v438_v52  ;;  %v683_v61 = vrot.slane %v584_v54, 2  ;;  %v1140_v62 = vmul.f32 %v2615_v19, %v2640_v36 }
  0x46   : > { %v1933_v63 = vsub.f32 0.0, %v2712_v56  ;;  %v546_v0 = vadd.f32 %v439_v60, %v301_v46  ;;  %v994_v1 = vrot.slane %v896_v58, 1  ;;  %v995_v3 = vrot.slane %v897_v22, 1 }
  0x47   : > { %v1414_v4 = vadd.f32 %v1382_v28, %v1346_v59  ;;  %v684_v6 = vsel %vm676_vm1, %v682_v57, %v683_v61  ;;  %v1141_v7 = vmul.f32 %v2615_v19, %v2655_v47  ;;  %v1238_v8 = vrot.slane %v1140_v62, 2 }
  0x48   : > { %v1965_v9 = vmul.f32 1.442695, %v1933_v63  ;;  %v791_v11 = vadd.f32 %v684_v6, %v546_v0  ;;  %v996_v12 = vsel %vm431_vm0, %v994_v1, %v995_v3  ;;  %v1383_v25 = vmul.f32 %v2617_v20, %v2723_v5 }
  0x49   : > { %v1658_v26 = vadd.f32 %v1549_v50, %v1414_v4  ;;  %v1239_v27 = vrot.slane %v1141_v7, 2  ;;  %v1452_v28 = vmul.f32 %v2619_v21, %v2723_v5  ;;  %v1453_v29 = vmul.f32 %v2619_v21, %v2729_v10 }
  0x4a   : > { %2316 = vpow2.f32 %v1965_v9  ;;  %v859_v30 = vadd.f32 %v827_v55, %v791_v11  ;;  %v1696_v31 = vmul.f32 %v2642_v37, %v2723_v5  ;;  %v1697_v32 = vmul.f32 %v2642_v37, %v2729_v10 }
  0x4b   : > { %v2742_v33 = vadd.f32 %v1793_v51, %v1658_v26  ;;  %v1240_v34 = vsel %vm676_vm1, %v1238_v8, %v1239_v27  ;;  %v1550_v35 = vrot.slane %v1452_v28, 1  ;;  %v1551_v38 = vrot.slane %v1453_v29, 1 }
  0x4c   : > { %v1103_v39 = vadd.f32 %v996_v12, %v859_v30  ;;  %v1794_v41 = vrot.slane %v1696_v31, 2  ;;  %v1795_v42 = vrot.slane %v1697_v32, 2  ;;  %v270_v43 = vmul.f32 %v2603_v13, %v2625_v23  ;;  %v2758_v23 = vld [vmem:[%s2599_s5 + $0x58] sm:$0x3] }
  0x4d   : > { %v1934_v45 = vsub.f32 0.0, %v2742_v33  ;;  %v1552_v46 = vsel %vm431_vm0, %v1550_v35, %v1551_v38  ;;  %v340_v48 = vmul.f32 %v2605_v14, %v2670_v2  ;;  %v585_v49 = vmul.f32 %v2607_v15, %v2670_v2 }
  0x4e   : > { %v1347_v40 = vadd.f32 %v1240_v34, %v1103_v39  ;;  %v1796_v50 = vsel %vm676_vm1, %v1794_v41, %v1795_v42  ;;  %v302_v51 = vadd.f32 %v2611_v17, %v270_v43  ;;  %v828_v44 = vmul.f32 %v2609_v16, %v2655_v47 }
  0x4f   : > { %v1967_v53 = vmul.f32 1.442695, %v1934_v45  ;;  %v440_v54 = vrot.slane %v340_v48, 1  ;;  %v685_v55 = vrot.slane %v585_v49, 2  ;;  %v898_v57 = vmul.f32 %v2613_v18, %v2683_v24 }
  0x50   : > { %v1415_v58 = vadd.f32 %v1383_v25, %v1347_v40  ;;  %v1142_v2 = vmul.f32 %v2615_v19, %v2683_v24  ;;  %v1384_v22 = vmul.f32 %v2617_v20, %v2729_v10  ;;  %v1454_v59 = vmul.f32 %v2619_v21, %v2758_v23 }
  0x51   : > { %2318 = vpow2.f32 %v1967_v53  ;;  %v441_v60 = vsel %vm431_vm0, %v438_v52, %v440_v54  ;;  %v686_v62 = vsel %vm676_vm1, %v683_v61, %v685_v55  ;;  %v997_v63 = vrot.slane %v898_v57, 1  ;;  %v2808_v53 = vld [vmem:[%s2599_s5 + $0x60] sm:$0xff] }
  0x52   : > { %v1659_v0 = vadd.f32 %v1552_v46, %v1415_v58  ;;  %v547_v1 = vadd.f32 %v441_v60, %v302_v51  ;;  %v1241_v4 = vrot.slane %v1142_v2, 2  ;;  %v1553_v6 = vrot.slane %v1454_v59, 1  ;;  %v2817_v2 = vld [vmem:[%s2599_s5 + $0x68] sm:$0xff] }
  0x53   : > { %v998_v7 = vsel %vm431_vm0, %v995_v3, %v997_v63  ;;  %v1698_v8 = vmul.f32 %v2642_v37, %v2758_v23  ;;  %v271_v9 = vmul.f32 %v2603_v13, %v2640_v36  ;;  %v341_v11 = vmul.f32 %v2605_v14, %v2640_v36 }
  0x54   : > { %v2777_v12 = vadd.f32 %v1796_v50, %v1659_v0  ;;  %v792_v52 = vadd.f32 %v686_v62, %v547_v1  ;;  %v1242_v61 = vsel %vm676_vm1, %v1239_v27, %v1241_v4  ;;  %v1554_v25 = vsel %vm431_vm0, %v1551_v38, %v1553_v6 }
  0x55   : > { %v1797_v26 = vrot.slane %v1698_v8, 2  ;;  %v303_v28 = vadd.f32 %v2611_v17, %v271_v9  ;;  %v2784_v3 = vmul.f32 %v2605_v14, %v2655_v47  ;;  %v442_v29 = vrot.slane %v341_v11, 1 }
  0x56   : > { %v1935_v30 = vsub.f32 0.0, %v2777_v12  ;;  %v860_v31 = vadd.f32 %v828_v44, %v792_v52  ;;  %v586_v32 = vmul.f32 %v2607_v15, %v2640_v36  ;;  %v2791_v34 = vmul.f32 %v2607_v15, %v2655_v47 }
  0x57   : > { %v2317_v27 = vpop.eup %2316  ;;  %v1798_v35 = vsel %vm676_vm1, %v1795_v42, %v1797_v26  ;;  %v443_v38 = vrot.slane %v2784_v3, 1  ;;  %v829_v39 = vmul.f32 %v2609_v16, %v2723_v5  ;;  %v899_v41 = vmul.f32 %v2613_v18, %v2723_v5 }
  0x58   : > { %v2029_v43 = vadd.f32 1.0, %v2317_v27  ;;  %v1969_v45 = vmul.f32 1.442695, %v1935_v30  ;;  %v1104_v46 = vadd.f32 %v998_v7, %v860_v31  ;;  %v687_v36 = vrot.slane %v586_v32, 2 }
  0x59   : > { %v444_v48 = vsel %vm431_vm0, %v442_v29, %v443_v38  ;;  %v688_v49 = vrot.slane %v2791_v34, 2  ;;  %v2803_v42 = vmul.f32 %v2613_v18, %v2729_v10  ;;  %v999_v40 = vrot.slane %v899_v41, 1 }
  0x5a   : > { %2320 = vrcp.f32 %v2029_v43  ;;  %v1348_v50 = vadd.f32 %v1242_v61, %v1104_v46  ;;  %v548_v51 = vadd.f32 %v444_v48, %v303_v28  ;;  %v1143_v44 = vmul.f32 %v2615_v19, %v2723_v5  ;;  %v2850_v48 = vld [vmem:[%s2599_s5 + $0x70] sm:$0x3] }
  0x5b   : > { %2322 = vpow2.f32 %v1969_v45  ;;  %v689_v54 = vsel %vm676_vm1, %v687_v36, %v688_v49  ;;  %v1000_v55 = vrot.slane %v2803_v42, 1  ;;  %v2814_v57 = vmul.f32 %v2615_v19, %v2729_v10 }
  0x5c   : > { %v1416_v58 = vadd.f32 %v1384_v22, %v1348_v50  ;;  %v793_v59 = vadd.f32 %v689_v54, %v548_v51  ;;  %v1243_v60 = vrot.slane %v1143_v44, 2  ;;  %v1385_v62 = vmul.f32 %v2617_v20, %v2808_v53 }
  0x5d   : > { %v1001_v63 = vsel %vm431_vm0, %v999_v40, %v1000_v55  ;;  %v1244_v0 = vrot.slane %v2814_v57, 2  ;;  %v1455_v1 = vmul.f32 %v2619_v21, %v2808_v53  ;;  %v1456_v4 = vmul.f32 %v2619_v21, %v2817_v2 }
  0x5e   : > { %v2319_v6 = vpop.eup %2318  ;;  %v1660_v7 = vadd.f32 %v1554_v25, %v1416_v58  ;;  %v861_v22 = vadd.f32 %v829_v39, %v793_v59  ;;  %v1699_v8 = vmul.f32 %v2642_v37, %v2808_v53  ;;  %v1700_v9 = vmul.f32 %v2642_v37, %v2817_v2 }
  0x5f   : > { %v2030_v11 = vadd.f32 1.0, %v2319_v6  ;;  %v1245_v52 = vsel %vm676_vm1, %v1243_v60, %v1244_v0  ;;  %v1555_v61 = vrot.slane %v1455_v1, 1  ;;  %v1556_v26 = vrot.slane %v1456_v4, 1 }
  0x60   : > { %v2832_v28 = vadd.f32 %v1798_v35, %v1660_v7  ;;  %v1105_v3 = vadd.f32 %v1001_v63, %v861_v22  ;;  %v1799_v29 = vrot.slane %v1699_v8, 2  ;;  %v1800_v30 = vrot.slane %v1700_v9, 2 }
  0x61   : > { %2324 = vrcp.f32 %v2030_v11  ;;  %v1557_v25 = vsel %vm431_vm0, %v1555_v61, %v1556_v26  ;;  %v272_v31 = vmul.f32 %v2603_v13, %v2655_v47  ;;  %v343_v32 = vmul.f32 %v2605_v14, %v2683_v24 }
  0x62   : > { %v1936_v34 = vsub.f32 0.0, %v2832_v28  ;;  %v1349_v27 = vadd.f32 %v1245_v52, %v1105_v3  ;;  %v1801_v35 = vsel %vm676_vm1, %v1799_v29, %v1800_v30  ;;  %v588_v39 = vmul.f32 %v2607_v15, %v2683_v24 }
  0x63   : > { %v304_v41 = vadd.f32 %v2611_v17, %v272_v31  ;;  %v445_v43 = vrot.slane %v343_v32, 1  ;;  %v830_v45 = vmul.f32 %v2609_v16, %v2729_v10  ;;  %v901_v47 = vmul.f32 %v2613_v18, %v2758_v23 }
  0x64   : > { %v1971_v46 = vmul.f32 1.442695, %v1936_v34  ;;  %v1417_v36 = vadd.f32 %v1385_v62, %v1349_v27  ;;  %v690_v42 = vrot.slane %v588_v39, 2  ;;  %v1145_v40 = vmul.f32 %v2615_v19, %v2758_v23 }
  0x65   : > { %v446_v24 = vsel %vm431_vm0, %v443_v38, %v445_v43  ;;  %v1002_v50 = vrot.slane %v901_v47, 1  ;;  %v1386_v51 = vmul.f32 %v2617_v20, %v2817_v2  ;;  %v1457_v44 = vmul.f32 %v2619_v21, %v2850_v48 }
  0x66   : > { %2326 = vpow2.f32 %v1971_v46  ;;  %v1661_v54 = vadd.f32 %v1557_v25, %v1417_v36  ;;  %v549_v57 = vadd.f32 %v446_v24, %v304_v41  ;;  %v691_v58 = vsel %vm676_vm1, %v688_v49, %v690_v42 }
  0x67   : > { %v2321_v59 = vpop.eup %2320  ;;  %v1003_v38 = vsel %vm431_vm0, %v1000_v55, %v1002_v50  ;;  %v1246_v60 = vrot.slane %v1145_v40, 2  ;;  %v1558_v62 = vrot.slane %v1457_v44, 1  ;;  %v1701_v63 = vmul.f32 %v2642_v37, %v2850_v48  ;;  %v2909_v40 = vld [vmem:[%s2599_s5 + $0x78] sm:$0xff] }
  0x68   : > { %v2323_v1 = vpop.eup %2322  ;;  %v2125_v4 = vmul.f32 %v2321_v59, %v2712_v56  ;;  %v2869_v6 = vadd.f32 %v1801_v35, %v1661_v54  ;;  %v794_v49 = vadd.f32 %v691_v58, %v549_v57  ;;  %v273_v7 = vmul.f32 %v2603_v13, %v2723_v5  ;;  %v2916_v54 = vld [vmem:[%s2599_s5 + $0x80] sm:$0xff] }
  0x69   : > { %v2031_v22 = vadd.f32 1.0, %v2323_v1  ;;  %v1247_v8 = vsel %vm676_vm1, %v1244_v0, %v1246_v60  ;;  %v1559_v9 = vsel %vm431_vm0, %v1556_v26, %v1558_v62  ;;  %v1802_v55 = vrot.slane %v1701_v63, 2 }
  0x6a   : > { %2158 = vst.msk [vmem:[%s2863_s9] sm:$0xff] %vm2157_vm2, %v2125_v4  ;;  %v1937_v11 = vsub.f32 0.0, %v2869_v6  ;;  %v862_v52 = vadd.f32 %v830_v45, %v794_v49  ;;  %v305_v61 = vadd.f32 %v2611_v17, %v273_v7  ;;  %v344_v56 = vmul.f32 %v2605_v14, %v2723_v5 }
  0x6b   : > { %2328 = vrcp.f32 %v2031_v22  ;;  %v1803_v3 = vsel %vm676_vm1, %v1800_v30, %v1802_v55  ;;  %v2884_v29 = vmul.f32 %v2605_v14, %v2729_v10  ;;  %v589_v0 = vmul.f32 %v2607_v15, %v2723_v5 }
  0x6c   : > { %v1973_v26 = vmul.f32 1.442695, %v1937_v11  ;;  %v1106_v25 = vadd.f32 %v1003_v38, %v862_v52  ;;  %v447_v31 = vrot.slane %v344_v56, 1  ;;  %v2890_v32 = vmul.f32 %v2607_v15, %v2729_v10 }
  0x6d   : > { %v448_v34 = vrot.slane %v2884_v29, 1  ;;  %v692_v27 = vrot.slane %v589_v0, 2  ;;  %v831_v30 = vmul.f32 %v2609_v16, %v2808_v53  ;;  %v902_v35 = vmul.f32 %v2613_v18, %v2808_v53 }
  0x6e   : > { %v2325_v5 = vpop.eup %2324  ;;  %2330 = vpow2.f32 %v1973_v26  ;;  %v1350_v39 = vadd.f32 %v1247_v8, %v1106_v25  ;;  %v693_v41 = vrot.slane %v2890_v32, 2  ;;  %v2900_v43 = vmul.f32 %v2613_v18, %v2817_v2 }
  0x6f   : > { %v2126_v45 = vmul.f32 %v2325_v5, %v2742_v33  ;;  %v449_v47 = vsel %vm431_vm0, %v447_v31, %v448_v34  ;;  %v1004_v46 = vrot.slane %v902_v35, 1  ;;  %v1146_v36 = vmul.f32 %v2615_v19, %v2808_v53 }
  0x70   : > { %v1418_v42 = vadd.f32 %v1386_v51, %v1350_v39  ;;  %v550_v24 = vadd.f32 %v449_v47, %v305_v61  ;;  %v694_v50 = vsel %vm676_vm1, %v692_v27, %v693_v41  ;;  %v1005_v44 = vrot.slane %v2900_v43, 1 }
  0x71   : > { %2159 = vst.msk [vmem:[%s2863_s9 + $0x8] sm:$0xff] %vm2157_vm2, %v2126_v45  ;;  %v1147_v33 = vmul.f32 %v2615_v19, %v2817_v2  ;;  %v1248_v57 = vrot.slane %v1146_v36, 2  ;;  %v1387_v58 = vmul.f32 %v2617_v20, %v2909_v40  ;;  %v1458_v51 = vmul.f32 %v2619_v21, %v2909_v40 }
  0x72   : > { %v1662_v59 = vadd.f32 %v1559_v9, %v1418_v42  ;;  %v795_v38 = vadd.f32 %v694_v50, %v550_v24  ;;  %v1006_v60 = vsel %vm431_vm0, %v1004_v46, %v1005_v44  ;;  %v1459_v62 = vmul.f32 %v2619_v21, %v2916_v54 }
  0x73   : > { %v2327_v63 = vpop.eup %2326  ;;  %v1249_v1 = vrot.slane %v1147_v33, 2  ;;  %v1560_v4 = vrot.slane %v1458_v51, 1  ;;  %v1702_v49 = vmul.f32 %v2642_v37, %v2909_v40  ;;  %v1703_v7 = vmul.f32 %v2642_v37, %v2916_v54 }
  0x74   : > { %v2032_v22 = vadd.f32 1.0, %v2327_v63  ;;  %v2931_v8 = vadd.f32 %v1803_v3, %v1662_v59  ;;  %v863_v55 = vadd.f32 %v831_v30, %v795_v38  ;;  %v1561_v9 = vrot.slane %v1459_v62, 1 }
  0x75   : > { %v1250_v11 = vsel %vm676_vm1, %v1248_v57, %v1249_v1  ;;  %v1804_v52 = vrot.slane %v1702_v49, 2  ;;  %v1805_v61 = vrot.slane %v1703_v7, 2  ;;  %v274_v56 = vmul.f32 %v2603_v13, %v2729_v10 }
  0x76   : > { %2332 = vrcp.f32 %v2032_v22  ;;  %v1938_v0 = vsub.f32 0.0, %v2931_v8  ;;  %v1107_v26 = vadd.f32 %v1006_v60, %v863_v55  ;;  %v1562_v25 = vsel %vm431_vm0, %v1560_v4, %v1561_v9 }
  0x77   : > { %v1806_v31 = vsel %vm676_vm1, %v1804_v52, %v1805_v61  ;;  %v306_v3 = vadd.f32 %v2611_v17, %v274_v56  ;;  %v346_v32 = vmul.f32 %v2605_v14, %v2758_v23  ;;  %v591_v27 = vmul.f32 %v2607_v15, %v2758_v23  ;;  %v2952_v23 = vld [vmem:[%s2599_s5 + $0x88] sm:$0x3] }
  0x78   : > { %v2329_v30 = vpop.eup %2328  ;;  %v1975_v10 = vmul.f32 1.442695, %v1938_v0  ;;  %v1351_v35 = vadd.f32 %v1250_v11, %v1107_v26  ;;  %v832_v5 = vmul.f32 %v2609_v16, %v2817_v2  ;;  %v904_v39 = vmul.f32 %v2613_v18, %v2850_v48 }
  0x79   : > { %v2127_v43 = vmul.f32 %v2329_v30, %v2777_v12  ;;  %v450_v45 = vrot.slane %v346_v32, 1  ;;  %v695_v47 = vrot.slane %v591_v27, 2  ;;  %v1148_v46 = vmul.f32 %v2615_v19, %v2850_v48 }
  0x7a   : > { %2334 = vpow2.f32 %v1975_v10  ;;  %v1419_v36 = vadd.f32 %v1387_v58, %v1351_v35  ;;  %v1007_v42 = vrot.slane %v904_v39, 1  ;;  %v1388_v24 = vmul.f32 %v2617_v20, %v2916_v54 }
  0x7b   : > { %v2331_v50 = vpop.eup %2330  ;;  %2160 = vst.msk [vmem:[%s2863_s9 + $0x10] sm:$0xff] %vm2157_vm2, %v2127_v43  ;;  %v451_v12 = vsel %vm431_vm0, %v448_v34, %v450_v45  ;;  %v696_v33 = vsel %vm676_vm1, %v693_v41, %v695_v47  ;;  %v1251_v57 = vrot.slane %v1148_v46, 2  ;;  %v1460_v51 = vmul.f32 %v2619_v21, %v2952_v23  ;;  %v3005_v45 = vld [vmem:[%s2599_s5 + $0x90] sm:$0xff] }
  0x7c   : > { %v2033_v58 = vadd.f32 1.0, %v2331_v50  ;;  %v1663_v59 = vadd.f32 %v1562_v25, %v1419_v36  ;;  %v551_v38 = vadd.f32 %v451_v12, %v306_v3  ;;  %v1008_v60 = vsel %vm431_vm0, %v1005_v44, %v1007_v42  ;;  %v3016_v12 = vld [vmem:[%s2599_s5 + $0x98] sm:$0xff] }
  0x7d   : > { %v1252_v62 = vsel %vm676_vm1, %v1249_v1, %v1251_v57  ;;  %v1563_v63 = vrot.slane %v1460_v51, 1  ;;  %v1704_v4 = vmul.f32 %v2642_v37, %v2952_v23  ;;  %v275_v29 = vmul.f32 %v2603_v13, %v2808_v53 }
  0x7e   : > { %2336 = vrcp.f32 %v2033_v58  ;;  %v2970_v34 = vadd.f32 %v1806_v31, %v1663_v59  ;;  %v796_v41 = vadd.f32 %v696_v33, %v551_v38  ;;  %v347_v49 = vmul.f32 %v2605_v14, %v2808_v53 }
  0x7f   : > { %v1564_v7 = vsel %vm431_vm0, %v1561_v9, %v1563_v63  ;;  %v1807_v22 = vrot.slane %v1704_v4, 2  ;;  %v307_v44 = vadd.f32 %v2611_v17, %v275_v29  ;;  %v2978_v1 = vmul.f32 %v2605_v14, %v2817_v2 }
  0x80   : > { %v1939_v55 = vsub.f32 0.0, %v2970_v34  ;;  %v864_v11 = vadd.f32 %v832_v5, %v796_v41  ;;  %v452_v52 = vrot.slane %v347_v49, 1  ;;  %v592_v56 = vmul.f32 %v2607_v15, %v2808_v53 }
  0x81   : > { %v1808_v0 = vsel %vm676_vm1, %v1805_v61, %v1807_v22  ;;  %v453_v26 = vrot.slane %v2978_v1, 1  ;;  %v2987_v9 = vmul.f32 %v2607_v15, %v2817_v2  ;;  %v833_v25 = vmul.f32 %v2609_v16, %v2909_v40 }
  0x82   : > { %v1977_v31 = vmul.f32 1.442695, %v1939_v55  ;;  %v1108_v3 = vadd.f32 %v1008_v60, %v864_v11  ;;  %v697_v32 = vrot.slane %v592_v56, 2  ;;  %v905_v27 = vmul.f32 %v2613_v18, %v2909_v40 }
  0x83   : > { %v2333_v53 = vpop.eup %2332  ;;  %v454_v61 = vsel %vm431_vm0, %v452_v52, %v453_v26  ;;  %v698_v30 = vrot.slane %v2987_v9, 2  ;;  %v2999_v10 = vmul.f32 %v2613_v18, %v2916_v54  ;;  %v1149_v35 = vmul.f32 %v2615_v19, %v2909_v40 }
  0x84   : > { %v2128_v5 = vmul.f32 %v2333_v53, %v2832_v28  ;;  %2338 = vpow2.f32 %v1977_v31  ;;  %v1352_v39 = vadd.f32 %v1252_v62, %v1108_v3  ;;  %v552_v43 = vadd.f32 %v454_v61, %v307_v44 }
  0x85   : > { %v699_v47 = vsel %vm676_vm1, %v697_v32, %v698_v30  ;;  %v1009_v46 = vrot.slane %v905_v27, 1  ;;  %v1010_v36 = vrot.slane %v2999_v10, 1  ;;  %v3011_v42 = vmul.f32 %v2615_v19, %v2916_v54 }
  0x86   : > { %2161 = vst.msk [vmem:[%s2863_s9 + $0x18] sm:$0xff] %vm2157_vm2, %v2128_v5  ;;  %v1420_v50 = vadd.f32 %v1388_v24, %v1352_v39  ;;  %v797_v28 = vadd.f32 %v699_v47, %v552_v43  ;;  %v1253_v33 = vrot.slane %v1149_v35, 2  ;;  %v1389_v57 = vmul.f32 %v2617_v20, %v3005_v45  ;;  %v3049_v5 = vld [vmem:[%s2599_s5 + $0xa0] sm:$0x3] }
  0x87   : > { %v2335_v51 = vpop.eup %2334  ;;  %v1011_v58 = vsel %vm431_vm0, %v1009_v46, %v1010_v36  ;;  %v1254_v59 = vrot.slane %v3011_v42, 2  ;;  %v1461_v38 = vmul.f32 %v2619_v21, %v3005_v45  ;;  %v1462_v60 = vmul.f32 %v2619_v21, %v3016_v12 }
  0x88   : > { %v2034_v62 = vadd.f32 1.0, %v2335_v51  ;;  %v1664_v24 = vadd.f32 %v1564_v7, %v1420_v50  ;;  %v865_v63 = vadd.f32 %v833_v25, %v797_v28  ;;  %v1705_v4 = vmul.f32 %v2642_v37, %v3005_v45 }
  0x89   : > { %v1255_v29 = vsel %vm676_vm1, %v1253_v33, %v1254_v59  ;;  %v1565_v41 = vrot.slane %v1461_v38, 1  ;;  %v1566_v49 = vrot.slane %v1462_v60, 1  ;;  %v1706_v22 = vmul.f32 %v2642_v37, %v3016_v12 }
  0x8a   : > { %2340 = vrcp.f32 %v2034_v62  ;;  %v3031_v44 = vadd.f32 %v1808_v0, %v1664_v24  ;;  %v1109_v55 = vadd.f32 %v1011_v58, %v865_v63  ;;  %v1809_v11 = vrot.slane %v1705_v4, 2 }
  0x8b   : > { %v2337_v52 = vpop.eup %2336  ;;  %v1567_v7 = vsel %vm431_vm0, %v1565_v41, %v1566_v49  ;;  %v1810_v56 = vrot.slane %v1706_v22, 2  ;;  %v276_v9 = vmul.f32 %v2603_v13, %v2817_v2  ;;  %v349_v25 = vmul.f32 %v2605_v14, %v2850_v48 }
  0x8c   : > { %v2129_v31 = vmul.f32 %v2337_v52, %v2869_v6  ;;  %v1940_v3 = vsub.f32 0.0, %v3031_v44  ;;  %v1353_v0 = vadd.f32 %v1255_v29, %v1109_v55  ;;  %v594_v32 = vmul.f32 %v2607_v15, %v2850_v48 }
  0x8d   : > { %v1811_v27 = vsel %vm676_vm1, %v1809_v11, %v1810_v56  ;;  %v308_v53 = vadd.f32 %v2611_v17, %v276_v9  ;;  %v455_v61 = vrot.slane %v349_v25, 1  ;;  %v834_v10 = vmul.f32 %v2609_v16, %v2916_v54 }
  0x8e   : > { %2162 = vst.msk [vmem:[%s2863_s9 + $0x20] sm:$0xff] %vm2157_vm2, %v2129_v31  ;;  %v1979_v2 = vmul.f32 1.442695, %v1940_v3  ;;  %v1421_v35 = vadd.f32 %v1389_v57, %v1353_v0  ;;  %v700_v6 = vrot.slane %v594_v32, 2  ;;  %v907_v39 = vmul.f32 %v2613_v18, %v2952_v23 }
  0x8f   : > { %v456_v48 = vsel %vm431_vm0, %v453_v26, %v455_v61  ;;  %v1151_v43 = vmul.f32 %v2615_v19, %v2952_v23  ;;  %v1390_v47 = vmul.f32 %v2617_v20, %v3016_v12  ;;  %v1463_v46 = vmul.f32 %v2619_v21, %v3049_v5 }
  0x90   : > { %2342 = vpow2.f32 %v1979_v2  ;;  %v1665_v42 = vadd.f32 %v1567_v7, %v1421_v35  ;;  %v553_v50 = vadd.f32 %v456_v48, %v308_v53  ;;  %v701_v28 = vsel %vm676_vm1, %v698_v30, %v700_v6  ;;  %v3104_v6 = vld [vmem:[%s2599_s5 + $0xa8] sm:$0xff] }
  0x91   : > { %v2339_v33 = vpop.eup %2338  ;;  %v1012_v57 = vrot.slane %v907_v39, 1  ;;  %v1256_v51 = vrot.slane %v1151_v43, 2  ;;  %v1568_v1 = vrot.slane %v1463_v46, 1  ;;  %v1707_v26 = vmul.f32 %v2642_v37, %v3049_v5  ;;  %v3110_v43 = vld [vmem:[%s2599_s5 + $0xb0] sm:$0xff] }
  0x92   : > { %v2035_v58 = vadd.f32 1.0, %v2339_v33  ;;  %v3065_v38 = vadd.f32 %v1811_v27, %v1665_v42  ;;  %v798_v60 = vadd.f32 %v701_v28, %v553_v50  ;;  %v277_v62 = vmul.f32 %v2603_v13, %v2909_v40 }
  0x93   : > { %v1013_v24 = vsel %vm431_vm0, %v1010_v36, %v1012_v57  ;;  %v1257_v63 = vsel %vm676_vm1, %v1254_v59, %v1256_v51  ;;  %v1569_v30 = vsel %vm431_vm0, %v1566_v49, %v1568_v1  ;;  %v1812_v4 = vrot.slane %v1707_v26, 2 }
  0x94   : > { %2344 = vrcp.f32 %v2035_v58  ;;  %v1941_v29 = vsub.f32 0.0, %v3065_v38  ;;  %v866_v41 = vadd.f32 %v834_v10, %v798_v60  ;;  %v309_v22 = vadd.f32 %v2611_v17, %v277_v62 }
  0x95   : > { %v1813_v55 = vsel %vm676_vm1, %v1810_v56, %v1812_v4  ;;  %v350_v11 = vmul.f32 %v2605_v14, %v2909_v40  ;;  %v3079_v52 = vmul.f32 %v2605_v14, %v2916_v54  ;;  %v595_v36 = vmul.f32 %v2607_v15, %v2909_v40 }
  0x96   : > { %v1981_v59 = vmul.f32 1.442695, %v1941_v29  ;;  %v1110_v49 = vadd.f32 %v1013_v24, %v866_v41  ;;  %v3085_v7 = vmul.f32 %v2607_v15, %v2916_v54  ;;  %v835_v56 = vmul.f32 %v2609_v16, %v3005_v45 }
  0x97   : > { %v2341_v9 = vpop.eup %2340  ;;  %v457_v25 = vrot.slane %v350_v11, 1  ;;  %v458_v31 = vrot.slane %v3079_v52, 1  ;;  %v702_v3 = vrot.slane %v595_v36, 2  ;;  %v908_v40 = vmul.f32 %v2613_v18, %v3005_v45 }
  0x98   : > { %v2130_v0 = vmul.f32 %v2341_v9, %v2931_v8  ;;  %2346 = vpow2.f32 %v1981_v59  ;;  %v1354_v32 = vadd.f32 %v1257_v63, %v1110_v49  ;;  %v703_v27 = vrot.slane %v3085_v7, 2 }
  0x99   : > { %v459_v53 = vsel %vm431_vm0, %v457_v25, %v458_v31  ;;  %v3097_v61 = vmul.f32 %v2613_v18, %v3016_v12  ;;  %v1014_v10 = vrot.slane %v908_v40, 1  ;;  %v1152_v2 = vmul.f32 %v2615_v19, %v3005_v45 }
  0x9a   : > { %2163 = vst.msk [vmem:[%s2863_s9 + $0x28] sm:$0xff] %vm2157_vm2, %v2130_v0  ;;  %v1422_v35 = vadd.f32 %v1390_v47, %v1354_v32  ;;  %v554_v8 = vadd.f32 %v459_v53, %v309_v22  ;;  %v704_v39 = vsel %vm676_vm1, %v702_v3, %v703_v27  ;;  %v1153_v48 = vmul.f32 %v2615_v19, %v3016_v12 }
  0x9b   : > { %v1015_v46 = vrot.slane %v3097_v61, 1  ;;  %v1258_v42 = vrot.slane %v1152_v2, 2  ;;  %v1391_v50 = vmul.f32 %v2617_v20, %v3104_v6  ;;  %v1464_v28 = vmul.f32 %v2619_v21, %v3104_v6  ;;  %v3150_v2 = vld [vmem:[%s2599_s5 + $0xb8] sm:$0x3] }
  0x9c   : > { %v1666_v47 = vadd.f32 %v1569_v30, %v1422_v35  ;;  %v799_v33 = vadd.f32 %v704_v39, %v554_v8  ;;  %v1259_v57 = vrot.slane %v1153_v48, 2  ;;  %v1465_v51 = vmul.f32 %v2619_v21, %v3110_v43 }
  0x9d   : > { %v2343_v1 = vpop.eup %2342  ;;  %v1016_v26 = vsel %vm431_vm0, %v1014_v10, %v1015_v46  ;;  %v1570_v58 = vrot.slane %v1464_v28, 1  ;;  %v1708_v60 = vmul.f32 %v2642_v37, %v3104_v6  ;;  %v1709_v62 = vmul.f32 %v2642_v37, %v3110_v43 }
  0x9e   : > { %v2036_v24 = vadd.f32 1.0, %v2343_v1  ;;  %v3124_v63 = vadd.f32 %v1813_v55, %v1666_v47  ;;  %v867_v4 = vadd.f32 %v835_v56, %v799_v33  ;;  %v1260_v30 = vsel %vm676_vm1, %v1258_v42, %v1259_v57 }
  0x9f   : > { %v1571_v29 = vrot.slane %v1465_v51, 1  ;;  %v1814_v41 = vrot.slane %v1708_v60, 2  ;;  %v1815_v22 = vrot.slane %v1709_v62, 2  ;;  %v278_v11 = vmul.f32 %v2603_v13, %v2916_v54  ;;  %v3163_v62 = vld [vmem:[#allocation4] ss:$0 sm:$0xff] }
  0xa0   : > { %2348 = vrcp.f32 %v2036_v24  ;;  %v1942_v52 = vsub.f32 0.0, %v3124_v63  ;;  %v1111_v36 = vadd.f32 %v1016_v26, %v867_v4  ;;  %v352_v59 = vmul.f32 %v2605_v14, %v2952_v23 }
  0xa1   : > { %v2345_v49 = vpop.eup %2344  ;;  %v1572_v55 = vsel %vm431_vm0, %v1570_v58, %v1571_v29  ;;  %v1816_v7 = vsel %vm676_vm1, %v1814_v41, %v1815_v22  ;;  %v310_v56 = vadd.f32 %v2611_v17, %v278_v11  ;;  %v597_v9 = vmul.f32 %v2607_v15, %v2952_v23 }
  0xa2   : > { %v2131_v54 = vmul.f32 %v2345_v49, %v2970_v34  ;;  %v1983_v25 = vmul.f32 1.442695, %v1942_v52  ;;  %v1355_v3 = vadd.f32 %v1260_v30, %v1111_v36  ;;  %v460_v40 = vrot.slane %v352_v59, 1 }
  0xa3   : > { %v705_v0 = vrot.slane %v597_v9, 2  ;;  %v836_v32 = vmul.f32 %v2609_v16, %v3016_v12  ;;  %v910_v53 = vmul.f32 %v2613_v18, %v3049_v5  ;;  %v1154_v61 = vmul.f32 %v2615_v19, %v3049_v5 }
  0xa4   : > { %2164 = vst.msk [vmem:[%s2863_s9 + $0x30] sm:$0xff] %vm2157_vm2, %v2131_v54  ;;  %2350 = vpow2.f32 %v1983_v25  ;;  %v1423_v17 = vadd.f32 %v1391_v50, %v1355_v3  ;;  %v461_v23 = vsel %vm431_vm0, %v458_v31, %v460_v40  ;;  %v1392_v34 = vmul.f32 %v2617_v20, %v3110_v43 }
  0xa5   : > { %v2347_v10 = vpop.eup %2346  ;;  %v555_v35 = vadd.f32 %v461_v23, %v310_v56  ;;  %v706_v8 = vsel %vm676_vm1, %v703_v27, %v705_v0  ;;  %v1017_v39 = vrot.slane %v910_v53, 1  ;;  %v1261_v48 = vrot.slane %v1154_v61, 2  ;;  %v3207_v23 = vld [vmem:[%s2599_s5 + $0xc8] sm:$0xff] }
  0xa6   : > { %v2037_v42 = vadd.f32 1.0, %v2347_v10  ;;  %v1667_v28 = vadd.f32 %v1572_v55, %v1423_v17  ;;  %v1466_v47 = vmul.f32 %v2619_v21, %v3150_v2  ;;  %v1710_v50 = vmul.f32 %v2642_v37, %v3150_v2 }
  0xa7   : > { %v800_v31 = vadd.f32 %v706_v8, %v555_v35  ;;  %v1018_v33 = vsel %vm431_vm0, %v1015_v46, %v1017_v39  ;;  %v1262_v51 = vsel %vm676_vm1, %v1259_v57, %v1261_v48  ;;  %v279_v1 = vmul.f32 %v2603_v13, %v3005_v45 }
  0xa8   : > { %2352 = vrcp.f32 %v2037_v42  ;;  %v3161_v27 = vadd.f32 %v1816_v7, %v1667_v28  ;;  %v1573_v26 = vrot.slane %v1466_v47, 1  ;;  %v1817_v58 = vrot.slane %v1710_v50, 2 }
  0xa9   : > { %v868_v60 = vadd.f32 %v836_v32, %v800_v31  ;;  %v311_v24 = vadd.f32 %v3163_v62, %v279_v1  ;;  %v353_v37 = vmul.f32 %v2605_v14, %v3005_v45  ;;  %v3170_v46 = vmul.f32 %v2605_v14, %v3016_v12  ;;  %v3196_v32 = vld [vmem:[%s2599_s5 + $0xc0] sm:$0xff] }
  0xaa   : > { %v1943_v57 = vsub.f32 0.0, %v3161_v27  ;;  %v1574_v4 = vsel %vm431_vm0, %v1571_v29, %v1573_v26  ;;  %v1818_v30 = vsel %vm676_vm1, %v1815_v22, %v1817_v58  ;;  %v598_v41 = vmul.f32 %v2607_v15, %v3005_v45  ;;  %v3220_v26 = vld [vmem:[#allocation2 + $0x8] ss:$0 sm:$0xff] }
  0xab   : > { %v1112_v11 = vadd.f32 %v1018_v33, %v868_v60  ;;  %v462_v52 = vrot.slane %v353_v37, 1  ;;  %v463_v36 = vrot.slane %v3170_v46, 1  ;;  %v3180_v59 = vmul.f32 %v2607_v15, %v3016_v12 }
  0xac   : > { %v1985_v49 = vmul.f32 1.442695, %v1943_v57  ;;  %v707_v55 = vrot.slane %v598_v41, 2  ;;  %v837_v7 = vmul.f32 %v2609_v16, %v3104_v6  ;;  %v911_v29 = vmul.f32 %v2613_v18, %v3104_v6 }
  0xad   : > { %v2349_v45 = vpop.eup %2348  ;;  %v1356_v22 = vadd.f32 %v1262_v51, %v1112_v11  ;;  %v464_v56 = vsel %vm431_vm0, %v462_v52, %v463_v36  ;;  %v708_v9 = vrot.slane %v3180_v59, 2  ;;  %v3192_v54 = vmul.f32 %v2613_v18, %v3110_v43 }
  0xae   : > { %v2132_v25 = vmul.f32 %v2349_v45, %v3031_v44  ;;  %2354 = vpow2.f32 %v1985_v49  ;;  %v556_v3 = vadd.f32 %v464_v56, %v311_v24  ;;  %v1019_v40 = vrot.slane %v911_v29, 1 }
  0xaf   : > { %v1424_v0 = vadd.f32 %v1392_v34, %v1356_v22  ;;  %v709_v53 = vsel %vm676_vm1, %v707_v55, %v708_v9  ;;  %v1020_v61 = vrot.slane %v3192_v54, 1  ;;  %v1155_v17 = vmul.f32 %v2615_v19, %v3104_v6 }
  0xb0   : > { %2165 = vst.msk [vmem:[%s2863_s9 + $0x38] sm:$0xff] %vm2157_vm2, %v2132_v25  ;;  %v801_v44 = vadd.f32 %v709_v53, %v556_v3  ;;  %v1156_v10 = vmul.f32 %v2615_v19, %v3110_v43  ;;  %v1393_v34 = vmul.f32 %v2617_v20, %v3196_v32  ;;  %v1467_v35 = vmul.f32 %v2619_v21, %v3196_v32  ;;  %v3243_v25 = vld [vmem:[%s2599_s5 + $0xd0] sm:$0x3] }
  0xb1   : > { %v2351_v8 = vpop.eup %2350  ;;  %v1668_v39 = vadd.f32 %v1574_v4, %v1424_v0  ;;  %v1021_v48 = vsel %vm431_vm0, %v1019_v40, %v1020_v61  ;;  %v1263_v42 = vrot.slane %v1155_v17, 2  ;;  %v1468_v28 = vmul.f32 %v2619_v21, %v3207_v23 }
  0xb2   : > { %v2038_v47 = vadd.f32 1.0, %v2351_v8  ;;  %v869_v50 = vadd.f32 %v837_v7, %v801_v44  ;;  %v1264_v31 = vrot.slane %v1156_v10, 2  ;;  %v1575_v33 = vrot.slane %v1467_v35, 1 }
  0xb3   : > { %v3218_v51 = vadd.f32 %v1818_v30, %v1668_v39  ;;  %v1576_v1 = vrot.slane %v1468_v28, 1  ;;  %v1711_v58 = vmul.f32 %v3220_v26, %v3196_v32  ;;  %v1712_v60 = vmul.f32 %v3220_v26, %v3207_v23 }
  0xb4   : > { %2356 = vrcp.f32 %v2038_v47  ;;  %v1113_v24 = vadd.f32 %v1021_v48, %v869_v50  ;;  %v1265_v37 = vsel %vm676_vm1, %v1263_v42, %v1264_v31  ;;  %v280_v57 = vmul.f32 %v2603_v13, %v3016_v12 }
  0xb5   : > { %v2353_v4 = vpop.eup %2352  ;;  %v1944_v30 = vsub.f32 0.0, %v3218_v51  ;;  %v1577_v41 = vsel %vm431_vm0, %v1575_v33, %v1576_v1  ;;  %v1819_v11 = vrot.slane %v1711_v58, 2  ;;  %v1820_v52 = vrot.slane %v1712_v60, 2 }
  0xb6   : > { %v2133_v49 = vmul.f32 %v2353_v4, %v3065_v38  ;;  %v1357_v55 = vadd.f32 %v1265_v37, %v1113_v24  ;;  %v312_v7 = vadd.f32 %v3163_v62, %v280_v57  ;;  %v355_v29 = vmul.f32 %v2605_v14, %v3049_v5 }
  0xb7   : > { %v1987_v45 = vmul.f32 1.442695, %v1944_v30  ;;  %v1821_v22 = vsel %vm676_vm1, %v1819_v11, %v1820_v52  ;;  %v600_v12 = vmul.f32 %v2607_v15, %v3049_v5  ;;  %v838_v56 = vmul.f32 %v2609_v16, %v3110_v43 }
  0xb8   : > { %2166 = vst.msk [vmem:[%s2863_s9 + $0x40] sm:$0xff] %vm2157_vm2, %v2133_v49  ;;  %v1425_v54 = vadd.f32 %v1393_v34, %v1357_v55  ;;  %v465_v38 = vrot.slane %v355_v29, 1  ;;  %v913_v3 = vmul.f32 %v2613_v18, %v3150_v2  ;;  %v1157_v40 = vmul.f32 %v2615_v19, %v3150_v2 }
  0xb9   : > { %2358 = vpow2.f32 %v1987_v45  ;;  %v710_v0 = vrot.slane %v600_v12, 2  ;;  %v1394_v5 = vmul.f32 %v2617_v20, %v3207_v23  ;;  %v1469_v53 = vmul.f32 %v2619_v21, %v3243_v25  ;;  %v3294_v12 = vld [vmem:[%s2599_s5 + $0xd8] sm:$0xff] }
  0xba   : > { %v1669_v17 = vadd.f32 %v1577_v41, %v1425_v54  ;;  %v466_v44 = vsel %vm431_vm0, %v463_v36, %v465_v38  ;;  %v1022_v10 = vrot.slane %v913_v3, 1  ;;  %v1266_v34 = vrot.slane %v1157_v40, 2 }
  0xbb   : > { %v2355_v35 = vpop.eup %2354  ;;  %v557_v8 = vadd.f32 %v466_v44, %v312_v7  ;;  %v711_v39 = vsel %vm676_vm1, %v708_v9, %v710_v0  ;;  %v1578_v48 = vrot.slane %v1469_v53, 1  ;;  %v1713_v42 = vmul.f32 %v3220_v26, %v3243_v25 }
  0xbc   : > { %v2039_v28 = vadd.f32 1.0, %v2355_v35  ;;  %v3261_v47 = vadd.f32 %v1821_v22, %v1669_v17  ;;  %v1023_v50 = vsel %vm431_vm0, %v1020_v61, %v1022_v10  ;;  %v1267_v46 = vsel %vm676_vm1, %v1264_v31, %v1266_v34  ;;  %v3312_v17 = vld [vmem:[%s2599_s5 + $0xe0] sm:$0xff] }
  0xbd   : > { %v802_v36 = vadd.f32 %v711_v39, %v557_v8  ;;  %v1579_v33 = vsel %vm431_vm0, %v1576_v1, %v1578_v48  ;;  %v1822_v58 = vrot.slane %v1713_v42, 2  ;;  %v281_v59 = vmul.f32 %v2603_v13, %v3104_v6 }
  0xbe   : > { %2360 = vrcp.f32 %v2039_v28  ;;  %v1945_v9 = vsub.f32 0.0, %v3261_v47  ;;  %v356_v60 = vmul.f32 %v2605_v14, %v3104_v6  ;;  %v3273_v24 = vmul.f32 %v2605_v14, %v3110_v43 }
  0xbf   : > { %v870_v61 = vadd.f32 %v838_v56, %v802_v36  ;;  %v1823_v31 = vsel %vm676_vm1, %v1820_v52, %v1822_v58  ;;  %v313_v37 = vadd.f32 %v3163_v62, %v281_v59  ;;  %v601_v1 = vmul.f32 %v2607_v15, %v3104_v6 }
  0xc0   : > { %v1989_v57 = vmul.f32 1.442695, %v1945_v9  ;;  %v467_v4 = vrot.slane %v356_v60, 1  ;;  %v468_v30 = vrot.slane %v3273_v24, 1  ;;  %v3282_v41 = vmul.f32 %v2607_v15, %v3110_v43 }
  0xc1   : > { %v2357_v11 = vpop.eup %2356  ;;  %v1114_v49 = vadd.f32 %v1023_v50, %v870_v61  ;;  %v712_v55 = vrot.slane %v601_v1, 2  ;;  %v839_v52 = vmul.f32 %v2609_v16, %v3196_v32  ;;  %v914_v7 = vmul.f32 %v2613_v18, %v3196_v32 }
  0xc2   : > { %v2134_v6 = vmul.f32 %v2357_v11, %v3124_v63  ;;  %2362 = vpow2.f32 %v1989_v57  ;;  %v469_v29 = vsel %vm431_vm0, %v467_v4, %v468_v30  ;;  %v713_v45 = vrot.slane %v3282_v41, 2 }
  0xc3   : > { %v1358_v22 = vadd.f32 %v1267_v46, %v1114_v49  ;;  %v558_v56 = vadd.f32 %v469_v29, %v313_v37  ;;  %v3298_v54 = vmul.f32 %v2613_v18, %v3207_v23  ;;  %v1024_v38 = vrot.slane %v914_v7, 1 }
  0xc4   : > { %2167 = vst.msk [vmem:[%s2863_s9 + $0x48] sm:$0xff] %vm2157_vm2, %v2134_v6  ;;  %v714_v63 = vsel %vm676_vm1, %v712_v55, %v713_v45  ;;  %v1158_v3 = vmul.f32 %v2615_v19, %v3196_v32  ;;  %v3307_v40 = vmul.f32 %v2615_v19, %v3207_v23  ;;  %v1395_v0 = vmul.f32 %v2617_v20, %v3294_v12 }
  0xc5   : > { %v1426_v53 = vadd.f32 %v1394_v5, %v1358_v22  ;;  %v803_v44 = vadd.f32 %v714_v63, %v558_v56  ;;  %v1025_v10 = vrot.slane %v3298_v54, 1  ;;  %v1470_v34 = vmul.f32 %v2619_v21, %v3294_v12  ;;  %v3342_v56 = vld [vmem:[%s2599_s5 + $0xe8] sm:$0x3] }
  0xc6   : > { %v2359_v35 = vpop.eup %2358  ;;  %v1268_v8 = vrot.slane %v1158_v3, 2  ;;  %v1269_v39 = vrot.slane %v3307_v40, 2  ;;  %v1471_v48 = vmul.f32 %v2619_v21, %v3312_v17  ;;  %v1714_v42 = vmul.f32 %v3220_v26, %v3294_v12 }
  0xc7   : > { %v2040_v28 = vadd.f32 1.0, %v2359_v35  ;;  %v1670_v5 = vadd.f32 %v1579_v33, %v1426_v53  ;;  %v871_v50 = vadd.f32 %v839_v52, %v803_v44  ;;  %v1026_v46 = vsel %vm431_vm0, %v1024_v38, %v1025_v10 }
  0xc8   : > { %v1270_v36 = vsel %vm676_vm1, %v1268_v8, %v1269_v39  ;;  %v1580_v58 = vrot.slane %v1470_v34, 1  ;;  %v1581_v59 = vrot.slane %v1471_v48, 1  ;;  %v1715_v9 = vmul.f32 %v3220_v26, %v3312_v17 }
  0xc9   : > { %2364 = vrcp.f32 %v2040_v28  ;;  %v3326_v60 = vadd.f32 %v1823_v31, %v1670_v5  ;;  %v1115_v61 = vadd.f32 %v1026_v46, %v871_v50  ;;  %v1824_v37 = vrot.slane %v1714_v42, 2 }
  0xca   : > { %v1582_v1 = vsel %vm431_vm0, %v1580_v58, %v1581_v59  ;;  %v1825_v57 = vrot.slane %v1715_v9, 2  ;;  %v282_v33 = vmul.f32 %v2603_v13, %v3110_v43  ;;  %v358_v4 = vmul.f32 %v2605_v14, %v3150_v2 }
  0xcb   : > { %v2361_v41 = vpop.eup %2360  ;;  %v1946_v11 = vsub.f32 0.0, %v3326_v60  ;;  %v1359_v49 = vadd.f32 %v1270_v36, %v1115_v61  ;;  %v603_v31 = vmul.f32 %v2607_v15, %v3150_v2  ;;  %v840_v55 = vmul.f32 %v2609_v16, %v3207_v23 }
  0xcc   : > { %v2135_v52 = vmul.f32 %v2361_v41, %v3161_v27  ;;  %v1826_v7 = vsel %vm676_vm1, %v1824_v37, %v1825_v57  ;;  %v314_v43 = vadd.f32 %v3163_v62, %v282_v33  ;;  %v470_v6 = vrot.slane %v358_v4, 1 }
  0xcd   : > { %v1991_v29 = vmul.f32 1.442695, %v1946_v11  ;;  %v1427_v22 = vadd.f32 %v1395_v0, %v1359_v49  ;;  %v715_v54 = vrot.slane %v603_v31, 2  ;;  %v916_v38 = vmul.f32 %v2613_v18, %v3243_v25 }
  0xce   : > { %2168 = vst.msk [vmem:[%s2863_s9 + $0x50] sm:$0xff] %vm2157_vm2, %v2135_v52  ;;  %v471_v2 = vsel %vm431_vm0, %v468_v30, %v470_v6  ;;  %v1160_v27 = vmul.f32 %v2615_v19, %v3243_v25  ;;  %v1396_v63 = vmul.f32 %v2617_v20, %v3312_v17  ;;  %v1472_v3 = vmul.f32 %v2619_v21, %v3342_v56 }
  0xcf   : > { %v2363_v40 = vpop.eup %2362  ;;  %2366 = vpow2.f32 %v1991_v29  ;;  %v1671_v0 = vadd.f32 %v1582_v1, %v1427_v22  ;;  %v559_v53 = vadd.f32 %v471_v2, %v314_v43  ;;  %v716_v44 = vsel %vm676_vm1, %v713_v45, %v715_v54  ;;  %v3402_v22 = vld [vmem:[%s2599_s5 + $0xf0] sm:$0xff] }
  0xd0   : > { %v2041_v34 = vadd.f32 1.0, %v2363_v40  ;;  %v1027_v35 = vrot.slane %v916_v38, 1  ;;  %v1271_v24 = vrot.slane %v1160_v27, 2  ;;  %v1583_v8 = vrot.slane %v1472_v3, 1  ;;  %v3407_v27 = vld [vmem:[%s2599_s5 + $0xf8] sm:$0xff] }
  0xd1   : > { %v3358_v30 = vadd.f32 %v1826_v7, %v1671_v0  ;;  %v804_v48 = vadd.f32 %v716_v44, %v559_v53  ;;  %v1716_v42 = vmul.f32 %v3220_v26, %v3342_v56  ;;  %v283_v28 = vmul.f32 %v2603_v13, %v3196_v32 }
  0xd2   : > { %2368 = vrcp.f32 %v2041_v34  ;;  %v1028_v5 = vsel %vm431_vm0, %v1025_v10, %v1027_v35  ;;  %v1272_v50 = vsel %vm676_vm1, %v1269_v39, %v1271_v24  ;;  %v1584_v45 = vsel %vm431_vm0, %v1581_v59, %v1583_v8 }
  0xd3   : > { %v1947_v46 = vsub.f32 0.0, %v3358_v30  ;;  %v872_v36 = vadd.f32 %v840_v55, %v804_v48  ;;  %v1827_v58 = vrot.slane %v1716_v42, 2  ;;  %v315_v9 = vadd.f32 %v3163_v62, %v283_v28 }
  0xd4   : > { %v359_v61 = vmul.f32 %v2605_v14, %v3196_v32  ;;  %v3373_v37 = vmul.f32 %v2605_v14, %v3207_v23  ;;  %v604_v10 = vmul.f32 %v2607_v15, %v3196_v32  ;;  %v3379_v39 = vmul.f32 %v2607_v15, %v3207_v23 }
  0xd5   : > { %v1993_v59 = vmul.f32 1.442695, %v1947_v46  ;;  %v1116_v1 = vadd.f32 %v1028_v5, %v872_v36  ;;  %v1828_v33 = vsel %vm676_vm1, %v1825_v57, %v1827_v58  ;;  %v841_v4 = vmul.f32 %v2609_v16, %v3294_v12 }
  0xd6   : > { %v2365_v41 = vpop.eup %2364  ;;  %v472_v11 = vrot.slane %v359_v61, 1  ;;  %v473_v49 = vrot.slane %v3373_v37, 1  ;;  %v717_v31 = vrot.slane %v604_v10, 2  ;;  %v718_v32 = vrot.slane %v3379_v39, 2 }
  0xd7   : > { %v2136_v55 = vmul.f32 %v2365_v41, %v3218_v51  ;;  %2370 = vpow2.f32 %v1993_v59  ;;  %v1360_v52 = vadd.f32 %v1272_v50, %v1116_v1  ;;  %v917_v7 = vmul.f32 %v2613_v18, %v3294_v12 }
  0xd8   : > { %v474_v57 = vsel %vm431_vm0, %v472_v11, %v473_v49  ;;  %v719_v43 = vsel %vm676_vm1, %v717_v31, %v718_v32  ;;  %v3395_v6 = vmul.f32 %v2613_v18, %v3312_v17  ;;  %v1161_v29 = vmul.f32 %v2615_v19, %v3294_v12 }
  0xd9   : > { %2169 = vst.msk [vmem:[%s2863_s9 + $0x58] sm:$0xff] %vm2157_vm2, %v2136_v55  ;;  %v1428_v51 = vadd.f32 %v1396_v63, %v1360_v52  ;;  %v560_v54 = vadd.f32 %v474_v57, %v315_v9  ;;  %v1029_v38 = vrot.slane %v917_v7, 1  ;;  %v1162_v2 = vmul.f32 %v2615_v19, %v3312_v17 }
  0xda   : > { %v1030_v3 = vrot.slane %v3395_v6, 1  ;;  %v1273_v40 = vrot.slane %v1161_v29, 2  ;;  %v1397_v0 = vmul.f32 %v2617_v20, %v3402_v22  ;;  %v1473_v53 = vmul.f32 %v2619_v21, %v3402_v22  ;;  %v3446_v29 = vld [vmem:[%s2599_s5 + $0x100] sm:$0x3] }
  0xdb   : > { %v1672_v44 = vadd.f32 %v1584_v45, %v1428_v51  ;;  %v805_v63 = vadd.f32 %v719_v43, %v560_v54  ;;  %v1274_v34 = vrot.slane %v1162_v2, 2  ;;  %v1474_v35 = vmul.f32 %v2619_v21, %v3407_v27 }
  0xdc   : > { %v2367_v24 = vpop.eup %2366  ;;  %v1031_v8 = vsel %vm431_vm0, %v1029_v38, %v1030_v3  ;;  %v1585_v48 = vrot.slane %v1473_v53, 1  ;;  %v1717_v42 = vmul.f32 %v3220_v26, %v3402_v22  ;;  %v1718_v28 = vmul.f32 %v3220_v26, %v3407_v27 }
  0xdd   : > { %v2042_v5 = vadd.f32 1.0, %v2367_v24  ;;  %v3421_v50 = vadd.f32 %v1828_v33, %v1672_v44  ;;  %v873_v46 = vadd.f32 %v841_v4, %v805_v63  ;;  %v1275_v45 = vsel %vm676_vm1, %v1273_v40, %v1274_v34 }
  0xde   : > { %v1586_v36 = vrot.slane %v1474_v35, 1  ;;  %v1829_v58 = vrot.slane %v1717_v42, 2  ;;  %v1830_v9 = vrot.slane %v1718_v28, 2  ;;  %v284_v61 = vmul.f32 %v2603_v13, %v3207_v23 }
  0xdf   : > { %v2369_v37 = vpop.eup %2368  ;;  %2372 = vrcp.f32 %v2042_v5  ;;  %v1948_v10 = vsub.f32 0.0, %v3421_v50  ;;  %v1117_v59 = vadd.f32 %v1031_v8, %v873_v46  ;;  %v361_v1 = vmul.f32 %v2605_v14, %v3243_v25 }
  0xe0   : > { %v2137_v33 = vmul.f32 %v2369_v37, %v3261_v47  ;;  %v1587_v4 = vsel %vm431_vm0, %v1585_v48, %v1586_v36  ;;  %v1831_v41 = vsel %vm676_vm1, %v1829_v58, %v1830_v9  ;;  %v316_v11 = vadd.f32 %v3163_v62, %v284_v61 }
  0xe1   : > { %v1995_v31 = vmul.f32 1.442695, %v1948_v10  ;;  %v1361_v55 = vadd.f32 %v1275_v45, %v1117_v59  ;;  %v475_v23 = vrot.slane %v361_v1, 1  ;;  %v606_v52 = vmul.f32 %v2607_v15, %v3243_v25 }
  0xe2   : > { %2170 = vst.msk [vmem:[%s2863_s9 + $0x60] sm:$0xff] %vm2157_vm2, %v2137_v33  ;;  %v842_v7 = vmul.f32 %v2609_v16, %v3312_v17  ;;  %v919_v47 = vmul.f32 %v2613_v18, %v3342_v56  ;;  %v1163_v57 = vmul.f32 %v2615_v19, %v3342_v56  ;;  %v1398_v43 = vmul.f32 %v2617_v20, %v3407_v27 }
  0xe3   : > { %2374 = vpow2.f32 %v1995_v31  ;;  %v1429_v6 = vadd.f32 %v1397_v0, %v1361_v55  ;;  %v476_v25 = vsel %vm431_vm0, %v473_v49, %v475_v23  ;;  %v720_v51 = vrot.slane %v606_v52, 2 }
  0xe4   : > { %v2371_v54 = vpop.eup %2370  ;;  %v561_v38 = vadd.f32 %v476_v25, %v316_v11  ;;  %v1032_v2 = vrot.slane %v919_v47, 1  ;;  %v1276_v40 = vrot.slane %v1163_v57, 2  ;;  %v1475_v53 = vmul.f32 %v2619_v21, %v3446_v29  ;;  %v3493_v57 = vld [vmem:[%s2599_s5 + $0x108] sm:$0xff] }
  0xe5   : > { %v2043_v44 = vadd.f32 1.0, %v2371_v54  ;;  %v1673_v63 = vadd.f32 %v1587_v4, %v1429_v6  ;;  %v721_v35 = vsel %vm676_vm1, %v718_v32, %v720_v51  ;;  %v1719_v0 = vmul.f32 %v3220_v26, %v3446_v29  ;;  %v3504_v54 = vld [vmem:[%s2599_s5 + $0x110] sm:$0xff] }
  0xe6   : > { %v806_v24 = vadd.f32 %v721_v35, %v561_v38  ;;  %v1033_v49 = vsel %vm431_vm0, %v1030_v3, %v1032_v2  ;;  %v1277_v8 = vsel %vm676_vm1, %v1274_v34, %v1276_v40  ;;  %v1588_v48 = vrot.slane %v1475_v53, 1 }
  0xe7   : > { %2376 = vrcp.f32 %v2043_v44  ;;  %v3458_v42 = vadd.f32 %v1831_v41, %v1673_v63  ;;  %v1832_v28 = vrot.slane %v1719_v0, 2  ;;  %v285_v5 = vmul.f32 %v2603_v13, %v3294_v12 }
  0xe8   : > { %v874_v46 = vadd.f32 %v842_v7, %v806_v24  ;;  %v1589_v39 = vsel %vm431_vm0, %v1586_v36, %v1588_v48  ;;  %v362_v32 = vmul.f32 %v2605_v14, %v3294_v12  ;;  %v3467_v45 = vmul.f32 %v2605_v14, %v3312_v17 }
  0xe9   : > { %v1949_v3 = vsub.f32 0.0, %v3458_v42  ;;  %v1833_v34 = vsel %vm676_vm1, %v1830_v9, %v1832_v28  ;;  %v317_v58 = vadd.f32 %v3163_v62, %v285_v5  ;;  %v607_v61 = vmul.f32 %v2607_v15, %v3294_v12 }
  0xea   : > { %v1118_v37 = vadd.f32 %v1033_v49, %v874_v46  ;;  %v477_v10 = vrot.slane %v362_v32, 1  ;;  %v478_v36 = vrot.slane %v3467_v45, 1  ;;  %v3477_v59 = vmul.f32 %v2607_v15, %v3312_v17 }
  0xeb   : > { %v1997_v1 = vmul.f32 1.442695, %v1949_v3  ;;  %v722_v33 = vrot.slane %v607_v61, 2  ;;  %v843_v4 = vmul.f32 %v2609_v16, %v3402_v22  ;;  %v920_v9 = vmul.f32 %v2613_v18, %v3402_v22 }
  0xec   : > { %v2373_v12 = vpop.eup %2372  ;;  %v1362_v41 = vadd.f32 %v1277_v8, %v1118_v37  ;;  %v479_v11 = vsel %vm431_vm0, %v477_v10, %v478_v36  ;;  %v723_v31 = vrot.slane %v3477_v59, 2  ;;  %v3489_v55 = vmul.f32 %v2613_v18, %v3407_v27 }
  0xed   : > { %v2138_v23 = vmul.f32 %v2373_v12, %v3326_v60  ;;  %2378 = vpow2.f32 %v1997_v1  ;;  %v562_v52 = vadd.f32 %v479_v11, %v317_v58  ;;  %v1034_v7 = vrot.slane %v920_v9, 1 }
  0xee   : > { %v1430_v47 = vadd.f32 %v1398_v43, %v1362_v41  ;;  %v724_v6 = vsel %vm676_vm1, %v722_v33, %v723_v31  ;;  %v1035_v25 = vrot.slane %v3489_v55, 1  ;;  %v1164_v51 = vmul.f32 %v2615_v19, %v3402_v22 }
  0xef   : > { %2171 = vst.msk [vmem:[%s2863_s9 + $0x68] sm:$0xff] %vm2157_vm2, %v2138_v23  ;;  %v807_v60 = vadd.f32 %v724_v6, %v562_v52  ;;  %v1165_v38 = vmul.f32 %v2615_v19, %v3407_v27  ;;  %v1399_v43 = vmul.f32 %v2617_v20, %v3493_v57  ;;  %v1476_v2 = vmul.f32 %v2619_v21, %v3493_v57  ;;  %v3538_v23 = vld [vmem:[%s2599_s5 + $0x118] sm:$0x3] }
  0xf0   : > { %v2375_v40 = vpop.eup %2374  ;;  %v1674_v53 = vadd.f32 %v1589_v39, %v1430_v47  ;;  %v1036_v44 = vsel %vm431_vm0, %v1034_v7, %v1035_v25  ;;  %v1278_v63 = vrot.slane %v1164_v51, 2  ;;  %v1477_v35 = vmul.f32 %v2619_v21, %v3504_v54 }
  0xf1   : > { %v2044_v0 = vadd.f32 1.0, %v2375_v40  ;;  %v875_v24 = vadd.f32 %v843_v4, %v807_v60  ;;  %v1279_v49 = vrot.slane %v1165_v38, 2  ;;  %v1590_v8 = vrot.slane %v1476_v2, 1 }
  0xf2   : > { %v3515_v48 = vadd.f32 %v1833_v34, %v1674_v53  ;;  %v1591_v28 = vrot.slane %v1477_v35, 1  ;;  %v1720_v5 = vmul.f32 %v3220_v26, %v3493_v57  ;;  %v1721_v46 = vmul.f32 %v3220_v26, %v3504_v54 }
  0xf3   : > { %2380 = vrcp.f32 %v2044_v0  ;;  %v1119_v39 = vadd.f32 %v1036_v44, %v875_v24  ;;  %v1280_v32 = vsel %vm676_vm1, %v1278_v63, %v1279_v49  ;;  %v286_v3 = vmul.f32 %v2603_v13, %v3312_v17 }
  0xf4   : > { %v2377_v58 = vpop.eup %2376  ;;  %v1950_v34 = vsub.f32 0.0, %v3515_v48  ;;  %v1592_v61 = vsel %vm431_vm0, %v1590_v8, %v1591_v28  ;;  %v1834_v37 = vrot.slane %v1720_v5, 2  ;;  %v1835_v10 = vrot.slane %v1721_v46, 2 }
  0xf5   : > { %v2139_v1 = vmul.f32 %v2377_v58, %v3358_v30  ;;  %v1363_v33 = vadd.f32 %v1280_v32, %v1119_v39  ;;  %v318_v4 = vadd.f32 %v3163_v62, %v286_v3  ;;  %v364_v9 = vmul.f32 %v2605_v14, %v3342_v56 }
  0xf6   : > { %v1999_v12 = vmul.f32 1.442695, %v1950_v34  ;;  %v1836_v41 = vsel %vm676_vm1, %v1834_v37, %v1835_v10  ;;  %v609_v17 = vmul.f32 %v2607_v15, %v3342_v56  ;;  %v844_v11 = vmul.f32 %v2609_v16, %v3407_v27 }
  0xf7   : > { %2172 = vst.msk [vmem:[%s2863_s9 + $0x70] sm:$0xff] %vm2157_vm2, %v2139_v1  ;;  %v1431_v55 = vadd.f32 %v1399_v43, %v1363_v33  ;;  %v480_v30 = vrot.slane %v364_v9, 1  ;;  %v922_v52 = vmul.f32 %v2613_v18, %v3446_v29  ;;  %v1166_v7 = vmul.f32 %v2615_v19, %v3446_v29 }
  0xf8   : > { %2382 = vpow2.f32 %v1999_v12  ;;  %v725_v47 = vrot.slane %v609_v17, 2  ;;  %v1400_v56 = vmul.f32 %v2617_v20, %v3504_v54  ;;  %v1478_v6 = vmul.f32 %v2619_v21, %v3538_v23  ;;  %v3589_v17 = vld [vmem:[%s2599_s5 + $0x120] sm:$0xff] }
  0xf9   : > { %v1675_v51 = vadd.f32 %v1592_v61, %v1431_v55  ;;  %v481_v60 = vsel %vm431_vm0, %v478_v36, %v480_v30  ;;  %v1037_v38 = vrot.slane %v922_v52, 1  ;;  %v1281_v43 = vrot.slane %v1166_v7, 2 }
  0xfa   : > { %v2379_v2 = vpop.eup %2378  ;;  %v563_v40 = vadd.f32 %v481_v60, %v318_v4  ;;  %v726_v53 = vsel %vm676_vm1, %v723_v31, %v725_v47  ;;  %v1593_v44 = vrot.slane %v1478_v6, 1  ;;  %v1722_v63 = vmul.f32 %v3220_v26, %v3538_v23 }
  0xfb   : > { %v2045_v35 = vadd.f32 1.0, %v2379_v2  ;;  %v3556_v0 = vadd.f32 %v1836_v41, %v1675_v51  ;;  %v1038_v24 = vsel %vm431_vm0, %v1035_v25, %v1037_v38  ;;  %v1282_v45 = vsel %vm676_vm1, %v1279_v49, %v1281_v43  ;;  %v3607_v51 = vld [vmem:[%s2599_s5 + $0x128] sm:$0xff] }
  0xfc   : > { %v808_v36 = vadd.f32 %v726_v53, %v563_v40  ;;  %v1594_v8 = vsel %vm431_vm0, %v1591_v28, %v1593_v44  ;;  %v1837_v5 = vrot.slane %v1722_v63, 2  ;;  %v287_v59 = vmul.f32 %v2603_v13, %v3402_v22 }
  0xfd   : > { %2384 = vrcp.f32 %v2045_v35  ;;  %v1951_v31 = vsub.f32 0.0, %v3556_v0  ;;  %v365_v46 = vmul.f32 %v2605_v14, %v3402_v22  ;;  %v3568_v39 = vmul.f32 %v2605_v14, %v3407_v27 }
  0xfe   : > { %v876_v25 = vadd.f32 %v844_v11, %v808_v36  ;;  %v1838_v49 = vsel %vm676_vm1, %v1835_v10, %v1837_v5  ;;  %v319_v32 = vadd.f32 %v3163_v62, %v287_v59  ;;  %v610_v28 = vmul.f32 %v2607_v15, %v3402_v22 }
  0xff   : > { %v2001_v3 = vmul.f32 1.442695, %v1951_v31  ;;  %v482_v58 = vrot.slane %v365_v46, 1  ;;  %v483_v34 = vrot.slane %v3568_v39, 1  ;;  %v3577_v61 = vmul.f32 %v2607_v15, %v3407_v27 }
 0x100   : > { %v2381_v37 = vpop.eup %2380  ;;  %v1120_v1 = vadd.f32 %v1038_v24, %v876_v25  ;;  %v727_v33 = vrot.slane %v610_v28, 2  ;;  %v845_v10 = vmul.f32 %v2609_v16, %v3493_v57  ;;  %v923_v4 = vmul.f32 %v2613_v18, %v3493_v57 }
 0x101   : > { %v2140_v22 = vmul.f32 %v2381_v37, %v3421_v50  ;;  %2386 = vpow2.f32 %v2001_v3  ;;  %v484_v9 = vsel %vm431_vm0, %v482_v58, %v483_v34  ;;  %v728_v12 = vrot.slane %v3577_v61, 2 }
 0x102   : > { %v1364_v41 = vadd.f32 %v1282_v45, %v1120_v1  ;;  %v564_v11 = vadd.f32 %v484_v9, %v319_v32  ;;  %v3593_v55 = vmul.f32 %v2613_v18, %v3504_v54  ;;  %v1039_v30 = vrot.slane %v923_v4, 1 }
 0x103   : > { %2173 = vst.msk [vmem:[%s2863_s9 + $0x78] sm:$0xff] %vm2157_vm2, %v2140_v22  ;;  %v729_v50 = vsel %vm676_vm1, %v727_v33, %v728_v12  ;;  %v1167_v52 = vmul.f32 %v2615_v19, %v3493_v57  ;;  %v3602_v7 = vmul.f32 %v2615_v19, %v3504_v54  ;;  %v1401_v47 = vmul.f32 %v2617_v20, %v3589_v17 }
 0x104   : > { %v1432_v6 = vadd.f32 %v1400_v56, %v1364_v41  ;;  %v809_v60 = vadd.f32 %v729_v50, %v564_v11  ;;  %v1040_v38 = vrot.slane %v3593_v55, 1  ;;  %v1479_v43 = vmul.f32 %v2619_v21, %v3589_v17  ;;  %v3637_v11 = vld [vmem:[%s2599_s5 + $0x130] sm:$0x3] }
 0x105   : > { %v2383_v2 = vpop.eup %2382  ;;  %v1283_v40 = vrot.slane %v1167_v52, 2  ;;  %v1284_v53 = vrot.slane %v3602_v7, 2  ;;  %v1480_v44 = vmul.f32 %v2619_v21, %v3607_v51  ;;  %v1723_v63 = vmul.f32 %v3220_v26, %v3589_v17 }
 0x106   : > { %v2046_v35 = vadd.f32 1.0, %v2383_v2  ;;  %v1676_v56 = vadd.f32 %v1594_v8, %v1432_v6  ;;  %v877_v24 = vadd.f32 %v845_v10, %v809_v60  ;;  %v1041_v45 = vsel %vm431_vm0, %v1039_v30, %v1040_v38 }
 0x107   : > { %v1285_v36 = vsel %vm676_vm1, %v1283_v40, %v1284_v53  ;;  %v1595_v5 = vrot.slane %v1479_v43, 1  ;;  %v1596_v59 = vrot.slane %v1480_v44, 1  ;;  %v1724_v31 = vmul.f32 %v3220_v26, %v3607_v51 }
 0x108   : > { %2388 = vrcp.f32 %v2046_v35  ;;  %v3621_v46 = vadd.f32 %v1838_v49, %v1676_v56  ;;  %v1121_v25 = vadd.f32 %v1041_v45, %v877_v24  ;;  %v1839_v32 = vrot.slane %v1723_v63, 2 }
 0x109   : > { %v1597_v28 = vsel %vm431_vm0, %v1595_v5, %v1596_v59  ;;  %v1840_v3 = vrot.slane %v1724_v31, 2  ;;  %v288_v8 = vmul.f32 %v2603_v13, %v3407_v27  ;;  %v367_v58 = vmul.f32 %v2605_v14, %v3446_v29 }
 0x10a   : > { %v2385_v61 = vpop.eup %2384  ;;  %v1952_v37 = vsub.f32 0.0, %v3621_v46  ;;  %v1365_v1 = vadd.f32 %v1285_v36, %v1121_v25  ;;  %v612_v49 = vmul.f32 %v2607_v15, %v3446_v29  ;;  %v846_v33 = vmul.f32 %v2609_v16, %v3504_v54 }
 0x10b   : > { %v2141_v10 = vmul.f32 %v2385_v61, %v3458_v42  ;;  %v1841_v4 = vsel %vm676_vm1, %v1839_v32, %v1840_v3  ;;  %v320_v27 = vadd.f32 %v3163_v62, %v288_v8  ;;  %v485_v22 = vrot.slane %v367_v58, 1 }
 0x10c   : > { %v2003_v9 = vmul.f32 1.442695, %v1952_v37  ;;  %v1433_v41 = vadd.f32 %v1401_v47, %v1365_v1  ;;  %v730_v55 = vrot.slane %v612_v49, 2  ;;  %v925_v30 = vmul.f32 %v2613_v18, %v3538_v23 }
 0x10d   : > { %2174 = vst.msk [vmem:[%s2863_s9 + $0x80] sm:$0xff] %vm2157_vm2, %v2141_v10  ;;  %v486_v29 = vsel %vm431_vm0, %v483_v34, %v485_v22  ;;  %v1169_v42 = vmul.f32 %v2615_v19, %v3538_v23  ;;  %v1402_v50 = vmul.f32 %v2617_v20, %v3607_v51  ;;  %v1481_v52 = vmul.f32 %v2619_v21, %v3637_v11 }
 0x10e   : > { %v2387_v7 = vpop.eup %2386  ;;  %2390 = vpow2.f32 %v2003_v9  ;;  %v1677_v47 = vadd.f32 %v1597_v28, %v1433_v41  ;;  %v565_v6 = vadd.f32 %v486_v29, %v320_v27  ;;  %v731_v60 = vsel %vm676_vm1, %v728_v12, %v730_v55  ;;  %v3697_v9 = vld [vmem:[%s2599_s5 + $0x138] sm:$0xff]  ;;  %v3702_v29 = vld [vmem:[%s2599_s5 + $0x140] sm:$0xff] }
 0x10f   : > { %v2047_v43 = vadd.f32 1.0, %v2387_v7  ;;  %v1042_v2 = vrot.slane %v925_v30, 1  ;;  %v1286_v39 = vrot.slane %v1169_v42, 2  ;;  %v1598_v40 = vrot.slane %v1481_v52, 1 }
 0x110   : > { %v3653_v34 = vadd.f32 %v1841_v4, %v1677_v47  ;;  %v810_v44 = vadd.f32 %v731_v60, %v565_v6  ;;  %v1725_v63 = vmul.f32 %v3220_v26, %v3637_v11  ;;  %v289_v35 = vmul.f32 %v2603_v13, %v3493_v57 }
 0x111   : > { %2392 = vrcp.f32 %v2047_v43  ;;  %v1043_v56 = vsel %vm431_vm0, %v1040_v38, %v1042_v2  ;;  %v1287_v24 = vsel %vm676_vm1, %v1284_v53, %v1286_v39  ;;  %v1599_v12 = vsel %vm431_vm0, %v1596_v59, %v1598_v40 }
 0x112   : > { %v1953_v45 = vsub.f32 0.0, %v3653_v34  ;;  %v878_v36 = vadd.f32 %v846_v33, %v810_v44  ;;  %v1842_v5 = vrot.slane %v1725_v63, 2  ;;  %v321_v31 = vadd.f32 %v3163_v62, %v289_v35 }
 0x113   : > { %v368_v25 = vmul.f32 %v2605_v14, %v3493_v57  ;;  %v3668_v32 = vmul.f32 %v2605_v14, %v3504_v54  ;;  %v613_v38 = vmul.f32 %v2607_v15, %v3493_v57  ;;  %v3674_v53 = vmul.f32 %v2607_v15, %v3504_v54 }
 0x114   : > { %v2005_v59 = vmul.f32 1.442695, %v1953_v45  ;;  %v1122_v28 = vadd.f32 %v1043_v56, %v878_v36  ;;  %v1843_v8 = vsel %vm676_vm1, %v1840_v3, %v1842_v5  ;;  %v847_v62 = vmul.f32 %v2609_v16, %v3589_v17 }
 0x115   : > { %v2389_v58 = vpop.eup %2388  ;;  %v487_v61 = vrot.slane %v368_v25, 1  ;;  %v488_v37 = vrot.slane %v3668_v32, 1  ;;  %v732_v1 = vrot.slane %v613_v38, 2  ;;  %v733_v57 = vrot.slane %v3674_v53, 2 }
 0x116   : > { %v2142_v49 = vmul.f32 %v2389_v58, %v3515_v48  ;;  %2394 = vpow2.f32 %v2005_v59  ;;  %v1366_v33 = vadd.f32 %v1287_v24, %v1122_v28  ;;  %v926_v10 = vmul.f32 %v2613_v18, %v3589_v17  ;;  %v3727_v58 = vld [vmem:[#allocation4] ss:$0 sm:$0xff] }
 0x117   : > { %v489_v3 = vsel %vm431_vm0, %v487_v61, %v488_v37  ;;  %v734_v4 = vsel %vm676_vm1, %v732_v1, %v733_v57  ;;  %v3690_v27 = vmul.f32 %v2613_v18, %v3607_v51  ;;  %v1170_v22 = vmul.f32 %v2615_v19, %v3589_v17 }
 0x118   : > { %2175 = vst.msk [vmem:[%s2863_s9 + $0x88] sm:$0xff] %vm2157_vm2, %v2142_v49  ;;  %v1434_v48 = vadd.f32 %v1402_v50, %v1366_v33  ;;  %v566_v41 = vadd.f32 %v489_v3, %v321_v31  ;;  %v1044_v55 = vrot.slane %v926_v10, 1  ;;  %v1171_v30 = vmul.f32 %v2615_v19, %v3607_v51 }
 0x119   : > { %v1045_v42 = vrot.slane %v3690_v27, 1  ;;  %v1288_v52 = vrot.slane %v1170_v22, 2  ;;  %v1403_v7 = vmul.f32 %v2617_v20, %v3697_v9  ;;  %v1482_v47 = vmul.f32 %v2619_v21, %v3697_v9  ;;  %v3743_v22 = vld [vmem:[%s2599_s5 + $0x148] sm:$0x3] }
 0x11a   : > { %v1678_v6 = vadd.f32 %v1599_v12, %v1434_v48  ;;  %v811_v50 = vadd.f32 %v734_v4, %v566_v41  ;;  %v1289_v60 = vrot.slane %v1171_v30, 2  ;;  %v1483_v43 = vmul.f32 %v2619_v21, %v3702_v29 }
 0x11b   : > { %v2391_v2 = vpop.eup %2390  ;;  %v1046_v39 = vsel %vm431_vm0, %v1044_v55, %v1045_v42  ;;  %v1600_v40 = vrot.slane %v1482_v47, 1  ;;  %v1726_v44 = vmul.f32 %v3220_v26, %v3697_v9  ;;  %v1727_v63 = vmul.f32 %v3220_v26, %v3702_v29 }
 0x11c   : > { %v2048_v35 = vadd.f32 1.0, %v2391_v2  ;;  %v3716_v56 = vadd.f32 %v1843_v8, %v1678_v6  ;;  %v879_v24 = vadd.f32 %v847_v62, %v811_v50  ;;  %v1290_v12 = vsel %vm676_vm1, %v1288_v52, %v1289_v60 }
 0x11d   : > { %v1601_v45 = vrot.slane %v1483_v43, 1  ;;  %v1844_v36 = vrot.slane %v1726_v44, 2  ;;  %v1845_v5 = vrot.slane %v1727_v63, 2  ;;  %v290_v31 = vmul.f32 %v2603_v13, %v3504_v54 }
 0x11e   : > { %v2393_v25 = vpop.eup %2392  ;;  %2396 = vrcp.f32 %v2048_v35  ;;  %v1954_v32 = vsub.f32 0.0, %v3716_v56  ;;  %v1123_v38 = vadd.f32 %v1046_v39, %v879_v24  ;;  %v370_v59 = vmul.f32 %v2605_v14, %v3538_v23 }
 0x11f   : > { %v2143_v28 = vmul.f32 %v2393_v25, %v3556_v0  ;;  %v1602_v8 = vsel %vm431_vm0, %v1600_v40, %v1601_v45  ;;  %v1846_v62 = vsel %vm676_vm1, %v1844_v36, %v1845_v5  ;;  %v322_v61 = vadd.f32 %v3727_v58, %v290_v31 }
 0x120   : > { %v2007_v54 = vmul.f32 1.442695, %v1954_v32  ;;  %v1367_v1 = vadd.f32 %v1290_v12, %v1123_v38  ;;  %v490_v49 = vrot.slane %v370_v59, 1  ;;  %v615_v33 = vmul.f32 %v2607_v15, %v3538_v23 }
 0x121   : > { %2176 = vst.msk [vmem:[%s2863_s9 + $0x90] sm:$0xff] %vm2157_vm2, %v2143_v28  ;;  %v848_v0 = vmul.f32 %v2609_v16, %v3607_v51  ;;  %v928_v10 = vmul.f32 %v2613_v18, %v3637_v11  ;;  %v1172_v3 = vmul.f32 %v2615_v19, %v3637_v11  ;;  %v1404_v4 = vmul.f32 %v2617_v20, %v3702_v29 }
 0x122   : > { %2398 = vpow2.f32 %v2007_v54  ;;  %v1435_v27 = vadd.f32 %v1403_v7, %v1367_v1  ;;  %v491_v23 = vsel %vm431_vm0, %v488_v37, %v490_v49  ;;  %v735_v48 = vrot.slane %v615_v33, 2 }
 0x123   : > { %v2395_v41 = vpop.eup %2394  ;;  %v567_v55 = vadd.f32 %v491_v23, %v322_v61  ;;  %v1047_v30 = vrot.slane %v928_v10, 1  ;;  %v1291_v52 = vrot.slane %v1172_v3, 2  ;;  %v1484_v47 = vmul.f32 %v2619_v21, %v3743_v22  ;;  %v3790_v10 = vld [vmem:[%s2599_s5 + $0x150] sm:$0xff] }
 0x124   : > { %v2049_v6 = vadd.f32 1.0, %v2395_v41  ;;  %v1679_v50 = vadd.f32 %v1602_v8, %v1435_v27  ;;  %v736_v43 = vsel %vm676_vm1, %v733_v57, %v735_v48  ;;  %v1728_v7 = vmul.f32 %v3220_v26, %v3743_v22  ;;  %v3801_v48 = vld [vmem:[%s2599_s5 + $0x158] sm:$0xff] }
 0x125   : > { %v812_v2 = vadd.f32 %v736_v43, %v567_v55  ;;  %v1048_v37 = vsel %vm431_vm0, %v1045_v42, %v1047_v30  ;;  %v1292_v39 = vsel %vm676_vm1, %v1289_v60, %v1291_v52  ;;  %v1603_v40 = vrot.slane %v1484_v47, 1 }
 0x126   : > { %2400 = vrcp.f32 %v2049_v6  ;;  %v3755_v44 = vadd.f32 %v1846_v62, %v1679_v50  ;;  %v1847_v63 = vrot.slane %v1728_v7, 2  ;;  %v291_v35 = vmul.f32 %v2603_v13, %v3589_v17 }
 0x127   : > { %v880_v24 = vadd.f32 %v848_v0, %v812_v2  ;;  %v1604_v53 = vsel %vm431_vm0, %v1601_v45, %v1603_v40  ;;  %v371_v57 = vmul.f32 %v2605_v14, %v3589_v17  ;;  %v3764_v26 = vmul.f32 %v2605_v14, %v3607_v51 }
 0x128   : > { %v1955_v42 = vsub.f32 0.0, %v3755_v44  ;;  %v1848_v60 = vsel %vm676_vm1, %v1845_v5, %v1847_v63  ;;  %v323_v12 = vadd.f32 %v3727_v58, %v291_v35  ;;  %v616_v36 = vmul.f32 %v2607_v15, %v3589_v17  ;;  %v3814_v63 = vld [vmem:[#allocation2 + $0x8] ss:$0 sm:$0xff] }
 0x129   : > { %v1124_v31 = vadd.f32 %v1048_v37, %v880_v24  ;;  %v492_v25 = vrot.slane %v371_v57, 1  ;;  %v493_v45 = vrot.slane %v3764_v26, 1  ;;  %v3774_v32 = vmul.f32 %v2607_v15, %v3607_v51 }
 0x12a   : > { %v2009_v38 = vmul.f32 1.442695, %v1955_v42  ;;  %v737_v59 = vrot.slane %v616_v36, 2  ;;  %v849_v28 = vmul.f32 %v2609_v16, %v3697_v9  ;;  %v929_v5 = vmul.f32 %v2613_v18, %v3697_v9 }
 0x12b   : > { %v2397_v17 = vpop.eup %2396  ;;  %v1368_v8 = vadd.f32 %v1292_v39, %v1124_v31  ;;  %v494_v62 = vsel %vm431_vm0, %v492_v25, %v493_v45  ;;  %v738_v61 = vrot.slane %v3774_v32, 2  ;;  %v3786_v54 = vmul.f32 %v2613_v18, %v3702_v29 }
 0x12c   : > { %v2144_v1 = vmul.f32 %v2397_v17, %v3621_v46  ;;  %2402 = vpow2.f32 %v2009_v38  ;;  %v568_v49 = vadd.f32 %v494_v62, %v323_v12  ;;  %v1049_v33 = vrot.slane %v929_v5, 1 }
 0x12d   : > { %v1436_v0 = vadd.f32 %v1404_v4, %v1368_v8  ;;  %v739_v3 = vsel %vm676_vm1, %v737_v59, %v738_v61  ;;  %v1050_v27 = vrot.slane %v3786_v54, 1  ;;  %v1173_v23 = vmul.f32 %v2615_v19, %v3697_v9 }
 0x12e   : > { %2177 = vst.msk [vmem:[%s2863_s9 + $0x98] sm:$0xff] %vm2157_vm2, %v2144_v1  ;;  %v813_v46 = vadd.f32 %v739_v3, %v568_v49  ;;  %v1174_v41 = vmul.f32 %v2615_v19, %v3702_v29  ;;  %v1405_v4 = vmul.f32 %v2617_v20, %v3790_v10  ;;  %v1485_v55 = vmul.f32 %v2619_v21, %v3790_v10  ;;  %v3837_v1 = vld [vmem:[%s2599_s5 + $0x160] sm:$0x3] }
 0x12f   : > { %v2399_v30 = vpop.eup %2398  ;;  %v1680_v52 = vadd.f32 %v1604_v53, %v1436_v0  ;;  %v1051_v47 = vsel %vm431_vm0, %v1049_v33, %v1050_v27  ;;  %v1293_v6 = vrot.slane %v1173_v23, 2  ;;  %v1486_v50 = vmul.f32 %v2619_v21, %v3801_v48 }
 0x130   : > { %v2050_v43 = vadd.f32 1.0, %v2399_v30  ;;  %v881_v7 = vadd.f32 %v849_v28, %v813_v46  ;;  %v1294_v2 = vrot.slane %v1174_v41, 2  ;;  %v1605_v37 = vrot.slane %v1485_v55, 1 }
 0x131   : > { %v3812_v39 = vadd.f32 %v1848_v60, %v1680_v52  ;;  %v1606_v40 = vrot.slane %v1486_v50, 1  ;;  %v1729_v35 = vmul.f32 %v3814_v63, %v3790_v10  ;;  %v1730_v24 = vmul.f32 %v3814_v63, %v3801_v48 }
 0x132   : > { %2404 = vrcp.f32 %v2050_v43  ;;  %v1125_v53 = vadd.f32 %v1051_v47, %v881_v7  ;;  %v1295_v57 = vsel %vm676_vm1, %v1293_v6, %v1294_v2  ;;  %v292_v42 = vmul.f32 %v2603_v13, %v3607_v51 }
 0x133   : > { %v2401_v60 = vpop.eup %2400  ;;  %v1956_v12 = vsub.f32 0.0, %v3812_v39  ;;  %v1607_v36 = vsel %vm431_vm0, %v1605_v37, %v1606_v40  ;;  %v1849_v31 = vrot.slane %v1729_v35, 2  ;;  %v1850_v25 = vrot.slane %v1730_v24, 2 }
 0x134   : > { %v2145_v38 = vmul.f32 %v2401_v60, %v3653_v34  ;;  %v1369_v59 = vadd.f32 %v1295_v57, %v1125_v53  ;;  %v324_v28 = vadd.f32 %v3727_v58, %v292_v42  ;;  %v373_v5 = vmul.f32 %v2605_v14, %v3637_v11 }
 0x135   : > { %v2011_v17 = vmul.f32 1.442695, %v1956_v12  ;;  %v1851_v8 = vsel %vm676_vm1, %v1849_v31, %v1850_v25  ;;  %v618_v51 = vmul.f32 %v2607_v15, %v3637_v11  ;;  %v850_v62 = vmul.f32 %v2609_v16, %v3702_v29 }
 0x136   : > { %2178 = vst.msk [vmem:[%s2863_s9 + $0xa0] sm:$0xff] %vm2157_vm2, %v2145_v38  ;;  %v1437_v54 = vadd.f32 %v1405_v4, %v1369_v59  ;;  %v495_v34 = vrot.slane %v373_v5, 1  ;;  %v931_v49 = vmul.f32 %v2613_v18, %v3743_v22  ;;  %v1175_v33 = vmul.f32 %v2615_v19, %v3743_v22 }
 0x137   : > { %2406 = vpow2.f32 %v2011_v17  ;;  %v740_v0 = vrot.slane %v618_v51, 2  ;;  %v1406_v11 = vmul.f32 %v2617_v20, %v3801_v48  ;;  %v1487_v3 = vmul.f32 %v2619_v21, %v3837_v1  ;;  %v3888_v51 = vld [vmem:[%s2599_s5 + $0x168] sm:$0xff] }
 0x138   : > { %v1681_v23 = vadd.f32 %v1607_v36, %v1437_v54  ;;  %v496_v46 = vsel %vm431_vm0, %v493_v45, %v495_v34  ;;  %v1052_v41 = vrot.slane %v931_v49, 1  ;;  %v1296_v4 = vrot.slane %v1175_v33, 2 }
 0x139   : > { %v2403_v55 = vpop.eup %2402  ;;  %v569_v30 = vadd.f32 %v496_v46, %v324_v28  ;;  %v741_v52 = vsel %vm676_vm1, %v738_v61, %v740_v0  ;;  %v1608_v47 = vrot.slane %v1487_v3, 1  ;;  %v1731_v6 = vmul.f32 %v3814_v63, %v3837_v1 }
 0x13a   : > { %v2051_v50 = vadd.f32 1.0, %v2403_v55  ;;  %v3855_v43 = vadd.f32 %v1851_v8, %v1681_v23  ;;  %v1053_v7 = vsel %vm431_vm0, %v1050_v27, %v1052_v41  ;;  %v1297_v26 = vsel %vm676_vm1, %v1294_v2, %v1296_v4  ;;  %v3906_v23 = vld [vmem:[%s2599_s5 + $0x170] sm:$0xff] }
 0x13b   : > { %v814_v45 = vadd.f32 %v741_v52, %v569_v30  ;;  %v1609_v37 = vsel %vm431_vm0, %v1606_v40, %v1608_v47  ;;  %v1852_v35 = vrot.slane %v1731_v6, 2  ;;  %v293_v32 = vmul.f32 %v2603_v13, %v3697_v9 }
 0x13c   : > { %2408 = vrcp.f32 %v2051_v50  ;;  %v1957_v61 = vsub.f32 0.0, %v3855_v43  ;;  %v374_v24 = vmul.f32 %v2605_v14, %v3697_v9  ;;  %v3867_v53 = vmul.f32 %v2605_v14, %v3702_v29 }
 0x13d   : > { %v882_v27 = vadd.f32 %v850_v62, %v814_v45  ;;  %v1853_v2 = vsel %vm676_vm1, %v1850_v25, %v1852_v35  ;;  %v325_v57 = vadd.f32 %v3727_v58, %v293_v32  ;;  %v619_v40 = vmul.f32 %v2607_v15, %v3697_v9 }
 0x13e   : > { %v2013_v42 = vmul.f32 1.442695, %v1957_v61  ;;  %v497_v60 = vrot.slane %v374_v24, 1  ;;  %v498_v12 = vrot.slane %v3867_v53, 1  ;;  %v3876_v36 = vmul.f32 %v2607_v15, %v3702_v29 }
 0x13f   : > { %v2405_v31 = vpop.eup %2404  ;;  %v1126_v38 = vadd.f32 %v1053_v7, %v882_v27  ;;  %v742_v59 = vrot.slane %v619_v40, 2  ;;  %v851_v25 = vmul.f32 %v2609_v16, %v3790_v10  ;;  %v932_v28 = vmul.f32 %v2613_v18, %v3790_v10 }
 0x140   : > { %v2146_v9 = vmul.f32 %v2405_v31, %v3716_v56  ;;  %2410 = vpow2.f32 %v2013_v42  ;;  %v499_v5 = vsel %vm431_vm0, %v497_v60, %v498_v12  ;;  %v743_v17 = vrot.slane %v3876_v36, 2 }
 0x141   : > { %v1370_v8 = vadd.f32 %v1297_v26, %v1126_v38  ;;  %v570_v62 = vadd.f32 %v499_v5, %v325_v57  ;;  %v3892_v54 = vmul.f32 %v2613_v18, %v3801_v48  ;;  %v1054_v34 = vrot.slane %v932_v28, 1 }
 0x142   : > { %2179 = vst.msk [vmem:[%s2863_s9 + $0xa8] sm:$0xff] %vm2157_vm2, %v2146_v9  ;;  %v744_v56 = vsel %vm676_vm1, %v742_v59, %v743_v17  ;;  %v1176_v49 = vmul.f32 %v2615_v19, %v3790_v10  ;;  %v3901_v33 = vmul.f32 %v2615_v19, %v3801_v48  ;;  %v1407_v0 = vmul.f32 %v2617_v20, %v3888_v51 }
 0x143   : > { %v1438_v3 = vadd.f32 %v1406_v11, %v1370_v8  ;;  %v815_v46 = vadd.f32 %v744_v56, %v570_v62  ;;  %v1055_v41 = vrot.slane %v3892_v54, 1  ;;  %v1488_v4 = vmul.f32 %v2619_v21, %v3888_v51  ;;  %v3936_v62 = vld [vmem:[%s2599_s5 + $0x178] sm:$0x3] }
 0x144   : > { %v2407_v55 = vpop.eup %2406  ;;  %v1298_v30 = vrot.slane %v1176_v49, 2  ;;  %v1299_v52 = vrot.slane %v3901_v33, 2  ;;  %v1489_v47 = vmul.f32 %v2619_v21, %v3906_v23  ;;  %v1732_v6 = vmul.f32 %v3814_v63, %v3888_v51 }
 0x145   : > { %v2052_v50 = vadd.f32 1.0, %v2407_v55  ;;  %v1682_v11 = vadd.f32 %v1609_v37, %v1438_v3  ;;  %v883_v7 = vadd.f32 %v851_v25, %v815_v46  ;;  %v1056_v26 = vsel %vm431_vm0, %v1054_v34, %v1055_v41 }
 0x146   : > { %v1300_v45 = vsel %vm676_vm1, %v1298_v30, %v1299_v52  ;;  %v1610_v35 = vrot.slane %v1488_v4, 1  ;;  %v1611_v32 = vrot.slane %v1489_v47, 1  ;;  %v1733_v61 = vmul.f32 %v3814_v63, %v3906_v23 }
 0x147   : > { %2412 = vrcp.f32 %v2052_v50  ;;  %v3920_v24 = vadd.f32 %v1853_v2, %v1682_v11  ;;  %v1127_v27 = vadd.f32 %v1056_v26, %v883_v7  ;;  %v1854_v57 = vrot.slane %v1732_v6, 2 }
 0x148   : > { %v1612_v40 = vsel %vm431_vm0, %v1610_v35, %v1611_v32  ;;  %v1855_v42 = vrot.slane %v1733_v61, 2  ;;  %v294_v37 = vmul.f32 %v2603_v13, %v3702_v29  ;;  %v376_v60 = vmul.f32 %v2605_v14, %v3743_v22 }
 0x149   : > { %v2409_v36 = vpop.eup %2408  ;;  %v1958_v31 = vsub.f32 0.0, %v3920_v24  ;;  %v1371_v38 = vadd.f32 %v1300_v45, %v1127_v27  ;;  %v621_v2 = vmul.f32 %v2607_v15, %v3743_v22  ;;  %v852_v59 = vmul.f32 %v2609_v16, %v3801_v48 }
 0x14a   : > { %v2147_v25 = vmul.f32 %v2409_v36, %v3755_v44  ;;  %v1856_v28 = vsel %vm676_vm1, %v1854_v57, %v1855_v42  ;;  %v326_v29 = vadd.f32 %v3727_v58, %v294_v37  ;;  %v500_v9 = vrot.slane %v376_v60, 1 }
 0x14b   : > { %v2015_v5 = vmul.f32 1.442695, %v1958_v31  ;;  %v1439_v8 = vadd.f32 %v1407_v0, %v1371_v38  ;;  %v745_v54 = vrot.slane %v621_v2, 2  ;;  %v934_v34 = vmul.f32 %v2613_v18, %v3837_v1 }
 0x14c   : > { %2180 = vst.msk [vmem:[%s2863_s9 + $0xb0] sm:$0xff] %vm2157_vm2, %v2147_v25  ;;  %v501_v22 = vsel %vm431_vm0, %v498_v12, %v500_v9  ;;  %v1178_v44 = vmul.f32 %v2615_v19, %v3837_v1  ;;  %v1408_v56 = vmul.f32 %v2617_v20, %v3906_v23  ;;  %v1490_v49 = vmul.f32 %v2619_v21, %v3936_v62 }
 0x14d   : > { %v2411_v33 = vpop.eup %2410  ;;  %2414 = vpow2.f32 %v2015_v5  ;;  %v1683_v0 = vadd.f32 %v1612_v40, %v1439_v8  ;;  %v571_v3 = vadd.f32 %v501_v22, %v326_v29  ;;  %v746_v46 = vsel %vm676_vm1, %v743_v17, %v745_v54  ;;  %v3996_v8 = vld [vmem:[%s2599_s5 + $0x180] sm:$0xff] }
 0x14e   : > { %v2053_v4 = vadd.f32 1.0, %v2411_v33  ;;  %v1057_v55 = vrot.slane %v934_v34, 1  ;;  %v1301_v53 = vrot.slane %v1178_v44, 2  ;;  %v1613_v30 = vrot.slane %v1490_v49, 1  ;;  %v4001_v44 = vld [vmem:[%s2599_s5 + $0x188] sm:$0xff] }
 0x14f   : > { %v3952_v12 = vadd.f32 %v1856_v28, %v1683_v0  ;;  %v816_v47 = vadd.f32 %v746_v46, %v571_v3  ;;  %v1734_v6 = vmul.f32 %v3814_v63, %v3936_v62  ;;  %v295_v50 = vmul.f32 %v2603_v13, %v3790_v10 }
 0x150   : > { %2416 = vrcp.f32 %v2053_v4  ;;  %v1058_v11 = vsel %vm431_vm0, %v1055_v41, %v1057_v55  ;;  %v1302_v7 = vsel %vm676_vm1, %v1299_v52, %v1301_v53  ;;  %v1614_v17 = vsel %vm431_vm0, %v1611_v32, %v1613_v30 }
 0x151   : > { %v1959_v26 = vsub.f32 0.0, %v3952_v12  ;;  %v884_v45 = vadd.f32 %v852_v59, %v816_v47  ;;  %v1857_v35 = vrot.slane %v1734_v6, 2  ;;  %v327_v61 = vadd.f32 %v3727_v58, %v295_v50 }
 0x152   : > { %v377_v27 = vmul.f32 %v2605_v14, %v3790_v10  ;;  %v3967_v57 = vmul.f32 %v2605_v14, %v3801_v48  ;;  %v622_v41 = vmul.f32 %v2607_v15, %v3790_v10  ;;  %v3973_v52 = vmul.f32 %v2607_v15, %v3801_v48 }
 0x153   : > { %v2017_v32 = vmul.f32 1.442695, %v1959_v26  ;;  %v1128_v40 = vadd.f32 %v1058_v11, %v884_v45  ;;  %v1858_v37 = vsel %vm676_vm1, %v1855_v42, %v1857_v35  ;;  %v853_v60 = vmul.f32 %v2609_v16, %v3888_v51 }
 0x154   : > { %v2413_v36 = vpop.eup %2412  ;;  %v502_v31 = vrot.slane %v377_v27, 1  ;;  %v503_v38 = vrot.slane %v3967_v57, 1  ;;  %v747_v2 = vrot.slane %v622_v41, 2  ;;  %v748_v10 = vrot.slane %v3973_v52, 2 }
 0x155   : > { %v2148_v59 = vmul.f32 %v2413_v36, %v3812_v39  ;;  %2418 = vpow2.f32 %v2017_v32  ;;  %v1372_v25 = vadd.f32 %v1302_v7, %v1128_v40  ;;  %v935_v28 = vmul.f32 %v2613_v18, %v3888_v51 }
 0x156   : > { %v504_v42 = vsel %vm431_vm0, %v502_v31, %v503_v38  ;;  %v749_v29 = vsel %vm676_vm1, %v747_v2, %v748_v10  ;;  %v3989_v9 = vmul.f32 %v2613_v18, %v3906_v23  ;;  %v1179_v5 = vmul.f32 %v2615_v19, %v3888_v51 }
 0x157   : > { %2181 = vst.msk [vmem:[%s2863_s9 + $0xb8] sm:$0xff] %vm2157_vm2, %v2148_v59  ;;  %v1440_v39 = vadd.f32 %v1408_v56, %v1372_v25  ;;  %v572_v54 = vadd.f32 %v504_v42, %v327_v61  ;;  %v1059_v34 = vrot.slane %v935_v28, 1  ;;  %v1180_v22 = vmul.f32 %v2615_v19, %v3906_v23 }
 0x158   : > { %v1060_v49 = vrot.slane %v3989_v9, 1  ;;  %v1303_v33 = vrot.slane %v1179_v5, 2  ;;  %v1409_v0 = vmul.f32 %v2617_v20, %v3996_v8  ;;  %v1491_v3 = vmul.f32 %v2619_v21, %v3996_v8  ;;  %v4040_v5 = vld [vmem:[%s2599_s5 + $0x190] sm:$0x3] }
 0x159   : > { %v1684_v46 = vadd.f32 %v1614_v17, %v1440_v39  ;;  %v817_v56 = vadd.f32 %v749_v29, %v572_v54  ;;  %v1304_v4 = vrot.slane %v1180_v22, 2  ;;  %v1492_v55 = vmul.f32 %v2619_v21, %v4001_v44 }
 0x15a   : > { %v2415_v53 = vpop.eup %2414  ;;  %v1061_v30 = vsel %vm431_vm0, %v1059_v34, %v1060_v49  ;;  %v1615_v47 = vrot.slane %v1491_v3, 1  ;;  %v1735_v6 = vmul.f32 %v3814_v63, %v3996_v8  ;;  %v1736_v50 = vmul.f32 %v3814_v63, %v4001_v44 }
 0x15b   : > { %v2054_v11 = vadd.f32 1.0, %v2415_v53  ;;  %v4015_v7 = vadd.f32 %v1858_v37, %v1684_v46  ;;  %v885_v26 = vadd.f32 %v853_v60, %v817_v56  ;;  %v1305_v17 = vsel %vm676_vm1, %v1303_v33, %v1304_v4 }
 0x15c   : > { %v1616_v45 = vrot.slane %v1492_v55, 1  ;;  %v1859_v35 = vrot.slane %v1735_v6, 2  ;;  %v1860_v61 = vrot.slane %v1736_v50, 2  ;;  %v296_v27 = vmul.f32 %v2603_v13, %v3801_v48 }
 0x15d   : > { %v2417_v57 = vpop.eup %2416  ;;  %2420 = vrcp.f32 %v2054_v11  ;;  %v1960_v41 = vsub.f32 0.0, %v4015_v7  ;;  %v1129_v32 = vadd.f32 %v1061_v30, %v885_v26  ;;  %v379_v40 = vmul.f32 %v2605_v14, %v3837_v1 }
 0x15e   : > { %v2149_v37 = vmul.f32 %v2417_v57, %v3855_v43  ;;  %v1617_v60 = vsel %vm431_vm0, %v1615_v47, %v1616_v45  ;;  %v1861_v36 = vsel %vm676_vm1, %v1859_v35, %v1860_v61  ;;  %v328_v31 = vadd.f32 %v3727_v58, %v296_v27 }
 0x15f   : > { %v2019_v2 = vmul.f32 1.442695, %v1960_v41  ;;  %v1373_v59 = vadd.f32 %v1305_v17, %v1129_v32  ;;  %v505_v48 = vrot.slane %v379_v40, 1  ;;  %v624_v25 = vmul.f32 %v2607_v15, %v3837_v1 }
 0x160   : > { %2182 = vst.msk [vmem:[%s2863_s9 + $0xc0] sm:$0xff] %vm2157_vm2, %v2149_v37  ;;  %v854_v28 = vmul.f32 %v2609_v16, %v3906_v23  ;;  %v937_v43 = vmul.f32 %v2613_v18, %v3936_v62  ;;  %v1181_v42 = vmul.f32 %v2615_v19, %v3936_v62  ;;  %v1410_v29 = vmul.f32 %v2617_v20, %v4001_v44 }
 0x161   : > { %2422 = vpow2.f32 %v2019_v2  ;;  %v1441_v9 = vadd.f32 %v1409_v0, %v1373_v59  ;;  %v506_v1 = vsel %vm431_vm0, %v503_v38, %v505_v48  ;;  %v750_v39 = vrot.slane %v624_v25, 2 }
 0x162   : > { %v2419_v54 = vpop.eup %2418  ;;  %v573_v34 = vadd.f32 %v506_v1, %v328_v31  ;;  %v1062_v22 = vrot.slane %v937_v43, 1  ;;  %v1306_v33 = vrot.slane %v1181_v42, 2  ;;  %v1493_v3 = vmul.f32 %v2619_v21, %v4040_v5  ;;  %v250_v31 = vld [vmem:[%s2599_s5 + $0x198] sm:$0xff] }
 0x163   : > { %v2055_v46 = vadd.f32 1.0, %v2419_v54  ;;  %v1685_v56 = vadd.f32 %v1617_v60, %v1441_v9  ;;  %v751_v55 = vsel %vm676_vm1, %v748_v10, %v750_v39  ;;  %v1737_v0 = vmul.f32 %v3814_v63, %v4040_v5 }
 0x164   : > { %v818_v53 = vadd.f32 %v751_v55, %v573_v34  ;;  %v1063_v38 = vsel %vm431_vm0, %v1060_v49, %v1062_v22  ;;  %v1307_v30 = vsel %vm676_vm1, %v1304_v4, %v1306_v33  ;;  %v1618_v47 = vrot.slane %v1493_v3, 1 }
 0x165   : > { %2424 = vrcp.f32 %v2055_v46  ;;  %v4052_v6 = vadd.f32 %v1861_v36, %v1685_v56  ;;  %v1862_v50 = vrot.slane %v1737_v0, 2  ;;  %v297_v11 = vmul.f32 %v2603_v13, %v3888_v51 }
 0x166   : > { %v886_v26 = vadd.f32 %v854_v28, %v818_v53  ;;  %v1619_v52 = vsel %vm431_vm0, %v1616_v45, %v1618_v47  ;;  %v380_v10 = vmul.f32 %v2605_v14, %v3888_v51  ;;  %v4061_v49 = vmul.f32 %v2605_v14, %v3906_v23  ;;  %v4088_v28 = vld [vmem:[%s2599_s5 + $0x1a0] sm:$0xff] }
 0x167   : > { %v1961_v4 = vsub.f32 0.0, %v4052_v6  ;;  %v1863_v17 = vsel %vm676_vm1, %v1860_v61, %v1862_v50  ;;  %v329_v35 = vadd.f32 %v3727_v58, %v297_v11  ;;  %v625_v27 = vmul.f32 %v2607_v15, %v3888_v51 }
 0x168   : > { %v1130_v57 = vadd.f32 %v1063_v38, %v886_v26  ;;  %v507_v45 = vrot.slane %v380_v10, 1  ;;  %v508_v41 = vrot.slane %v4061_v49, 1  ;;  %v4071_v32 = vmul.f32 %v2607_v15, %v3906_v23 }
 0x169   : > { %v2021_v40 = vmul.f32 1.442695, %v1961_v4  ;;  %v752_v37 = vrot.slane %v625_v27, 2  ;;  %v855_v60 = vmul.f32 %v2609_v16, %v3996_v8  ;;  %v938_v61 = vmul.f32 %v2613_v18, %v3996_v8 }
 0x16a   : > { %v2421_v36 = vpop.eup %2420  ;;  %v1374_v51 = vadd.f32 %v1307_v30, %v1130_v57  ;;  %v509_v2 = vsel %vm431_vm0, %v507_v45, %v508_v41  ;;  %v753_v59 = vrot.slane %v4071_v32, 2  ;;  %v4084_v48 = vmul.f32 %v2613_v18, %v4001_v44 }
 0x16b   : > { %v2150_v25 = vmul.f32 %v2421_v36, %v3920_v24  ;;  %2426 = vpow2.f32 %v2021_v40  ;;  %v574_v43 = vadd.f32 %v509_v2, %v329_v35  ;;  %v1064_v42 = vrot.slane %v938_v61, 1 }
 0x16c   : > { %v1442_v9 = vadd.f32 %v1410_v29, %v1374_v51  ;;  %v754_v1 = vsel %vm676_vm1, %v752_v37, %v753_v59  ;;  %v1065_v39 = vrot.slane %v4084_v48, 1  ;;  %v1182_v54 = vmul.f32 %v2615_v19, %v3996_v8  ;;  %v252_v51 = vld [vmem:[%s2599_s5 + $0x1a8] sm:$0x3] }
 0x16d   : > { %2183 = vst.msk [vmem:[%s2863_s9 + $0xc8] sm:$0xff] %vm2157_vm2, %v2150_v25  ;;  %v819_v34 = vadd.f32 %v754_v1, %v574_v43  ;;  %v1183_v22 = vmul.f32 %v2615_v19, %v4001_v44  ;;  %v1411_v24 = vmul.f32 %v2617_v20, %v250_v31  ;;  %v1494_v33 = vmul.f32 %v2619_v21, %v250_v31 }
 0x16e   : > { %v2423_v3 = vpop.eup %2422  ;;  %v1686_v46 = vadd.f32 %v1619_v52, %v1442_v9  ;;  %v1066_v29 = vsel %vm431_vm0, %v1064_v42, %v1065_v39  ;;  %v1308_v56 = vrot.slane %v1182_v54, 2  ;;  %v4103_v55 = vmul.f32 %v2619_v21, %v4088_v28 }
 0x16f   : > { %v2056_v8 = vadd.f32 1.0, %v2423_v3  ;;  %v887_v0 = vadd.f32 %v855_v60, %v819_v34  ;;  %v1309_v53 = vrot.slane %v1183_v22, 2  ;;  %v1620_v38 = vrot.slane %v1494_v33, 1 }
 0x170   : > { %v4105_v30 = vadd.f32 %v1863_v17, %v1686_v46  ;;  %v1621_v47 = vrot.slane %v4103_v55, 1  ;;  %v1738_v50 = vmul.f32 %v3814_v63, %v250_v31  ;;  %v1739_v11 = vmul.f32 %v3814_v63, %v4088_v28 }
 0x171   : > { %2428 = vrcp.f32 %v2056_v8  ;;  %v1131_v26 = vadd.f32 %v1066_v29, %v887_v0  ;;  %v1310_v52 = vsel %vm676_vm1, %v1308_v56, %v1309_v53  ;;  %v298_v10 = vmul.f32 %v2603_v13, %v3906_v23 }
 0x172   : > { %v2425_v4 = vpop.eup %2424  ;;  %v1962_v35 = vsub.f32 0.0, %v4105_v30  ;;  %v1864_v17 = vrot.slane %v1738_v50, 2  ;;  %v1865_v27 = vrot.slane %v1739_v11, 2  ;;  %v382_v32 = vmul.f32 %v2605_v14, %v3936_v62 }
 0x173   : > { %v2151_v57 = vmul.f32 %v2425_v4, %v3952_v12  ;;  %v1375_v45 = vadd.f32 %v1310_v52, %v1131_v26  ;;  %v1622_v37 = vsel %vm431_vm0, %v1620_v38, %v1621_v47  ;;  %v330_v60 = vadd.f32 %v3727_v58, %v298_v10 }
 0x174   : > { %v2023_v40 = vmul.f32 1.442695, %v1962_v35  ;;  %v627_v13 = vmul.f32 %v2607_v15, %v3936_v62  ;;  %v510_v61 = vrot.slane %v382_v32, 1  ;;  %v940_v36 = vmul.f32 %v2613_v18, %v4040_v5 }
 0x175   : > { %2184 = vst.msk [vmem:[%s2863_s9 + $0xd0] sm:$0xff] %vm2157_vm2, %v2151_v57  ;;  %v1443_v23 = vadd.f32 %v1411_v24, %v1375_v45  ;;  %v1184_v12 = vmul.f32 %v2615_v19, %v4040_v5  ;;  %v1866_v14 = vsel %vm676_vm1, %v1864_v17, %v1865_v27  ;;  %v856_v18 = vmul.f32 %v2609_v16, %v4001_v44 }
 0x176   : > { %2430 = vpow2.f32 %v2023_v40  ;;  %v755_v31 = vrot.slane %v627_v13, 2  ;;  %v511_v15 = vsel %vm431_vm0, %v508_v41, %v510_v61  ;;  %v1067_v58 = vrot.slane %v940_v36, 1 }
 0x177   : > { %v1687_v2 = vadd.f32 %v1622_v37, %v1443_v23  ;;  %v575_v48 = vadd.f32 %v511_v15, %v330_v60  ;;  %v1311_v5 = vrot.slane %v1184_v12, 2  ;;  %v1496_v42 = vmul.f32 %v2619_v21, %v252_v51 }
 0x178   : > { %v2427_v62 = vpop.eup %2426  ;;  %v756_v25 = vsel %vm676_vm1, %v753_v59, %v755_v31  ;;  %v1068_v49 = vsel %vm431_vm0, %v1065_v39, %v1067_v58  ;;  %v1740_v41 = vmul.f32 %v3814_v63, %v252_v51  ;;  %v1412_v44 = vmul.f32 %v2617_v20, %v4088_v28 }
 0x179   : > { %v2057_v43 = vadd.f32 1.0, %v2427_v62  ;;  %v1931_v19 = vadd.f32 %v1866_v14, %v1687_v2  ;;  %v820_v9 = vadd.f32 %v756_v25, %v575_v48  ;;  %v1312_v59 = vsel %vm676_vm1, %v1309_v53, %v1311_v5 }
 0x17a   : > { %v1623_v22 = vrot.slane %v1496_v42, 1  ;;  %v1867_v33 = vrot.slane %v1740_v41, 2 }
 0x17b   : > { %2432 = vrcp.f32 %v2057_v43  ;;  %v1963_v1 = vsub.f32 0.0, %v1931_v19  ;;  %v888_v54 = vadd.f32 %v856_v18, %v820_v9 }
 0x17c   : > { %v1624_v63 = vsel %vm431_vm0, %v1621_v47, %v1623_v22  ;;  %v1868_v29 = vsel %vm676_vm1, %v1865_v27, %v1867_v33 }
 0x17d   : > { %v2025_v34 = vmul.f32 1.442695, %v1963_v1  ;;  %v1132_v16 = vadd.f32 %v1068_v49, %v888_v54 }
 0x17e   : > { %v2429_v24 = vpop.eup %2428 }
 0x17f   : > { %v2152_v21 = vmul.f32 %v2429_v24, %v4015_v7  ;;  %2434 = vpow2.f32 %v2025_v34  ;;  %v1376_v3 = vadd.f32 %v1312_v59, %v1132_v16 }
 0x181   : > { %2185 = vst.msk [vmem:[%s2863_s9 + $0xd8] sm:$0xff] %vm2157_vm2, %v2152_v21  ;;  %v1444_v39 = vadd.f32 %v1412_v44, %v1376_v3 }
 0x183   : > { %v2431_v46 = vpop.eup %2430  ;;  %v1688_v55 = vadd.f32 %v1624_v63, %v1444_v39 }
 0x184   : > { %v2058_v56 = vadd.f32 1.0, %v2431_v46 }
 0x185   : > { %v1932_v8 = vadd.f32 %v1868_v29, %v1688_v55 }
 0x186   : > { %2436 = vrcp.f32 %v2058_v56 }
 0x187   : > { %v1964_v28 = vsub.f32 0.0, %v1932_v8 }
 0x188   : > { %v2433_v20 = vpop.eup %2432 }
 0x189   : > { %v2153_v7 = vmul.f32 %v2433_v20, %v4052_v6  ;;  %v2027_v0 = vmul.f32 1.442695, %v1964_v28 }
 0x18b   : > { %2186 = vst.msk [vmem:[%s2863_s9 + $0xe0] sm:$0xff] %vm2157_vm2, %v2153_v7  ;;  %2438 = vpow2.f32 %v2027_v0 }
 0x18c   : > { %v2435_v53 = vpop.eup %2434 }
 0x18d   : > { %v2059_v38 = vadd.f32 1.0, %v2435_v53 }
 0x18f   : > { %2440 = vrcp.f32 %v2059_v38 }
 0x193   : > { %v2437_v47 = vpop.eup %2436 }
 0x194   : > { %v2154_v50 = vmul.f32 %v2437_v47, %v4105_v30 }
 0x196   : > { %2187 = vst.msk [vmem:[%s2863_s9 + $0xe8] sm:$0xff] %vm2157_vm2, %v2154_v50 }
 0x198   : > { %v2439_v11 = vpop.eup %2438 }
 0x199   : > { %v2060_v26 = vadd.f32 1.0, %v2439_v11 }
 0x19b   : > { %2442 = vrcp.f32 %v2060_v26 }
 0x19c   : > { %v2441_v52 = vpop.eup %2440 }
 0x19d   : > { %v2155_v10 = vmul.f32 %v2441_v52, %v1931_v19 }
 0x19f   : > { %2188 = vst.msk [vmem:[%s2863_s9 + $0xf0] sm:$0xff] %vm2157_vm2, %v2155_v10 }
 0x1a8   : > { %v2443_v6 = vpop.eup %2442 }
 0x1a9   : > { %v2156_v4 = vmul.f32 %v2443_v6, %v1932_v8 }
 0x1ab   : > { %2189 = vst.msk [vmem:[%s2863_s9 + $0xf8] sm:$0xff] %vm2157_vm2, %v2156_v4 }
 0x1ac PF: > { %s15_s12 = sadd.s32 1, %s2514_s12  }
 0x1ad   : > { %p12_p2 = scmp.ge.s32.totalorder %s15_s12, 4  }
 0x1af   :  { %14 = sbr.rel (!%p12_p2) target bundleno = 2 (0x2), region = 71 }
 0x1b4   :  { %2211 = vsyncpa [#allocation3], 1 }
 0x1b5   :  { %2213 = vsyncpa [#allocation3 + $0x1], 1 }
 0x1b6   :  { %2214 = vsyncpa [#allocation5], 1 }

// kernel: _lambda_.8
= control target key start
LH: loop header
LB: loop body
LE: loop exit
PB: predicated region body
PF: predicated region fallthrough
CT: control target
= control target key end

     0   :  { %s1849_s18 = smov 0   ;;  %s1851_s19 = smov 0   ;;  %s2345_s0 = inlined_call_operand.vmem [shape: f32[2,512,64], index: 0, kind: input, shape index: {}]   ;;  %s2346_s1 = inlined_call_operand.vmem [shape: bf16[4,64,64], index: 1, kind: input, shape index: {}]   ;;  %s2347_s2 = inlined_call_operand.vmem [shape: bf16[4,64,32], index: 2, kind: input, shape index: {}]   ;;  %s2348_s3 = inlined_call_operand.vmem [shape: f32[4,1,64], index: 3, kind: input, shape index: {}]   ;;  %s2349_s4 = inlined_call_operand.vmem [shape: f32[4,512,64], index: 4, kind: output, shape index: {0}]   ;;  %s2350_s5 = inlined_call_operand.vmem [shape: f32[4,512,32], index: 5, kind: output, shape index: {1}]  }
   0x1   :  { %s1853_s20 = smov 0   ;;  %s1855_s21 = smov 0  }
   0x2   :  { %s1857_s22 = smov 0  }
   0x3 LB: > { %s25_s23 = sadd.s32 1, %s1809_s20  ;;  %s28_s24 = sadd.s32 1, %s1813_s21  ;;  %s1817_s22 = sphi %s1857_s22, %s16_s22   ;;  %s1813_s21 = sphi %s1855_s21, %s2354_s21   ;;  %s1809_s20 = sphi %s1853_s20, %s2353_s20   ;;  %s1805_s19 = sphi %s1851_s19, %s2352_s19   ;;  %s1801_s18 = sphi %s1849_s18, %s2351_s18  }
   0x4   : > { %p26_p0 = scmp.ge.s32.totalorder %s25_s23, 2  ;;  %p1421_p1 = scmp.ge.s32.totalorder %s1817_s22, 1 }
   0x5   : > { %p289_p2 = scmp.lt.s32.totalorder %s1817_s22, 9 }
   0x6   : > { %s2356_s23 = smov (%p26_p0, %s25_s23), 0  ;;  %s2358_s24 = smov (!%p26_p0, %s28_s24), %s1813_s21 }
   0x7   : > { %p290_p3 = pnand %p1421_p1, %p289_p2  ;;  %p30_p4 = scmp.ge.s32.totalorder %s2358_s24, 4 }
   0x8   : > { %p393_p5 = scmp.lt.s32.totalorder (!%p290_p3), %s1805_s19, 3  ;;  %p359_p6 = scmp.lt.s32.totalorder (!%p290_p3), %s1805_s19, 0 }
   0x9   : > { %s2360_s24 = smov (%p30_p4, %s2358_s24), 0  ;;  %293 = sbr.rel (%p290_p3) target bundleno = 336 (0x150), region = 36 }
   0xa   : > { %s360_s25 = ssub.s32 (!%p290_p3), 0, %s1805_s19  ;;  %s1425_s26 = sshll.u32 (!%p290_p3), %s1801_s18, 5 }
   0xb   : > { %s1422_s28 = smin.u32 (!%p290_p3), %s1805_s19, %s360_s25  ;;  %p374_p7 = scmp.lt.s32.totalorder (!%p290_p3), %s1425_s26, 63 }
   0xc   : > { %s362_s30 = sand.u32 (!%p290_p3), 1, %s1422_s28  }
   0xd   : > { %s363_s9 = ssub.s32 (!%p290_p3), 0, %s362_s30 }
   0xe   : > { %s1882_s27 = scalar_select %p393_p5, %s1805_s19, 3  ;;  %vm514_vm0 = vcmask 523264   ;;  %vm1205_vm1 = vcmask 261120  }
   0xf   : > { %s2362_s9 = smov (!%p359_p6, %s363_s9), %s362_s30  ;;  %s2364_s26 = smov (!%p374_p7, %s1425_s26), 63 }
  0x10   : > { %s1481_s29 = sshll.u32 %s1882_s27, 5  ;;  %p1424_p8 = scmp.lt.s32.totalorder %s2362_s9, 0 }
  0x11   : > { %s397_s8 = scalar_lea.vmem %s2346_s1, %s1481_s29  ;;  %s402_s12 = scalar_lea.vmem %s2347_s2, %s1481_s29 }
  0x12   : > { %v1643_v0 = vld [vmem:[%s397_s8 + $0x18] sm:$0xff]   ;;  %v1644_v1 = vld [vmem:[%s397_s8 + $0x10] sm:$0xff]   ;;  %v1645_v2 = vld [vmem:[%s397_s8 + $0x8] sm:$0xff]   ;;  %s369_s13 = sadd.s32 2, %s2362_s9  ;;  %s1433_s14 = sshll.u32 %s1882_s27, 6 }
  0x13   : > { %1523 = vmatprep.subr.bf16.mxu0 %v1643_v0  ;;  %s2366_s13 = smov (!%p1424_p8, %s369_s13), %s2362_s9  ;;  %v1647_v3 = vld [vmem:[%s402_s12 + $0x18] sm:$0xff]   ;;  %v1648_v4 = vld [vmem:[%s402_s12 + $0x10] sm:$0xff]   ;;  %s1892_s15 = sadd.s32 %s1433_s14, %s2364_s26  ;;  %v1646_v5 = vld [vmem:[%s397_s8] sm:$0xff]  }
  0x14   : > { %1524 = vmatpush3.bf16.msra.mxu0 %v1643_v0  ;;  %p372_p9 = scmp.lt.s32.totalorder %s2366_s13, 1  ;;  %1563 = vmatprep.subr.bf16.mxu1 %v1647_v3  ;;  %v1649_v6 = vld [vmem:[%s402_s12 + $0x8] sm:$0xff]   ;;  %v1650_v7 = vld [vmem:[%s402_s12] sm:$0xff]   ;;  %s405_s30 = scalar_lea.vmem %s2348_s3, %s1882_s27 }
  0x15   : > { %1525 = vmatprep.subr.bf16.mxu0 %v1644_v1  ;;  %1564 = vmatpush3.bf16.msra.mxu1 %v1647_v3  ;;  %v1967_v56 = vld [vmem:[%s405_s30] ss:$0 sm:$0xff]  ;;  %s1434_s6 = sshll.u32 %s1892_s15, 3 }
  0x16   : > { %s2368_s13 = smov (!%p372_p9, %s2366_s13), 1  ;;  %1565 = vmatprep.subr.bf16.mxu1 %v1648_v4  ;;  %s1978_s9 = scalar_lea.vmem %s2350_s5, %s1434_s6 }
  0x17   : > { %s1426_s16 = sshll.u32 %s2368_s13, 6  ;;  %s2087_s11 = scalar_lea.vmem %s2349_s4, %s1434_s6 }
  0x18   : > { %1526 = vmatpush3.bf16.msra.mxu0 %v1644_v1  ;;  %s377_s17 = sadd.s32 %s1426_s16, %s2364_s26 }
  0x19   : > { %1527 = vmatprep.subr.bf16.mxu0 %v1645_v2  ;;  %1566 = vmatpush3.bf16.msra.mxu1 %v1648_v4  ;;  %s1427_s18 = sshll.u32 %s377_s17, 3 }
  0x1a   : > { %1567 = vmatprep.subr.bf16.mxu1 %v1649_v6  ;;  %s1897_s28 = scalar_lea.vmem %s2345_s0, %s1427_s18 }
  0x1b   : > { %v427_v8 = vld [vmem:[%s1897_s28] sm:$0xff]  ;;  %v428_v9 = vld [vmem:[%s1897_s28 + $0x8] sm:$0xff]  ;;  %v429_v10 = vld [vmem:[%s1897_s28 + $0x10] sm:$0xff] }
  0x1c   : > { %1528 = vmatpush3.bf16.msra.mxu0 %v1645_v2  ;;  %v459_v11 = vpack.c.bf16 %v428_v9, %v427_v8  ;;  %v430_v12 = vld [vmem:[%s1897_s28 + $0x18] sm:$0xff]  ;;  %v431_v13 = vld [vmem:[%s1897_s28 + $0x20] sm:$0xff]  ;;  %v432_v14 = vld [vmem:[%s1897_s28 + $0x28] sm:$0xff] }
  0x1d   : > { %1529 = vmatprep.subr.bf16.mxu0 %v1646_v5  ;;  %1568 = vmatpush3.bf16.msra.mxu1 %v1649_v6  ;;  %v460_v15 = vpack.c.bf16 %v430_v12, %v429_v10  ;;  %v461_v16 = vpack.c.bf16 %v432_v14, %v431_v13  ;;  %v433_v17 = vld [vmem:[%s1897_s28 + $0x30] sm:$0xff]  ;;  %v434_v18 = vld [vmem:[%s1897_s28 + $0x38] sm:$0xff]  ;;  %v435_v19 = vld [vmem:[%s1897_s28 + $0x40] sm:$0xff] }
  0x1e   : > { %1569 = vmatprep.subr.bf16.mxu1 %v1650_v7  ;;  %1531 = vmatprep.mubr.msk.bf16.mxu0 %vm514_vm0, %v459_v11  ;;  %v436_v20 = vld [vmem:[%s1897_s28 + $0x48] sm:$0xff]  ;;  %v462_v21 = vpack.c.bf16 %v434_v18, %v433_v17  ;;  %v437_v23 = vld [vmem:[%s1897_s28 + $0x50] sm:$0xff]  ;;  %v438_v24 = vld [vmem:[%s1897_s28 + $0x58] sm:$0xff] }
  0x1f   : > { %1571 = vmatprep.mubr.msk.bf16.mxu1 %vm514_vm0, %v459_v11  ;;  %v463_v22 = vpack.c.bf16 %v436_v20, %v435_v19  ;;  %v439_v25 = vld [vmem:[%s1897_s28 + $0x60] sm:$0xff]  ;;  %v440_v26 = vld [vmem:[%s1897_s28 + $0x68] sm:$0xff]  ;;  %v464_v27 = vpack.c.bf16 %v438_v24, %v437_v23  ;;  %v441_v29 = vld [vmem:[%s1897_s28 + $0x70] sm:$0xff] }
  0x20   : > { %1530 = vmatpush3.bf16.msra.mxu0 %v1646_v5  ;;  %v465_v28 = vpack.c.bf16 %v440_v26, %v439_v25  ;;  %v442_v30 = vld [vmem:[%s1897_s28 + $0x78] sm:$0xff]  ;;  %v443_v31 = vld [vmem:[%s1897_s28 + $0x80] sm:$0xff]  ;;  %v444_v32 = vld [vmem:[%s1897_s28 + $0x88] sm:$0xff] }
  0x21   : > { %1570 = vmatpush3.bf16.msra.mxu1 %v1650_v7  ;;  %v466_v33 = vpack.c.bf16 %v442_v30, %v441_v29  ;;  %v467_v34 = vpack.c.bf16 %v444_v32, %v443_v31  ;;  %v445_v35 = vld [vmem:[%s1897_s28 + $0x90] sm:$0xff]  ;;  %v446_v36 = vld [vmem:[%s1897_s28 + $0x98] sm:$0xff]  ;;  %v447_v37 = vld [vmem:[%s1897_s28 + $0xa0] sm:$0xff] }
  0x22   : > { %v448_v38 = vld [vmem:[%s1897_s28 + $0xa8] sm:$0xff]  ;;  %v468_v39 = vpack.c.bf16 %v446_v36, %v445_v35  ;;  %v449_v41 = vld [vmem:[%s1897_s28 + $0xb0] sm:$0xff]  ;;  %v450_v42 = vld [vmem:[%s1897_s28 + $0xb8] sm:$0xff] }
  0x23   : > { %1532 = vmatmul.mubr.msk.bf16.vlgmr.msra.gmra.mxu0 %vm514_vm0, %v460_v15  ;;  %v469_v40 = vpack.c.bf16 %v448_v38, %v447_v37  ;;  %v451_v43 = vld [vmem:[%s1897_s28 + $0xc0] sm:$0xff]  ;;  %v452_v44 = vld [vmem:[%s1897_s28 + $0xc8] sm:$0xff]  ;;  %v470_v45 = vpack.c.bf16 %v450_v42, %v449_v41  ;;  %v453_v47 = vld [vmem:[%s1897_s28 + $0xd0] sm:$0xff] }
  0x24   : > { %1535 = vmatprep.mubr.msk.bf16.mxu0 %vm514_vm0, %v461_v16  ;;  %1572 = vmatmul.mubr.msk.bf16.vlgmr.msra.gmra.mxu1 %vm514_vm0, %v460_v15  ;;  %v471_v46 = vpack.c.bf16 %v452_v44, %v451_v43  ;;  %v454_v48 = vld [vmem:[%s1897_s28 + $0xd8] sm:$0xff]  ;;  %v455_v49 = vld [vmem:[%s1897_s28 + $0xe0] sm:$0xff]  ;;  %v456_v50 = vld [vmem:[%s1897_s28 + $0xe8] sm:$0xff] }
  0x25   : > { %1575 = vmatprep.mubr.msk.bf16.mxu1 %vm514_vm0, %v461_v16  ;;  %v472_v51 = vpack.c.bf16 %v454_v48, %v453_v47  ;;  %v473_v52 = vpack.c.bf16 %v456_v50, %v455_v49  ;;  %v457_v53 = vld [vmem:[%s1897_s28 + $0xf0] sm:$0xff]  ;;  %v458_v54 = vld [vmem:[%s1897_s28 + $0xf8] sm:$0xff] }
  0x26   : > { %v474_v55 = vpack.c.bf16 %v458_v54, %v457_v53 }
  0x2b   : > { %1536 = vmatmul.mubr.msk.bf16.gmra.mxu0 %vm514_vm0, %v462_v21 }
  0x2c   : > { %1539 = vmatprep.mubr.msk.bf16.mxu0 %vm514_vm0, %v463_v22  ;;  %1576 = vmatmul.mubr.msk.bf16.gmra.mxu1 %vm514_vm0, %v462_v21 }
  0x2d   : > { %1579 = vmatprep.mubr.msk.bf16.mxu1 %vm514_vm0, %v463_v22 }
  0x33   : > { %1540 = vmatmul.mubr.msk.bf16.gmra.mxu0 %vm514_vm0, %v464_v27 }
  0x34   : > { %1543 = vmatprep.mubr.msk.bf16.mxu0 %vm514_vm0, %v465_v28  ;;  %1580 = vmatmul.mubr.msk.bf16.gmra.mxu1 %vm514_vm0, %v464_v27 }
  0x35   : > { %1583 = vmatprep.mubr.msk.bf16.mxu1 %vm514_vm0, %v465_v28 }
  0x3b   : > { %1544 = vmatmul.mubr.msk.bf16.gmra.mxu0 %vm514_vm0, %v466_v33 }
  0x3c   : > { %1547 = vmatprep.mubr.msk.bf16.mxu0 %vm514_vm0, %v467_v34  ;;  %1584 = vmatmul.mubr.msk.bf16.gmra.mxu1 %vm514_vm0, %v466_v33 }
  0x3d   : > { %1587 = vmatprep.mubr.msk.bf16.mxu1 %vm514_vm0, %v467_v34 }
  0x43   : > { %1548 = vmatmul.mubr.msk.bf16.gmra.mxu0 %vm514_vm0, %v468_v39 }
  0x44   : > { %1551 = vmatprep.mubr.msk.bf16.mxu0 %vm514_vm0, %v469_v40  ;;  %1588 = vmatmul.mubr.msk.bf16.gmra.mxu1 %vm514_vm0, %v468_v39 }
  0x45   : > { %1591 = vmatprep.mubr.msk.bf16.mxu1 %vm514_vm0, %v469_v40 }
  0x4b   : > { %1552 = vmatmul.mubr.msk.bf16.gmra.mxu0 %vm514_vm0, %v470_v45 }
  0x4c   : > { %1555 = vmatprep.mubr.msk.bf16.mxu0 %vm514_vm0, %v471_v46  ;;  %1592 = vmatmul.mubr.msk.bf16.gmra.mxu1 %vm514_vm0, %v470_v45 }
  0x4d   : > { %1595 = vmatprep.mubr.msk.bf16.mxu1 %vm514_vm0, %v471_v46 }
  0x53   : > { %1556 = vmatmul.mubr.msk.bf16.gmra.mxu0 %vm514_vm0, %v472_v51 }
  0x54   : > { %1559 = vmatprep.mubr.msk.bf16.mxu0 %vm514_vm0, %v473_v52  ;;  %1596 = vmatmul.mubr.msk.bf16.gmra.mxu1 %vm514_vm0, %v472_v51 }
  0x55   : > { %1599 = vmatprep.mubr.msk.bf16.mxu1 %vm514_vm0, %v473_v52 }
  0x5b   : > { %1560 = vmatmul.mubr.msk.bf16.gmra.mxu0 %vm514_vm0, %v474_v55 }
  0x5c   : > { %1600 = vmatmul.mubr.msk.bf16.gmra.mxu1 %vm514_vm0, %v474_v55 }
  0xe3   : > { %v1533_v57 = vpop.f32.mrf.mxu0 }
  0xe4   : > { %v1971_v58 = vadd.f32 %v1533_v57, %v1967_v56  ;;  %v1573_v63 = vpop.f32.mrf.mxu1 }
  0xe5   : > { %v597_v59 = vpop.f32.mrf.mxu0  ;;  %1208 = vst.msk [vmem:[%s1978_s9 + $0x10] sm:$0xff] %vm1205_vm1, %v1573_v63 }
  0xe6   : > { %v758_v60 = vmin.f32 %v1971_v58, 20.0  ;;  %v1982_v61 = vadd.f32 %v1967_v56, %v597_v59  ;;  %v1078_v4 = vpop.f32.mrf.mxu1  ;;  %vm726_vm2 = vcmp.gt.f32.partialorder %v1971_v58, 20.0 }
  0xe7   : > { %v1534_v62 = vpop.f32.mrf.mxu0  ;;  %1206 = vst.msk [vmem:[%s1978_s9] sm:$0xff] %vm1205_vm1, %v1078_v4 }
  0xe8   : > { %v792_v0 = vmul.f32 1.442695, %v758_v60  ;;  %v756_v1 = vmin.f32 %v1982_v61, 20.0  ;;  %v1986_v2 = vadd.f32 %v1534_v62, %v1967_v56  ;;  %v1574_v9 = vpop.f32.mrf.mxu1  ;;  %vm724_vm3 = vcmp.gt.f32.partialorder %v1982_v61, 20.0 }
  0xe9   : > { %v600_v3 = vpop.f32.mrf.mxu0  ;;  %1209 = vst.msk [vmem:[%s1978_s9 + $0x18] sm:$0xff] %vm1205_vm1, %v1574_v9 }
  0xea   : > { %1651 = vpow2.f32 %v792_v0  ;;  %v788_v5 = vmul.f32 1.442695, %v756_v1  ;;  %v759_v6 = vmin.f32 %v1986_v2, 20.0  ;;  %v1994_v7 = vadd.f32 %v1967_v56, %v600_v3  ;;  %v1081_v14 = vpop.f32.mrf.mxu1 }
  0xeb   : > { %v1537_v8 = vpop.f32.mrf.mxu0  ;;  %1207 = vst.msk [vmem:[%s1978_s9 + $0x8] sm:$0xff] %vm1205_vm1, %v1081_v14  ;;  %vm727_vm4 = vcmp.gt.f32.partialorder %v1986_v2, 20.0 }
  0xec   : > { %1653 = vpow2.f32 %v788_v5  ;;  %v794_v10 = vmul.f32 1.442695, %v759_v6  ;;  %v1997_v11 = vadd.f32 %v1537_v8, %v1967_v56  ;;  %v757_v12 = vmin.f32 %v1994_v7, 20.0  ;;  %v1577_v19 = vpop.f32.mrf.mxu1 }
  0xed   : > { %v613_v13 = vpop.f32.mrf.mxu0  ;;  %1212 = vst.msk [vmem:[%s1978_s9 + $0x30] sm:$0xff] %vm1205_vm1, %v1577_v19  ;;  %vm725_vm5 = vcmp.gt.f32.partialorder %v1994_v7, 20.0 }
  0xee   : > { %1655 = vpow2.f32 %v794_v10  ;;  %v762_v15 = vmin.f32 %v1997_v11, 20.0  ;;  %v2004_v16 = vadd.f32 %v1967_v56, %v613_v13  ;;  %v790_v17 = vmul.f32 1.442695, %v757_v12  ;;  %v1094_v24 = vpop.f32.mrf.mxu1 }
  0xef   : > { %v1538_v18 = vpop.f32.mrf.mxu0  ;;  %1210 = vst.msk [vmem:[%s1978_s9 + $0x20] sm:$0xff] %vm1205_vm1, %v1094_v24  ;;  %vm730_vm6 = vcmp.gt.f32.partialorder %v1997_v11, 20.0 }
  0xf0   : > { %v800_v20 = vmul.f32 1.442695, %v762_v15  ;;  %v760_v21 = vmin.f32 %v2004_v16, 20.0  ;;  %v2010_v22 = vadd.f32 %v1538_v18, %v1967_v56  ;;  %1657 = vpow2.f32 %v790_v17  ;;  %v1578_v29 = vpop.f32.mrf.mxu1 }
  0xf1   : > { %v616_v23 = vpop.f32.mrf.mxu0  ;;  %1213 = vst.msk [vmem:[%s1978_s9 + $0x38] sm:$0xff] %vm1205_vm1, %v1578_v29  ;;  %vm728_vm7 = vcmp.gt.f32.partialorder %v2004_v16, 20.0 }
  0xf2   : > { %1659 = vpow2.f32 %v800_v20  ;;  %v796_v25 = vmul.f32 1.442695, %v760_v21  ;;  %v763_v26 = vmin.f32 %v2010_v22, 20.0  ;;  %v2018_v27 = vadd.f32 %v1967_v56, %v616_v23  ;;  %v1097_v34 = vpop.f32.mrf.mxu1 }
  0xf3   : > { %v1541_v28 = vpop.f32.mrf.mxu0  ;;  %1211 = vst.msk [vmem:[%s1978_s9 + $0x28] sm:$0xff] %vm1205_vm1, %v1097_v34  ;;  %vm731_vm8 = vcmp.gt.f32.partialorder %v2010_v22, 20.0 }
  0xf4   : > { %1661 = vpow2.f32 %v796_v25  ;;  %v802_v30 = vmul.f32 1.442695, %v763_v26  ;;  %v2021_v31 = vadd.f32 %v1541_v28, %v1967_v56  ;;  %v761_v32 = vmin.f32 %v2018_v27, 20.0  ;;  %v1581_v40 = vpop.f32.mrf.mxu1 }
  0xf5   : > { %v629_v33 = vpop.f32.mrf.mxu0  ;;  %1216 = vst.msk [vmem:[%s1978_s9 + $0x50] sm:$0xff] %vm1205_vm1, %v1581_v40  ;;  %vm729_vm9 = vcmp.gt.f32.partialorder %v2018_v27, 20.0 }
  0xf6   : > { %1663 = vpow2.f32 %v802_v30  ;;  %v766_v35 = vmin.f32 %v2021_v31, 20.0  ;;  %v2028_v36 = vadd.f32 %v1967_v56, %v629_v33  ;;  %v798_v38 = vmul.f32 1.442695, %v761_v32  ;;  %v1110_v47 = vpop.f32.mrf.mxu1 }
  0xf7   : > { %v1652_v37 = vpop.eup %1651  ;;  %v1542_v39 = vpop.f32.mrf.mxu0  ;;  %1214 = vst.msk [vmem:[%s1978_s9 + $0x40] sm:$0xff] %vm1205_vm1, %v1110_v47  ;;  %vm734_vm10 = vcmp.gt.f32.partialorder %v2021_v31, 20.0 }
  0xf8   : > { %v854_v41 = vadd.f32 1.0, %v1652_v37  ;;  %v808_v42 = vmul.f32 1.442695, %v766_v35  ;;  %v764_v43 = vmin.f32 %v2028_v36, 20.0  ;;  %1665 = vpow2.f32 %v798_v38  ;;  %v1582_v54 = vpop.f32.mrf.mxu1 }
  0xf9   : > { %v1654_v44 = vpop.eup %1653  ;;  %v2036_v45 = vadd.f32 %v1542_v39, %v1967_v56  ;;  %v632_v46 = vpop.f32.mrf.mxu0  ;;  %1217 = vst.msk [vmem:[%s1978_s9 + $0x58] sm:$0xff] %vm1205_vm1, %v1582_v54  ;;  %vm732_vm11 = vcmp.gt.f32.partialorder %v2028_v36, 20.0 }
  0xfa   : > { %1667 = vlog2.f32 %v854_v41  ;;  %v852_v48 = vadd.f32 1.0, %v1654_v44  ;;  %v804_v49 = vmul.f32 1.442695, %v764_v43  ;;  %v2039_v50 = vadd.f32 %v1967_v56, %v632_v46  ;;  %v1113_v63 = vpop.f32.mrf.mxu1 }
  0xfb   : > { %v1656_v51 = vpop.eup %1655  ;;  %1669 = vpow2.f32 %v808_v42  ;;  %v767_v52 = vmin.f32 %v2036_v45, 20.0  ;;  %v1545_v53 = vpop.f32.mrf.mxu0  ;;  %1215 = vst.msk [vmem:[%s1978_s9 + $0x48] sm:$0xff] %vm1205_vm1, %v1113_v63  ;;  %vm735_vm12 = vcmp.gt.f32.partialorder %v2036_v45, 20.0 }
  0xfc   : > { %1671 = vlog2.f32 %v852_v48  ;;  %v855_v55 = vadd.f32 1.0, %v1656_v51  ;;  %v765_v57 = vmin.f32 %v2039_v50, 20.0  ;;  %v2048_v60 = vadd.f32 %v1545_v53, %v1967_v56  ;;  %v1585_v9 = vpop.f32.mrf.mxu1 }
  0xfd   : > { %1673 = vpow2.f32 %v804_v49  ;;  %v810_v59 = vmul.f32 1.442695, %v767_v52  ;;  %v645_v62 = vpop.f32.mrf.mxu0  ;;  %v1658_v0 = vpop.eup %1657  ;;  %1220 = vst.msk [vmem:[%s1978_s9 + $0x70] sm:$0xff] %vm1205_vm1, %v1585_v9  ;;  %vm733_vm13 = vcmp.gt.f32.partialorder %v2039_v50, 20.0 }
  0xfe   : > { %1675 = vlog2.f32 %v855_v55  ;;  %v806_v1 = vmul.f32 1.442695, %v765_v57  ;;  %v2051_v3 = vadd.f32 %v1967_v56, %v645_v62  ;;  %v853_v5 = vadd.f32 1.0, %v1658_v0  ;;  %v1126_v18 = vpop.f32.mrf.mxu1 }
  0xff   : > { %v1660_v4 = vpop.eup %1659  ;;  %1677 = vpow2.f32 %v810_v59  ;;  %v770_v6 = vmin.f32 %v2048_v60, 20.0  ;;  %v1546_v8 = vpop.f32.mrf.mxu0  ;;  %1218 = vst.msk [vmem:[%s1978_s9 + $0x60] sm:$0xff] %vm1205_vm1, %v1126_v18  ;;  %vm738_vm14 = vcmp.gt.f32.partialorder %v2048_v60, 20.0 }
 0x100   : > { %v858_v10 = vadd.f32 1.0, %v1660_v4  ;;  %1679 = vpow2.f32 %v806_v1  ;;  %v768_v12 = vmin.f32 %v2051_v3, 20.0  ;;  %v2060_v15 = vadd.f32 %v1546_v8, %v1967_v56  ;;  %v1586_v26 = vpop.f32.mrf.mxu1 }
 0x101   : > { %v1662_v13 = vpop.eup %1661  ;;  %1681 = vlog2.f32 %v853_v5  ;;  %v816_v14 = vmul.f32 1.442695, %v770_v6  ;;  %v648_v17 = vpop.f32.mrf.mxu0  ;;  %1221 = vst.msk [vmem:[%s1978_s9 + $0x78] sm:$0xff] %vm1205_vm1, %v1586_v26  ;;  %vm736_vm15 = vcmp.gt.f32.partialorder %v2051_v3, 20.0 }
 0x102   : > { %1683 = vlog2.f32 %v858_v10  ;;  %v856_v19 = vadd.f32 1.0, %v1662_v13  ;;  %v812_v20 = vmul.f32 1.442695, %v768_v12  ;;  %v2063_v21 = vadd.f32 %v1967_v56, %v648_v17  ;;  %v1129_v34 = vpop.f32.mrf.mxu1 }
 0x103   : > { %v1664_v23 = vpop.eup %1663  ;;  %1685 = vpow2.f32 %v816_v14  ;;  %v771_v24 = vmin.f32 %v2060_v15, 20.0  ;;  %v1549_v25 = vpop.f32.mrf.mxu0  ;;  %1219 = vst.msk [vmem:[%s1978_s9 + $0x68] sm:$0xff] %vm1205_vm1, %v1129_v34 }
 0x104   : > { %1687 = vlog2.f32 %v856_v19  ;;  %v859_v28 = vadd.f32 1.0, %v1664_v23  ;;  %v769_v29 = vmin.f32 %v2063_v21, 20.0  ;;  %v2072_v32 = vadd.f32 %v1549_v25, %v1967_v56  ;;  %v1589_v43 = vpop.f32.mrf.mxu1 }
 0x105   : > { %1689 = vpow2.f32 %v812_v20  ;;  %v818_v30 = vmul.f32 1.442695, %v771_v24  ;;  %v661_v33 = vpop.f32.mrf.mxu0  ;;  %v1666_v35 = vpop.eup %1665  ;;  %1224 = vst.msk [vmem:[%s1978_s9 + $0x90] sm:$0xff] %vm1205_vm1, %v1589_v43 }
 0x106   : > { %1691 = vlog2.f32 %v859_v28  ;;  %v814_v37 = vmul.f32 1.442695, %v769_v29  ;;  %v2076_v38 = vadd.f32 %v1967_v56, %v661_v33  ;;  %v857_v40 = vadd.f32 1.0, %v1666_v35  ;;  %v1142_v54 = vpop.f32.mrf.mxu1 }
 0x107   : > { %v1668_v39 = vpop.eup %1667  ;;  %1693 = vpow2.f32 %v818_v30  ;;  %v774_v41 = vmin.f32 %v2072_v32, 20.0  ;;  %v1550_v42 = vpop.f32.mrf.mxu0  ;;  %1222 = vst.msk [vmem:[%s1978_s9 + $0x80] sm:$0xff] %vm1205_vm1, %v1142_v54 }
 0x108   : > { %v1670_v44 = vpop.eup %1669  ;;  %v889_v46 = vmul.f32 0.6931472, %v1668_v39  ;;  %1695 = vpow2.f32 %v814_v37  ;;  %v772_v47 = vmin.f32 %v2076_v38, 20.0  ;;  %v2094_v52 = vadd.f32 %v1550_v42, %v1967_v56 }
 0x109   : > { %v1672_v48 = vpop.eup %1671  ;;  %1697 = vlog2.f32 %v857_v40  ;;  %v862_v49 = vadd.f32 1.0, %v1670_v44  ;;  %v824_v51 = vmul.f32 1.442695, %v774_v41  ;;  %v664_v53 = vpop.f32.mrf.mxu0 }
 0x10a   : > { %v1674_v55 = vpop.eup %1673  ;;  %v950_v57 = vsel %vm726_vm2, %v1971_v58, %v889_v46  ;;  %v885_v59 = vmul.f32 0.6931472, %v1672_v48  ;;  %v820_v62 = vmul.f32 1.442695, %v772_v47  ;;  %v2100_v63 = vadd.f32 %v1967_v56, %v664_v53  ;;  %v1590_v58 = vpop.f32.mrf.mxu1 }
 0x10b   : > { %v1676_v0 = vpop.eup %1675  ;;  %982 = vst.msk [vmem:[%s2087_s11 + $0x10] sm:$0xff] %vm514_vm0, %v950_v57  ;;  %1699 = vlog2.f32 %v862_v49  ;;  %v860_v1 = vadd.f32 1.0, %v1674_v55  ;;  %v775_v4 = vmin.f32 %v2094_v52, 20.0  ;;  %v1553_v5 = vpop.f32.mrf.mxu0  ;;  %vm739_vm2 = vcmp.gt.f32.partialorder %v2060_v15, 20.0 }
 0x10c   : > { %v1678_v6 = vpop.eup %1677  ;;  %v948_v8 = vsel %vm724_vm3, %v1982_v61, %v885_v59  ;;  %v891_v9 = vmul.f32 0.6931472, %v1676_v0  ;;  %1701 = vpow2.f32 %v824_v51  ;;  %1225 = vst.msk [vmem:[%s1978_s9 + $0x98] sm:$0xff] %vm1205_vm1, %v1590_v58  ;;  %v773_v14 = vmin.f32 %v2100_v63, 20.0  ;;  %v1145_v18 = vpop.f32.mrf.mxu1 }
 0x10d   : > { %v1680_v10 = vpop.eup %1679  ;;  %980 = vst.msk [vmem:[%s2087_s11] sm:$0xff] %vm514_vm0, %v948_v8  ;;  %1703 = vlog2.f32 %v860_v1  ;;  %v863_v12 = vadd.f32 1.0, %v1678_v6  ;;  %v826_v13 = vmul.f32 1.442695, %v775_v4  ;;  %v677_v17 = vpop.f32.mrf.mxu0  ;;  %v2121_v23 = vadd.f32 %v1553_v5, %v1967_v56 }
 0x10e   : > { %v1682_v19 = vpop.eup %1681  ;;  %v951_v61 = vsel %vm727_vm4, %v1986_v2, %v891_v9  ;;  %v861_v20 = vadd.f32 1.0, %v1680_v10  ;;  %1705 = vpow2.f32 %v820_v62  ;;  %1223 = vst.msk [vmem:[%s1978_s9 + $0x88] sm:$0xff] %vm1205_vm1, %v1145_v18  ;;  %v822_v26 = vmul.f32 1.442695, %v773_v14  ;;  %v1593_v2 = vpop.f32.mrf.mxu1 }
 0x10f   : > { %v1684_v24 = vpop.eup %1683  ;;  %983 = vst.msk [vmem:[%s2087_s11 + $0x18] sm:$0xff] %vm514_vm0, %v951_v61  ;;  %v887_v25 = vmul.f32 0.6931472, %v1682_v19  ;;  %1707 = vlog2.f32 %v863_v12  ;;  %v2128_v28 = vadd.f32 %v1967_v56, %v677_v17  ;;  %v1554_v29 = vpop.f32.mrf.mxu0  ;;  %v778_v34 = vmin.f32 %v2121_v23, 20.0 }
 0x110   : > { %v1686_v30 = vpop.eup %1685  ;;  %v897_v33 = vmul.f32 0.6931472, %v1684_v24  ;;  %1709 = vlog2.f32 %v861_v20  ;;  %1228 = vst.msk [vmem:[%s1978_s9 + $0xb0] sm:$0xff] %vm1205_vm1, %v1593_v2  ;;  %v1158_v41 = vpop.f32.mrf.mxu1  ;;  %v2149_v49 = vadd.f32 %v1554_v29, %v1967_v56  ;;  %vm737_vm3 = vcmp.gt.f32.partialorder %v2063_v21, 20.0 }
 0x111   : > { %v1688_v35 = vpop.eup %1687  ;;  %v949_v37 = vsel %vm725_vm5, %v1994_v7, %v887_v25  ;;  %v866_v39 = vadd.f32 1.0, %v1686_v30  ;;  %1711 = vpow2.f32 %v826_v13  ;;  %v680_v40 = vpop.f32.mrf.mxu0  ;;  %v832_v46 = vmul.f32 1.442695, %v778_v34  ;;  %1226 = vst.msk [vmem:[%s1978_s9 + $0xa0] sm:$0xff] %vm1205_vm1, %v1158_v41 }
 0x112   : > { %v1690_v42 = vpop.eup %1689  ;;  %981 = vst.msk [vmem:[%s2087_s11 + $0x8] sm:$0xff] %vm514_vm0, %v949_v37  ;;  %v954_v43 = vsel %vm730_vm6, %v1997_v11, %v897_v33  ;;  %v893_v44 = vmul.f32 0.6931472, %v1688_v35  ;;  %1713 = vpow2.f32 %v822_v26  ;;  %v776_v48 = vmin.f32 %v2128_v28, 20.0  ;;  %v1594_v53 = vpop.f32.mrf.mxu1 }
 0x113   : > { %v1692_v7 = vpop.eup %1691  ;;  %986 = vst.msk [vmem:[%s2087_s11 + $0x30] sm:$0xff] %vm514_vm0, %v954_v43  ;;  %1715 = vlog2.f32 %v866_v39  ;;  %v864_v47 = vadd.f32 1.0, %v1690_v42  ;;  %v1557_v51 = vpop.f32.mrf.mxu0  ;;  %v2155_v57 = vadd.f32 %v1967_v56, %v680_v40  ;;  %v779_v6 = vmin.f32 %v2149_v49, 20.0 }
 0x114   : > { %v1694_v11 = vpop.eup %1693  ;;  %v952_v54 = vsel %vm728_vm7, %v2004_v16, %v893_v44  ;;  %v899_v55 = vmul.f32 0.6931472, %v1692_v7  ;;  %1717 = vpow2.f32 %v832_v46  ;;  %1229 = vst.msk [vmem:[%s1978_s9 + $0xb8] sm:$0xff] %vm1205_vm1, %v1594_v53  ;;  %v828_v0 = vmul.f32 1.442695, %v776_v48  ;;  %v1161_v4 = vpop.f32.mrf.mxu1 }
 0x115   : > { %v1696_v59 = vpop.eup %1695  ;;  %984 = vst.msk [vmem:[%s2087_s11 + $0x20] sm:$0xff] %vm514_vm0, %v952_v54  ;;  %1719 = vlog2.f32 %v864_v47  ;;  %v867_v62 = vadd.f32 1.0, %v1694_v11  ;;  %v693_v1 = vpop.f32.mrf.mxu0  ;;  %v777_v9 = vmin.f32 %v2155_v57, 20.0  ;;  %v2173_v10 = vadd.f32 %v1557_v51, %v1967_v56 }
 0x116   : > { %v1698_v16 = vpop.eup %1697  ;;  %v955_v5 = vsel %vm731_vm8, %v2010_v22, %v899_v55  ;;  %v865_v58 = vadd.f32 1.0, %v1696_v59  ;;  %1227 = vst.msk [vmem:[%s1978_s9 + $0xa8] sm:$0xff] %vm1205_vm1, %v1161_v4  ;;  %v1597_v22 = vpop.f32.mrf.mxu1  ;;  %v834_v14 = vmul.f32 1.442695, %v779_v6  ;;  %v2176_v17 = vadd.f32 %v1967_v56, %v693_v1 }
 0x117   : > { %987 = vst.msk [vmem:[%s2087_s11 + $0x38] sm:$0xff] %vm514_vm0, %v955_v5  ;;  %v895_v8 = vmul.f32 0.6931472, %v1698_v16  ;;  %1721 = vlog2.f32 %v867_v62  ;;  %v1558_v12 = vpop.f32.mrf.mxu0  ;;  %v830_v24 = vmul.f32 1.442695, %v777_v9  ;;  %v782_v30 = vmin.f32 %v2173_v10, 20.0 }
 0x118   : > { %v1700_v13 = vpop.eup %1699  ;;  %1723 = vlog2.f32 %v865_v58  ;;  %v2179_v18 = vadd.f32 %v1558_v12, %v1967_v56  ;;  %1232 = vst.msk [vmem:[%s1978_s9 + $0xd0] sm:$0xff] %vm1205_vm1, %v1597_v22  ;;  %v1174_v26 = vpop.f32.mrf.mxu1  ;;  %v780_v42 = vmin.f32 %v2176_v17, 20.0  ;;  %vm740_vm4 = vcmp.gt.f32.partialorder %v2076_v38, 20.0 }
 0x119   : > { %v1702_v19 = vpop.eup %1701  ;;  %v953_v61 = vsel %vm729_vm9, %v2018_v27, %v895_v8  ;;  %v905_v20 = vmul.f32 0.6931472, %v1700_v13  ;;  %1725 = vpow2.f32 %v828_v0  ;;  %v696_v25 = vpop.f32.mrf.mxu0  ;;  %1230 = vst.msk [vmem:[%s1978_s9 + $0xc0] sm:$0xff] %vm1205_vm1, %v1174_v26  ;;  %v840_v41 = vmul.f32 1.442695, %v782_v30 }
 0x11a   : > { %v1704_v29 = vpop.eup %1703  ;;  %985 = vst.msk [vmem:[%s2087_s11 + $0x28] sm:$0xff] %vm514_vm0, %v953_v61  ;;  %v870_v2 = vadd.f32 1.0, %v1702_v19  ;;  %1727 = vpow2.f32 %v834_v14  ;;  %v1598_v37 = vpop.f32.mrf.mxu1  ;;  %v783_v46 = vmin.f32 %v2179_v18, 20.0  ;;  %v836_v53 = vmul.f32 1.442695, %v780_v42 }
 0x11b   : > { %v1706_v33 = vpop.eup %1705  ;;  %v958_v27 = vsel %vm734_vm10, %v2021_v31, %v905_v20  ;;  %v901_v34 = vmul.f32 0.6931472, %v1704_v29  ;;  %1729 = vpow2.f32 %v830_v24  ;;  %v1561_v35 = vpop.f32.mrf.mxu0  ;;  %1233 = vst.msk [vmem:[%s1978_s9 + $0xd8] sm:$0xff] %vm1205_vm1, %v1598_v37  ;;  %v2209_v11 = vadd.f32 %v1967_v56, %v696_v25 }
 0x11c   : > { %v1708_v39 = vpop.eup %1707  ;;  %990 = vst.msk [vmem:[%s2087_s11 + $0x50] sm:$0xff] %vm514_vm0, %v958_v27  ;;  %1731 = vlog2.f32 %v870_v2  ;;  %v868_v40 = vadd.f32 1.0, %v1706_v33  ;;  %v1177_v47 = vpop.f32.mrf.mxu1  ;;  %v842_v59 = vmul.f32 1.442695, %v783_v46  ;;  %v2228_v6 = vadd.f32 %v1561_v35, %v1967_v56 }
 0x11d   : > { %v1710_v43 = vpop.eup %1709  ;;  %v956_v31 = vsel %vm732_vm11, %v2028_v36, %v901_v34  ;;  %v907_v44 = vmul.f32 0.6931472, %v1708_v39  ;;  %v709_v7 = vpop.f32.mrf.mxu0  ;;  %1231 = vst.msk [vmem:[%s1978_s9 + $0xc8] sm:$0xff] %vm1205_vm1, %v1177_v47  ;;  %v781_v58 = vmin.f32 %v2209_v11, 20.0  ;;  %vm743_vm5 = vcmp.gt.f32.partialorder %v2094_v52, 20.0 }
 0x11e   : > { %v1712_v48 = vpop.eup %1711  ;;  %988 = vst.msk [vmem:[%s2087_s11 + $0x40] sm:$0xff] %vm514_vm0, %v956_v31  ;;  %v903_v51 = vmul.f32 0.6931472, %v1710_v43  ;;  %1733 = vlog2.f32 %v868_v40  ;;  %v1601_v0 = vpop.f32.mrf.mxu1  ;;  %v2231_v12 = vadd.f32 %v1967_v56, %v709_v7  ;;  %v786_v24 = vmin.f32 %v2228_v6, 20.0 }
 0x11f   : > { %v1714_v36 = vpop.eup %1713  ;;  %v959_v54 = vsel %vm735_vm12, %v2036_v45, %v907_v44  ;;  %v871_v55 = vadd.f32 1.0, %v1712_v48  ;;  %1735 = vpow2.f32 %v840_v41  ;;  %v1562_v62 = vpop.f32.mrf.mxu0  ;;  %1236 = vst.msk [vmem:[%s1978_s9 + $0xf0] sm:$0xff] %vm1205_vm1, %v1601_v0  ;;  %v838_v19 = vmul.f32 1.442695, %v781_v58 }
 0x120   : > { %v1716_v1 = vpop.eup %1715  ;;  %991 = vst.msk [vmem:[%s2087_s11 + $0x58] sm:$0xff] %vm514_vm0, %v959_v54  ;;  %v957_v4 = vsel %vm733_vm13, %v2039_v50, %v903_v51  ;;  %v869_v16 = vadd.f32 1.0, %v1714_v36  ;;  %1737 = vpow2.f32 %v836_v53  ;;  %v1190_v8 = vpop.f32.mrf.mxu1  ;;  %v2234_v22 = vadd.f32 %v1562_v62, %v1967_v56 }
 0x121   : > { %v1718_v45 = vpop.eup %1717  ;;  %989 = vst.msk [vmem:[%s2087_s11 + $0x48] sm:$0xff] %vm514_vm0, %v957_v4  ;;  %v913_v5 = vmul.f32 0.6931472, %v1716_v1  ;;  %1739 = vlog2.f32 %v871_v55  ;;  %v712_v25 = vpop.f32.mrf.mxu0  ;;  %v784_v2 = vmin.f32 %v2231_v12, 20.0  ;;  %v848_v34 = vmul.f32 1.442695, %v786_v24 }
 0x122   : > { %v1720_v50 = vpop.eup %1719  ;;  %1741 = vlog2.f32 %v869_v16  ;;  %v874_v9 = vadd.f32 1.0, %v1718_v45  ;;  %1234 = vst.msk [vmem:[%s1978_s9 + $0xe0] sm:$0xff] %vm1205_vm1, %v1190_v8  ;;  %v1602_v61 = vpop.f32.mrf.mxu1  ;;  %v787_v35 = vmin.f32 %v2234_v22, 20.0  ;;  %v2258_v40 = vadd.f32 %v1967_v56, %v712_v25 }
 0x123   : > { %v962_v13 = vsel %vm738_vm14, %v2048_v60, %v913_v5  ;;  %v909_v14 = vmul.f32 0.6931472, %v1720_v50  ;;  %1743 = vpow2.f32 %v842_v59  ;;  %1237 = vst.msk [vmem:[%s1978_s9 + $0xf8] sm:$0xff] %vm1205_vm1, %v1602_v61  ;;  %v844_v31 = vmul.f32 1.442695, %v784_v2 }
 0x124   : > { %v1722_v20 = vpop.eup %1721  ;;  %994 = vst.msk [vmem:[%s2087_s11 + $0x70] sm:$0xff] %vm514_vm0, %v962_v13  ;;  %1745 = vlog2.f32 %v874_v9  ;;  %v1193_v30 = vpop.f32.mrf.mxu1  ;;  %v850_v46 = vmul.f32 1.442695, %v787_v35  ;;  %v785_v7 = vmin.f32 %v2258_v40, 20.0  ;;  %vm741_vm6 = vcmp.gt.f32.partialorder %v2100_v63, 20.0 }
 0x125   : > { %v1724_v26 = vpop.eup %1723  ;;  %v960_v60 = vsel %vm736_vm15, %v2051_v3, %v909_v14  ;;  %v915_v29 = vmul.f32 0.6931472, %v1722_v20  ;;  %1747 = vpow2.f32 %v838_v19  ;;  %1235 = vst.msk [vmem:[%s1978_s9 + $0xe8] sm:$0xff] %vm1205_vm1, %v1193_v30  ;;  %vm742_vm1 = vcmp.gt.f32.partialorder %v2072_v32, 20.0 }
 0x126   : > { %v1726_v33 = vpop.eup %1725  ;;  %992 = vst.msk [vmem:[%s2087_s11 + $0x60] sm:$0xff] %vm514_vm0, %v960_v60  ;;  %v911_v27 = vmul.f32 0.6931472, %v1724_v26  ;;  %1749 = vpow2.f32 %v848_v34  ;;  %vm746_vm7 = vcmp.gt.f32.partialorder %v2121_v23, 20.0  ;;  %vm744_vm8 = vcmp.gt.f32.partialorder %v2128_v28, 20.0 }
 0x127   : > { %v1728_v37 = vpop.eup %1727  ;;  %v963_v3 = vsel %vm739_vm2, %v2060_v15, %v915_v29  ;;  %v872_v39 = vadd.f32 1.0, %v1726_v33  ;;  %vm747_vm9 = vcmp.gt.f32.partialorder %v2149_v49, 20.0  ;;  %vm745_vm10 = vcmp.gt.f32.partialorder %v2155_v57, 20.0 }
 0x128   : > { %v1730_v41 = vpop.eup %1729  ;;  %995 = vst.msk [vmem:[%s2087_s11 + $0x78] sm:$0xff] %vm514_vm0, %v963_v3  ;;  %v961_v42 = vsel %vm737_vm3, %v2063_v21, %v911_v27  ;;  %v875_v43 = vadd.f32 1.0, %v1728_v37  ;;  %v846_v21 = vmul.f32 1.442695, %v785_v7  ;;  %vm750_vm11 = vcmp.gt.f32.partialorder %v2173_v10, 20.0 }
 0x129   : > { %v1732_v44 = vpop.eup %1731  ;;  %993 = vst.msk [vmem:[%s2087_s11 + $0x68] sm:$0xff] %vm514_vm0, %v961_v42  ;;  %1751 = vlog2.f32 %v872_v39  ;;  %v873_v15 = vadd.f32 1.0, %v1730_v41  ;;  %vm748_vm12 = vcmp.gt.f32.partialorder %v2176_v17, 20.0  ;;  %vm751_vm13 = vcmp.gt.f32.partialorder %v2179_v18, 20.0 }
 0x12a   : > { %v921_v47 = vmul.f32 0.6931472, %v1732_v44  ;;  %1753 = vlog2.f32 %v875_v43  ;;  %vm749_vm14 = vcmp.gt.f32.partialorder %v2209_v11, 20.0  ;;  %vm754_vm15 = vcmp.gt.f32.partialorder %v2228_v6, 20.0 }
 0x12b   : > { %v1734_v56 = vpop.eup %1733  ;;  %1755 = vlog2.f32 %v873_v15  ;;  %vm752_vm2 = vcmp.gt.f32.partialorder %v2231_v12, 20.0  ;;  %vm755_vm3 = vcmp.gt.f32.partialorder %v2234_v22, 20.0 }
 0x12c   : > { %v1736_v48 = vpop.eup %1735  ;;  %v966_v51 = vsel %vm742_vm1, %v2072_v32, %v921_v47  ;;  %v917_v53 = vmul.f32 0.6931472, %v1734_v56  ;;  %1757 = vpow2.f32 %v844_v31  ;;  %vm753_vm1 = vcmp.gt.f32.partialorder %v2258_v40, 20.0 }
 0x12d   : > { %v1738_v36 = vpop.eup %1737  ;;  %998 = vst.msk [vmem:[%s2087_s11 + $0x90] sm:$0xff] %vm514_vm0, %v966_v51  ;;  %v878_v54 = vadd.f32 1.0, %v1736_v48  ;;  %1759 = vpow2.f32 %v850_v46 }
 0x12e   : > { %v1740_v55 = vpop.eup %1739  ;;  %v964_v59 = vsel %vm740_vm4, %v2076_v38, %v917_v53  ;;  %v876_v62 = vadd.f32 1.0, %v1738_v36  ;;  %1761 = vpow2.f32 %v846_v21 }
 0x12f   : > { %v1742_v0 = vpop.eup %1741  ;;  %996 = vst.msk [vmem:[%s2087_s11 + $0x80] sm:$0xff] %vm514_vm0, %v964_v59  ;;  %v923_v32 = vmul.f32 0.6931472, %v1740_v55  ;;  %1763 = vlog2.f32 %v878_v54 }
 0x130   : > { %v1744_v1 = vpop.eup %1743  ;;  %v919_v4 = vmul.f32 0.6931472, %v1742_v0  ;;  %1765 = vlog2.f32 %v876_v62 }
 0x131   : > { %v1746_v16 = vpop.eup %1745  ;;  %v967_v45 = vsel %vm743_vm5, %v2094_v52, %v923_v32  ;;  %v879_v38 = vadd.f32 1.0, %v1744_v1 }
 0x132   : > { %v1748_v5 = vpop.eup %1747  ;;  %999 = vst.msk [vmem:[%s2087_s11 + $0x98] sm:$0xff] %vm514_vm0, %v967_v45  ;;  %v965_v58 = vsel %vm741_vm6, %v2100_v63, %v919_v4  ;;  %v929_v8 = vmul.f32 0.6931472, %v1746_v16 }
 0x133   : > { %997 = vst.msk [vmem:[%s2087_s11 + $0x88] sm:$0xff] %vm514_vm0, %v965_v58  ;;  %1767 = vlog2.f32 %v879_v38  ;;  %v877_v50 = vadd.f32 1.0, %v1748_v5  ;;  %v1750_v13 = vpop.eup %1749 }
 0x134   : > { %v970_v9 = vsel %vm746_vm7, %v2121_v23, %v929_v8  ;;  %v882_v14 = vadd.f32 1.0, %v1750_v13 }
 0x135   : > { %1002 = vst.msk [vmem:[%s2087_s11 + $0xb0] sm:$0xff] %vm514_vm0, %v970_v9  ;;  %1769 = vlog2.f32 %v877_v50 }
 0x136   : > { %v1752_v52 = vpop.eup %1751  ;;  %1771 = vlog2.f32 %v882_v14 }
 0x137   : > { %v1754_v19 = vpop.eup %1753  ;;  %v925_v61 = vmul.f32 0.6931472, %v1752_v52 }
 0x138   : > { %v1756_v63 = vpop.eup %1755  ;;  %v931_v20 = vmul.f32 0.6931472, %v1754_v19 }
 0x139   : > { %v1758_v24 = vpop.eup %1757  ;;  %v968_v25 = vsel %vm744_vm8, %v2128_v28, %v925_v61  ;;  %v927_v23 = vmul.f32 0.6931472, %v1756_v63 }
 0x13a   : > { %v1760_v26 = vpop.eup %1759  ;;  %1000 = vst.msk [vmem:[%s2087_s11 + $0xa0] sm:$0xff] %vm514_vm0, %v968_v25  ;;  %v971_v60 = vsel %vm747_vm9, %v2149_v49, %v931_v20  ;;  %v880_v29 = vadd.f32 1.0, %v1758_v24 }
 0x13b   : > { %v1762_v2 = vpop.eup %1761  ;;  %1003 = vst.msk [vmem:[%s2087_s11 + $0xb8] sm:$0xff] %vm514_vm0, %v971_v60  ;;  %v969_v30 = vsel %vm745_vm10, %v2155_v57, %v927_v23  ;;  %v883_v33 = vadd.f32 1.0, %v1760_v26 }
 0x13c   : > { %v1764_v28 = vpop.eup %1763  ;;  %1001 = vst.msk [vmem:[%s2087_s11 + $0xa8] sm:$0xff] %vm514_vm0, %v969_v30  ;;  %1773 = vlog2.f32 %v880_v29  ;;  %v881_v27 = vadd.f32 1.0, %v1762_v2 }
 0x13d   : > { %v1766_v34 = vpop.eup %1765  ;;  %v937_v35 = vmul.f32 0.6931472, %v1764_v28  ;;  %1775 = vlog2.f32 %v883_v33 }
 0x13e   : > { %v933_v49 = vmul.f32 0.6931472, %v1766_v34  ;;  %1777 = vlog2.f32 %v881_v27 }
 0x13f   : > { %v974_v37 = vsel %vm750_vm11, %v2173_v10, %v937_v35 }
 0x140   : > { %v1768_v57 = vpop.eup %1767  ;;  %1006 = vst.msk [vmem:[%s2087_s11 + $0xd0] sm:$0xff] %vm514_vm0, %v974_v37  ;;  %v972_v3 = vsel %vm748_vm12, %v2176_v17, %v933_v49 }
 0x141   : > { %1004 = vst.msk [vmem:[%s2087_s11 + $0xc0] sm:$0xff] %vm514_vm0, %v972_v3  ;;  %v939_v39 = vmul.f32 0.6931472, %v1768_v57 }
 0x142   : > { %v1770_v41 = vpop.eup %1769 }
 0x143   : > { %v975_v42 = vsel %vm751_vm13, %v2179_v18, %v939_v39  ;;  %v935_v43 = vmul.f32 0.6931472, %v1770_v41  ;;  %v1772_v10 = vpop.eup %1771 }
 0x144   : > { %1007 = vst.msk [vmem:[%s2087_s11 + $0xd8] sm:$0xff] %vm514_vm0, %v975_v42  ;;  %v945_v17 = vmul.f32 0.6931472, %v1772_v10 }
 0x145   : > { %v973_v31 = vsel %vm749_vm14, %v2209_v11, %v935_v43 }
 0x146   : > { %1005 = vst.msk [vmem:[%s2087_s11 + $0xc8] sm:$0xff] %vm514_vm0, %v973_v31  ;;  %v978_v44 = vsel %vm754_vm15, %v2228_v6, %v945_v17 }
 0x147   : > { %1010 = vst.msk [vmem:[%s2087_s11 + $0xf0] sm:$0xff] %vm514_vm0, %v978_v44 }
 0x149   : > { %v1774_v15 = vpop.eup %1773 }
 0x14a   : > { %v1776_v18 = vpop.eup %1775  ;;  %v941_v46 = vmul.f32 0.6931472, %v1774_v15 }
 0x14b   : > { %v1778_v7 = vpop.eup %1777  ;;  %v947_v47 = vmul.f32 0.6931472, %v1776_v18 }
 0x14c   : > { %v976_v11 = vsel %vm752_vm2, %v2231_v12, %v941_v46  ;;  %v943_v56 = vmul.f32 0.6931472, %v1778_v7 }
 0x14d   : > { %1008 = vst.msk [vmem:[%s2087_s11 + $0xe0] sm:$0xff] %vm514_vm0, %v976_v11  ;;  %v979_v21 = vsel %vm755_vm3, %v2234_v22, %v947_v47 }
 0x14e   : > { %1011 = vst.msk [vmem:[%s2087_s11 + $0xf8] sm:$0xff] %vm514_vm0, %v979_v21  ;;  %v977_v6 = vsel %vm753_vm1, %v2258_v40, %v943_v56 }
 0x14f   : > { %1009 = vst.msk [vmem:[%s2087_s11 + $0xe8] sm:$0xff] %vm514_vm0, %v977_v6 }
 0x150 PF: > { %s16_s22 = sadd.s32 1, %s1817_s22   ;;  %s2351_s18 = smov %s1809_s20 }
 0x151   : > { %p13_p10 = scmp.ge.s32.totalorder %s16_s22, 10   ;;  %s2352_s19 = smov %s1813_s21 }
 0x152   : > { %s2353_s20 = smov %s2356_s23  ;;  %s2354_s21 = smov %s2360_s24 }
 0x153   :  { %15 = sbr.rel (!%p13_p10) target bundleno = 3 (0x3), region = 87 }

// kernel: _lambda_.9
= control target key start
LH: loop header
LB: loop body
LE: loop exit
PB: predicated region body
PF: predicated region fallthrough
CT: control target
= control target key end

     0   :  { %s1737_s18 = smov 0   ;;  %s1739_s19 = smov 0   ;;  %s2277_s0 = inlined_call_operand.vmem [shape: f32[2,2,256,64], index: 0, kind: input, shape index: {}]   ;;  %s2278_s1 = inlined_call_operand.vmem [shape: f32[4,2,256,64], index: 1, kind: input, shape index: {}]   ;;  %s2279_s2 = inlined_call_operand.vmem [shape: f32[4,2,16,32,16], index: 2, kind: input, shape index: {}]   ;;  %s2280_s3 = inlined_call_operand.vmem [shape: f32[4,16,64], index: 3, kind: input, shape index: {}]   ;;  %s2281_s4 = inlined_call_operand.vmem [shape: f32[4,1,64], index: 4, kind: input, shape index: {}]   ;;  %s2282_s5 = inlined_call_operand.vmem [shape: f32[2,2,256,64], index: 5, kind: output, shape index: {}]  }
   0x1   :  { %2285 = sst [smem:[#allocation8_spill]] %s2277_s0  ;;  %s1741_s20 = smov 0  }
   0x2   :  { %2286 = sst [smem:[#allocation9_spill]] %s2282_s5  ;;  %s1743_s21 = smov 0  }
   0x3   :  { %s1745_s22 = smov 0   ;;  %s1747_s23 = smov 0  }
   0x4   :  { %s1749_s24 = smov 0  }
   0x5 LB: > { %2287 = sst [smem:[#allocation3_spill]] %s1680_s22  ;;  %s27_s25 = sadd.s32 1, %s1676_s21  ;;  %s1688_s24 = sphi %s1749_s24, %s15_s24   ;;  %s1684_s23 = sphi %s1747_s23, %s2302_s23   ;;  %s1680_s22 = sphi %s1745_s22, %s2301_s22   ;;  %s1676_s21 = sphi %s1743_s21, %s2300_s21   ;;  %s1672_s20 = sphi %s1741_s20, %s2295_s20   ;;  %s1668_s19 = sphi %s1739_s19, %s2294_s19   ;;  %s1664_s18 = sphi %s1737_s18, %s2299_s18  }
   0x6   : > { %2288 = sst [smem:[#allocation4_spill]] %s1684_s23  ;;  %p28_p0 = scmp.ge.s32.totalorder %s27_s25, 16 }
   0x7   : > { %s30_s26 = sadd.s32 1, %s1680_s22  ;;  %p1435_p1 = scmp.ge.s32.totalorder %s1688_s24, 1 }
   0x8   : > { %p286_p2 = scmp.lt.s32.totalorder %s1688_s24, 65  ;;  %s2304_s25 = smov (%p28_p0, %s27_s25), 0 }
   0x9   : > { %2289 = sst [smem:[#allocation5_spill]] %s2304_s25  ;;  %s2306_s26 = smov (!%p28_p0, %s30_s26), %s1680_s22 }
   0xa   : > { %p287_p3 = pnand %p1435_p1, %p286_p2  ;;  %p32_p4 = scmp.ge.s32.totalorder %s2306_s26, 2 }
   0xb   : > { %s34_s27 = sadd.s32 1, %s1684_s23  ;;  %s1436_s28 = sshll.u32 (!%p287_p3), %s1664_s18, 1 }
   0xc   : > { %s2308_s26 = smov (%p32_p4, %s2306_s26), 0  ;;  %s2310_s27 = smov (!%p32_p4, %s34_s27), %s1684_s23 }
   0xd   : > { %2290 = sst [smem:[#allocation6_spill]] %s2308_s26  ;;  %p36_p5 = scmp.ge.s32.totalorder %s2310_s27, 2 }
   0xe   : > { %290 = sbr.rel (%p287_p3) target bundleno = 365 (0x16d), region = 40  ;;  %p365_p6 = scmp.lt.s32.totalorder (!%p287_p3), %s1672_s20, 1 }
   0xf   : > { %s2312_s27 = smov (%p36_p5, %s2310_s27), 0  ;;  %p367_p7 = scmp.lt.s32.totalorder (!%p287_p3), %s1668_s19, 1 }
  0x10   : > { %2291 = sst [smem:[#allocation7_spill]] %s2312_s27  ;;  %p369_p8 = scmp.lt.s32.totalorder (!%p287_p3), %s1436_s28, 31 }
  0x11   : > { %p379_p9 = scmp.lt.s32.totalorder (!%p287_p3), %s1672_s20, 3  ;;  %p396_p10 = scmp.lt.s32.totalorder (!%p287_p3), %s1664_s18, 15 }
  0x12   : > { %s2292_s0 = sld [smem:[#allocation8_spill]] (!%p287_p3)  ;;  %p1454_p11 = scmp.ne.s32.totalorder (!%p287_p3), %s1664_s18, 0 }
  0x13   : > { %s366_s29 = scalar_select %p365_p6, %s1672_s20, 1 }
  0x14   : > { %s2314_s19 = smov (!%p367_p7, %s1668_s19), 1  ;;  %s2316_s28 = smov (!%p369_p8, %s1436_s28), 31 }
  0x15   : > { %s1437_s30 = sshll.u32 %s2314_s19, 5  ;;  %s1438_s6 = sshll.u32 %s366_s29, 6 }
  0x16   : > { %s372_s7 = sadd.s32 %s1437_s30, %s2316_s28  ;;  %s1445_s10 = sshll.u32 %s2314_s19, 6 }
  0x17   : > { %s374_s8 = sadd.s32 %s1438_s6, %s372_s7  ;;  %s2293_s5 = sld [smem:[#allocation9_spill]] }
  0x18   : > { %s1439_s9 = sshll.u32 %s374_s8, 3  ;;  %s2318_s20 = smov (!%p379_p9, %s1672_s20), 3 }
  0x19   : > { %s1791_s13 = scalar_lea.vmem %s2292_s0, %s1439_s9  ;;  %s1442_s28 = sshll.u32 %s2318_s20, 6 }
  0x1a   : > { %s397_s17 = scalar_select %p396_p10, %s1664_s18, 15 }
  0x1b   : > { %s1446_s29 = sshll.u32 %s2318_s20, 7  ;;  %s388_s19 = sadd.s32 %s1442_s28, %s372_s7 }
  0x1c   : > { %s1444_s30 = sshll.u32 %s397_s17, 2  ;;  %s1443_s6 = sshll.u32 %s388_s19, 3 }
  0x1d   : > { %s1796_s16 = scalar_lea.vmem %s2293_s5, %s1439_s9  ;;  %s400_s8 = sadd.s32 %s1445_s10, %s1444_s30 }
  0x1e   : > { %s1807_s0 = scalar_lea.vmem %s2278_s1, %s1443_s6  ;;  %s402_s9 = sadd.s32 %s1446_s29, %s400_s8 }
  0x1f   : > { %s1447_s14 = sshll.u32 %s402_s9, 3  ;;  %s1458_s15 = sshll.u32 %s2318_s20, 4 }
  0x20   : > { %s404_s26 = scalar_lea.vmem %s2279_s2, %s1447_s14  ;;  %s1816_s22 = scalar_lea.vmem %s2280_s3, %s1458_s15 }
  0x21   : > { %s412_s10 = scalar_lea.vmem %s2281_s4, %s2318_s20  ;;  %430 = sbr.rel (%p1454_p11) target bundleno = 40 (0x28), region = 44 }
  0x26   : > { %vm431_vm0 = vcmask 523264   ;;  %v1690_v0 = vmov 0.0  }
  0x27   : > { %432 = vst.msk [vmem:[#allocation2] sm:$0xff] %vm431_vm0, %v1690_v0  ;;  %433 = vst.msk [vmem:[#allocation2 + $0x8] sm:$0xff] %vm431_vm0, %v1690_v0 }
  0x28 PF: > { %v1823_v1 = vld [vmem:[%s404_s26 + $0x10] sm:$0xff]  ;;  %v1825_v2 = vld [vmem:[%s404_s26] sm:$0xff]  ;;  %v1691_v3 = vmov 0   ;;  %v1829_v4 = vld [vmem:[%s404_s26 + $0x18] sm:$0xff]  ;;  %v1692_v6 = vmov 1   ;;  %v1693_v7 = vmov 2   ;;  %v448_v20 = vlaneseq }
  0x29   : > { %1533 = vset.pattern.permute.xlu1 %v1691_v3  ;;  %1532 = vset.pattern.permute.xlu0 %v1691_v3  ;;  %v1831_v5 = vld [vmem:[%s404_s26 + $0x8] sm:$0xff]  ;;  %v1694_v8 = vmov 3   ;;  %v1695_v9 = vmov 4   ;;  %v1696_v10 = vmov 5   ;;  %v1697_v11 = vmov 6   ;;  %v1896_v24 = vld [vmem:[%s1807_s0] sm:$0xff] }
  0x2a   : > { %480 = vperm.xlu1 %1533, %v1823_v1   ;;  %460 = vperm.xlu0 %1532, %v1825_v2   ;;  %v1698_v12 = vmov 7   ;;  %v1699_v13 = vmov 8   ;;  %v1700_v14 = vmov 13   ;;  %v1701_v15 = vmov 9   ;;  %v1901_v26 = vld [vmem:[%s1816_s22 + $0x8] sm:$0xff]  ;;  %v1905_v27 = vld [vmem:[%s1816_s22] sm:$0xff] }
  0x2b   : > { %v1702_v16 = vmov 10   ;;  %v1703_v17 = vmov 12   ;;  %v1704_v18 = vmov 14   ;;  %v1705_v19 = vmov 15   ;;  %v1936_v45 = vld [vmem:[%s1791_s13] sm:$0xff] }
  0x2c   : > { %v1706_v21 = vmov 11   ;;  %v1887_v22 = vshrl.u32 %v448_v20, 7  ;;  %v1941_v49 = vmul.f32 %v1936_v45, %v1896_v24  ;;  %vm490_vm1 = vcmask 523264  }
  0x2d   : > { %vm1207_vm2 = vcmask 1040384   ;;  %vm1209_vm3 = vcmask 1041408   ;;  %vm1211_vm4 = vcmask 1042432   ;;  %vm1213_vm5 = vcmask 1043456  }
  0x2e   : > { %485 = vperm.xlu1 %1533, %v1829_v4   ;;  %465 = vperm.xlu0 %1532, %v1831_v5   ;;  %v1892_v23 = vsub.s32 0, %v1887_v22  ;;  %v1909_v28 = vsub.s32 1, %v1887_v22  ;;  %v1921_v36 = vsub.s32 2, %v1887_v22  ;;  %v1933_v44 = vsub.s32 3, %v1887_v22  ;;  %v447_v56 = vld [vmem:[#allocation2 + $0x8] sm:$0xff]  ;;  %v446_v61 = vld [vmem:[#allocation2] sm:$0xff] }
  0x2f   : > { %v1953_v59 = vsub.s32 4, %v1887_v22  ;;  %vm1215_vm6 = vcmask 1044480   ;;  %vm1217_vm7 = vcmask 1045504   ;;  %vm1219_vm8 = vcmask 1046528  }
  0x30   : > { %v451_v25 = vrot.slane %v1896_v24, %v1892_v23  ;;  %v503_v31 = vrot.slane %v1896_v24, %v1909_v28  ;;  %v550_v41 = vrot.slane %v1896_v24, %v1921_v36  ;;  %v597_v51 = vrot.slane %v1896_v24, %v1933_v44 }
  0x31   : > { %v471_v55 = vrot.slane %v1941_v49, %v1892_v23 }
  0x32   : > { %1535 = vset.pattern.permute.xlu1 %v1692_v6  ;;  %1534 = vset.pattern.permute.xlu0 %v1692_v6  ;;  %v453_v29 = vmul.f32 %v451_v25, %v1901_v26  ;;  %v452_v30 = vmul.f32 %v451_v25, %v1905_v27  ;;  %v504_v35 = vmul.f32 %v503_v31, %v1905_v27 }
  0x33   : > { %515 = vperm.xlu1 %1535, %v1831_v5   ;;  %511 = vperm.xlu0 %1534, %v1825_v2   ;;  %v505_v37 = vmul.f32 %v503_v31, %v1901_v26  ;;  %v551_v43 = vmul.f32 %v550_v41, %v1905_v27  ;;  %v552_v48 = vmul.f32 %v550_v41, %v1901_v26 }
  0x34   : > { %v456_v32 = vmul.f32 1.442695, %v453_v29  ;;  %v454_v33 = vmul.f32 1.442695, %v452_v30  ;;  %v506_v40 = vmul.f32 1.442695, %v504_v35  ;;  %v598_v58 = vmul.f32 %v597_v51, %v1905_v27 }
  0x35   : > { %v508_v42 = vmul.f32 1.442695, %v505_v37  ;;  %v553_v50 = vmul.f32 1.442695, %v551_v43  ;;  %v555_v53 = vmul.f32 1.442695, %v552_v48  ;;  %v599_v62 = vmul.f32 %v597_v51, %v1901_v26 }
  0x36   : > { %1570 = vpow2.f32 %v456_v32 }
  0x37   : > { %529 = vperm.xlu1 %1535, %v1823_v1   ;;  %533 = vperm.xlu0 %1534, %v1829_v4   ;;  %1572 = vpow2.f32 %v454_v33 }
  0x38   : > { %1574 = vpow2.f32 %v506_v40  ;;  %v568_v40 = vrot.slane %v1941_v49, %v1921_v36 }
  0x39   : > { %1576 = vpow2.f32 %v508_v42 }
  0x3a   : > { %1578 = vpow2.f32 %v553_v50 }
  0x3b   : > { %1536 = vset.pattern.permute.xlu1 %v1693_v7  ;;  %1537 = vset.pattern.permute.xlu0 %v1693_v7  ;;  %1580 = vpow2.f32 %v555_v53  ;;  %v600_v7 = vmul.f32 1.442695, %v598_v58 }
  0x3c   : > { %558 = vperm.xlu1 %1536, %v1825_v2   ;;  %562 = vperm.xlu0 %1537, %v1831_v5  }
  0x3d   : > { %1582 = vpow2.f32 %v600_v7 }
  0x40   : > { %576 = vperm.xlu1 %1536, %v1823_v1   ;;  %1538 = vset.pattern.permute.xlu0 %v1694_v8 }
  0x41   : > { %605 = vperm.xlu0 %1538, %v1825_v2  }
  0x43   : > { %v1571_v54 = vpop.eup %1570 }
  0x44   : > { %580 = vperm.xlu1 %1536, %v1829_v4   ;;  %v1573_v60 = vpop.eup %1572  ;;  %v475_v0 = vmul.f32 %v1571_v54, %v447_v56  ;;  %v1996_v56 = vsub.s32 6, %v1887_v22 }
  0x45   : > { %627 = vperm.xlu0 %1538, %v1829_v4   ;;  %v474_v6 = vmul.f32 %v1573_v60, %v446_v61 }
  0x48   : > { %1539 = vset.pattern.permute.xlu1 %v1694_v8  ;;  %v644_v8 = vrot.slane %v1896_v24, %v1953_v59 }
  0x49   : > { %609 = vperm.xlu1 %1539, %v1831_v5   ;;  %1541 = vset.pattern.permute.xlu0 %v1695_v9 }
  0x4a   : > { %656 = vperm.xlu0 %1541, %v1831_v5   ;;  %v646_v20 = vmul.f32 %v644_v8, %v1901_v26  ;;  %v645_v30 = vmul.f32 %v644_v8, %v1905_v27 }
  0x4c   : > { %v649_v37 = vmul.f32 1.442695, %v646_v20  ;;  %v647_v42 = vmul.f32 1.442695, %v645_v30 }
  0x4d   : > { %623 = vperm.xlu1 %1539, %v1823_v1  }
  0x4e   : > { %1542 = vset.pattern.permute.xlu0 %v1696_v10 }
  0x4f   : > { %699 = vperm.xlu0 %1542, %v1825_v2  }
  0x51   : > { %1540 = vset.pattern.permute.xlu1 %v1695_v9  ;;  %v602_v9 = vmul.f32 1.442695, %v599_v62 }
  0x52   : > { %652 = vperm.xlu1 %1540, %v1825_v2  }
  0x53   : > { %721 = vperm.xlu0 %1542, %v1829_v4   ;;  %1584 = vpow2.f32 %v602_v9 }
  0x54   : > { %1586 = vpow2.f32 %v649_v37 }
  0x55   : > { %1588 = vpow2.f32 %v647_v42 }
  0x56   : > { %670 = vperm.xlu1 %1540, %v1823_v1  }
  0x57   : > { %1545 = vset.pattern.permute.xlu0 %v1697_v11 }
  0x58   : > { %750 = vperm.xlu0 %1545, %v1831_v5  }
  0x5a   : > { %674 = vperm.xlu1 %1540, %v1829_v4  }
  0x5c   : > { %1546 = vset.pattern.permute.xlu0 %v1698_v12 }
  0x5d   : > { %793 = vperm.xlu0 %1546, %v1825_v2  }
  0x5e   : > { %1543 = vset.pattern.permute.xlu1 %v1696_v10  ;;  %v521_v10 = vrot.slane %v1941_v49, %v1909_v28 }
  0x5f   : > { %703 = vperm.xlu1 %1543, %v1831_v5  }
  0x61   : > { %815 = vperm.xlu0 %1546, %v1829_v4  }
  0x63   : > { %717 = vperm.xlu1 %1543, %v1823_v1  }
  0x65   : > { %1549 = vset.pattern.permute.xlu0 %v1699_v13 }
  0x66   : > { %844 = vperm.xlu0 %1549, %v1831_v5  }
  0x67   : > { %1544 = vset.pattern.permute.xlu1 %v1697_v11 }
  0x68   : > { %746 = vperm.xlu1 %1544, %v1825_v2  }
  0x6a   : > { %1555 = vset.pattern.permute.xlu0 %v1700_v14 }
  0x6b   : > { %1079 = vperm.xlu0 %1555, %v1831_v5  }
  0x6c   : > { %764 = vperm.xlu1 %1544, %v1823_v1  }
  0x6f   : > { %1556 = vset.pattern.permute.xlu0 %v1701_v15 }
  0x70   : > { %768 = vperm.xlu1 %1544, %v1829_v4   ;;  %887 = vperm.xlu0 %1556, %v1825_v2  }
  0x74   : > { %1547 = vset.pattern.permute.xlu1 %v1698_v12  ;;  %905 = vperm.xlu0 %1556, %v1823_v1   ;;  %v1575_v12 = vpop.eup %1574 }
  0x75   : > { %797 = vperm.xlu1 %1547, %v1831_v5   ;;  %v1577_v25 = vpop.eup %1576 }
  0x76   : > { %v1579_v43 = vpop.eup %1578 }
  0x77   : > { %v1581_v51 = vpop.eup %1580 }
  0x78   : > { %1558 = vset.pattern.permute.xlu0 %v1702_v16 }
  0x79   : > { %811 = vperm.xlu1 %1547, %v1823_v1   ;;  %938 = vperm.xlu0 %1558, %v1831_v5  }
  0x7d   : > { %1548 = vset.pattern.permute.xlu1 %v1699_v13  ;;  %956 = vperm.xlu0 %1558, %v1829_v4  }
  0x7e   : > { %840 = vperm.xlu1 %1548, %v1825_v2  }
  0x81   : > { %1561 = vset.pattern.permute.xlu0 %v1703_v17 }
  0x82   : > { %858 = vperm.xlu1 %1548, %v1823_v1   ;;  %1028 = vperm.xlu0 %1561, %v1825_v2  }
  0x86   : > { %862 = vperm.xlu1 %1548, %v1829_v4   ;;  %1050 = vperm.xlu0 %1561, %v1829_v4  }
  0x8a   : > { %1550 = vset.pattern.permute.xlu1 %v1701_v15  ;;  %1566 = vset.pattern.permute.xlu0 %v1704_v18 }
  0x8b   : > { %891 = vperm.xlu1 %1550, %v1831_v5   ;;  %1140 = vperm.xlu0 %1566, %v1823_v1  }
  0x8f   : > { %1551 = vset.pattern.permute.xlu1 %v1702_v16  ;;  %1567 = vset.pattern.permute.xlu0 %v1705_v19 }
  0x90   : > { %934 = vperm.xlu1 %1551, %v1825_v2   ;;  %1169 = vperm.xlu0 %1567, %v1825_v2  }
  0x94   : > { %1552 = vset.pattern.permute.xlu1 %v1706_v21  ;;  %1191 = vperm.xlu0 %1567, %v1829_v4  }
  0x95   : > { %981 = vperm.xlu1 %1552, %v1825_v2  }
  0x99   : > { %985 = vperm.xlu1 %1552, %v1831_v5  }
  0x9d   : > { %1553 = vset.pattern.permute.xlu1 %v1703_v17 }
  0x9e   : > { %1032 = vperm.xlu1 %1553, %v1831_v5  }
  0xa2   : > { %1554 = vset.pattern.permute.xlu1 %v1700_v14 }
  0xa3   : > { %1075 = vperm.xlu1 %1554, %v1825_v2  }
  0xa5   : > { %v1917_v34 = vpop.permute.xlu1 %480  ;;  %v461_v38 = vpop.permute.xlu0 %460 }
  0xa6   : > { %v472_v3 = vmul.f32 %v471_v55, %v461_v38 }
  0xa7   : > { %1557 = vset.pattern.permute.xlu1 %v1704_v18 }
  0xa8   : > { %1122 = vperm.xlu1 %1557, %v1825_v2   ;;  %v1974_v29 = vadd.f32 %v474_v6, %v472_v3  ;;  %v1583_v3 = vpop.eup %1582 }
  0xa9   : > { %v1926_v39 = vpop.permute.xlu1 %485  ;;  %v466_v46 = vpop.permute.xlu0 %465 }
  0xaa   : > { %v473_v63 = vmul.f32 %v471_v55, %v466_v46  ;;  %v524_v31 = vmul.f32 %v1575_v12, %v1974_v29  ;;  %v1585_v7 = vpop.eup %1584 }
  0xac   : > { %1126 = vperm.xlu1 %1557, %v1831_v5   ;;  %v1965_v13 = vadd.f32 %v475_v0, %v473_v63  ;;  %v615_v0 = vrot.slane %v1941_v49, %v1933_v44 }
  0xae   : > { %v516_v47 = vpop.permute.xlu1 %515  ;;  %v512_v57 = vpop.permute.xlu0 %511  ;;  %v525_v33 = vmul.f32 %v1577_v25, %v1965_v13 }
  0xaf   : > { %v523_v32 = vmul.f32 %v521_v10, %v516_v47 }
  0xb0   : > { %1559 = vset.pattern.permute.xlu1 %v1701_v15 }
  0xb1   : > { %909 = vperm.xlu1 %1559, %v1829_v4   ;;  %v1989_v48 = vadd.f32 %v525_v33, %v523_v32  ;;  %v1587_v32 = vpop.eup %1586 }
  0xb2   : > { %v1947_v52 = vpop.permute.xlu1 %529  ;;  %v1962_v11 = vpop.permute.xlu0 %533 }
  0xb3   : > { %v572_v61 = vmul.f32 %v1581_v51, %v1989_v48 }
  0xb5   : > { %1560 = vset.pattern.permute.xlu1 %v1702_v16  ;;  %v1971_v16 = vsub.s32 5, %v1887_v22 }
  0xb6   : > { %952 = vperm.xlu1 %1560, %v1823_v1  }
  0xb7   : > { %v559_v2 = vpop.permute.xlu1 %558  ;;  %v691_v38 = vrot.slane %v1896_v24, %v1971_v16  ;;  %v563_v41 = vpop.permute.xlu0 %562 }
  0xb8   : > { %v569_v53 = vmul.f32 %v568_v40, %v559_v2 }
  0xb9   : > { %v692_v47 = vmul.f32 %v691_v38, %v1905_v27  ;;  %v693_v50 = vmul.f32 %v691_v38, %v1901_v26 }
  0xba   : > { %1562 = vset.pattern.permute.xlu1 %v1706_v21  ;;  %v522_v21 = vmul.f32 %v521_v10, %v512_v57  ;;  %v570_v57 = vmul.f32 %v568_v40, %v563_v41  ;;  %v2019_v40 = vsub.s32 7, %v1887_v22  ;;  %v1589_v41 = vpop.eup %1588  ;;  %v709_v22 = vrot.slane %v1941_v49, %v1971_v16 }
  0xbb   : > { %999 = vperm.xlu1 %1562, %v1823_v1   ;;  %v1968_v15 = vpop.permute.xlu1 %576  ;;  %v694_v60 = vmul.f32 1.442695, %v692_v47  ;;  %v696_v62 = vmul.f32 1.442695, %v693_v50 }
  0xbc   : > { %v1986_v46 = vadd.f32 %v524_v31, %v522_v21  ;;  %v606_v58 = vpop.permute.xlu0 %605  ;;  %v574_v6 = vadd.f32 %v572_v61, %v570_v57  ;;  %v662_v31 = vrot.slane %v1941_v49, %v1953_v59 }
  0xbd   : > { %1590 = vpow2.f32 %v694_v60  ;;  %v616_v10 = vmul.f32 %v615_v0, %v606_v58 }
  0xbe   : > { %v571_v54 = vmul.f32 %v1579_v43, %v1986_v46  ;;  %1592 = vpow2.f32 %v696_v62  ;;  %v619_v20 = vmul.f32 %v1585_v7, %v574_v6 }
  0xbf   : > { %1003 = vperm.xlu1 %1562, %v1829_v4   ;;  %v1980_v35 = vpop.permute.xlu1 %580 }
  0xc0   : > { %v1999_v63 = vadd.f32 %v571_v54, %v569_v53  ;;  %v2009_v8 = vpop.permute.xlu0 %627  ;;  %v785_v53 = vrot.slane %v1896_v24, %v2019_v40 }
  0xc2   : > { %v618_v12 = vmul.f32 %v1583_v3, %v1999_v63  ;;  %v786_v61 = vmul.f32 %v785_v53, %v1905_v27  ;;  %v537_v3 = vmul.f32 %v1962_v11, %v1989_v48  ;;  %v583_v11 = vmul.f32 %v1968_v15, %v1999_v63 }
  0xc3   : > { %1563 = vset.pattern.permute.xlu1 %v1705_v19 }
  0xc4   : > { %1173 = vperm.xlu1 %1563, %v1831_v5   ;;  %v610_v55 = vpop.permute.xlu1 %609  ;;  %v738_v5 = vrot.slane %v1896_v24, %v1996_v56  ;;  %v620_v33 = vadd.f32 %v618_v12, %v616_v10  ;;  %v787_v24 = vmul.f32 %v785_v53, %v1901_v26 }
  0xc5   : > { %v617_v9 = vmul.f32 %v615_v0, %v610_v55  ;;  %v657_v37 = vpop.permute.xlu0 %656  ;;  %v2030_v0 = vld [vmem:[%s1807_s0 + $0x8] sm:$0xff] }
  0xc6   : > { %v740_v30 = vmul.f32 %v738_v5, %v1901_v26  ;;  %v664_v47 = vmul.f32 %v662_v31, %v657_v37  ;;  %v665_v51 = vmul.f32 %v1589_v41, %v620_v33 }
  0xc7   : > { %v621_v21 = vadd.f32 %v619_v20, %v617_v9  ;;  %v832_v20 = vrot.slane %v2030_v0, %v1892_v23 }
  0xc8   : > { %1564 = vset.pattern.permute.xlu1 %v1703_v17  ;;  %v2004_v2 = vpop.permute.xlu1 %623  ;;  %v739_v17 = vmul.f32 %v738_v5, %v1905_v27  ;;  %v536_v5 = vmul.f32 %v1947_v52, %v1986_v46  ;;  %v489_v52 = vmul.f32 %v1926_v39, %v1965_v13  ;;  %v488_v46 = vmul.f32 %v1917_v34, %v1974_v29 }
  0xc9   : > { %1046 = vperm.xlu1 %1564, %v1823_v1   ;;  %v666_v50 = vmul.f32 %v1587_v32, %v621_v21  ;;  %v630_v39 = vmul.f32 %v2004_v2, %v620_v33  ;;  %v585_v29 = vsel %vm490_vm1, %v583_v11, 0.0  ;;  %v756_v33 = vrot.slane %v1941_v49, %v1996_v56 }
  0xca   : > { %v741_v38 = vmul.f32 1.442695, %v739_v17  ;;  %v1591_v57 = vpop.eup %1590  ;;  %v700_v58 = vpop.permute.xlu0 %699  ;;  %v788_v17 = vmul.f32 1.442695, %v786_v61  ;;  %v538_v48 = vsel %vm490_vm1, %v536_v5, 0.0  ;;  %v492_v34 = vsel %vm490_vm1, %v489_v52, 0.0 }
  0xcb   : > { %v668_v60 = vadd.f32 %v666_v50, %v664_v47  ;;  %v1593_v62 = vpop.eup %1592  ;;  %v710_v7 = vmul.f32 %v709_v22, %v700_v58 }
  0xcc   : > { %1594 = vpow2.f32 %v741_v38 }
  0xcd   : > { %1565 = vset.pattern.permute.xlu1 %v1700_v14  ;;  %v653_v25 = vpop.permute.xlu1 %652  ;;  %v743_v14 = vmul.f32 1.442695, %v740_v30 }
  0xce   : > { %1093 = vperm.xlu1 %1565, %v1823_v1   ;;  %v663_v43 = vmul.f32 %v662_v31, %v653_v25  ;;  %v631_v31 = vmul.f32 %v2009_v8, %v621_v21  ;;  %v491_v8 = vsel %vm490_vm1, %v488_v46, 0.0  ;;  %v632_v21 = vsel %vm490_vm1, %v630_v39, 0.0 }
  0xcf   : > { %1596 = vpow2.f32 %v743_v14  ;;  %v493_v50 = vadd.f32 %v492_v34, %v491_v8 }
  0xd0   : > { %v667_v55 = vadd.f32 %v665_v51, %v663_v43  ;;  %1598 = vpow2.f32 %v788_v17  ;;  %v633_v2 = vsel %vm490_vm1, %v631_v31, 0.0  ;;  %v803_v31 = vrot.slane %v1941_v49, %v2019_v40 }
  0xd1   : > { %v671_v42 = vpop.permute.xlu1 %670  ;;  %v494_v17 = vrot.slane %v493_v50, 4 }
  0xd2   : > { %1097 = vperm.xlu1 %1565, %v1829_v4   ;;  %v712_v10 = vmul.f32 %v1591_v57, %v667_v55  ;;  %v677_v14 = vmul.f32 %v671_v42, %v667_v55  ;;  %v834_v57 = vmul.f32 %v832_v20, %v1901_v26 }
  0xd4   : > { %v714_v15 = vadd.f32 %v712_v10, %v710_v7  ;;  %v679_v5 = vsel %vm490_vm1, %v677_v14, 0.0 }
  0xd5   : > { %v675_v54 = vpop.permute.xlu1 %674 }
  0xd6   : > { %1568 = vset.pattern.permute.xlu1 %v1704_v18  ;;  %v584_v18 = vmul.f32 %v1980_v35, %v574_v6  ;;  %v790_v35 = vmul.f32 1.442695, %v787_v24  ;;  %v722_v6 = vpop.permute.xlu0 %721  ;;  %v678_v63 = vmul.f32 %v675_v54, %v668_v60  ;;  %v634_v24 = vadd.f32 %v633_v2, %v632_v21 }
  0xd7   : > { %1144 = vperm.xlu1 %1568, %v1829_v4   ;;  %v713_v4 = vmul.f32 %v1593_v62, %v668_v60 }
  0xd8   : > { %v586_v30 = vsel %vm490_vm1, %v584_v18, 0.0  ;;  %1600 = vpow2.f32 %v790_v35  ;;  %v680_v51 = vsel %vm490_vm1, %v678_v63, 0.0  ;;  %v635_v11 = vrot.slane %v634_v24, 4 }
  0xd9   : > { %v1595_v38 = vpop.eup %1594  ;;  %v587_v43 = vadd.f32 %v586_v30, %v585_v29 }
  0xda   : > { %v704_v9 = vpop.permute.xlu1 %703  ;;  %v751_v53 = vpop.permute.xlu0 %750  ;;  %v759_v60 = vmul.f32 %v1595_v38, %v714_v15  ;;  %v636_v29 = vadd.f32 %v635_v11, %v634_v24 }
  0xdb   : > { %v711_v12 = vmul.f32 %v709_v22, %v704_v9  ;;  %1569 = vset.pattern.permute.xlu1 %v1705_v19  ;;  %v539_v19 = vsel %vm490_vm1, %v537_v3, 0.0  ;;  %v588_v62 = vrot.slane %v587_v43, 4  ;;  %v681_v3 = vadd.f32 %v680_v51, %v679_v5 }
  0xdc   : > { %1187 = vperm.xlu1 %1569, %v1823_v1   ;;  %v833_v1 = vmul.f32 %v832_v20, %v1905_v27  ;;  %v540_v41 = vadd.f32 %v539_v19, %v538_v48  ;;  %v1597_v47 = vpop.eup %1596  ;;  %v758_v18 = vmul.f32 %v756_v33, %v751_v53  ;;  %v837_v20 = vmul.f32 1.442695, %v834_v57 }
  0xdd   : > { %v715_v25 = vadd.f32 %v713_v4, %v711_v12  ;;  %v2068_v4 = vrot.slane %v2030_v0, %v1909_v28  ;;  %v589_v46 = vadd.f32 %v588_v62, %v587_v43  ;;  %v682_v48 = vrot.slane %v681_v3, 4 }
  0xde   : > { %v718_v13 = vpop.permute.xlu1 %717  ;;  %v835_v22 = vmul.f32 1.442695, %v833_v1  ;;  %v541_v61 = vrot.slane %v540_v41, 4  ;;  %v2076_v1 = vrot.slane %v2030_v0, %v1921_v36  ;;  %v2084_v53 = vrot.slane %v2030_v0, %v1933_v44 }
  0xdf   : > { %v725_v32 = vmul.f32 %v722_v6, %v715_v25  ;;  %v724_v37 = vmul.f32 %v718_v13, %v714_v15  ;;  %v760_v9 = vmul.f32 %v1597_v47, %v715_v25  ;;  %v880_v35 = vmul.f32 %v2068_v4, %v1905_v27  ;;  %v794_v6 = vpop.permute.xlu0 %793  ;;  %v1599_v13 = vpop.eup %1598 }
  0xe0   : > { %v542_v52 = vadd.f32 %v541_v61, %v540_v41  ;;  %1602 = vpow2.f32 %v835_v22  ;;  %v495_v15 = vadd.f32 %v494_v17, %v493_v50  ;;  %v590_v38 = vrot.slane %v589_v46, 2 }
  0xe1   : > { %v727_v42 = vsel %vm490_vm1, %v725_v32, 0.0  ;;  %v726_v55 = vsel %vm490_vm1, %v724_v37, 0.0  ;;  %v762_v30 = vadd.f32 %v760_v9, %v758_v18  ;;  %1604 = vpow2.f32 %v837_v20 }
  0xe2   : > { %v728_v10 = vadd.f32 %v727_v42, %v726_v55  ;;  %v543_v34 = vrot.slane %v542_v52, 2  ;;  %v882_v32 = vmul.f32 1.442695, %v880_v35  ;;  %v683_v41 = vadd.f32 %v682_v48, %v681_v3  ;;  %v2087_v55 = vld [vmem:[%s1791_s13 + $0x8] sm:$0xff] }
  0xe3   : > { %v747_v54 = vpop.permute.xlu1 %746  ;;  %v816_v14 = vpop.permute.xlu0 %815  ;;  %v804_v2 = vmul.f32 %v803_v31, %v794_v6  ;;  %v496_v47 = vrot.slane %v495_v15, 2  ;;  %v927_v51 = vmul.f32 %v2076_v1, %v1905_v27  ;;  %v974_v17 = vmul.f32 %v2084_v53, %v1905_v27 }
  0xe4   : > { %v757_v58 = vmul.f32 %v756_v33, %v747_v54  ;;  %v729_v25 = vrot.slane %v728_v10, 4  ;;  %v637_v54 = vrot.slane %v636_v29, 2  ;;  %v684_v61 = vrot.slane %v683_v41, 2 }
  0xe5   : > { %v1601_v37 = vpop.eup %1600  ;;  %1606 = vpow2.f32 %v882_v32  ;;  %v497_v18 = vadd.f32 %v496_v47, %v495_v15  ;;  %v881_v15 = vmul.f32 %v2068_v4, %v1901_v26 }
  0xe6   : > { %v761_v7 = vadd.f32 %v759_v60, %v757_v58  ;;  %v730_v8 = vadd.f32 %v729_v25, %v728_v10  ;;  %v807_v42 = vmul.f32 %v1601_v37, %v762_v30  ;;  %v544_v58 = vadd.f32 %v543_v34, %v542_v52 }
  0xe7   : > { %v765_v12 = vpop.permute.xlu1 %764  ;;  %v591_v60 = vadd.f32 %v590_v38, %v589_v46  ;;  %v845_v9 = vpop.permute.xlu0 %844  ;;  %v2091_v10 = vmul.f32 %v2087_v55, %v2030_v0  ;;  %v638_v20 = vadd.f32 %v637_v54, %v636_v29  ;;  %v498_v34 = vrot.slane %v497_v18, 1 }
  0xe8   : > { %v771_v19 = vmul.f32 %v765_v12, %v761_v7  ;;  %v806_v33 = vmul.f32 %v1599_v13, %v761_v7  ;;  %v731_v62 = vrot.slane %v730_v8, 2  ;;  %v929_v12 = vmul.f32 1.442695, %v927_v51 }
  0xe9   : > { %v545_v48 = vrot.slane %v544_v58, 1  ;;  %v592_v6 = vrot.slane %v591_v60, 1  ;;  %v850_v13 = vrot.slane %v2091_v10, %v1892_v23  ;;  %v639_v29 = vrot.slane %v638_v20, 1 }
  0xea   : > { %v773_v43 = vsel %vm490_vm1, %v771_v19, 0.0  ;;  %v808_v3 = vadd.f32 %v806_v33, %v804_v2  ;;  %v685_v19 = vadd.f32 %v684_v61, %v683_v41  ;;  %1608 = vpow2.f32 %v929_v12 }
  0xeb   : > { %v769_v39 = vpop.permute.xlu1 %768  ;;  %v976_v38 = vmul.f32 1.442695, %v974_v17  ;;  %v546_v2 = vadd.f32 %v545_v48, %v544_v58  ;;  %v2105_v23 = vrot.slane %v2030_v0, %v1953_v59  ;;  %v852_v47 = vmul.f32 %v850_v13, %v845_v9  ;;  %v2113_v9 = vld [vmem:[%s412_s10] ss:$0 sm:$0xff] }
  0xec   : > { %v772_v63 = vmul.f32 %v769_v39, %v762_v30  ;;  %v732_v30 = vadd.f32 %v731_v62, %v730_v8  ;;  %v686_v41 = vrot.slane %v685_v19, 1  ;;  %v499_v54 = vadd.f32 %v498_v34, %v497_v18 }
  0xed   : > { %v1603_v46 = vpop.eup %1602  ;;  %v884_v61 = vmul.f32 1.442695, %v881_v15  ;;  %v1021_v18 = vmul.f32 %v2105_v23, %v1905_v27  ;;  %1610 = vpow2.f32 %v976_v38  ;;  %v928_v48 = vmul.f32 %v2076_v1, %v1901_v26 }
  0xee   : > { %v774_v49 = vsel %vm490_vm1, %v772_v63, 0.0  ;;  %v1605_v63 = vpop.eup %1604  ;;  %v853_v8 = vmul.f32 %v1603_v46, %v808_v3  ;;  %v733_v33 = vrot.slane %v732_v30, 1  ;;  %v687_v62 = vadd.f32 %v686_v41, %v685_v19 }
  0xef   : > { %v775_v21 = vadd.f32 %v774_v49, %v773_v43  ;;  %1612 = vpow2.f32 %v884_v61  ;;  %v991_v61 = vrot.slane %v2091_v10, %v1933_v44  ;;  %v1038_v44 = vrot.slane %v2091_v10, %v1953_v59 }
  0xf0   : > { %v798_v50 = vpop.permute.xlu1 %797 }
  0xf1   : > { %v776_v22 = vrot.slane %v775_v21, 4  ;;  %v805_v57 = vmul.f32 %v803_v31, %v798_v50 }
  0xf3   : > { %v777_v24 = vadd.f32 %v776_v22, %v775_v21  ;;  %v809_v5 = vadd.f32 %v807_v42, %v805_v57  ;;  %v593_v21 = vadd.f32 %v592_v6, %v591_v60  ;;  %v640_v22 = vadd.f32 %v639_v29, %v638_v20  ;;  %v1607_v60 = vpop.eup %1606 }
  0xf4   : > { %v812_v7 = vpop.permute.xlu1 %811  ;;  %v1235_v6 = vmul.f32 %v2113_v9, %v1936_v45 }
  0xf5   : > { %v778_v52 = vrot.slane %v777_v24, 2  ;;  %v819_v11 = vmul.f32 %v816_v14, %v809_v5  ;;  %v818_v35 = vmul.f32 %v812_v7, %v808_v3  ;;  %v2101_v14 = vpop.permute.xlu0 %1079  ;;  %v854_v51 = vmul.f32 %v1605_v63, %v809_v5 }
  0xf6   : > { %v1208_v3 = vsel %vm1207_vm2, %v499_v54, %v546_v2  ;;  %v734_v7 = vadd.f32 %v733_v33, %v732_v30  ;;  %v2117_v5 = vrot.slane %v2091_v10, %v1909_v28  ;;  %v931_v33 = vmul.f32 1.442695, %v928_v48 }
  0xf7   : > { %v821_v25 = vsel %vm490_vm1, %v819_v11, 0.0  ;;  %v820_v31 = vsel %vm490_vm1, %v818_v35, 0.0  ;;  %v779_v32 = vadd.f32 %v778_v52, %v777_v24  ;;  %v1210_v12 = vsel %vm1209_vm3, %v1208_v3, %v593_v21  ;;  %v1609_v29 = vpop.eup %1608 }
  0xf8   : > { %v822_v39 = vadd.f32 %v821_v25, %v820_v31  ;;  %v2122_v52 = vadd.f32 %v854_v51, %v852_v47  ;;  %v1212_v11 = vsel %vm1211_vm4, %v1210_v12, %v640_v22  ;;  %v944_v21 = vrot.slane %v2091_v10, %v1921_v36 }
  0xf9   : > { %v841_v37 = vpop.permute.xlu1 %840  ;;  %v780_v57 = vrot.slane %v779_v32, 1  ;;  %v888_v20 = vpop.permute.xlu0 %887  ;;  %v1214_v28 = vsel %vm1213_vm5, %v1212_v11, %v687_v62  ;;  %v2156_v47 = vrot.slane %v2030_v0, %v2019_v40  ;;  %v975_v36 = vmul.f32 %v2084_v53, %v1901_v26 }
  0xfa   : > { %v823_v43 = vrot.slane %v822_v39, 4  ;;  %v851_v49 = vmul.f32 %v850_v13, %v841_v37  ;;  %v1216_v25 = vsel %vm1215_vm6, %v1214_v28, %v734_v7  ;;  %v898_v31 = vmul.f32 %v2117_v5, %v888_v20 }
  0xfb   : > { %v781_v35 = vadd.f32 %v780_v57, %v779_v32  ;;  %v1067_v13 = vrot.slane %v2030_v0, %v1971_v16  ;;  %v978_v3 = vmul.f32 1.442695, %v975_v36  ;;  %v1162_v7 = vmul.f32 %v2156_v47, %v1905_v27 }
  0xfc   : > { %v824_v4 = vadd.f32 %v823_v43, %v822_v39  ;;  %v855_v50 = vadd.f32 %v853_v8, %v851_v49  ;;  %v1023_v39 = vmul.f32 1.442695, %v1021_v18  ;;  %v2145_v43 = vrot.slane %v2030_v0, %v1996_v56 }
  0xfd   : > { %v859_v42 = vpop.permute.xlu1 %858  ;;  %v1218_v45 = vsel %vm1217_vm7, %v1216_v25, %v781_v35  ;;  %v2141_v38 = vpop.permute.xlu0 %905  ;;  %v1068_v8 = vmul.f32 %v1067_v13, %v1905_v27  ;;  %v1022_v53 = vmul.f32 %v2105_v23, %v1901_v26  ;;  %v1164_v48 = vmul.f32 1.442695, %v1162_v7 }
  0xfe   : > { %v825_v24 = vrot.slane %v824_v4, 2  ;;  %v865_v58 = vmul.f32 %v859_v42, %v855_v50  ;;  %v900_v34 = vmul.f32 %v1607_v60, %v855_v50  ;;  %1614 = vpow2.f32 %v1023_v39  ;;  %v1611_v42 = vpop.eup %1610 }
  0xff   : > { %v1070_v51 = vmul.f32 1.442695, %v1068_v8  ;;  %v1115_v54 = vmul.f32 %v2145_v43, %v1905_v27  ;;  %1616 = vpow2.f32 %v931_v33  ;;  %v1613_v12 = vpop.eup %1612  ;;  %v1025_v28 = vmul.f32 1.442695, %v1022_v53 }
 0x100   : > { %v826_v17 = vadd.f32 %v825_v24, %v824_v4  ;;  %v867_v63 = vsel %vm490_vm1, %v865_v58, 0.0  ;;  %v2148_v2 = vadd.f32 %v900_v34, %v898_v31  ;;  %v901_v27 = vmul.f32 %v1613_v12, %v2122_v52 }
 0x101   : > { %v863_v46 = vpop.permute.xlu1 %862  ;;  %v939_v4 = vpop.permute.xlu0 %938  ;;  %1618 = vpow2.f32 %v1070_v51  ;;  %v1117_v0 = vmul.f32 1.442695, %v1115_v54  ;;  %v1069_v59 = vmul.f32 %v1067_v13, %v1901_v26  ;;  %v1132_v13 = vrot.slane %v2091_v10, %v1996_v56 }
 0x102   : > { %v827_v19 = vrot.slane %v826_v17, 1  ;;  %v866_v30 = vmul.f32 %v863_v46, %v2122_v52  ;;  %v947_v57 = vmul.f32 %v1609_v29, %v2148_v2  ;;  %v946_v52 = vmul.f32 %v944_v21, %v939_v4 }
 0x103   : > { %1620 = vpow2.f32 %v1117_v0  ;;  %v1072_v34 = vmul.f32 1.442695, %v1069_v59  ;;  %v1179_v4 = vrot.slane %v2091_v10, %v2019_v40  ;;  %v1163_v40 = vmul.f32 %v2156_v47, %v1901_v26 }
 0x104   : > { %v828_v15 = vadd.f32 %v827_v19, %v826_v17  ;;  %v868_v1 = vsel %vm490_vm1, %v866_v30, 0.0  ;;  %1622 = vpow2.f32 %v978_v3  ;;  %v912_v53 = vmul.f32 %v2141_v38, %v2148_v2 }
 0x105   : > { %v2138_v32 = vadd.f32 %v868_v1, %v867_v63  ;;  %v2167_v24 = vpop.permute.xlu0 %956  ;;  %1624 = vpow2.f32 %v1164_v48 }
 0x106   : > { %v1220_v37 = vsel %vm1219_vm8, %v1218_v45, %v828_v15  ;;  %v892_v41 = vpop.permute.xlu1 %891  ;;  %1626 = vpow2.f32 %v1025_v28  ;;  %v914_v47 = vsel %vm490_vm1, %v912_v53, 0.0 }
 0x107   : > { %v1237_v49 = vadd.f32 %v1235_v6, %v1220_v37  ;;  %v899_v11 = vmul.f32 %v2117_v5, %v892_v41  ;;  %v1085_v5 = vrot.slane %v2091_v10, %v1971_v16  ;;  %1628 = vpow2.f32 %v1072_v34 }
 0x109   : > { %1239 = vst.msk [vmem:[%s1796_s16] sm:$0xff] %vm490_vm1, %v1237_v49  ;;  %v1029_v46 = vpop.permute.xlu0 %1028  ;;  %v903_v6 = vadd.f32 %v901_v27, %v899_v11  ;;  %v1166_v11 = vmul.f32 1.442695, %v1163_v40  ;;  %v1087_v38 = vmul.f32 %v1085_v5, %v2101_v14 }
 0x10a   : > { %v1039_v19 = vmul.f32 %v1038_v44, %v1029_v46 }
 0x10b   : > { %v935_v50 = vpop.permute.xlu1 %934  ;;  %v1615_v20 = vpop.eup %1614 }
 0x10c   : > { %v945_v22 = vmul.f32 %v944_v21, %v935_v50  ;;  %v1617_v30 = vpop.eup %1616  ;;  %v1116_v21 = vmul.f32 %v2145_v43, %v1901_v26  ;;  %v870_v43 = vrot.slane %v2138_v32, 4 }
 0x10d   : > { %v2181_v31 = vpop.permute.xlu0 %1050  ;;  %v948_v63 = vmul.f32 %v1617_v30, %v903_v6 }
 0x10e   : > { %v2165_v62 = vadd.f32 %v947_v57, %v945_v22  ;;  %v1619_v15 = vpop.eup %1618  ;;  %v1119_v0 = vmul.f32 1.442695, %v1116_v21  ;;  %v871_v12 = vadd.f32 %v870_v43, %v2138_v32 }
 0x10f   : > { %v2191_v49 = vadd.f32 %v948_v63, %v946_v52 }
 0x110   : > { %v982_v58 = vpop.permute.xlu1 %981  ;;  %v994_v60 = vmul.f32 %v1611_v42, %v2165_v62  ;;  %v1621_v41 = vpop.eup %1620  ;;  %1630 = vpow2.f32 %v1119_v0  ;;  %v872_v48 = vrot.slane %v871_v12, 2 }
 0x111   : > { %v992_v18 = vmul.f32 %v991_v61, %v982_v58  ;;  %v2188_v1 = vpop.permute.xlu0 %1140  ;;  %v1623_v8 = vpop.eup %1622  ;;  %1632 = vpow2.f32 %v1166_v11 }
 0x112   : > { %v995_v22 = vmul.f32 %v1623_v8, %v2191_v49  ;;  %v1625_v36 = vpop.eup %1624 }
 0x113   : > { %v2174_v17 = vadd.f32 %v994_v60, %v992_v18  ;;  %v1627_v58 = vpop.eup %1626 }
 0x114   : > { %v986_v35 = vpop.permute.xlu1 %985  ;;  %v1629_v26 = vpop.eup %1628 }
 0x115   : > { %v1041_v23 = vmul.f32 %v1615_v20, %v2174_v17  ;;  %v993_v33 = vmul.f32 %v991_v61, %v986_v35  ;;  %v1170_v54 = vpop.permute.xlu0 %1169 }
 0x116   : > { %v1180_v61 = vmul.f32 %v1179_v4, %v1170_v54 }
 0x117   : > { %v2186_v39 = vadd.f32 %v1041_v23, %v1039_v19  ;;  %v997_v56 = vadd.f32 %v995_v22, %v993_v33  ;;  %v873_v19 = vadd.f32 %v872_v48, %v871_v12 }
 0x119   : > { %v1033_v25 = vpop.permute.xlu1 %1032  ;;  %v1088_v37 = vmul.f32 %v1619_v15, %v2186_v39  ;;  %v1042_v7 = vmul.f32 %v1627_v58, %v997_v56  ;;  %v874_v15 = vrot.slane %v873_v19, 1  ;;  %v1192_v48 = vpop.permute.xlu0 %1191 }
 0x11a   : > { %v1040_v3 = vmul.f32 %v1038_v44, %v1033_v25 }
 0x11c   : > { %v1044_v46 = vadd.f32 %v1042_v7, %v1040_v3 }
 0x11e   : > { %v1076_v29 = vpop.permute.xlu1 %1075  ;;  %v1089_v2 = vmul.f32 %v1629_v26, %v1044_v46  ;;  %v1054_v0 = vmul.f32 %v2181_v31, %v1044_v46 }
 0x11f   : > { %v1086_v45 = vmul.f32 %v1085_v5, %v1076_v29 }
 0x120   : > { %v1091_v30 = vadd.f32 %v1089_v2, %v1087_v38 }
 0x121   : > { %v2195_v16 = vadd.f32 %v1088_v37, %v1086_v45  ;;  %v875_v37 = vadd.f32 %v874_v15, %v873_v19 }
 0x123   : > { %v1123_v50 = vpop.permute.xlu1 %1122  ;;  %v1135_v51 = vmul.f32 %v1621_v41, %v2195_v16 }
 0x124   : > { %v1133_v57 = vmul.f32 %v1132_v13, %v1123_v50 }
 0x126   : > { %v2203_v42 = vadd.f32 %v1135_v51, %v1133_v57 }
 0x127   : > { %v1127_v60 = vpop.permute.xlu1 %1126 }
 0x128   : > { %v1182_v10 = vmul.f32 %v1625_v36, %v2203_v42  ;;  %v1134_v52 = vmul.f32 %v1132_v13, %v1127_v60  ;;  %v960_v13 = vmul.f32 %v2167_v24, %v2191_v49 }
 0x12a   : > { %v2209_v18 = vadd.f32 %v1182_v10, %v1180_v61 }
 0x12c   : > { %v910_v20 = vpop.permute.xlu1 %909  ;;  %1205 = vst.msk [vmem:[#allocation2] sm:$0xff] %vm490_vm1, %v2209_v18 }
 0x12d   : > { %v913_v35 = vmul.f32 %v910_v20, %v903_v6  ;;  %v1631_v6 = vpop.eup %1630 }
 0x12e   : > { %v1136_v34 = vmul.f32 %v1631_v6, %v1091_v30  ;;  %v1633_v33 = vpop.eup %1632 }
 0x12f   : > { %v915_v44 = vsel %vm490_vm1, %v913_v35, 0.0  ;;  %v1147_v35 = vmul.f32 %v2188_v1, %v2203_v42 }
 0x130   : > { %v916_v27 = vadd.f32 %v915_v44, %v914_v47  ;;  %v1138_v41 = vadd.f32 %v1136_v34, %v1134_v52 }
 0x131   : > { %v953_v28 = vpop.permute.xlu1 %952  ;;  %v1149_v38 = vsel %vm490_vm1, %v1147_v35, 0.0 }
 0x132   : > { %v917_v32 = vrot.slane %v916_v27, 4  ;;  %v1183_v50 = vmul.f32 %v1633_v33, %v1138_v41  ;;  %v959_v51 = vmul.f32 %v953_v28, %v2165_v62  ;;  %v962_v62 = vsel %vm490_vm1, %v960_v13, 0.0 }
 0x134   : > { %v918_v23 = vadd.f32 %v917_v32, %v916_v27  ;;  %v961_v61 = vsel %vm490_vm1, %v959_v51, 0.0 }
 0x135   : > { %v963_v60 = vadd.f32 %v962_v62, %v961_v61 }
 0x136   : > { %v919_v25 = vrot.slane %v918_v23, 2  ;;  %v1000_v59 = vpop.permute.xlu1 %999 }
 0x137   : > { %v1006_v57 = vmul.f32 %v1000_v59, %v2174_v17  ;;  %v1056_v17 = vsel %vm490_vm1, %v1054_v0, 0.0  ;;  %v964_v10 = vrot.slane %v963_v60, 4 }
 0x138   : > { %v920_v63 = vadd.f32 %v919_v25, %v918_v23 }
 0x139   : > { %v1008_v24 = vsel %vm490_vm1, %v1006_v57, 0.0  ;;  %v965_v12 = vadd.f32 %v964_v10, %v963_v60 }
 0x13a   : > { %v921_v29 = vrot.slane %v920_v63, 1  ;;  %v1004_v45 = vpop.permute.xlu1 %1003 }
 0x13b   : > { %v1007_v54 = vmul.f32 %v1004_v45, %v997_v56 }
 0x13c   : > { %v922_v8 = vadd.f32 %v921_v29, %v920_v63 }
 0x13e   : > { %v2220_v14 = vsel %vm1207_vm2, %v875_v37, %v922_v8 }
 0x13f   : > { %v1174_v5 = vpop.permute.xlu1 %1173 }
 0x140   : > { %v1181_v21 = vmul.f32 %v1179_v4, %v1174_v5  ;;  %v1009_v4 = vsel %vm490_vm1, %v1007_v54, 0.0 }
 0x141   : > { %v1010_v49 = vadd.f32 %v1009_v4, %v1008_v24 }
 0x142   : > { %v1185_v22 = vadd.f32 %v1183_v50, %v1181_v21 }
 0x143   : > { %v1011_v3 = vrot.slane %v1010_v49, 4 }
 0x144   : > { %1206 = vst.msk [vmem:[#allocation2 + $0x8] sm:$0xff] %vm490_vm1, %v1185_v22  ;;  %v1047_v36 = vpop.permute.xlu1 %1046  ;;  %v1195_v23 = vmul.f32 %v1192_v48, %v1185_v22 }
 0x145   : > { %v1053_v58 = vmul.f32 %v1047_v36, %v2186_v39  ;;  %v1012_v46 = vadd.f32 %v1011_v3, %v1010_v49 }
 0x146   : > { %v1197_v63 = vsel %vm490_vm1, %v1195_v23, 0.0 }
 0x147   : > { %v1055_v56 = vsel %vm490_vm1, %v1053_v58, 0.0  ;;  %v1013_v2 = vrot.slane %v1012_v46, 2 }
 0x148   : > { %v1057_v40 = vadd.f32 %v1056_v17, %v1055_v56  ;;  %v1236_v17 = vmul.f32 %v2113_v9, %v2087_v55 }
 0x149   : > { %v1094_v43 = vpop.permute.xlu1 %1093  ;;  %v1014_v52 = vadd.f32 %v1013_v2, %v1012_v46 }
 0x14a   : > { %v1100_v31 = vmul.f32 %v1094_v43, %v2195_v16  ;;  %v1058_v39 = vrot.slane %v1057_v40, 4  ;;  %v966_v16 = vrot.slane %v965_v12, 2 }
 0x14b   : > { %v1015_v5 = vrot.slane %v1014_v52, 1 }
 0x14c   : > { %v1102_v20 = vsel %vm490_vm1, %v1100_v31, 0.0  ;;  %v1059_v47 = vadd.f32 %v1058_v39, %v1057_v40  ;;  %v967_v1 = vadd.f32 %v966_v16, %v965_v12 }
 0x14d   : > { %v1098_v7 = vpop.permute.xlu1 %1097 }
 0x14e   : > { %v1101_v53 = vmul.f32 %v1098_v7, %v1091_v30  ;;  %v1060_v30 = vrot.slane %v1059_v47, 2  ;;  %v968_v8 = vrot.slane %v967_v1, 1 }
 0x150   : > { %v1103_v11 = vsel %vm490_vm1, %v1101_v53, 0.0  ;;  %v1061_v34 = vadd.f32 %v1060_v30, %v1059_v47  ;;  %v969_v13 = vadd.f32 %v968_v8, %v967_v1 }
 0x151   : > { %v1104_v26 = vadd.f32 %v1103_v11, %v1102_v20 }
 0x152   : > { %v1145_v44 = vpop.permute.xlu1 %1144  ;;  %v1062_v50 = vrot.slane %v1061_v34, 1  ;;  %v1222_v4 = vsel %vm1209_vm3, %v2220_v14, %v969_v13 }
 0x153   : > { %v1105_v27 = vrot.slane %v1104_v26, 4  ;;  %v1148_v28 = vmul.f32 %v1145_v44, %v1138_v41 }
 0x154   : > { %v1063_v0 = vadd.f32 %v1062_v50, %v1061_v34 }
 0x155   : > { %v1106_v32 = vadd.f32 %v1105_v27, %v1104_v26  ;;  %v1150_v19 = vsel %vm490_vm1, %v1148_v28, 0.0 }
 0x156   : > { %v1151_v25 = vadd.f32 %v1150_v19, %v1149_v38 }
 0x157   : > { %v1107_v59 = vrot.slane %v1106_v32, 2  ;;  %v1188_v6 = vpop.permute.xlu1 %1187 }
 0x158   : > { %v1152_v42 = vrot.slane %v1151_v25, 4  ;;  %v1194_v15 = vmul.f32 %v1188_v6, %v2209_v18  ;;  %v1016_v18 = vadd.f32 %v1015_v5, %v1014_v52 }
 0x159   : > { %v1108_v37 = vadd.f32 %v1107_v59, %v1106_v32 }
 0x15a   : > { %v1153_v29 = vadd.f32 %v1152_v42, %v1151_v25  ;;  %v1196_v45 = vsel %vm490_vm1, %v1194_v15, 0.0  ;;  %v1223_v56 = vsel %vm1211_vm4, %v1222_v4, %v1016_v18 }
 0x15b   : > { %v1198_v41 = vadd.f32 %v1197_v63, %v1196_v45  ;;  %v1109_v54 = vrot.slane %v1108_v37, 1  ;;  %v1224_v24 = vsel %vm1213_vm5, %v1223_v56, %v1063_v0 }
 0x15c   : > { %v1154_v33 = vrot.slane %v1153_v29, 2 }
 0x15d   : > { %v1199_v21 = vrot.slane %v1198_v41, 4  ;;  %v1110_v61 = vadd.f32 %v1109_v54, %v1108_v37 }
 0x15e   : > { %v1155_v51 = vadd.f32 %v1154_v33, %v1153_v29 }
 0x15f   : > { %v1200_v22 = vadd.f32 %v1199_v21, %v1198_v41  ;;  %v1225_v49 = vsel %vm1215_vm6, %v1224_v24, %v1110_v61 }
 0x160   : > { %v1156_v57 = vrot.slane %v1155_v51, 1 }
 0x161   : > { %v1201_v36 = vrot.slane %v1200_v22, 2 }
 0x162   : > { %v1157_v62 = vadd.f32 %v1156_v57, %v1155_v51 }
 0x163   : > { %v1202_v58 = vadd.f32 %v1201_v36, %v1200_v22 }
 0x164   : > { %v1226_v40 = vsel %vm1217_vm7, %v1225_v49, %v1157_v62 }
 0x165   : > { %v1203_v60 = vrot.slane %v1202_v58, 1 }
 0x167   : > { %v1204_v43 = vadd.f32 %v1203_v60, %v1202_v58 }
 0x169   : > { %v1227_v10 = vsel %vm1219_vm8, %v1226_v40, %v1204_v43 }
 0x16a   : > { %v1238_v31 = vadd.f32 %v1236_v17, %v1227_v10 }
 0x16c   : > { %1240 = vst.msk [vmem:[%s1796_s16 + $0x8] sm:$0xff] %vm490_vm1, %v1238_v31 }
 0x16d PF: > { %s15_s24 = sadd.s32 1, %s1688_s24   ;;  %s2294_s19 = sld [smem:[#allocation3_spill]] }
 0x16e   : > { %p12_p12 = scmp.ge.s32.totalorder %s15_s24, 66   ;;  %s2295_s20 = sld [smem:[#allocation4_spill]] }
 0x16f   : > { %s2296_s22 = sld [smem:[#allocation5_spill]]  ;;  %s2299_s18 = smov %s1676_s21 }
 0x170   : > { %s2297_s23 = sld [smem:[#allocation6_spill]] }
 0x171   : > { %s2298_s25 = sld [smem:[#allocation7_spill]] }
 0x173   :  { %14 = sbr.rel (!%p12_p12) target bundleno = 5 (0x5), region = 86 }
 0x175   : > { %s2300_s21 = smov %s2296_s22 }
 0x176   : > { %s2301_s22 = smov %s2297_s23 }
 0x177   : > { %s2302_s23 = smov %s2298_s25 }

// kernel: _lambda_.10
= control target key start
LH: loop header
LB: loop body
LE: loop exit
PB: predicated region body
PF: predicated region fallthrough
CT: control target
= control target key end

     0   :  { %s1920_s21 = smov 0   ;;  %s1922_s22 = smov 0   ;;  %s2457_s0 = inlined_call_operand.vmem [shape: f32[2,2,256,64], index: 0, kind: input, shape index: {}]   ;;  %s2458_s1 = inlined_call_operand.vmem [shape: f32[4,2,256,64], index: 1, kind: input, shape index: {}]   ;;  %s2459_s2 = inlined_call_operand.vmem [shape: f32[4,2,16,32,16], index: 2, kind: input, shape index: {}]   ;;  %s2460_s3 = inlined_call_operand.vmem [shape: f32[4,16,64], index: 3, kind: input, shape index: {}]   ;;  %s2461_s4 = inlined_call_operand.vmem [shape: f32[4,1,64], index: 4, kind: input, shape index: {}]   ;;  %s2462_s5 = inlined_call_operand.vmem [shape: f32[2,2,256,64], index: 5, kind: input, shape index: {}, may-alias: {5,6}]   ;;  %s2463_s6 = inlined_call_operand.vmem [shape: f32[2,2,256,64], index: 6, kind: output, shape index: {}, may-alias: {5,6}]  }
   0x1   :  { %2468 = sst [smem:[#allocation10_spill]] %s2457_s0  ;;  %s1924_s23 = smov 0  }
   0x2   :  { %2469 = sst [smem:[#allocation11_spill]] %s2462_s5  ;;  %s1926_s24 = smov 0  }
   0x3   :  { %s1928_s25 = smov 0   ;;  %s1930_s26 = smov 0  }
   0x4   :  { %s1932_s27 = smov 0  }
   0x5 LB: > { %2470 = sst [smem:[#allocation3_spill]] %s1854_s24  ;;  %s28_s28 = sadd.s32 1, %s1854_s24  ;;  %s1866_s27 = sphi %s1932_s27, %s16_s27   ;;  %s1862_s26 = sphi %s1930_s26, %s2485_s26   ;;  %s1858_s25 = sphi %s1928_s25, %s2484_s25   ;;  %s1854_s24 = sphi %s1926_s24, %s2483_s24   ;;  %s1850_s23 = sphi %s1924_s23, %s2482_s23   ;;  %s1846_s22 = sphi %s1922_s22, %s2481_s22   ;;  %s1842_s21 = sphi %s1920_s21, %s2480_s21  }
   0x6   : > { %2471 = sst [smem:[#allocation4_spill]] %s1858_s25  ;;  %p29_p0 = scmp.ge.s32.totalorder %s28_s28, 16 }
   0x7   : > { %2472 = sst [smem:[#allocation5_spill]] %s1862_s26  ;;  %s31_s29 = sadd.s32 1, %s1858_s25 }
   0x8   : > { %2473 = sst [smem:[#allocation6_spill]] %s1866_s27  ;;  %p1604_p1 = scmp.ge.s32.totalorder %s1866_s27, 1 }
   0x9   : > { %p368_p2 = scmp.lt.s32.totalorder %s1866_s27, 65  ;;  %s2487_s28 = smov (%p29_p0, %s28_s28), 0 }
   0xa   : > { %2474 = sst [smem:[#allocation7_spill]] %s2487_s28  ;;  %s2489_s29 = smov (!%p29_p0, %s31_s29), %s1858_s25 }
   0xb   : > { %p369_p3 = pnand %p1604_p1, %p368_p2  ;;  %p33_p4 = scmp.ge.s32.totalorder %s2489_s29, 2 }
   0xc   : > { %s35_s30 = sadd.s32 1, %s1862_s26  ;;  %s470_s7 = ssub.s32 (!%p369_p3), 15, %s1842_s21 }
   0xd   : > { %s2491_s29 = smov (%p33_p4, %s2489_s29), 0  ;;  %s2493_s30 = smov (!%p33_p4, %s35_s30), %s1862_s26 }
   0xe   : > { %2475 = sst [smem:[#allocation8_spill]] %s2491_s29  ;;  %p37_p5 = scmp.ge.s32.totalorder %s2493_s30, 2 }
   0xf   : > { %372 = sbr.rel (%p369_p3) target bundleno = 372 (0x174), region = 44  ;;  %p472_p6 = scmp.lt.s32.totalorder (!%p369_p3), %s1850_s23, 1 }
  0x10   : > { %s2495_s30 = smov (%p37_p5, %s2493_s30), 0  ;;  %s1605_s8 = sshll.u32 (!%p369_p3), %s470_s7, 1 }
  0x11   : > { %2476 = sst [smem:[#allocation9_spill]] %s2495_s30  ;;  %p474_p7 = scmp.lt.s32.totalorder (!%p369_p3), %s1846_s22, 1 }
  0x12   : > { %p476_p8 = scmp.lt.s32.totalorder (!%p369_p3), %s1605_s8, 31  ;;  %s486_s12 = sadd.s32 (!%p369_p3), 2, %s1850_s23 }
  0x13   : > { %p489_p9 = scmp.lt.s32.totalorder (!%p369_p3), %s486_s12, 3  ;;  %p510_p10 = scmp.lt.s32.totalorder (!%p369_p3), %s470_s7, 15 }
  0x14   : > { %s473_s9 = scalar_select %p472_p6, %s1850_s23, 1 }
  0x15   : > { %s2497_s22 = smov (!%p474_p7, %s1846_s22), 1  ;;  %s2499_s8 = smov (!%p476_p8, %s1605_s8), 31 }
  0x16   : > { %s1607_s10 = sshll.u32 %s473_s9, 6  ;;  %s1606_s11 = sshll.u32 %s2497_s22, 5 }
  0x17   : > { %s479_s13 = sadd.s32 %s1606_s11, %s2499_s8  ;;  %s1614_s16 = sshll.u32 %s2497_s22, 6 }
  0x18   : > { %s481_s14 = sadd.s32 %s1607_s10, %s479_s13  ;;  %s2477_s0 = sld [smem:[#allocation10_spill]] }
  0x19   : > { %s1608_s15 = sshll.u32 %s481_s14, 3  ;;  %s2478_s5 = sld [smem:[#allocation11_spill]] }
  0x1a   : > { %s2501_s12 = smov (!%p489_p9, %s486_s12), 3  ;;  %s2503_s7 = smov (!%p510_p10, %s470_s7), 15 }
  0x1b   : > { %s1611_s23 = sshll.u32 %s2501_s12, 6  ;;  %s1615_s8 = sshll.u32 %s2501_s12, 7 }
  0x1c   : > { %s498_s22 = sadd.s32 %s1611_s23, %s479_s13  ;;  %s1613_s9 = sshll.u32 %s2503_s7, 2 }
  0x1d   : > { %s1612_s10 = sshll.u32 %s498_s22, 3  ;;  %s514_s11 = sadd.s32 %s1614_s16, %s1613_s9 }
  0x1e   : > { %s1973_s19 = scalar_lea.vmem %s2477_s0, %s1608_s15  ;;  %s1987_s18 = scalar_lea.vmem %s2458_s1, %s1612_s10 }
  0x1f   : > { %s1978_s29 = scalar_lea.vmem %s2478_s5, %s1608_s15  ;;  %s516_s30 = sadd.s32 %s1615_s8, %s514_s11 }
  0x20   : > { %s1616_s20 = sshll.u32 %s516_s30, 3  ;;  %s1631_s0 = sshll.u32 %s2501_s12, 4 }
  0x21   : > { %s518_s26 = scalar_lea.vmem %s2459_s2, %s1616_s20  ;;  %s1996_s27 = scalar_lea.vmem %s2460_s3, %s1631_s0 }
  0x22   : > { %s531_s16 = scalar_lea.vmem %s2461_s4, %s2501_s12  ;;  %s2005_s9 = scalar_lea.vmem %s2463_s6, %s1608_s15 }
  0x23   : > { %p1627_p11 = scmp.ne.s32.totalorder %s1842_s21, 0 }
  0x25   : > { %568 = sbr.rel (%p1627_p11) target bundleno = 44 (0x2c), region = 48 }
  0x2a   : > { %vm569_vm0 = vcmask 523264   ;;  %v1868_v0 = vmov 0.0  }
  0x2b   : > { %570 = vst.msk [vmem:[#allocation2] sm:$0xff] %vm569_vm0, %v1868_v0  ;;  %571 = vst.msk [vmem:[#allocation2 + $0x8] sm:$0xff] %vm569_vm0, %v1868_v0 }
  0x2c PF: > { %v2008_v1 = vld [vmem:[%s518_s26 + $0x10] sm:$0xff]  ;;  %v2010_v2 = vld [vmem:[%s518_s26] sm:$0xff]  ;;  %v1869_v3 = vmov 15   ;;  %v2014_v4 = vld [vmem:[%s518_s26 + $0x18] sm:$0xff]  ;;  %v1870_v6 = vmov 14   ;;  %v1871_v7 = vmov 13   ;;  %v586_v18 = vlaneseq }
  0x2d   : > { %1706 = vset.pattern.permute.xlu1 %v1869_v3  ;;  %1705 = vset.pattern.permute.xlu0 %v1869_v3  ;;  %v2016_v5 = vld [vmem:[%s518_s26 + $0x8] sm:$0xff]  ;;  %v1872_v8 = vmov 12   ;;  %v1873_v9 = vmov 11   ;;  %v1874_v10 = vmov 10   ;;  %v1875_v11 = vmov 9   ;;  %v2079_v25 = vld [vmem:[%s1996_s27] sm:$0xff] }
  0x2e   : > { %618 = vperm.xlu1 %1706, %v2008_v1   ;;  %598 = vperm.xlu0 %1705, %v2010_v2   ;;  %v1876_v12 = vmov 8   ;;  %v1877_v13 = vmov 7   ;;  %v1878_v14 = vmov 6   ;;  %v1879_v15 = vmov 4   ;;  %v2070_v22 = vld [vmem:[%s1987_s18 + $0x8] sm:$0xff] }
  0x2f   : > { %v1880_v16 = vmov 3   ;;  %v1881_v17 = vmov 1   ;;  %v1882_v19 = vmov 0   ;;  %v2062_v20 = vshrl.u32 %v586_v18, 7  ;;  %v2087_v28 = vld [vmem:[%s1996_s27 + $0x8] sm:$0xff] }
  0x30   : > { %v1883_v23 = vmov 2   ;;  %v1884_v26 = vmov 5   ;;  %v2100_v32 = vld [vmem:[%s1973_s19 + $0x8] sm:$0xff]  ;;  %vm628_vm1 = vcmask 523264   ;;  %vm1345_vm2 = vcmask 1040384  }
  0x31   : > { %v2067_v21 = vsub.s32 7, %v2062_v20  ;;  %v2106_v33 = vmul.f32 %v2100_v32, %v2070_v22  ;;  %v2110_v34 = vsub.s32 6, %v2062_v20  ;;  %v2119_v45 = vsub.s32 5, %v2062_v20 }
  0x32   : > { %623 = vperm.xlu1 %1706, %v2014_v4   ;;  %603 = vperm.xlu0 %1705, %v2016_v5   ;;  %v584_v36 = vld [vmem:[#allocation2] sm:$0xff]  ;;  %v585_v43 = vld [vmem:[#allocation2 + $0x8] sm:$0xff]  ;;  %v2130_v60 = vsub.s32 4, %v2062_v20  ;;  %vm1347_vm3 = vcmask 1041408   ;;  %vm1349_vm4 = vcmask 1042432   ;;  %vm1351_vm5 = vcmask 1043456  }
  0x33   : > { %v589_v24 = vrot.slane %v2070_v22, %v2067_v21  ;;  %v609_v37 = vrot.slane %v2106_v33, %v2067_v21  ;;  %v641_v39 = vrot.slane %v2070_v22, %v2110_v34  ;;  %v688_v52 = vrot.slane %v2070_v22, %v2119_v45 }
  0x34   : > { %vm1353_vm6 = vcmask 1044480   ;;  %vm1355_vm7 = vcmask 1045504   ;;  %vm1357_vm8 = vcmask 1046528  }
  0x35   : > { %v590_v27 = vmul.f32 %v589_v24, %v2079_v25  ;;  %v591_v30 = vmul.f32 %v589_v24, %v2087_v28  ;;  %v642_v48 = vmul.f32 %v641_v39, %v2079_v25  ;;  %v643_v56 = vmul.f32 %v641_v39, %v2087_v28 }
  0x36   : > { %1708 = vset.pattern.permute.xlu1 %v1870_v6  ;;  %1707 = vset.pattern.permute.xlu0 %v1870_v6  ;;  %v689_v59 = vmul.f32 %v688_v52, %v2079_v25  ;;  %v690_v6 = vmul.f32 %v688_v52, %v2087_v28 }
  0x37   : > { %653 = vperm.xlu1 %1708, %v2016_v5   ;;  %649 = vperm.xlu0 %1707, %v2010_v2   ;;  %v592_v29 = vmul.f32 1.442695, %v590_v27  ;;  %v594_v31 = vmul.f32 1.442695, %v591_v30  ;;  %v644_v55 = vmul.f32 1.442695, %v642_v48  ;;  %v659_v27 = vrot.slane %v2106_v33, %v2110_v34 }
  0x38   : > { %v646_v63 = vmul.f32 1.442695, %v643_v56 }
  0x39   : > { %1748 = vpow2.f32 %v592_v29 }
  0x3a   : > { %1750 = vpow2.f32 %v594_v31 }
  0x3b   : > { %667 = vperm.xlu1 %1708, %v2008_v1   ;;  %671 = vperm.xlu0 %1707, %v2014_v4   ;;  %1752 = vpow2.f32 %v644_v55 }
  0x3c   : > { %1754 = vpow2.f32 %v646_v63 }
  0x3f   : > { %1709 = vset.pattern.permute.xlu1 %v1871_v7  ;;  %1710 = vset.pattern.permute.xlu0 %v1871_v7 }
  0x40   : > { %696 = vperm.xlu1 %1709, %v2010_v2   ;;  %700 = vperm.xlu0 %1710, %v2016_v5  }
  0x44   : > { %714 = vperm.xlu1 %1709, %v2008_v1   ;;  %1711 = vset.pattern.permute.xlu0 %v1872_v8 }
  0x45   : > { %743 = vperm.xlu0 %1711, %v2010_v2  }
  0x46   : > { %v1749_v35 = vpop.eup %1748 }
  0x47   : > { %v612_v38 = vmul.f32 %v1749_v35, %v584_v36  ;;  %v1751_v40 = vpop.eup %1750  ;;  %v2161_v35 = vsub.s32 2, %v2062_v20 }
  0x48   : > { %718 = vperm.xlu1 %1709, %v2014_v4   ;;  %v613_v47 = vmul.f32 %v1751_v40, %v585_v43  ;;  %v1753_v29 = vpop.eup %1752 }
  0x49   : > { %765 = vperm.xlu0 %1711, %v2014_v4   ;;  %v1755_v40 = vpop.eup %1754  ;;  %v829_v43 = vrot.slane %v2070_v22, %v2161_v35 }
  0x4b   : > { %v830_v52 = vmul.f32 %v829_v43, %v2079_v25  ;;  %v831_v56 = vmul.f32 %v829_v43, %v2087_v28 }
  0x4c   : > { %1712 = vset.pattern.permute.xlu1 %v1872_v8  ;;  %v2146_v8 = vsub.s32 3, %v2062_v20 }
  0x4d   : > { %747 = vperm.xlu1 %1712, %v2016_v5   ;;  %1714 = vset.pattern.permute.xlu0 %v1873_v9 }
  0x4e   : > { %794 = vperm.xlu0 %1714, %v2016_v5   ;;  %v782_v18 = vrot.slane %v2070_v22, %v2146_v8 }
  0x51   : > { %761 = vperm.xlu1 %1712, %v2008_v1  }
  0x52   : > { %1715 = vset.pattern.permute.xlu0 %v1874_v10 }
  0x53   : > { %837 = vperm.xlu0 %1715, %v2010_v2  }
  0x55   : > { %1713 = vset.pattern.permute.xlu1 %v1873_v9 }
  0x56   : > { %790 = vperm.xlu1 %1713, %v2010_v2  }
  0x57   : > { %859 = vperm.xlu0 %1715, %v2014_v4  }
  0x5a   : > { %808 = vperm.xlu1 %1713, %v2008_v1  }
  0x5b   : > { %1718 = vset.pattern.permute.xlu0 %v1875_v11 }
  0x5c   : > { %888 = vperm.xlu0 %1718, %v2016_v5  }
  0x5e   : > { %812 = vperm.xlu1 %1713, %v2014_v4  }
  0x60   : > { %1719 = vset.pattern.permute.xlu0 %v1876_v12 }
  0x61   : > { %931 = vperm.xlu0 %1719, %v2010_v2  }
  0x62   : > { %1716 = vset.pattern.permute.xlu1 %v1874_v10 }
  0x63   : > { %841 = vperm.xlu1 %1716, %v2016_v5  }
  0x65   : > { %953 = vperm.xlu0 %1719, %v2014_v4  }
  0x67   : > { %855 = vperm.xlu1 %1716, %v2008_v1  }
  0x69   : > { %1722 = vset.pattern.permute.xlu0 %v1877_v13 }
  0x6a   : > { %982 = vperm.xlu0 %1722, %v2016_v5  }
  0x6b   : > { %1717 = vset.pattern.permute.xlu1 %v1875_v11  ;;  %v693_v11 = vmul.f32 1.442695, %v690_v6 }
  0x6c   : > { %884 = vperm.xlu1 %1717, %v2010_v2  }
  0x6e   : > { %1724 = vset.pattern.permute.xlu0 %v1878_v14 }
  0x6f   : > { %1029 = vperm.xlu0 %1724, %v2016_v5  }
  0x70   : > { %902 = vperm.xlu1 %1717, %v2008_v1  }
  0x73   : > { %1726 = vset.pattern.permute.xlu0 %v1879_v15 }
  0x74   : > { %906 = vperm.xlu1 %1717, %v2014_v4   ;;  %1119 = vperm.xlu0 %1726, %v2010_v2  }
  0x78   : > { %1720 = vset.pattern.permute.xlu1 %v1876_v12  ;;  %1729 = vset.pattern.permute.xlu0 %v1880_v16 }
  0x79   : > { %935 = vperm.xlu1 %1720, %v2016_v5   ;;  %1170 = vperm.xlu0 %1729, %v2016_v5  }
  0x7d   : > { %949 = vperm.xlu1 %1720, %v2008_v1   ;;  %1731 = vset.pattern.permute.xlu0 %v1881_v17 }
  0x7e   : > { %1260 = vperm.xlu0 %1731, %v2010_v2  }
  0x81   : > { %1721 = vset.pattern.permute.xlu1 %v1877_v13 }
  0x82   : > { %978 = vperm.xlu1 %1721, %v2010_v2   ;;  %1734 = vset.pattern.permute.xlu0 %v1882_v19 }
  0x83   : > { %1311 = vperm.xlu0 %1734, %v2016_v5  }
  0x86   : > { %996 = vperm.xlu1 %1721, %v2008_v1  }
  0x87   : > { %1325 = vperm.xlu0 %1734, %v2008_v1  }
  0x8a   : > { %1723 = vset.pattern.permute.xlu1 %v1878_v14 }
  0x8b   : > { %1025 = vperm.xlu1 %1723, %v2010_v2   ;;  %1737 = vset.pattern.permute.xlu0 %v1883_v23 }
  0x8c   : > { %1231 = vperm.xlu0 %1737, %v2008_v1  }
  0x8f   : > { %1725 = vset.pattern.permute.xlu1 %v1884_v26 }
  0x90   : > { %1072 = vperm.xlu1 %1725, %v2010_v2   ;;  %1740 = vset.pattern.permute.xlu0 %v1880_v16 }
  0x91   : > { %1188 = vperm.xlu0 %1740, %v2014_v4  }
  0x94   : > { %1076 = vperm.xlu1 %1725, %v2016_v5  }
  0x95   : > { %1742 = vset.pattern.permute.xlu0 %v1884_v26 }
  0x96   : > { %1090 = vperm.xlu0 %1742, %v2008_v1  }
  0x98   : > { %1727 = vset.pattern.permute.xlu1 %v1879_v15 }
  0x99   : > { %1123 = vperm.xlu1 %1727, %v2016_v5  }
  0x9a   : > { %1745 = vset.pattern.permute.xlu0 %v1878_v14 }
  0x9b   : > { %1047 = vperm.xlu0 %1745, %v2014_v4  }
  0x9d   : > { %1728 = vset.pattern.permute.xlu1 %v1880_v16 }
  0x9e   : > { %1166 = vperm.xlu1 %1728, %v2010_v2  }
  0x9f   : > { %1747 = vset.pattern.permute.xlu0 %v1882_v19 }
  0xa2   : > { %1730 = vset.pattern.permute.xlu1 %v1883_v23 }
  0xa3   : > { %1213 = vperm.xlu1 %1730, %v2010_v2  }
  0xa7   : > { %1217 = vperm.xlu1 %1730, %v2016_v5  }
  0xa9   : > { %v619_v41 = vpop.permute.xlu1 %618  ;;  %v599_v42 = vpop.permute.xlu0 %598 }
  0xaa   : > { %v610_v44 = vmul.f32 %v609_v37, %v599_v42 }
  0xab   : > { %1732 = vset.pattern.permute.xlu1 %v1881_v17 }
  0xac   : > { %v614_v46 = vadd.f32 %v612_v38, %v610_v44  ;;  %1264 = vperm.xlu1 %1732, %v2016_v5   ;;  %v735_v5 = vrot.slane %v2070_v22, %v2130_v60 }
  0xad   : > { %v624_v49 = vpop.permute.xlu1 %623  ;;  %v604_v50 = vpop.permute.xlu0 %603 }
  0xae   : > { %v611_v51 = vmul.f32 %v609_v37, %v604_v50  ;;  %v626_v53 = vmul.f32 %v619_v41, %v614_v46  ;;  %v736_v7 = vmul.f32 %v735_v5, %v2079_v25  ;;  %v737_v12 = vmul.f32 %v735_v5, %v2087_v28 }
  0xaf   : > { %v784_v37 = vmul.f32 %v782_v18, %v2087_v28  ;;  %v662_v39 = vmul.f32 %v1753_v29, %v614_v46  ;;  %v706_v41 = vrot.slane %v2106_v33, %v2119_v45 }
  0xb0   : > { %v615_v54 = vadd.f32 %v613_v47, %v611_v51  ;;  %1733 = vset.pattern.permute.xlu1 %v1882_v19  ;;  %v629_v61 = vsel %vm628_vm1, %v626_v53, 0.0  ;;  %v740_v31 = vmul.f32 1.442695, %v737_v12 }
  0xb1   : > { %1307 = vperm.xlu1 %1733, %v2010_v2   ;;  %v691_v2 = vmul.f32 1.442695, %v689_v59  ;;  %v787_v47 = vmul.f32 1.442695, %v784_v37  ;;  %v2206_v37 = vsub.s32 0, %v2062_v20 }
  0xb2   : > { %v627_v57 = vmul.f32 %v624_v49, %v615_v54  ;;  %v654_v58 = vpop.permute.xlu1 %653  ;;  %v650_v10 = vpop.permute.xlu0 %649  ;;  %v663_v46 = vmul.f32 %v1755_v40, %v615_v54  ;;  %v800_v40 = vrot.slane %v2106_v33, %v2146_v8 }
  0xb3   : > { %1756 = vpow2.f32 %v691_v2  ;;  %v660_v38 = vmul.f32 %v659_v27, %v650_v10  ;;  %v661_v48 = vmul.f32 %v659_v27, %v654_v58  ;;  %v753_v2 = vrot.slane %v2106_v33, %v2130_v60 }
  0xb4   : > { %v630_v62 = vsel %vm628_vm1, %v627_v57, 0.0  ;;  %1758 = vpow2.f32 %v693_v11 }
  0xb5   : > { %v2134_v0 = vadd.f32 %v630_v62, %v629_v61  ;;  %1735 = vset.pattern.permute.xlu1 %v1881_v17  ;;  %v738_v17 = vmul.f32 1.442695, %v736_v7  ;;  %v2175_v49 = vadd.f32 %v662_v39, %v660_v38  ;;  %v2182_v57 = vadd.f32 %v663_v46, %v661_v48  ;;  %v2218_v48 = vld [vmem:[%s1987_s18] sm:$0xff] }
  0xb6   : > { %v2137_v3 = vpop.permute.xlu1 %667  ;;  %1278 = vperm.xlu1 %1735, %v2008_v1   ;;  %v2157_v30 = vpop.permute.xlu0 %671  ;;  %v834_v7 = vmul.f32 1.442695, %v831_v56 }
  0xb7   : > { %1760 = vpow2.f32 %v738_v17 }
  0xb8   : > { %1762 = vpow2.f32 %v740_v31 }
  0xba   : > { %1282 = vperm.xlu1 %1735, %v2014_v4  }
  0xbb   : > { %v697_v9 = vpop.permute.xlu1 %696  ;;  %v701_v50 = vpop.permute.xlu0 %700 }
  0xbc   : > { %v707_v53 = vmul.f32 %v706_v41, %v697_v9  ;;  %v708_v61 = vmul.f32 %v706_v41, %v701_v50  ;;  %v923_v50 = vrot.slane %v2070_v22, %v2206_v37 }
  0xbe   : > { %1736 = vset.pattern.permute.xlu1 %v1882_v19  ;;  %v783_v19 = vmul.f32 %v782_v18, %v2079_v25 }
  0xbf   : > { %1329 = vperm.xlu1 %1736, %v2014_v4   ;;  %v2153_v24 = vpop.permute.xlu1 %714 }
  0xc0   : > { %v785_v42 = vmul.f32 1.442695, %v783_v19  ;;  %v1757_v44 = vpop.eup %1756  ;;  %v744_v63 = vpop.permute.xlu0 %743 }
  0xc1   : > { %v709_v55 = vmul.f32 %v1757_v44, %v2175_v49  ;;  %v1759_v59 = vpop.eup %1758  ;;  %v754_v11 = vmul.f32 %v753_v2, %v744_v63 }
  0xc2   : > { %1764 = vpow2.f32 %v785_v42  ;;  %v710_v6 = vmul.f32 %v1759_v59, %v2182_v57  ;;  %v925_v59 = vmul.f32 %v923_v50, %v2087_v28 }
  0xc3   : > { %1738 = vset.pattern.permute.xlu1 %v1883_v23  ;;  %v2164_v36 = vpop.permute.xlu1 %718  ;;  %v2173_v23 = vsub.s32 1, %v2062_v20  ;;  %1766 = vpow2.f32 %v787_v47  ;;  %v2189_v62 = vadd.f32 %v709_v55, %v707_v53 }
  0xc4   : > { %1235 = vperm.xlu1 %1738, %v2014_v4   ;;  %v1761_v5 = vpop.eup %1760  ;;  %v2196_v12 = vadd.f32 %v710_v6, %v708_v61 }
  0xc5   : > { %v876_v54 = vrot.slane %v2070_v22, %v2173_v23  ;;  %v756_v17 = vmul.f32 %v1761_v5, %v2189_v62  ;;  %v1763_v27 = vpop.eup %1762 }
  0xc6   : > { %v757_v38 = vmul.f32 %v1763_v27, %v2196_v12 }
  0xc7   : > { %v877_v9 = vmul.f32 %v876_v54, %v2079_v25  ;;  %v878_v18 = vmul.f32 %v876_v54, %v2087_v28  ;;  %v2209_v39 = vadd.f32 %v756_v17, %v754_v11  ;;  %v847_v54 = vrot.slane %v2106_v33, %v2161_v35 }
  0xc8   : > { %1739 = vset.pattern.permute.xlu1 %v1880_v16  ;;  %v748_v51 = vpop.permute.xlu1 %747  ;;  %v832_v16 = vmul.f32 1.442695, %v830_v52  ;;  %v924_v52 = vmul.f32 %v923_v50, %v2079_v25  ;;  %v928_v17 = vmul.f32 1.442695, %v925_v59  ;;  %v2250_v50 = vld [vmem:[%s1973_s19] sm:$0xff] }
  0xc9   : > { %1184 = vperm.xlu1 %1739, %v2008_v1   ;;  %v755_v29 = vmul.f32 %v753_v2, %v748_v51  ;;  %v879_v31 = vmul.f32 1.442695, %v877_v9  ;;  %v881_v41 = vmul.f32 1.442695, %v878_v18 }
  0xca   : > { %1768 = vpow2.f32 %v832_v16  ;;  %v926_v2 = vmul.f32 1.442695, %v924_v52  ;;  %v2258_v52 = vrot.slane %v2106_v33, %v2206_v37 }
  0xcb   : > { %1770 = vpow2.f32 %v834_v7  ;;  %v2215_v43 = vadd.f32 %v757_v38, %v755_v29 }
  0xcc   : > { %v2184_v58 = vpop.permute.xlu1 %761  ;;  %1772 = vpow2.f32 %v879_v31 }
  0xcd   : > { %1741 = vset.pattern.permute.xlu1 %v1879_v15  ;;  %v2198_v15 = vpop.permute.xlu0 %765  ;;  %1774 = vpow2.f32 %v881_v41 }
  0xce   : > { %1137 = vperm.xlu1 %1741, %v2008_v1   ;;  %1776 = vpow2.f32 %v926_v2 }
  0xcf   : > { %v1765_v42 = vpop.eup %1764  ;;  %1778 = vpow2.f32 %v928_v17 }
  0xd0   : > { %v1767_v20 = vpop.eup %1766  ;;  %v803_v51 = vmul.f32 %v1765_v42, %v2209_v39 }
  0xd1   : > { %v791_v10 = vpop.permute.xlu1 %790  ;;  %v795_v44 = vpop.permute.xlu0 %794  ;;  %v804_v16 = vmul.f32 %v1767_v20, %v2215_v43 }
  0xd2   : > { %1141 = vperm.xlu1 %1741, %v2014_v4   ;;  %v801_v47 = vmul.f32 %v800_v40, %v791_v10  ;;  %v802_v53 = vmul.f32 %v800_v40, %v795_v44  ;;  %v894_v44 = vrot.slane %v2106_v33, %v2173_v23 }
  0xd4   : > { %v2229_v55 = vadd.f32 %v803_v51, %v801_v47  ;;  %v806_v7 = vadd.f32 %v804_v16, %v802_v53 }
  0xd5   : > { %v2203_v19 = vpop.permute.xlu1 %808  ;;  %v838_v56 = vpop.permute.xlu0 %837 }
  0xd6   : > { %1743 = vset.pattern.permute.xlu1 %v1884_v26  ;;  %v970_v26 = vrot.slane %v2218_v48, %v2067_v21  ;;  %v848_v6 = vmul.f32 %v847_v54, %v838_v56 }
  0xd7   : > { %1094 = vperm.xlu1 %1743, %v2014_v4   ;;  %v1769_v22 = vpop.eup %1768 }
  0xd8   : > { %v972_v63 = vmul.f32 %v970_v26, %v2087_v28  ;;  %v971_v5 = vmul.f32 %v970_v26, %v2079_v25  ;;  %v850_v10 = vmul.f32 %v1769_v22, %v2229_v55  ;;  %v1771_v11 = vpop.eup %1770  ;;  %v2254_v26 = vrot.slane %v2218_v48, %v2173_v23 }
  0xd9   : > { %v2220_v46 = vpop.permute.xlu1 %812  ;;  %v860_v9 = vpop.permute.xlu0 %859  ;;  %v851_v38 = vmul.f32 %v1771_v11, %v806_v7 }
  0xda   : > { %v973_v31 = vmul.f32 1.442695, %v971_v5  ;;  %v852_v40 = vadd.f32 %v850_v10, %v848_v6  ;;  %v975_v41 = vmul.f32 1.442695, %v972_v63  ;;  %v1773_v42 = vpop.eup %1772  ;;  %v722_v10 = vmul.f32 %v2164_v36, %v2196_v12 }
  0xdb   : > { %1744 = vset.pattern.permute.xlu1 %v1878_v14  ;;  %v1017_v14 = vrot.slane %v2218_v48, %v2110_v34  ;;  %v1775_v51 = vpop.eup %1774  ;;  %v675_v36 = vmul.f32 %v2157_v30, %v2182_v57  ;;  %v721_v12 = vmul.f32 %v2153_v24, %v2189_v62  ;;  %v1158_v24 = vrot.slane %v2218_v48, %v2146_v8 }
  0xdc   : > { %1043 = vperm.xlu1 %1744, %v2008_v1   ;;  %v1064_v1 = vrot.slane %v2218_v48, %v2119_v45  ;;  %1780 = vpow2.f32 %v973_v31  ;;  %v897_v16 = vmul.f32 %v1773_v42, %v852_v40  ;;  %v1777_v57 = vpop.eup %1776 }
  0xdd   : > { %v1019_v18 = vmul.f32 %v1017_v14, %v2087_v28  ;;  %v889_v20 = vpop.permute.xlu0 %888  ;;  %v1018_v56 = vmul.f32 %v1017_v14, %v2079_v25  ;;  %1782 = vpow2.f32 %v975_v41  ;;  %v816_v14 = vmul.f32 %v2220_v46, %v806_v7  ;;  %v1779_v42 = vpop.eup %1778 }
  0xde   : > { %v842_v61 = vpop.permute.xlu1 %841  ;;  %v896_v59 = vmul.f32 %v894_v44, %v889_v20  ;;  %v1065_v63 = vmul.f32 %v1064_v1, %v2079_v25  ;;  %v815_v46 = vmul.f32 %v2203_v19, %v2229_v55 }
  0xdf   : > { %v849_v27 = vmul.f32 %v847_v54, %v842_v61  ;;  %v1022_v47 = vmul.f32 1.442695, %v1019_v18  ;;  %v2263_v61 = vmul.f32 %v2250_v50, %v2218_v48  ;;  %v1020_v17 = vmul.f32 1.442695, %v1018_v56 }
  0xe0   : > { %1746 = vset.pattern.permute.xlu1 %v1877_v13  ;;  %v1066_v13 = vmul.f32 %v1064_v1, %v2087_v28  ;;  %v1111_v18 = vrot.slane %v2218_v48, %v2130_v60  ;;  %v769_v1 = vmul.f32 %v2198_v15, %v2215_v43  ;;  %v1067_v7 = vmul.f32 1.442695, %v1065_v63 }
  0xe1   : > { %1000 = vperm.xlu1 %1746, %v2014_v4   ;;  %v853_v4 = vadd.f32 %v851_v38, %v849_v27  ;;  %1784 = vpow2.f32 %v1022_v47  ;;  %v674_v27 = vmul.f32 %v2137_v3, %v2175_v49  ;;  %v724_v43 = vsel %vm628_vm1, %v722_v10, 0.0 }
  0xe2   : > { %v856_v29 = vpop.permute.xlu1 %855  ;;  %v1069_v22 = vmul.f32 1.442695, %v1066_v13  ;;  %v1112_v30 = vmul.f32 %v1111_v18, %v2079_v25  ;;  %v771_v19 = vsel %vm628_vm1, %v769_v1, 0.0  ;;  %v677_v38 = vsel %vm628_vm1, %v675_v36, 0.0 }
  0xe3   : > { %v863_v2 = vmul.f32 %v860_v9, %v853_v4  ;;  %v862_v5 = vmul.f32 %v856_v29, %v852_v40  ;;  %v898_v6 = vmul.f32 %v1775_v51, %v853_v4  ;;  %v768_v9 = vmul.f32 %v2184_v58, %v2209_v39  ;;  %v932_v4 = vpop.permute.xlu0 %931 }
  0xe4   : > { %1786 = vpow2.f32 %v1069_v22  ;;  %v818_v58 = vsel %vm628_vm1, %v816_v14, 0.0  ;;  %v676_v62 = vsel %vm628_vm1, %v674_v27, 0.0  ;;  %v723_v40 = vsel %vm628_vm1, %v721_v12, 0.0 }
  0xe5   : > { %v864_v29 = vsel %vm628_vm1, %v862_v5, 0.0  ;;  %v865_v3 = vsel %vm628_vm1, %v863_v2, 0.0  ;;  %v900_v15 = vadd.f32 %v898_v6, %v896_v59  ;;  %v770_v55 = vsel %vm628_vm1, %v768_v9, 0.0 }
  0xe6   : > { %v817_v41 = vsel %vm628_vm1, %v815_v46, 0.0  ;;  %v866_v13 = vadd.f32 %v865_v3, %v864_v29  ;;  %v942_v56 = vmul.f32 %v2258_v52, %v932_v4  ;;  %v678_v59 = vadd.f32 %v677_v38, %v676_v62 }
  0xe7   : > { %v885_v53 = vpop.permute.xlu1 %884  ;;  %v819_v47 = vadd.f32 %v818_v58, %v817_v41  ;;  %v988_v63 = vrot.slane %v2263_v61, %v2067_v21  ;;  %1788 = vpow2.f32 %v1020_v17  ;;  %v1113_v5 = vmul.f32 %v1111_v18, %v2087_v28  ;;  %v954_v18 = vpop.permute.xlu0 %953 }
  0xe8   : > { %v895_v54 = vmul.f32 %v894_v44, %v885_v53  ;;  %v725_v44 = vadd.f32 %v724_v43, %v723_v40  ;;  %v772_v53 = vadd.f32 %v771_v19, %v770_v55  ;;  %v867_v10 = vrot.slane %v866_v13, 4 }
  0xe9   : > { %v1781_v22 = vpop.eup %1780  ;;  %v945_v27 = vmul.f32 %v1779_v42, %v900_v15  ;;  %v820_v9 = vrot.slane %v819_v47, 4  ;;  %1790 = vpow2.f32 %v1067_v7  ;;  %v1159_v36 = vmul.f32 %v1158_v24, %v2079_v25 }
  0xea   : > { %v899_v33 = vadd.f32 %v897_v16, %v895_v54  ;;  %v1783_v6 = vpop.eup %1782  ;;  %v726_v12 = vrot.slane %v725_v44, 4  ;;  %v773_v46 = vrot.slane %v772_v53, 4  ;;  %v632_v17 = vrot.slane %v2134_v0, 4 }
  0xeb   : > { %v903_v11 = vpop.permute.xlu1 %902  ;;  %v1116_v43 = vmul.f32 1.442695, %v1113_v5  ;;  %v679_v58 = vrot.slane %v678_v59, 4  ;;  %v2312_v62 = vrot.slane %v2263_v61, %v2110_v34  ;;  %v2316_v19 = vrot.slane %v2263_v61, %v2130_v60  ;;  %v983_v60 = vpop.permute.xlu0 %982 }
  0xec   : > { %v909_v49 = vmul.f32 %v903_v11, %v899_v33  ;;  %v944_v16 = vmul.f32 %v1777_v57, %v899_v33  ;;  %v1114_v33 = vmul.f32 1.442695, %v1112_v30  ;;  %v821_v57 = vadd.f32 %v820_v9, %v819_v47 }
  0xed   : > { %v727_v55 = vadd.f32 %v726_v12, %v725_v44  ;;  %v633_v42 = vadd.f32 %v632_v17, %v2134_v0  ;;  %v680_v47 = vadd.f32 %v679_v58, %v678_v59  ;;  %v1205_v5 = vrot.slane %v2218_v48, %v2161_v35 }
  0xee   : > { %v911_v20 = vsel %vm628_vm1, %v909_v49, 0.0  ;;  %v2303_v1 = vpop.eup %1784  ;;  %v946_v29 = vadd.f32 %v944_v16, %v942_v56  ;;  %1792 = vpow2.f32 %v1114_v33 }
  0xef   : > { %v907_v39 = vpop.permute.xlu1 %906  ;;  %1794 = vpow2.f32 %v1116_v43 }
  0xf0   : > { %v910_v31 = vmul.f32 %v907_v39, %v900_v15  ;;  %v868_v39 = vadd.f32 %v867_v10, %v866_v13  ;;  %v1161_v13 = vmul.f32 1.442695, %v1159_v36  ;;  %v991_v44 = vmul.f32 %v1781_v22, %v946_v29 }
  0xf1   : > { %v2308_v15 = vpop.eup %1786  ;;  %v2325_v36 = vrot.slane %v2263_v61, %v2119_v45  ;;  %v634_v22 = vrot.slane %v633_v42, 2 }
  0xf2   : > { %v912_v51 = vsel %vm628_vm1, %v910_v31, 0.0  ;;  %v774_v31 = vadd.f32 %v773_v46, %v772_v53  ;;  %v869_v34 = vrot.slane %v868_v39, 2  ;;  %v728_v53 = vrot.slane %v727_v55, 2 }
  0xf3   : > { %v913_v54 = vadd.f32 %v912_v51, %v911_v20  ;;  %v822_v51 = vrot.slane %v821_v57, 2  ;;  %1796 = vpow2.f32 %v1161_v13  ;;  %v635_v58 = vadd.f32 %v634_v22, %v633_v42 }
  0xf4   : > { %v936_v2 = vpop.permute.xlu1 %935  ;;  %v775_v16 = vrot.slane %v774_v31, 2  ;;  %v870_v9 = vadd.f32 %v869_v34, %v868_v39  ;;  %v729_v17 = vadd.f32 %v728_v53, %v727_v55 }
  0xf5   : > { %v914_v14 = vrot.slane %v913_v54, 4  ;;  %v943_v11 = vmul.f32 %v2258_v52, %v936_v2  ;;  %v1160_v52 = vmul.f32 %v1158_v24, %v2087_v28  ;;  %v990_v2 = vmul.f32 %v988_v63, %v983_v60 }
  0xf6   : > { %v871_v45 = vrot.slane %v870_v9, 1  ;;  %v730_v55 = vrot.slane %v729_v17, 1 }
  0xf7   : > { %v947_v21 = vadd.f32 %v945_v27, %v943_v11  ;;  %v915_v3 = vadd.f32 %v914_v14, %v913_v54  ;;  %v1163_v20 = vmul.f32 1.442695, %v1160_v52  ;;  %v1789_v11 = vpop.eup %1788  ;;  %v681_v27 = vrot.slane %v680_v47, 2 }
  0xf8   : > { %v950_v49 = vpop.permute.xlu1 %949  ;;  %v1206_v52 = vmul.f32 %v1205_v5, %v2079_v25 }
  0xf9   : > { %v957_v7 = vmul.f32 %v954_v18, %v947_v21  ;;  %v956_v30 = vmul.f32 %v950_v49, %v946_v29  ;;  %v916_v40 = vrot.slane %v915_v3, 2  ;;  %v992_v14 = vmul.f32 %v1783_v6, %v947_v21  ;;  %v1791_v29 = vpop.eup %1790 }
  0xfa   : > { %v776_v6 = vadd.f32 %v775_v16, %v774_v31  ;;  %1798 = vpow2.f32 %v1163_v20  ;;  %v1207_v21 = vmul.f32 %v1205_v5, %v2087_v28  ;;  %v682_v43 = vadd.f32 %v681_v27, %v680_v47 }
  0xfb   : > { %v958_v24 = vsel %vm628_vm1, %v956_v30, 0.0  ;;  %v959_v38 = vsel %vm628_vm1, %v957_v7, 0.0  ;;  %v917_v10 = vadd.f32 %v916_v40, %v915_v3  ;;  %v2330_v3 = vadd.f32 %v992_v14, %v990_v2 }
  0xfc   : > { %v960_v41 = vadd.f32 %v959_v38, %v958_v24  ;;  %v777_v31 = vrot.slane %v776_v6, 1  ;;  %v1030_v24 = vpop.permute.xlu0 %1029  ;;  %v872_v20 = vadd.f32 %v871_v45, %v870_v9  ;;  %v1208_v60 = vmul.f32 1.442695, %v1206_v52  ;;  %v1378_v45 = vld [vmem:[%s1978_s29 + $0x8] sm:$0xff] }
  0xfd   : > { %v979_v4 = vpop.permute.xlu1 %978  ;;  %v918_v18 = vrot.slane %v917_v10, 1  ;;  %v1037_v13 = vmul.f32 %v2312_v62, %v1030_v24  ;;  %v1039_v34 = vmul.f32 %v2303_v1, %v2330_v3  ;;  %v731_v5 = vadd.f32 %v730_v55, %v729_v17 }
  0xfe   : > { %v961_v56 = vrot.slane %v960_v41, 4  ;;  %v989_v54 = vmul.f32 %v988_v63, %v979_v4  ;;  %v823_v63 = vadd.f32 %v822_v51, %v821_v57  ;;  %v1793_v57 = vpop.eup %1792  ;;  %v683_v4 = vrot.slane %v682_v43, 1 }
  0xff   : > { %v1795_v42 = vpop.eup %1794  ;;  %v778_v53 = vadd.f32 %v777_v31, %v776_v6  ;;  %v2350_v14 = vadd.f32 %v1039_v34, %v1037_v13  ;;  %1800 = vpow2.f32 %v1208_v60  ;;  %v1210_v17 = vmul.f32 1.442695, %v1207_v21 }
 0x100   : > { %v962_v0 = vadd.f32 %v961_v56, %v960_v41  ;;  %v993_v59 = vadd.f32 %v991_v44, %v989_v54  ;;  %v824_v39 = vrot.slane %v823_v63, 1  ;;  %v919_v41 = vadd.f32 %v918_v18, %v917_v10 }
 0x101   : > { %v997_v33 = vpop.permute.xlu1 %996  ;;  %v636_v56 = vrot.slane %v635_v58, 1  ;;  %v1254_v6 = vmul.f32 %v2254_v26, %v2087_v28  ;;  %1802 = vpow2.f32 %v1210_v17 }
 0x102   : > { %v963_v12 = vrot.slane %v962_v0, 2  ;;  %v2327_v46 = vmul.f32 %v997_v33, %v993_v59  ;;  %v1038_v40 = vmul.f32 %v1789_v11, %v993_v59  ;;  %v825_v54 = vadd.f32 %v824_v39, %v823_v63  ;;  %v1797_v33 = vpop.eup %1796  ;;  %v1120_v39 = vpop.permute.xlu0 %1119 }
 0x103   : > { %v684_v59 = vadd.f32 %v683_v4, %v682_v43  ;;  %v1253_v11 = vmul.f32 %v2254_v26, %v2079_v25  ;;  %v637_v22 = vadd.f32 %v636_v56, %v635_v58  ;;  %v1299_v58 = vrot.slane %v2218_v48, %v2206_v37 }
 0x104   : > { %v964_v49 = vadd.f32 %v963_v12, %v962_v0  ;;  %v1130_v26 = vmul.f32 %v2316_v19, %v1120_v39 }
 0x105   : > { %v1255_v21 = vmul.f32 1.442695, %v1253_v11  ;;  %v1301_v48 = vmul.f32 %v1299_v58, %v2087_v28 }
 0x106   : > { %v965_v7 = vrot.slane %v964_v49, 1  ;;  %v1026_v30 = vpop.permute.xlu1 %1025 }
 0x107   : > { %v1036_v38 = vmul.f32 %v2312_v62, %v1026_v30  ;;  %v2345_v62 = vld [vmem:[%s531_s16] ss:$0 sm:$0xff]  ;;  %1804 = vpow2.f32 %v1255_v21  ;;  %v1304_v34 = vmul.f32 1.442695, %v1301_v48 }
 0x108   : > { %v966_v47 = vadd.f32 %v965_v7, %v964_v49  ;;  %v1374_v9 = vmul.f32 %v2345_v62, %v2100_v32  ;;  %v1799_v49 = vpop.eup %1798  ;;  %v1086_v32 = vmul.f32 %v2308_v15, %v2350_v14  ;;  %v1257_v15 = vmul.f32 1.442695, %v1254_v6 }
 0x109   : > { %v2337_v51 = vadd.f32 %v1038_v40, %v1036_v38 }
 0x10a   : > { %v1359_v44 = vsel %vm1345_vm2, %v966_v47, %v919_v41  ;;  %v1300_v41 = vmul.f32 %v1299_v58, %v2079_v25  ;;  %1806 = vpow2.f32 %v1257_v15 }
 0x10b   : > { %v1360_v1 = vsel %vm1347_vm3, %v1359_v44, %v872_v20  ;;  %v1073_v16 = vpop.permute.xlu1 %1072  ;;  %v1085_v2 = vmul.f32 %v1791_v29, %v2337_v51  ;;  %v1171_v20 = vpop.permute.xlu0 %1170  ;;  %1808 = vpow2.f32 %v1304_v34 }
 0x10c   : > { %v1083_v10 = vmul.f32 %v2325_v36, %v1073_v16  ;;  %v1361_v0 = vsel %vm1349_vm4, %v1360_v1, %v825_v54  ;;  %v1801_v60 = vpop.eup %1800  ;;  %v1223_v54 = vrot.slane %v2263_v61, %v2161_v35 }
 0x10d   : > { %v1362_v27 = vsel %vm1351_vm5, %v1361_v0, %v778_v53 }
 0x10e   : > { %v2358_v63 = vadd.f32 %v1085_v2, %v1083_v10  ;;  %v1363_v12 = vsel %vm1353_vm6, %v1362_v27, %v731_v5  ;;  %v1803_v2 = vpop.eup %1802  ;;  %v1270_v5 = vrot.slane %v2263_v61, %v2173_v23 }
 0x10f   : > { %v1077_v29 = vpop.permute.xlu1 %1076  ;;  %v1364_v18 = vsel %vm1355_vm7, %v1363_v12, %v684_v59  ;;  %v1261_v11 = vpop.permute.xlu0 %1260 }
 0x110   : > { %v1084_v43 = vmul.f32 %v2325_v36, %v1077_v29  ;;  %v1365_v52 = vsel %vm1357_vm8, %v1364_v18, %v637_v22  ;;  %v1132_v55 = vmul.f32 %v1793_v57, %v2358_v63  ;;  %v2376_v36 = vld [vmem:[%s1978_s29] sm:$0xff]  ;;  %v1176_v57 = vrot.slane %v2263_v61, %v2146_v8 }
 0x111   : > { %v1376_v7 = vadd.f32 %v1374_v9, %v1365_v52  ;;  %v1271_v22 = vmul.f32 %v1270_v5, %v1261_v11  ;;  %v1317_v29 = vrot.slane %v2263_v61, %v2206_v37 }
 0x112   : > { %v2372_v30 = vadd.f32 %v1086_v32, %v1084_v43  ;;  %v2386_v13 = vadd.f32 %v1132_v55, %v1130_v26  ;;  %v1178_v56 = vmul.f32 %v1176_v57, %v1171_v20 }
 0x113   : > { %v1380_v31 = vadd.f32 %v1378_v45, %v1376_v7  ;;  %v1312_v43 = vpop.permute.xlu0 %1311 }
 0x114   : > { %v1124_v24 = vpop.permute.xlu1 %1123  ;;  %v1133_v38 = vmul.f32 %v1795_v42, %v2372_v30  ;;  %v1302_v42 = vmul.f32 1.442695, %v1300_v41  ;;  %v1805_v0 = vpop.eup %1804  ;;  %v1319_v45 = vmul.f32 %v1317_v29, %v1312_v43 }
 0x115   : > { %v1131_v40 = vmul.f32 %v2316_v19, %v1124_v24  ;;  %1382 = vst.msk [vmem:[%s2005_s9 + $0x8] sm:$0xff] %vm628_vm1, %v1380_v31  ;;  %v1179_v19 = vmul.f32 %v1797_v33, %v2386_v13 }
 0x116   : > { %1810 = vpow2.f32 %v1302_v42 }
 0x117   : > { %v2388_v47 = vadd.f32 %v1133_v38, %v1131_v40  ;;  %v1807_v33 = vpop.eup %1806  ;;  %v1326_v15 = vpop.permute.xlu0 %1325 }
 0x119   : > { %v1167_v4 = vpop.permute.xlu1 %1166  ;;  %v1180_v25 = vmul.f32 %v1799_v49, %v2388_v47  ;;  %v1809_v49 = vpop.eup %1808 }
 0x11a   : > { %v1177_v28 = vmul.f32 %v1176_v57, %v1167_v4 }
 0x11b   : > { %v1182_v16 = vadd.f32 %v1180_v25, %v1178_v56  ;;  %v1232_v24 = vpop.permute.xlu0 %1231 }
 0x11c   : > { %v1181_v8 = vadd.f32 %v1179_v19, %v1177_v28 }
 0x11d   : > { %v1227_v9 = vmul.f32 %v1803_v2, %v1182_v16 }
 0x11e   : > { %v1214_v44 = vpop.permute.xlu1 %1213  ;;  %v1226_v53 = vmul.f32 %v1801_v60, %v1181_v8 }
 0x11f   : > { %v1224_v1 = vmul.f32 %v1223_v54, %v1214_v44  ;;  %v1189_v20 = vpop.permute.xlu0 %1188 }
 0x120   : > { %v1192_v56 = vmul.f32 %v1189_v20, %v1182_v16 }
 0x121   : > { %v1228_v10 = vadd.f32 %v1226_v53, %v1224_v1 }
 0x122   : > { %v1218_v59 = vpop.permute.xlu1 %1217 }
 0x123   : > { %v1225_v27 = vmul.f32 %v1223_v54, %v1218_v59  ;;  %v1273_v35 = vmul.f32 %v1805_v0, %v1228_v10  ;;  %v1811_v23 = vpop.eup %1810  ;;  %v1238_v57 = vmul.f32 %v1232_v24, %v1228_v10  ;;  %v1194_v0 = vsel %vm628_vm1, %v1192_v56, 0.0  ;;  %v1091_v16 = vpop.permute.xlu0 %1090 }
 0x125   : > { %v1229_v12 = vadd.f32 %v1227_v9, %v1225_v27  ;;  %v1275_v32 = vadd.f32 %v1273_v35, %v1271_v22  ;;  %v1240_v54 = vsel %vm628_vm1, %v1238_v57, 0.0 }
 0x127   : > { %v1265_v17 = vpop.permute.xlu1 %1264  ;;  %v1274_v6 = vmul.f32 %v1807_v33, %v1229_v12  ;;  %v1320_v7 = vmul.f32 %v1811_v23, %v1275_v32 }
 0x128   : > { %v1272_v18 = vmul.f32 %v1270_v5, %v1265_v17 }
 0x12a   : > { %v1276_v52 = vadd.f32 %v1274_v6, %v1272_v18 }
 0x12c   : > { %v1308_v58 = vpop.permute.xlu1 %1307  ;;  %v1321_v39 = vmul.f32 %v1809_v49, %v1276_v52  ;;  %v1097_v49 = vmul.f32 %v1091_v16, %v2358_v63 }
 0x12d   : > { %v1318_v21 = vmul.f32 %v1317_v29, %v1308_v58  ;;  %v1048_v58 = vpop.permute.xlu0 %1047 }
 0x12e   : > { %v1323_v26 = vadd.f32 %v1321_v39, %v1319_v45 }
 0x12f   : > { %v1322_v55 = vadd.f32 %v1320_v7, %v1318_v21 }
 0x130   : > { %1344 = vst.msk [vmem:[#allocation2 + $0x8] sm:$0xff] %vm628_vm1, %v1323_v26 }
 0x131   : > { %1343 = vst.msk [vmem:[#allocation2] sm:$0xff] %vm628_vm1, %v1322_v55  ;;  %v1279_v37 = vpop.permute.xlu1 %1278  ;;  %v1332_v48 = vmul.f32 %v1326_v15, %v1322_v55  ;;  %v1099_v55 = vsel %vm628_vm1, %v1097_v49, 0.0 }
 0x132   : > { %v1285_v4 = vmul.f32 %v1279_v37, %v1275_v32 }
 0x133   : > { %v1334_v60 = vsel %vm628_vm1, %v1332_v48, 0.0 }
 0x134   : > { %v1287_v53 = vsel %vm628_vm1, %v1285_v4, 0.0 }
 0x135   : > { %v1283_v61 = vpop.permute.xlu1 %1282 }
 0x136   : > { %v1286_v40 = vmul.f32 %v1283_v61, %v1276_v52 }
 0x138   : > { %v1288_v19 = vsel %vm628_vm1, %v1286_v40, 0.0 }
 0x139   : > { %v1289_v5 = vadd.f32 %v1288_v19, %v1287_v53 }
 0x13a   : > { %v1330_v31 = vpop.permute.xlu1 %1329 }
 0x13b   : > { %v1333_v38 = vmul.f32 %v1330_v31, %v1323_v26  ;;  %v1290_v33 = vrot.slane %v1289_v5, 4 }
 0x13d   : > { %v1335_v42 = vsel %vm628_vm1, %v1333_v38, 0.0  ;;  %v1291_v6 = vadd.f32 %v1290_v33, %v1289_v5 }
 0x13e   : > { %v1336_v25 = vadd.f32 %v1335_v42, %v1334_v60 }
 0x13f   : > { %v1236_v41 = vpop.permute.xlu1 %1235  ;;  %v1292_v39 = vrot.slane %v1291_v6, 2 }
 0x140   : > { %v1239_v34 = vmul.f32 %v1236_v41, %v1229_v12  ;;  %v1337_v59 = vrot.slane %v1336_v25, 4 }
 0x141   : > { %v1293_v31 = vadd.f32 %v1292_v39, %v1291_v6 }
 0x142   : > { %v1241_v28 = vsel %vm628_vm1, %v1239_v34, 0.0  ;;  %v1338_v35 = vadd.f32 %v1337_v59, %v1336_v25 }
 0x143   : > { %v1242_v1 = vadd.f32 %v1241_v28, %v1240_v54  ;;  %v1294_v20 = vrot.slane %v1293_v31, 1 }
 0x144   : > { %v1185_v44 = vpop.permute.xlu1 %1184  ;;  %v1339_v43 = vrot.slane %v1338_v35, 2 }
 0x145   : > { %v1191_v2 = vmul.f32 %v1185_v44, %v1181_v8  ;;  %v1243_v27 = vrot.slane %v1242_v1, 4  ;;  %v1295_v5 = vadd.f32 %v1294_v20, %v1293_v31 }
 0x146   : > { %v1340_v37 = vadd.f32 %v1339_v43, %v1338_v35 }
 0x147   : > { %v1193_v10 = vsel %vm628_vm1, %v1191_v2, 0.0  ;;  %v1244_v29 = vadd.f32 %v1243_v27, %v1242_v1 }
 0x148   : > { %v1195_v11 = vadd.f32 %v1194_v0, %v1193_v10  ;;  %v1341_v41 = vrot.slane %v1340_v37, 1  ;;  %v1005_v0 = vsel %vm628_vm1, %v2327_v46, 0.0 }
 0x149   : > { %v1138_v9 = vpop.permute.xlu1 %1137  ;;  %v1245_v45 = vrot.slane %v1244_v29, 2 }
 0x14a   : > { %v1196_v22 = vrot.slane %v1195_v11, 4  ;;  %v1144_v12 = vmul.f32 %v1138_v9, %v2386_v13  ;;  %v1342_v25 = vadd.f32 %v1341_v41, %v1340_v37 }
 0x14b   : > { %v1246_v63 = vadd.f32 %v1245_v45, %v1244_v29 }
 0x14c   : > { %v1197_v18 = vadd.f32 %v1196_v22, %v1195_v11  ;;  %v1146_v32 = vsel %vm628_vm1, %v1144_v12, 0.0  ;;  %v1346_v9 = vsel %vm1345_vm2, %v1342_v25, %v1295_v5 }
 0x14d   : > { %v1142_v17 = vpop.permute.xlu1 %1141  ;;  %v1247_v4 = vrot.slane %v1246_v63, 1 }
 0x14e   : > { %v1145_v8 = vmul.f32 %v1142_v17, %v2388_v47  ;;  %v1198_v21 = vrot.slane %v1197_v18, 2  ;;  %v1051_v47 = vmul.f32 %v1048_v58, %v2350_v14 }
 0x14f   : > { %v1248_v53 = vadd.f32 %v1247_v4, %v1246_v63 }
 0x150   : > { %v1147_v23 = vsel %vm628_vm1, %v1145_v8, 0.0  ;;  %v1199_v24 = vadd.f32 %v1198_v21, %v1197_v18 }
 0x151   : > { %v1148_v52 = vadd.f32 %v1147_v23, %v1146_v32  ;;  %v1348_v16 = vsel %vm1347_vm3, %v1346_v9, %v1248_v53 }
 0x152   : > { %v1095_v7 = vpop.permute.xlu1 %1094  ;;  %v1200_v28 = vrot.slane %v1199_v24, 1 }
 0x153   : > { %v1149_v13 = vrot.slane %v1148_v52, 4  ;;  %v1098_v26 = vmul.f32 %v1095_v7, %v2372_v30  ;;  %v1053_v30 = vsel %vm628_vm1, %v1051_v47, 0.0 }
 0x155   : > { %v1150_v61 = vadd.f32 %v1149_v13, %v1148_v52  ;;  %v1100_v15 = vsel %vm628_vm1, %v1098_v26, 0.0  ;;  %v1373_v52 = vmul.f32 %v2345_v62, %v2250_v50 }
 0x156   : > { %v1101_v38 = vadd.f32 %v1100_v15, %v1099_v55 }
 0x157   : > { %v1151_v48 = vrot.slane %v1150_v61, 2  ;;  %v1044_v40 = vpop.permute.xlu1 %1043 }
 0x158   : > { %v1102_v57 = vrot.slane %v1101_v38, 4  ;;  %v1050_v34 = vmul.f32 %v1044_v40, %v2337_v51  ;;  %v1201_v51 = vadd.f32 %v1200_v28, %v1199_v24 }
 0x159   : > { %v1152_v42 = vadd.f32 %v1151_v48, %v1150_v61 }
 0x15a   : > { %v1103_v14 = vadd.f32 %v1102_v57, %v1101_v38  ;;  %v1052_v19 = vsel %vm628_vm1, %v1050_v34, 0.0  ;;  %v1350_v12 = vsel %vm1349_vm4, %v1348_v16, %v1201_v51 }
 0x15b   : > { %v1153_v60 = vrot.slane %v1152_v42, 1  ;;  %v1054_v56 = vadd.f32 %v1053_v30, %v1052_v19 }
 0x15c   : > { %v1104_v54 = vrot.slane %v1103_v14, 2  ;;  %v1001_v44 = vpop.permute.xlu1 %1000 }
 0x15d   : > { %v1055_v1 = vrot.slane %v1054_v56, 4  ;;  %v1004_v2 = vmul.f32 %v1001_v44, %v2330_v3  ;;  %v1154_v59 = vadd.f32 %v1153_v60, %v1152_v42 }
 0x15e   : > { %v1105_v10 = vadd.f32 %v1104_v54, %v1103_v14 }
 0x15f   : > { %v1056_v11 = vadd.f32 %v1055_v1, %v1054_v56  ;;  %v1006_v27 = vsel %vm628_vm1, %v1004_v2, 0.0  ;;  %v1352_v17 = vsel %vm1351_vm5, %v1350_v12, %v1154_v59 }
 0x160   : > { %v1106_v33 = vrot.slane %v1105_v10, 1  ;;  %v1007_v22 = vadd.f32 %v1006_v27, %v1005_v0 }
 0x161   : > { %v1057_v35 = vrot.slane %v1056_v11, 2 }
 0x162   : > { %v1107_v3 = vadd.f32 %v1106_v33, %v1105_v10  ;;  %v1008_v29 = vrot.slane %v1007_v22, 4 }
 0x163   : > { %v1058_v6 = vadd.f32 %v1057_v35, %v1056_v11 }
 0x164   : > { %v1354_v46 = vsel %vm1353_vm6, %v1352_v17, %v1107_v3  ;;  %v1009_v18 = vadd.f32 %v1008_v29, %v1007_v22 }
 0x165   : > { %v1059_v8 = vrot.slane %v1058_v6, 1 }
 0x166   : > { %v1010_v49 = vrot.slane %v1009_v18, 2 }
 0x167   : > { %v1060_v43 = vadd.f32 %v1059_v8, %v1058_v6 }
 0x168   : > { %v1011_v32 = vadd.f32 %v1010_v49, %v1009_v18 }
 0x169   : > { %v1356_v23 = vsel %vm1355_vm7, %v1354_v46, %v1060_v43 }
 0x16a   : > { %v1012_v45 = vrot.slane %v1011_v32, 1 }
 0x16c   : > { %v1013_v58 = vadd.f32 %v1012_v45, %v1011_v32 }
 0x16e   : > { %v1358_v39 = vsel %vm1357_vm8, %v1356_v23, %v1013_v58 }
 0x16f   : > { %v1375_v21 = vadd.f32 %v1373_v52, %v1358_v39 }
 0x171   : > { %v1379_v7 = vadd.f32 %v2376_v36, %v1375_v21 }
 0x173   : > { %1381 = vst.msk [vmem:[%s2005_s9] sm:$0xff] %vm628_vm1, %v1379_v7 }
 0x174 PF: > { %s2479_s21 = sld [smem:[#allocation6_spill]] }
 0x175   : > { %s2481_s22 = sld [smem:[#allocation4_spill]] }
 0x176   : > { %s2482_s23 = sld [smem:[#allocation5_spill]] }
 0x177   : > { %s2483_s24 = sld [smem:[#allocation7_spill]] }
 0x178   : > { %s2484_s25 = sld [smem:[#allocation8_spill]] }
 0x179   : > { %s2485_s26 = sld [smem:[#allocation9_spill]] }
 0x17a   : > { %s16_s27 = sadd.s32 1, %s2479_s21   ;;  %s2480_s21 = sld [smem:[#allocation3_spill]] }
 0x17b   : > { %p13_p12 = scmp.ge.s32.totalorder %s16_s27, 66  }
 0x17d   :  { %15 = sbr.rel (!%p13_p12) target bundleno = 5 (0x5), region = 93 }

// kernel: _lambda_.11
= control target key start
LH: loop header
LB: loop body
LE: loop exit
PB: predicated region body
PF: predicated region fallthrough
CT: control target
= control target key end

     0   :  { %11 = vsyncpa [#allocation3], 0  ;;  %s3015_s0 = inlined_call_operand.vmem [shape: f32[512,64], index: 0, kind: input, shape index: {}]   ;;  %s3016_s1 = inlined_call_operand.vmem [shape: f32[512,64], index: 1, kind: input, shape index: {}]   ;;  %s3017_s2 = inlined_call_operand.vmem [shape: f32[1,64], index: 2, kind: input, shape index: {}]   ;;  %s3018_s3 = inlined_call_operand.vmem [shape: f32[1,64], index: 3, kind: input, shape index: {}]   ;;  %s3019_s4 = inlined_call_operand.vmem [shape: bf16[64,32], index: 4, kind: input, shape index: {}]   ;;  %s3020_s5 = inlined_call_operand.vmem [shape: f32[512,32], index: 5, kind: input, shape index: {}]   ;;  %s3021_s6 = inlined_call_operand.hbm [shape: f32[512,32], index: 6, kind: output, shape index: {}]  }
   0x1   :  { %13 = vsyncpa [#allocation3 + $0x1], 0  ;;  %s1980_s21 = smov 0   ;;  %s1982_s22 = smov 0  }
   0x2   :  { %s1984_s23 = smov 0   ;;  %s1986_s24 = smov 0  }
   0x3 LB: > { %s2001_s25 = sadd.s32 4294967295, %s1940_s24   ;;  %s1536_s26 = sadd.s32 4294967294, %s1940_s24   ;;  %s1940_s24 = sphi %s1986_s24, %s3135_s24   ;;  %s1936_s23 = sphi %s1984_s23, %s3134_s23   ;;  %s1932_s22 = sphi %s1982_s22, %s3133_s22   ;;  %s1928_s21 = sphi %s1980_s21, %s3132_s21  }
   0x4   : > { %s2005_s27 = sadd.s32 1, %s1940_s24   ;;  %s167_s28 = sadd.s32 1, %s1936_s23 }
   0x5   : > { %s164_s29 = ssub.s32 %s1940_s24, %s2005_s27  ;;  %p177_p0 = scmp.ne.s32.totalorder %s1936_s23, %s1932_s22 }
   0x6   : > { %p165_p1 = scmp.eq.s32.totalorder %s164_s29, 0  ;;  %p178_p2 = scmp.eq.s32.totalorder %s2001_s25, 1 }
   0x7   : > { %p183_p3 = scmp.ne.s32.totalorder %s1932_s22, %s1928_s21  ;;  %p184_p4 = scmp.eq.s32.totalorder %s1536_s26, 1 }
   0x8   : > { %s2016_s30 = scalar_select %p165_p1, %s1936_s23, %s167_s28  }
   0x9   : > { %p2018_p5 = por %p178_p2, %p177_p0  ;;  %p2022_p6 = por %p184_p4, %p183_p3 }
   0xa   : > { %p1539_p7 = scmp.ge.s32.totalorder %s1940_s24, 1  ;;  %p238_p8 = scmp.lt.s32.totalorder %s1940_s24, 3 }
   0xc   : > { %p239_p9 = pnand %p1539_p7, %p238_p8 }
   0xe   : > { %242 = sbr.rel (%p239_p9) target bundleno = 617 (0x269), region = 44 }
  0x13   : > { %s1541_s9 = sshll.u32 %s2001_s25, 5  ;;  %vm330_vm0 = vcmask 523264   ;;  %s275_s15 = sand.u32 1, %s1932_s22   ;;  %vm1403_vm1 = vcmask 261120  }
  0x14   : > { %p279_p10 = scmp.lt.s32.totalorder %s1541_s9, 63  ;;  %s1540_s19 = sshll.u32 %s275_s15, 8 }
  0x15   : > { %s2869_s20 = scalar_lea.vmem [#allocation2], %s1540_s19  ;;  %s1942_s12 = smov [#allocation2]  }
  0x16   : > { %s3137_s9 = smov (!%p279_p10, %s1541_s9), 63  ;;  %s1450_s26 = sshll.u32 %s2869_s20, 4  ;;  %s2967_s26 = int_to_ptr.vmem [resolvable:$true] %s1450_s26 }
  0x17   : > { %s2029_s10 = sshll.u32 %s3137_s9, 3  ;;  %s1880_s11 = scalar_lea.vmem %s2967_s26, 4096 }
  0x18   : > { %s2035_s13 = scalar_lea.vmem %s3015_s0, %s2029_s10  ;;  %s2405_s9 = scalar_lea.vmem %s3016_s1, %s2029_s10 }
  0x19   : > { %v2038_v0 = vld [vmem:[%s2035_s13] sm:$0xff]  ;;  %v2044_v2 = vld [vmem:[%s2035_s13 + $0x8] sm:$0xff]  ;;  %v2058_v8 = vld [vmem:[%s2035_s13 + $0x10] sm:$0xff]  ;;  %s2862_s18 = scalar_lea.vmem %s3020_s5, %s2029_s10  ;;  %s1574_s10 = sshll.u32 %s2001_s25, 12 }
  0x1a   : > { %v2041_v1 = vld [vmem:[%s2035_s13 + $0x80] sm:$0xff]  ;;  %v331_v3 = vsel %vm330_vm0, %v2038_v0, 0.0  ;;  %v2051_v5 = vld [vmem:[%s2035_s13 + $0x88] sm:$0xff]  ;;  %v334_v6 = vsel %vm330_vm0, %v2044_v2, 0.0  ;;  %v2061_v9 = vld [vmem:[%s2035_s13 + $0x18] sm:$0xff]  ;;  %v337_v10 = vsel %vm330_vm0, %v2058_v8, 0.0  ;;  %p1881_p11 = scmp.ne.s32.totalorder %s2967_s26, %s1880_s11 }
  0x1b   : > { %v379_v4 = vsel %vm330_vm0, %v2041_v1, 0.0  ;;  %332 = vadd.xlane.f32.xlu0 %v331_v3  ;;  %v382_v7 = vsel %vm330_vm0, %v2051_v5, 0.0  ;;  %v340_v11 = vsel %vm330_vm0, %v2061_v9, 0.0  ;;  %v2068_v12 = vld [vmem:[%s2035_s13 + $0x90] sm:$0xff]  ;;  %v2071_v13 = vld [vmem:[%s2035_s13 + $0x98] sm:$0xff]  ;;  %v2078_v16 = vld [vmem:[%s2035_s13 + $0x20] sm:$0xff] }
  0x1c   : > { %380 = vadd.xlane.f32.xlu1 %v379_v4  ;;  %v385_v14 = vsel %vm330_vm0, %v2068_v12, 0.0  ;;  %v388_v15 = vsel %vm330_vm0, %v2071_v13, 0.0  ;;  %v2081_v17 = vld [vmem:[%s2035_s13 + $0x28] sm:$0xff]  ;;  %v343_v18 = vsel %vm330_vm0, %v2078_v16, 0.0  ;;  %v2088_v20 = vld [vmem:[%s2035_s13 + $0xa0] sm:$0xff]  ;;  %v2098_v24 = vld [vmem:[%s2035_s13 + $0x30] sm:$0xff]  ;;  %p1882_p12 = pnand %p1881_p11, %p2018_p5 }
  0x1d   : > { %v346_v19 = vsel %vm330_vm0, %v2081_v17, 0.0  ;;  %v2091_v21 = vld [vmem:[%s2035_s13 + $0xa8] sm:$0xff]  ;;  %v391_v22 = vsel %vm330_vm0, %v2088_v20, 0.0  ;;  %v2101_v25 = vld [vmem:[%s2035_s13 + $0x38] sm:$0xff]  ;;  %v349_v26 = vsel %vm330_vm0, %v2098_v24, 0.0  ;;  %v2108_v28 = vld [vmem:[%s2035_s13 + $0xb0] sm:$0xff] }
  0x1e   : > { %v394_v23 = vsel %vm330_vm0, %v2091_v21, 0.0  ;;  %v352_v27 = vsel %vm330_vm0, %v2101_v25, 0.0  ;;  %v2111_v29 = vld [vmem:[%s2035_s13 + $0xb8] sm:$0xff]  ;;  %v397_v30 = vsel %vm330_vm0, %v2108_v28, 0.0  ;;  %v2118_v32 = vld [vmem:[%s2035_s13 + $0x40] sm:$0xff]  ;;  %v2121_v33 = vld [vmem:[%s2035_s13 + $0x48] sm:$0xff]  ;;  %p1883_p13 = pneg %p1882_p12 }
  0x1f   : > { %335 = vadd.xlane.f32.xlu0 %v334_v6  ;;  %v400_v31 = vsel %vm330_vm0, %v2111_v29, 0.0  ;;  %v355_v34 = vsel %vm330_vm0, %v2118_v32, 0.0  ;;  %v358_v35 = vsel %vm330_vm0, %v2121_v33, 0.0  ;;  %v2128_v36 = vld [vmem:[%s2035_s13 + $0xc0] sm:$0xff]  ;;  %v2131_v37 = vld [vmem:[%s2035_s13 + $0xc8] sm:$0xff]  ;;  %v2138_v40 = vld [vmem:[%s2035_s13 + $0x50] sm:$0xff] }
  0x20   : > { %383 = vadd.xlane.f32.xlu1 %v382_v7  ;;  %v403_v38 = vsel %vm330_vm0, %v2128_v36, 0.0  ;;  %v406_v39 = vsel %vm330_vm0, %v2131_v37, 0.0  ;;  %v2141_v41 = vld [vmem:[%s2035_s13 + $0x58] sm:$0xff]  ;;  %v361_v42 = vsel %vm330_vm0, %v2138_v40, 0.0  ;;  %v2148_v44 = vld [vmem:[%s2035_s13 + $0xd0] sm:$0xff]  ;;  %v2158_v48 = vld [vmem:[%s2035_s13 + $0x60] sm:$0xff] }
  0x21   : > { %v364_v43 = vsel %vm330_vm0, %v2141_v41, 0.0  ;;  %v2151_v45 = vld [vmem:[%s2035_s13 + $0xd8] sm:$0xff]  ;;  %v409_v46 = vsel %vm330_vm0, %v2148_v44, 0.0  ;;  %v2161_v49 = vld [vmem:[%s2035_s13 + $0x68] sm:$0xff]  ;;  %v367_v50 = vsel %vm330_vm0, %v2158_v48, 0.0  ;;  %v2168_v52 = vld [vmem:[%s2035_s13 + $0xe0] sm:$0xff] }
  0x22   : > { %v412_v47 = vsel %vm330_vm0, %v2151_v45, 0.0  ;;  %v370_v51 = vsel %vm330_vm0, %v2161_v49, 0.0  ;;  %v2171_v53 = vld [vmem:[%s2035_s13 + $0xe8] sm:$0xff]  ;;  %v415_v54 = vsel %vm330_vm0, %v2168_v52, 0.0  ;;  %v2178_v56 = vld [vmem:[%s2035_s13 + $0x70] sm:$0xff]  ;;  %v2181_v57 = vld [vmem:[%s2035_s13 + $0x78] sm:$0xff] }
  0x23   : > { %338 = vadd.xlane.f32.xlu0 %v337_v10  ;;  %v418_v55 = vsel %vm330_vm0, %v2171_v53, 0.0  ;;  %v373_v58 = vsel %vm330_vm0, %v2178_v56, 0.0  ;;  %v376_v59 = vsel %vm330_vm0, %v2181_v57, 0.0  ;;  %v2188_v60 = vld [vmem:[%s2035_s13 + $0xf0] sm:$0xff]  ;;  %v2191_v61 = vld [vmem:[%s2035_s13 + $0xf8] sm:$0xff]  ;;  %s2975_s25 = scalar_lea.sflag [#allocation3], %s275_s15 }
  0x24   : > { %341 = vadd.xlane.f32.xlu1 %v340_v11  ;;  %v421_v62 = vsel %vm330_vm0, %v2188_v60, 0.0  ;;  %v424_v63 = vsel %vm330_vm0, %v2191_v61, 0.0  ;;  %s1884_s13 = sshll.u32 %s1942_s12, 4  ;;  %s1885_s13 = int_to_ptr.vmem [resolvable:$false] %s1884_s13 }
  0x25   : > { %s1886_s14 = scalar_lea.vmem %s1885_s13, 8192  ;;  %p1887_p0 = scmp.lt.s32.totalorder %s2967_s26, %s1885_s13 }
  0x26   : > { %p1888_p1 = scmp.lt.s32.totalorder %s1886_s14, %s1880_s11 }
  0x27   : > { %386 = vadd.xlane.f32.xlu0 %v385_v14 }
  0x28   : > { %389 = vadd.xlane.f32.xlu1 %v388_v15  ;;  %p1889_p2 = por %p1888_p1, %p1887_p0 }
  0x2a   : > { %p1890_p3 = pnand %p1889_p2, %p1883_p13 }
  0x2b   : > { %344 = vadd.xlane.f32.xlu0 %v343_v18 }
  0x2c   : > { %347 = vadd.xlane.f32.xlu1 %v346_v19 }
  0x2f   : > { %392 = vadd.xlane.f32.xlu0 %v391_v22 }
  0x30   : > { %395 = vadd.xlane.f32.xlu1 %v394_v23 }
  0x33   : > { %350 = vadd.xlane.f32.xlu0 %v349_v26 }
  0x34   : > { %353 = vadd.xlane.f32.xlu1 %v352_v27 }
  0x37   : > { %398 = vadd.xlane.f32.xlu0 %v397_v30 }
  0x38   : > { %401 = vadd.xlane.f32.xlu1 %v400_v31 }
  0x3b   : > { %356 = vadd.xlane.f32.xlu0 %v355_v34 }
  0x3c   : > { %359 = vadd.xlane.f32.xlu1 %v358_v35 }
  0x3f   : > { %404 = vadd.xlane.f32.xlu0 %v403_v38 }
  0x40   : > { %407 = vadd.xlane.f32.xlu1 %v406_v39 }
  0x43   : > { %362 = vadd.xlane.f32.xlu0 %v361_v42 }
  0x44   : > { %365 = vadd.xlane.f32.xlu1 %v364_v43 }
  0x47   : > { %410 = vadd.xlane.f32.xlu0 %v409_v46 }
  0x48   : > { %413 = vadd.xlane.f32.xlu1 %v412_v47 }
  0x4b   : > { %368 = vadd.xlane.f32.xlu0 %v367_v50 }
  0x4c   : > { %371 = vadd.xlane.f32.xlu1 %v370_v51 }
  0x4f   : > { %416 = vadd.xlane.f32.xlu0 %v415_v54 }
  0x50   : > { %419 = vadd.xlane.f32.xlu1 %v418_v55 }
  0x53   : > { %374 = vadd.xlane.f32.xlu0 %v373_v58 }
  0x54   : > { %377 = vadd.xlane.f32.xlu1 %v376_v59 }
  0x57   : > { %422 = vadd.xlane.f32.xlu0 %v421_v62 }
  0x58   : > { %425 = vadd.xlane.f32.xlu1 %v424_v63 }
  0xa4   : > { %v333_v3 = vpop.xlane.xlu0 %332 }
  0xa5   : > { %v381_v4 = vpop.xlane.xlu1 %380  ;;  %v428_v6 = vmul.f32 0.015625, %v333_v3 }
  0xa6   : > { %v444_v7 = vmul.f32 0.015625, %v381_v4 }
  0xa7   : > { %v2198_v10 = vsub.f32 %v2038_v0, %v428_v6 }
  0xa8   : > { %v2201_v11 = vsub.f32 %v2041_v1, %v444_v7  ;;  %v336_v14 = vpop.xlane.xlu0 %335 }
  0xa9   : > { %v384_v15 = vpop.xlane.xlu1 %383  ;;  %v429_v18 = vmul.f32 0.015625, %v336_v14  ;;  %v492_v22 = vmul.f32 %v2198_v10, %v2198_v10 }
  0xaa   : > { %v445_v19 = vmul.f32 0.015625, %v384_v15  ;;  %v508_v23 = vmul.f32 %v2201_v11, %v2201_v11 }
  0xab   : > { %v2208_v26 = vsub.f32 %v2044_v2, %v429_v18  ;;  %v524_v0 = vsel %vm330_vm0, %v492_v22, 0.0 }
  0xac   : > { %v2211_v27 = vsub.f32 %v2051_v5, %v445_v19  ;;  %525 = vadd.xlane.f32.xlu0 %v524_v0  ;;  %v339_v1 = vpop.xlane.xlu0 %338  ;;  %v572_v31 = vsel %vm330_vm0, %v508_v23, 0.0 }
  0xad   : > { %v342_v30 = vpop.xlane.xlu1 %341  ;;  %v430_v34 = vmul.f32 0.015625, %v339_v1  ;;  %v493_v38 = vmul.f32 %v2208_v26, %v2208_v26 }
  0xae   : > { %v431_v35 = vmul.f32 0.015625, %v342_v30  ;;  %v509_v39 = vmul.f32 %v2211_v27, %v2211_v27 }
  0xaf   : > { %v2220_v2 = vsub.f32 %v2058_v8, %v430_v34  ;;  %v527_v42 = vsel %vm330_vm0, %v493_v38, 0.0 }
  0xb0   : > { %v2223_v5 = vsub.f32 %v2061_v9, %v431_v35  ;;  %573 = vadd.xlane.f32.xlu0 %v572_v31  ;;  %528 = vadd.xlane.f32.xlu1 %v527_v42  ;;  %v387_v43 = vpop.xlane.xlu0 %386  ;;  %v575_v47 = vsel %vm330_vm0, %v509_v39, 0.0 }
  0xb1   : > { %v390_v46 = vpop.xlane.xlu1 %389  ;;  %v446_v50 = vmul.f32 0.015625, %v387_v43  ;;  %v494_v54 = vmul.f32 %v2220_v2, %v2220_v2 }
  0xb2   : > { %v447_v51 = vmul.f32 0.015625, %v390_v46  ;;  %v495_v8 = vmul.f32 %v2223_v5, %v2223_v5 }
  0xb3   : > { %v2232_v55 = vsub.f32 %v2068_v12, %v446_v50  ;;  %v530_v58 = vsel %vm330_vm0, %v494_v54, 0.0 }
  0xb4   : > { %v2235_v9 = vsub.f32 %v2071_v13, %v447_v51  ;;  %576 = vadd.xlane.f32.xlu1 %v575_v47  ;;  %531 = vadd.xlane.f32.xlu0 %v530_v58  ;;  %v345_v59 = vpop.xlane.xlu0 %344  ;;  %v533_v63 = vsel %vm330_vm0, %v495_v8, 0.0 }
  0xb5   : > { %v348_v62 = vpop.xlane.xlu1 %347  ;;  %v432_v3 = vmul.f32 0.015625, %v345_v59  ;;  %v510_v6 = vmul.f32 %v2232_v55, %v2232_v55 }
  0xb6   : > { %3060 = vst [vmem:[#allocation5_spill] sm:$0xff] %v2235_v9  ;;  %v433_v4 = vmul.f32 0.015625, %v348_v62  ;;  %v511_v12 = vmul.f32 %v2235_v9, %v2235_v9 }
  0xb7   : > { %v2244_v7 = vsub.f32 %v2078_v16, %v432_v3  ;;  %v578_v14 = vsel %vm330_vm0, %v510_v6, 0.0 }
  0xb8   : > { %v2247_v13 = vsub.f32 %v2081_v17, %v433_v4  ;;  %534 = vadd.xlane.f32.xlu1 %v533_v63  ;;  %579 = vadd.xlane.f32.xlu0 %v578_v14  ;;  %v393_v15 = vpop.xlane.xlu0 %392  ;;  %v581_v19 = vsel %vm330_vm0, %v511_v12, 0.0 }
  0xb9   : > { %3061 = vst [vmem:[#allocation6_spill] sm:$0xff] %v2244_v7  ;;  %v396_v18 = vpop.xlane.xlu1 %395  ;;  %v448_v22 = vmul.f32 0.015625, %v393_v15  ;;  %v496_v0 = vmul.f32 %v2244_v7, %v2244_v7 }
  0xba   : > { %3062 = vst [vmem:[#allocation7_spill] sm:$0xff] %v2247_v13  ;;  %v449_v23 = vmul.f32 0.015625, %v396_v18  ;;  %v497_v16 = vmul.f32 %v2247_v13, %v2247_v13 }
  0xbb   : > { %v2256_v1 = vsub.f32 %v2088_v20, %v448_v22  ;;  %v536_v30 = vsel %vm330_vm0, %v496_v0, 0.0 }
  0xbc   : > { %v2259_v17 = vsub.f32 %v2091_v21, %v449_v23  ;;  %582 = vadd.xlane.f32.xlu1 %v581_v19  ;;  %537 = vadd.xlane.f32.xlu0 %v536_v30  ;;  %v351_v31 = vpop.xlane.xlu0 %350  ;;  %v539_v35 = vsel %vm330_vm0, %v497_v16, 0.0 }
  0xbd   : > { %3063 = vst [vmem:[#allocation8_spill] sm:$0xff] %v2256_v1  ;;  %v354_v34 = vpop.xlane.xlu1 %353  ;;  %v434_v38 = vmul.f32 0.015625, %v351_v31  ;;  %v512_v42 = vmul.f32 %v2256_v1, %v2256_v1 }
  0xbe   : > { %3064 = vst [vmem:[#allocation9_spill] sm:$0xff] %v2259_v17  ;;  %v435_v39 = vmul.f32 0.015625, %v354_v34  ;;  %v513_v20 = vmul.f32 %v2259_v17, %v2259_v17 }
  0xbf   : > { %v2268_v43 = vsub.f32 %v2098_v24, %v434_v38  ;;  %v584_v46 = vsel %vm330_vm0, %v512_v42, 0.0 }
  0xc0   : > { %v2271_v21 = vsub.f32 %v2101_v25, %v435_v39  ;;  %540 = vadd.xlane.f32.xlu1 %v539_v35  ;;  %585 = vadd.xlane.f32.xlu0 %v584_v46  ;;  %v399_v47 = vpop.xlane.xlu0 %398  ;;  %v587_v51 = vsel %vm330_vm0, %v513_v20, 0.0 }
  0xc1   : > { %3065 = vst [vmem:[#allocation10_spill] sm:$0xff] %v2268_v43  ;;  %v402_v50 = vpop.xlane.xlu1 %401  ;;  %v450_v54 = vmul.f32 0.015625, %v399_v47  ;;  %v498_v58 = vmul.f32 %v2268_v43, %v2268_v43 }
  0xc2   : > { %3066 = vst [vmem:[#allocation11_spill] sm:$0xff] %v2271_v21  ;;  %v451_v8 = vmul.f32 0.015625, %v402_v50  ;;  %v499_v24 = vmul.f32 %v2271_v21, %v2271_v21 }
  0xc3   : > { %v2280_v59 = vsub.f32 %v2108_v28, %v450_v54  ;;  %v542_v62 = vsel %vm330_vm0, %v498_v58, 0.0 }
  0xc4   : > { %v2283_v25 = vsub.f32 %v2111_v29, %v451_v8  ;;  %588 = vadd.xlane.f32.xlu1 %v587_v51  ;;  %543 = vadd.xlane.f32.xlu0 %v542_v62  ;;  %v357_v63 = vpop.xlane.xlu0 %356  ;;  %v545_v4 = vsel %vm330_vm0, %v499_v24, 0.0 }
  0xc5   : > { %3067 = vst [vmem:[#allocation12_spill] sm:$0xff] %v2280_v59  ;;  %v360_v3 = vpop.xlane.xlu1 %359  ;;  %v436_v6 = vmul.f32 0.015625, %v357_v63  ;;  %v514_v14 = vmul.f32 %v2280_v59, %v2280_v59  ;;  %v2550_v59 = vld [vmem:[%s2405_s9 + $0xf0] sm:$0xff] }
  0xc6   : > { %3068 = vst [vmem:[#allocation13_spill] sm:$0xff] %v2283_v25  ;;  %v437_v12 = vmul.f32 0.015625, %v360_v3  ;;  %v515_v28 = vmul.f32 %v2283_v25, %v2283_v25  ;;  %3095 = vst [vmem:[#allocation40_spill] sm:$0xff] %v2550_v59 }
  0xc7   : > { %v2292_v15 = vsub.f32 %v2118_v32, %v436_v6  ;;  %v590_v18 = vsel %vm330_vm0, %v514_v14, 0.0 }
  0xc8   : > { %v2295_v29 = vsub.f32 %v2121_v33, %v437_v12  ;;  %546 = vadd.xlane.f32.xlu1 %v545_v4  ;;  %591 = vadd.xlane.f32.xlu0 %v590_v18  ;;  %v405_v19 = vpop.xlane.xlu0 %404  ;;  %v593_v23 = vsel %vm330_vm0, %v515_v28, 0.0 }
  0xc9   : > { %3069 = vst [vmem:[#allocation14_spill] sm:$0xff] %v2292_v15  ;;  %v408_v22 = vpop.xlane.xlu1 %407  ;;  %v452_v0 = vmul.f32 0.015625, %v405_v19  ;;  %v500_v30 = vmul.f32 %v2292_v15, %v2292_v15  ;;  %v2539_v15 = vld [vmem:[%s2405_s9 + $0x78] sm:$0xff] }
  0xca   : > { %3070 = vst [vmem:[#allocation15_spill] sm:$0xff] %v2295_v29  ;;  %v453_v16 = vmul.f32 0.015625, %v408_v22  ;;  %v501_v32 = vmul.f32 %v2295_v29, %v2295_v29  ;;  %3094 = vst [vmem:[#allocation39_spill] sm:$0xff] %v2539_v15 }
  0xcb   : > { %v2304_v31 = vsub.f32 %v2128_v36, %v452_v0  ;;  %v548_v34 = vsel %vm330_vm0, %v500_v30, 0.0 }
  0xcc   : > { %v2307_v33 = vsub.f32 %v2131_v37, %v453_v16  ;;  %594 = vadd.xlane.f32.xlu1 %v593_v23  ;;  %549 = vadd.xlane.f32.xlu0 %v548_v34  ;;  %v363_v35 = vpop.xlane.xlu0 %362  ;;  %v551_v39 = vsel %vm330_vm0, %v501_v32, 0.0  ;;  %v1684_v37 = vld [vmem:[%s3019_s4 + $0x18] sm:$0xff]  }
  0xcd   : > { %3071 = vst [vmem:[#allocation16_spill] sm:$0xff] %v2304_v31  ;;  %v366_v38 = vpop.xlane.xlu1 %365  ;;  %v438_v42 = vmul.f32 0.015625, %v363_v35  ;;  %v516_v46 = vmul.f32 %v2304_v31, %v2304_v31  ;;  %1595 = vmatprep.subr.bf16.mxu0 %v1684_v37  ;;  %1635 = vmatprep.subr.bf16.mxu1 %v1684_v37 }
  0xce   : > { %3072 = vst [vmem:[#allocation17_spill] sm:$0xff] %v2307_v33  ;;  %v439_v20 = vmul.f32 0.015625, %v366_v38  ;;  %v517_v36 = vmul.f32 %v2307_v33, %v2307_v33  ;;  %1596 = vmatpush3.bf16.msra.mxu0 %v1684_v37  ;;  %1639 = vmatpush3.bf16.msra.mxu1 %v1684_v37 }
  0xcf   : > { %v2319_v47 = vsub.f32 %v2138_v40, %v438_v42  ;;  %v596_v51 = vsel %vm330_vm0, %v516_v46, 0.0 }
  0xd0   : > { %v2322_v50 = vsub.f32 %v2141_v41, %v439_v20  ;;  %552 = vadd.xlane.f32.xlu1 %v551_v39  ;;  %597 = vadd.xlane.f32.xlu0 %v596_v51  ;;  %v411_v54 = vpop.xlane.xlu0 %410  ;;  %v599_v58 = vsel %vm330_vm0, %v517_v36, 0.0  ;;  %v1685_v41 = vld [vmem:[%s3019_s4 + $0x10] sm:$0xff]  }
  0xd1   : > { %3073 = vst [vmem:[#allocation18_spill] sm:$0xff] %v2319_v47  ;;  %v414_v8 = vpop.xlane.xlu1 %413  ;;  %v454_v24 = vmul.f32 0.015625, %v411_v54  ;;  %v502_v63 = vmul.f32 %v2319_v47, %v2319_v47  ;;  %1597 = vmatprep.subr.bf16.mxu0 %v1685_v41  ;;  %1636 = vmatprep.subr.bf16.mxu1 %v1685_v41 }
  0xd2   : > { %3074 = vst [vmem:[#allocation19_spill] sm:$0xff] %v2322_v50  ;;  %v455_v62 = vmul.f32 0.015625, %v414_v8  ;;  %v503_v40 = vmul.f32 %v2322_v50, %v2322_v50  ;;  %1598 = vmatpush3.bf16.msra.mxu0 %v1685_v41  ;;  %1640 = vmatpush3.bf16.msra.mxu1 %v1685_v41  ;;  %v2513_v50 = vld [vmem:[%s2405_s9 + $0x68] sm:$0xff] }
  0xd3   : > { %v2334_v3 = vsub.f32 %v2148_v44, %v454_v24  ;;  %v554_v6 = vsel %vm330_vm0, %v502_v63, 0.0  ;;  %3090 = vst [vmem:[#allocation35_spill] sm:$0xff] %v2513_v50 }
  0xd4   : > { %v2337_v4 = vsub.f32 %v2151_v45, %v455_v62  ;;  %600 = vadd.xlane.f32.xlu1 %v599_v58  ;;  %555 = vadd.xlane.f32.xlu0 %v554_v6  ;;  %v369_v12 = vpop.xlane.xlu0 %368  ;;  %v557_v28 = vsel %vm330_vm0, %v503_v40, 0.0  ;;  %v1686_v45 = vld [vmem:[%s3019_s4 + $0x8] sm:$0xff]  }
  0xd5   : > { %3075 = vst [vmem:[#allocation20_spill] sm:$0xff] %v2334_v3  ;;  %v372_v14 = vpop.xlane.xlu1 %371  ;;  %v440_v18 = vmul.f32 0.015625, %v369_v12  ;;  %v518_v22 = vmul.f32 %v2334_v3, %v2334_v3  ;;  %1599 = vmatprep.subr.bf16.mxu0 %v1686_v45  ;;  %1637 = vmatprep.subr.bf16.mxu1 %v1686_v45 }
  0xd6   : > { %3076 = vst [vmem:[#allocation21_spill] sm:$0xff] %v2337_v4  ;;  %v441_v19 = vmul.f32 0.015625, %v372_v14  ;;  %v519_v44 = vmul.f32 %v2337_v4, %v2337_v4  ;;  %1600 = vmatpush3.bf16.msra.mxu0 %v1686_v45  ;;  %1641 = vmatpush3.bf16.msra.mxu1 %v1686_v45  ;;  %v2501_v4 = vld [vmem:[%s2405_s9 + $0xd8] sm:$0xff] }
  0xd7   : > { %v2349_v23 = vsub.f32 %v2158_v48, %v440_v18  ;;  %v602_v16 = vsel %vm330_vm0, %v518_v22, 0.0  ;;  %3088 = vst [vmem:[#allocation33_spill] sm:$0xff] %v2501_v4 }
  0xd8   : > { %v2352_v0 = vsub.f32 %v2161_v49, %v441_v19  ;;  %558 = vadd.xlane.f32.xlu1 %v557_v28  ;;  %603 = vadd.xlane.f32.xlu0 %v602_v16  ;;  %v417_v30 = vpop.xlane.xlu0 %416  ;;  %v605_v34 = vsel %vm330_vm0, %v519_v44, 0.0  ;;  %v1687_v49 = vld [vmem:[%s3019_s4] sm:$0xff]  }
  0xd9   : > { %3077 = vst [vmem:[#allocation22_spill] sm:$0xff] %v2349_v23  ;;  %v420_v32 = vpop.xlane.xlu1 %419  ;;  %v456_v35 = vmul.f32 0.015625, %v417_v30  ;;  %v504_v39 = vmul.f32 %v2349_v23, %v2349_v23  ;;  %1601 = vmatprep.subr.bf16.mxu0 %v1687_v49  ;;  %1638 = vmatprep.subr.bf16.mxu1 %v1687_v49  ;;  %v2412_v30 = vld [vmem:[%s2405_s9 + $0x8] sm:$0xff] }
  0xda   : > { %3078 = vst [vmem:[#allocation23_spill] sm:$0xff] %v2352_v0  ;;  %v457_v38 = vmul.f32 0.015625, %v420_v32  ;;  %v505_v48 = vmul.f32 %v2352_v0, %v2352_v0  ;;  %1602 = vmatpush3.bf16.msra.mxu0 %v1687_v49  ;;  %1642 = vmatpush3.bf16.msra.mxu1 %v1687_v49  ;;  %v2415_v32 = vld [vmem:[%s2405_s9 + $0x80] sm:$0xff] }
  0xdb   : > { %v2364_v42 = vsub.f32 %v2168_v52, %v456_v35  ;;  %v560_v46 = vsel %vm330_vm0, %v504_v39, 0.0  ;;  %v874_v39 = vsub.f32 0.0, %v2415_v32 }
  0xdc   : > { %v2367_v20 = vsub.f32 %v2171_v53, %v457_v38  ;;  %606 = vadd.xlane.f32.xlu1 %v605_v34  ;;  %561 = vadd.xlane.f32.xlu0 %v560_v46  ;;  %v375_v36 = vpop.xlane.xlu0 %374  ;;  %v563_v51 = vsel %vm330_vm0, %v505_v48, 0.0  ;;  %v859_v34 = vsub.f32 0.0, %v2412_v30  ;;  %v2419_v38 = vld [vmem:[%s2405_s9 + $0x88] sm:$0xff]  ;;  %v2423_v48 = vld [vmem:[%s2405_s9 + $0x10] sm:$0xff]  ;;  %v2427_v46 = vld [vmem:[%s2405_s9 + $0x18] sm:$0xff] }
  0xdd   : > { %3079 = vst [vmem:[#allocation24_spill] sm:$0xff] %v2364_v42  ;;  %v378_v37 = vpop.xlane.xlu1 %377  ;;  %v442_v54 = vmul.f32 0.015625, %v375_v36  ;;  %v520_v58 = vmul.f32 %v2364_v42, %v2364_v42  ;;  %v875_v49 = vsub.f32 0.0, %v2419_v38  ;;  %v2487_v42 = vld [vmem:[%s2405_s9 + $0x50] sm:$0xff] }
  0xde   : > { %3080 = vst [vmem:[#allocation25_spill] sm:$0xff] %v2367_v20  ;;  %v443_v8 = vmul.f32 0.015625, %v378_v37  ;;  %v521_v52 = vmul.f32 %v2367_v20, %v2367_v20  ;;  %v892_v36 = vmul.f32 1.442695, %v859_v34  ;;  %v860_v37 = vsub.f32 0.0, %v2423_v48  ;;  %v2458_v34 = vld [vmem:[%s2405_s9 + $0x38] sm:$0xff] }
  0xdf   : > { %v2376_v53 = vsub.f32 %v2178_v56, %v442_v54  ;;  %v608_v62 = vsel %vm330_vm0, %v520_v58, 0.0  ;;  %v922_v54 = vmul.f32 1.442695, %v874_v39  ;;  %v924_v58 = vmul.f32 1.442695, %v875_v49  ;;  %v2483_v20 = vld [vmem:[%s2405_s9 + $0xc8] sm:$0xff] }
  0xe0   : > { %v2379_v24 = vsub.f32 %v2181_v57, %v443_v8  ;;  %564 = vadd.xlane.f32.xlu1 %v563_v51  ;;  %609 = vadd.xlane.f32.xlu0 %v608_v62  ;;  %v423_v63 = vpop.xlane.xlu0 %422  ;;  %v611_v41 = vsel %vm330_vm0, %v521_v52, 0.0  ;;  %v2431_v51 = vld [vmem:[%s2405_s9 + $0x90] sm:$0xff]  ;;  %v861_v8 = vsub.f32 0.0, %v2427_v46  ;;  %v2435_v52 = vld [vmem:[%s2405_s9 + $0x98] sm:$0xff]  ;;  %3085 = vst [vmem:[#allocation30_spill] sm:$0xff] %v2487_v42 }
  0xe1   : > { %3081 = vst [vmem:[#allocation26_spill] sm:$0xff] %v2376_v53  ;;  %v426_v40 = vpop.xlane.xlu1 %425  ;;  %v458_v6 = vmul.f32 0.015625, %v423_v63  ;;  %v506_v14 = vmul.f32 %v2376_v53, %v2376_v53  ;;  %v876_v62 = vsub.f32 0.0, %v2431_v51  ;;  %v894_v63 = vmul.f32 1.442695, %v860_v37  ;;  %v2463_v37 = vld [vmem:[%s2405_s9 + $0xb0] sm:$0xff] }
  0xe2   : > { %3082 = vst [vmem:[#allocation27_spill] sm:$0xff] %v2379_v24  ;;  %v459_v12 = vmul.f32 0.015625, %v426_v40  ;;  %v507_v56 = vmul.f32 %v2379_v24, %v2379_v24  ;;  %v2439_v40 = vld [vmem:[%s2405_s9 + $0x20] sm:$0xff] }
  0xe3   : > { %v2388_v57 = vsub.f32 %v2188_v60, %v458_v6  ;;  %v566_v18 = vsel %vm330_vm0, %v506_v14, 0.0  ;;  %v877_v6 = vsub.f32 0.0, %v2435_v52  ;;  %v926_v14 = vmul.f32 1.442695, %v876_v62 }
  0xe4   : > { %v2391_v28 = vsub.f32 %v2191_v61, %v459_v12  ;;  %612 = vadd.xlane.f32.xlu1 %v611_v41  ;;  %567 = vadd.xlane.f32.xlu0 %v566_v18  ;;  %v569_v19 = vsel %vm330_vm0, %v507_v56, 0.0  ;;  %v2408_v61 = vld [vmem:[%s2405_s9] sm:$0xff]  ;;  %v896_v41 = vmul.f32 1.442695, %v861_v8  ;;  %v2443_v12 = vld [vmem:[%s2405_s9 + $0x28] sm:$0xff]  ;;  %v862_v56 = vsub.f32 0.0, %v2439_v40 }
  0xe5   : > { %3083 = vst [vmem:[#allocation28_spill] sm:$0xff] %v2388_v57  ;;  %v522_v22 = vmul.f32 %v2388_v57, %v2388_v57  ;;  %v858_v16 = vsub.f32 0.0, %v2408_v61  ;;  %v2447_v18 = vld [vmem:[%s2405_s9 + $0xa0] sm:$0xff]  ;;  %v865_v8 = vsub.f32 0.0, %v2458_v34  ;;  %v2475_v57 = vld [vmem:[%s2405_s9 + $0x48] sm:$0xff] }
  0xe6   : > { %3084 = vst [vmem:[#allocation29_spill] sm:$0xff] %v2391_v28  ;;  %v523_v44 = vmul.f32 %v2391_v28, %v2391_v28 }
  0xe7   : > { %v614_v45 = vsel %vm330_vm0, %v522_v22, 0.0  ;;  %v890_v35 = vmul.f32 1.442695, %v858_v16  ;;  %v928_v22 = vmul.f32 1.442695, %v877_v6  ;;  %v880_v6 = vsub.f32 0.0, %v2463_v37 }
  0xe8   : > { %570 = vadd.xlane.f32.xlu1 %v569_v19  ;;  %615 = vadd.xlane.f32.xlu0 %v614_v45  ;;  %v617_v60 = vsel %vm330_vm0, %v523_v44, 0.0  ;;  %v863_v19 = vsub.f32 0.0, %v2443_v12  ;;  %v2451_v44 = vld [vmem:[%s2405_s9 + $0xa8] sm:$0xff]  ;;  %v878_v45 = vsub.f32 0.0, %v2447_v18  ;;  %v898_v16 = vmul.f32 1.442695, %v862_v56 }
  0xe9   : > { %1688 = vpow2.f32 %v890_v35  ;;  %v879_v49 = vsub.f32 0.0, %v2451_v44 }
  0xea   : > { %1690 = vpow2.f32 %v892_v36  ;;  %v900_v39 = vmul.f32 1.442695, %v863_v19  ;;  %v904_v19 = vmul.f32 1.442695, %v865_v8 }
  0xeb   : > { %1692 = vpow2.f32 %v922_v54  ;;  %v930_v54 = vmul.f32 1.442695, %v878_v45 }
  0xec   : > { %618 = vadd.xlane.f32.xlu1 %v617_v60  ;;  %1694 = vpow2.f32 %v924_v58  ;;  %v2455_v60 = vld [vmem:[%s2405_s9 + $0x30] sm:$0xff] }
  0xed   : > { %1696 = vpow2.f32 %v894_v63  ;;  %v864_v36 = vsub.f32 0.0, %v2455_v60  ;;  %v932_v63 = vmul.f32 1.442695, %v879_v49 }
  0xee   : > { %1698 = vpow2.f32 %v896_v41  ;;  %v2467_v41 = vld [vmem:[%s2405_s9 + $0xb8] sm:$0xff] }
  0xef   : > { %1700 = vpow2.f32 %v926_v14  ;;  %v902_v14 = vmul.f32 1.442695, %v864_v36  ;;  %v881_v45 = vsub.f32 0.0, %v2467_v41 }
  0xf0   : > { %1702 = vpow2.f32 %v928_v22 }
  0xf1   : > { %1704 = vpow2.f32 %v898_v16  ;;  %v934_v16 = vmul.f32 1.442695, %v880_v6  ;;  %v936_v8 = vmul.f32 1.442695, %v881_v45 }
  0xf2   : > { %1706 = vpow2.f32 %v900_v39 }
  0xf3   : > { %1708 = vpow2.f32 %v930_v54 }
  0xf6   : > { %v1689_v35 = vpop.eup %1688 }
  0xf7   : > { %v954_v58 = vadd.f32 1.0, %v1689_v35  ;;  %v1691_v62 = vpop.eup %1690  ;;  %v2472_v35 = vld [vmem:[%s2405_s9 + $0x40] sm:$0xff] }
  0xf8   : > { %v1693_v56 = vpop.eup %1692  ;;  %v955_v28 = vadd.f32 1.0, %v1691_v62  ;;  %v866_v54 = vsub.f32 0.0, %v2472_v35 }
  0xf9   : > { %v1695_v22 = vpop.eup %1694  ;;  %1710 = vrcp.f32 %v954_v58  ;;  %v970_v49 = vadd.f32 1.0, %v1693_v56  ;;  %v2479_v58 = vld [vmem:[%s2405_s9 + $0xc0] sm:$0xff] }
  0xfa   : > { %1712 = vpow2.f32 %v932_v63  ;;  %v1697_v39 = vpop.eup %1696  ;;  %v971_v36 = vadd.f32 1.0, %v1695_v22  ;;  %v867_v63 = vsub.f32 0.0, %v2475_v57  ;;  %v906_v56 = vmul.f32 1.442695, %v866_v54 }
  0xfb   : > { %1714 = vpow2.f32 %v902_v14  ;;  %v1699_v24 = vpop.eup %1698  ;;  %v956_v53 = vadd.f32 1.0, %v1697_v39 }
  0xfc   : > { %1716 = vpow2.f32 %v904_v19  ;;  %v1701_v62 = vpop.eup %1700  ;;  %v957_v6 = vadd.f32 1.0, %v1699_v24  ;;  %v882_v19 = vsub.f32 0.0, %v2479_v58  ;;  %v908_v45 = vmul.f32 1.442695, %v867_v63  ;;  %v2494_v63 = vld [vmem:[%s2405_s9 + $0x58] sm:$0xff] }
  0xfd   : > { %1718 = vrcp.f32 %v955_v28  ;;  %v1703_v14 = vpop.eup %1702  ;;  %v972_v22 = vadd.f32 1.0, %v1701_v62  ;;  %v883_v24 = vsub.f32 0.0, %v2483_v20  ;;  %v868_v62 = vsub.f32 0.0, %v2487_v42  ;;  %3086 = vst [vmem:[#allocation31_spill] sm:$0xff] %v2494_v63 }
  0xfe   : > { %1720 = vpow2.f32 %v934_v16  ;;  %v1705_v28 = vpop.eup %1704  ;;  %v973_v39 = vadd.f32 1.0, %v1703_v14 }
  0xff   : > { %1722 = vrcp.f32 %v970_v49  ;;  %v1707_v16 = vpop.eup %1706  ;;  %v938_v49 = vmul.f32 1.442695, %v882_v19  ;;  %v958_v54 = vadd.f32 1.0, %v1705_v28  ;;  %v2497_v19 = vld [vmem:[%s2405_s9 + $0xd0] sm:$0xff]  ;;  %v869_v28 = vsub.f32 0.0, %v2494_v63 }
 0x100   : > { %1724 = vrcp.f32 %v971_v36  ;;  %v1709_v36 = vpop.eup %1708  ;;  %3087 = vst [vmem:[#allocation32_spill] sm:$0xff] %v2497_v19  ;;  %v910_v23 = vmul.f32 1.442695, %v868_v62  ;;  %v885_v62 = vsub.f32 0.0, %v2501_v4 }
 0x101   : > { %1726 = vpow2.f32 %v936_v8 }
 0x102   : > { %1728 = vrcp.f32 %v956_v53  ;;  %v959_v53 = vadd.f32 1.0, %v1707_v16  ;;  %v944_v63 = vmul.f32 1.442695, %v885_v62 }
 0x103   : > { %1730 = vrcp.f32 %v957_v6  ;;  %v940_v6 = vmul.f32 1.442695, %v883_v24 }
 0x104   : > { %1732 = vpow2.f32 %v906_v56  ;;  %v974_v56 = vadd.f32 1.0, %v1709_v36  ;;  %v2507_v36 = vld [vmem:[%s2405_s9 + $0x60] sm:$0xff] }
 0x105   : > { %1734 = vrcp.f32 %v972_v22  ;;  %3089 = vst [vmem:[#allocation34_spill] sm:$0xff] %v2507_v36 }
 0x106   : > { %v2491_v8 = vpop.eup %1710  ;;  %1736 = vpow2.f32 %v908_v45 }
 0x107   : > { %v1713_v0 = vpop.eup %1712  ;;  %1738 = vrcp.f32 %v973_v39 }
 0x108   : > { %v1715_v14 = vpop.eup %1714  ;;  %1740 = vpow2.f32 %v938_v49  ;;  %v975_v16 = vadd.f32 1.0, %v1713_v0  ;;  %v884_v49 = vsub.f32 0.0, %v2497_v19  ;;  %v912_v0 = vmul.f32 1.442695, %v869_v28  ;;  %v2519_v19 = vld [vmem:[%s2405_s9 + $0xe0] sm:$0xff] }
 0x109   : > { %v1717_v22 = vpop.eup %1716  ;;  %1742 = vrcp.f32 %v958_v54  ;;  %v960_v24 = vadd.f32 1.0, %v1715_v14  ;;  %v870_v14 = vsub.f32 0.0, %v2507_v36  ;;  %3091 = vst [vmem:[#allocation36_spill] sm:$0xff] %v2519_v19 }
 0x10a   : > { %v2503_v45 = vpop.eup %1718  ;;  %1744 = vrcp.f32 %v959_v53  ;;  %v961_v54 = vadd.f32 1.0, %v1717_v22  ;;  %v871_v22 = vsub.f32 0.0, %v2513_v50 }
 0x10b   : > { %v1721_v39 = vpop.eup %1720  ;;  %1746 = vpow2.f32 %v940_v6  ;;  %v914_v31 = vmul.f32 1.442695, %v870_v14 }
 0x10c   : > { %v2509_v3 = vpop.eup %1722  ;;  %1748 = vrcp.f32 %v974_v56  ;;  %v976_v6 = vadd.f32 1.0, %v1721_v39  ;;  %v942_v56 = vmul.f32 1.442695, %v884_v49  ;;  %v886_v39 = vsub.f32 0.0, %v2519_v19 }
 0x10d   : > { %v2515_v47 = vpop.eup %1724  ;;  %1750 = vpow2.f32 %v910_v23  ;;  %v2527_v23 = vld [vmem:[%s2405_s9 + $0xe8] sm:$0xff]  ;;  %v916_v50 = vmul.f32 1.442695, %v871_v22 }
 0x10e   : > { %v1727_v53 = vpop.eup %1726  ;;  %1752 = vrcp.f32 %v975_v16  ;;  %3092 = vst [vmem:[#allocation37_spill] sm:$0xff] %v2527_v23 }
 0x10f   : > { %v2521_v33 = vpop.eup %1728  ;;  %1754 = vrcp.f32 %v960_v24  ;;  %v977_v16 = vadd.f32 1.0, %v1727_v53  ;;  %v2533_v24 = vld [vmem:[%s2405_s9 + $0x70] sm:$0xff] }
 0x110   : > { %v2524_v4 = vpop.eup %1730  ;;  %1756 = vrcp.f32 %v961_v54  ;;  %3093 = vst [vmem:[#allocation38_spill] sm:$0xff] %v2533_v24  ;;  %v887_v54 = vsub.f32 0.0, %v2527_v23 }
 0x111   : > { %v1733_v28 = vpop.eup %1732  ;;  %1758 = vpow2.f32 %v912_v0  ;;  %v946_v0 = vmul.f32 1.442695, %v886_v39 }
 0x112   : > { %v2530_v36 = vpop.eup %1734  ;;  %1760 = vrcp.f32 %v976_v6  ;;  %v962_v29 = vadd.f32 1.0, %v1733_v28  ;;  %v872_v6 = vsub.f32 0.0, %v2533_v24  ;;  %v948_v22 = vmul.f32 1.442695, %v887_v54 }
 0x113   : > { %v1737_v49 = vpop.eup %1736  ;;  %1762 = vpow2.f32 %v942_v56 }
 0x114   : > { %v2536_v62 = vpop.eup %1738  ;;  %1764 = vpow2.f32 %v944_v63  ;;  %v963_v19 = vadd.f32 1.0, %v1737_v49  ;;  %v873_v63 = vsub.f32 0.0, %v2539_v15  ;;  %v918_v25 = vmul.f32 1.442695, %v872_v6 }
 0x115   : > { %v1741_v53 = vpop.eup %1740  ;;  %1766 = vrcp.f32 %v977_v16 }
 0x116   : > { %v2542_v14 = vpop.eup %1742  ;;  %1768 = vpow2.f32 %v914_v31  ;;  %v978_v28 = vadd.f32 1.0, %v1741_v53  ;;  %v920_v54 = vmul.f32 1.442695, %v873_v63  ;;  %v888_v53 = vsub.f32 0.0, %v2550_v59 }
 0x117   : > { %v2544_v56 = vpop.eup %1744  ;;  %1770 = vpow2.f32 %v916_v50 }
 0x118   : > { %v1747_v23 = vpop.eup %1746  ;;  %1772 = vrcp.f32 %v962_v29  ;;  %v950_v59 = vmul.f32 1.442695, %v888_v53 }
 0x119   : > { %v2547_v16 = vpop.eup %1748  ;;  %1774 = vpow2.f32 %v946_v0  ;;  %v979_v49 = vadd.f32 1.0, %v1747_v23 }
 0x11a   : > { %v1751_v24 = vpop.eup %1750  ;;  %1776 = vrcp.f32 %v963_v19 }
 0x11b   : > { %v2552_v31 = vpop.eup %1752  ;;  %1778 = vpow2.f32 %v948_v22  ;;  %v964_v42 = vadd.f32 1.0, %v1751_v24  ;;  %v2562_v22 = vld [vmem:[%s2405_s9 + $0xf8] sm:$0xff]  ;;  %s2965_s9 = scalar_lea.hbm %s3021_s6, %s1574_s10 }
 0x11c   : > { %v2554_v50 = vpop.eup %1754  ;;  %1780 = vrcp.f32 %v978_v28 }
 0x11d   : > { %v2557_v15 = vpop.eup %1756  ;;  %1782 = vpow2.f32 %v918_v25 }
 0x135   : > { %v526_v39 = vpop.xlane.xlu0 %525 }
 0x136   : > { %v620_v21 = vmul.f32 0.015625, %v526_v39  ;;  %v1759_v39 = vpop.eup %1758 }
 0x137   : > { %v2559_v23 = vpop.eup %1760  ;;  %v965_v7 = vadd.f32 1.0, %v1759_v39 }
 0x138   : > { %v652_v29 = vadd.f32 1e-05, %v620_v21  ;;  %v1763_v21 = vpop.eup %1762 }
 0x139   : > { %v529_v0 = vpop.xlane.xlu1 %528  ;;  %v574_v6 = vpop.xlane.xlu0 %573 }
 0x13a   : > { %1784 = vrsqrt.f32 %v652_v29  ;;  %v621_v19 = vmul.f32 0.015625, %v529_v0  ;;  %v636_v43 = vmul.f32 0.015625, %v574_v6  ;;  %v1765_v17 = vpop.eup %1764 }
 0x13b   : > { %1786 = vrcp.f32 %v979_v49  ;;  %v2564_v25 = vpop.eup %1766  ;;  %v2568_v49 = vmul.f32 %v2491_v8, %v2408_v61  ;;  %v981_v61 = vadd.f32 1.0, %v1765_v17 }
 0x13c   : > { %v653_v28 = vadd.f32 1e-05, %v621_v19  ;;  %v668_v63 = vadd.f32 1e-05, %v636_v43  ;;  %1788 = vpow2.f32 %v920_v54  ;;  %v1769_v0 = vpop.eup %1768  ;;  %v889_v43 = vsub.f32 0.0, %v2562_v22 }
 0x13d   : > { %v577_v1 = vpop.xlane.xlu1 %576  ;;  %v532_v13 = vpop.xlane.xlu0 %531  ;;  %1790 = vrcp.f32 %v964_v42  ;;  %v980_v19 = vadd.f32 1.0, %v1763_v21 }
 0x13e   : > { %1792 = vrsqrt.f32 %v653_v28  ;;  %v637_v24 = vmul.f32 0.015625, %v577_v1  ;;  %v622_v29 = vmul.f32 0.015625, %v532_v13  ;;  %v1771_v54 = vpop.eup %1770  ;;  %v2573_v1 = vmul.f32 %v2503_v45, %v2412_v30 }
 0x13f   : > { %1794 = vrsqrt.f32 %v668_v63  ;;  %v1773_v39 = vpop.eup %1772  ;;  %v2577_v13 = vmul.f32 %v2509_v3, %v2415_v32  ;;  %v2587_v30 = vmul.f32 %v2521_v33, %v2423_v48  ;;  %v2591_v3 = vmul.f32 %v2524_v4, %v2427_v46 }
 0x140   : > { %v669_v53 = vadd.f32 1e-05, %v637_v24  ;;  %v654_v6 = vadd.f32 1e-05, %v622_v29  ;;  %1796 = vpow2.f32 %v950_v59  ;;  %v1775_v8 = vpop.eup %1774  ;;  %v2581_v59 = vmul.f32 %v2515_v47, %v2419_v38 }
 0x141   : > { %v535_v42 = vpop.xlane.xlu1 %534  ;;  %v580_v9 = vpop.xlane.xlu0 %579  ;;  %1798 = vrcp.f32 %v965_v7  ;;  %v2595_v7 = vmul.f32 %v2530_v36, %v2431_v51  ;;  %v952_v47 = vmul.f32 1.442695, %v889_v43  ;;  %v2599_v33 = vmul.f32 %v2536_v62, %v2435_v52  ;;  %v2614_v52 = vld [vmem:[%s3017_s2] ss:$0 sm:$0xff] }
 0x142   : > { %1800 = vrsqrt.f32 %v669_v53  ;;  %v623_v28 = vmul.f32 0.015625, %v535_v42  ;;  %v638_v63 = vmul.f32 0.015625, %v580_v9  ;;  %v2583_v21 = vpop.eup %1776  ;;  %v2603_v4 = vmul.f32 %v2542_v14, %v2439_v40 }
 0x143   : > { %1802 = vrsqrt.f32 %v654_v6  ;;  %v1779_v9 = vpop.eup %1778  ;;  %v966_v48 = vadd.f32 1.0, %v1769_v0  ;;  %v2609_v29 = vmul.f32 %v2544_v56, %v2443_v12  ;;  %v2618_v40 = vmul.f32 %v2547_v16, %v2447_v18 }
 0x144   : > { %v655_v17 = vadd.f32 1e-05, %v623_v28  ;;  %v670_v32 = vadd.f32 1e-05, %v638_v63  ;;  %1804 = vrcp.f32 %v980_v19  ;;  %v1781_v38 = vpop.eup %1780  ;;  %v2622_v62 = vmul.f32 %v2552_v31, %v2451_v44  ;;  %v2643_v28 = vld [vmem:[%s3018_s3] ss:$0 sm:$0xff] }
 0x145   : > { %v583_v45 = vpop.xlane.xlu1 %582  ;;  %v538_v24 = vpop.xlane.xlu0 %537  ;;  %1806 = vrcp.f32 %v981_v61  ;;  %v967_v14 = vadd.f32 1.0, %v1771_v54  ;;  %v2631_v18 = vmul.f32 %v2554_v50, %v2455_v60  ;;  %v2635_v44 = vmul.f32 %v2557_v15, %v2458_v34 }
 0x146   : > { %v2605_v46 = vpop.eup %1782  ;;  %1808 = vrsqrt.f32 %v655_v17  ;;  %v639_v51 = vmul.f32 0.015625, %v583_v45  ;;  %v624_v36 = vmul.f32 0.015625, %v538_v24  ;;  %v982_v16 = vadd.f32 1.0, %v1775_v8 }
 0x147   : > { %v1785_v43 = vpop.eup %1784  ;;  %1810 = vrsqrt.f32 %v670_v32  ;;  %v2647_v15 = vmul.f32 %v2559_v23, %v2463_v37  ;;  %v2651_v34 = vmul.f32 %v2564_v25, %v2467_v41  ;;  %v2654_v50 = vmul.f32 %v1773_v39, %v2472_v35 }
 0x148   : > { %v2624_v0 = vpop.eup %1786  ;;  %v671_v12 = vadd.f32 1e-05, %v639_v51  ;;  %v656_v56 = vadd.f32 1e-05, %v624_v36  ;;  %v716_v53 = vmul.f32 %v1785_v43, %v2198_v10  ;;  %1812 = vpow2.f32 %v952_v47 }
 0x149   : > { %v2627_v6 = vpop.eup %1788  ;;  %v541_v19 = vpop.xlane.xlu1 %540  ;;  %1814 = vrcp.f32 %v966_v48  ;;  %v983_v48 = vadd.f32 1.0, %v1779_v9  ;;  %v2667_v36 = vmul.f32 %v2583_v21, %v2475_v57  ;;  %v2670_v43 = vmul.f32 %v1781_v38, %v2479_v58 }
 0x14a   : > { %v586_v42 = vpop.xlane.xlu0 %585  ;;  %v2637_v31 = vpop.eup %1790  ;;  %1816 = vrsqrt.f32 %v671_v12  ;;  %v625_v54 = vmul.f32 0.015625, %v541_v19  ;;  %v755_v61 = vmul.f32 %v2614_v52, %v716_v53  ;;  %v2679_v57 = vadd.f32 1.0, %v2605_v46 }
 0x14b   : > { %v640_v10 = vmul.f32 0.015625, %v586_v42  ;;  %v1793_v60 = vpop.eup %1792  ;;  %1818 = vrsqrt.f32 %v656_v56 }
 0x14c   : > { %v1795_v8 = vpop.eup %1794  ;;  %v657_v63 = vadd.f32 1e-05, %v625_v54  ;;  %v717_v32 = vmul.f32 %v1793_v60, %v2208_v26  ;;  %1820 = vrcp.f32 %v967_v14  ;;  %v794_v37 = vadd.f32 %v2643_v28, %v755_v61 }
 0x14d   : > { %v672_v17 = vadd.f32 1e-05, %v640_v10  ;;  %v2657_v47 = vpop.eup %1796  ;;  %v589_v45 = vpop.xlane.xlu1 %588  ;;  %v732_v23 = vmul.f32 %v1795_v8, %v2201_v11  ;;  %1822 = vrcp.f32 %v982_v16 }
 0x14e   : > { %v544_v24 = vpop.xlane.xlu0 %543  ;;  %v2661_v41 = vpop.eup %1798  ;;  %1824 = vrsqrt.f32 %v657_v63  ;;  %v641_v35 = vmul.f32 0.015625, %v589_v45  ;;  %v756_v39 = vmul.f32 %v2614_v52, %v717_v32  ;;  %v1082_v16 = vmul.f32 %v2568_v49, %v794_v37 }
 0x14f   : > { %v626_v25 = vmul.f32 0.015625, %v544_v24  ;;  %v1801_v51 = vpop.eup %1800  ;;  %1826 = vrsqrt.f32 %v672_v17  ;;  %v771_v26 = vmul.f32 %v2614_v52, %v732_v23 }
 0x150   : > { %v1803_v11 = vpop.eup %1802  ;;  %v673_v9 = vadd.f32 1e-05, %v641_v35  ;;  %v795_v12 = vadd.f32 %v2643_v28, %v756_v39  ;;  %v733_v56 = vmul.f32 %v1801_v51, %v2211_v27  ;;  %1828 = vrcp.f32 %v983_v48 }
 0x151   : > { %v658_v14 = vadd.f32 1e-05, %v626_v25  ;;  %v2674_v53 = vpop.eup %1804  ;;  %v547_v19 = vpop.xlane.xlu1 %546  ;;  %v718_v54 = vmul.f32 %v1803_v11, %v2220_v2  ;;  %v810_v60 = vadd.f32 %v2643_v28, %v771_v26  ;;  %v2695_v48 = vmul.f32 %v2624_v0, %v2483_v20 }
 0x152   : > { %v592_v42 = vpop.xlane.xlu0 %591  ;;  %v2681_v58 = vpop.eup %1806  ;;  %1830 = vrsqrt.f32 %v673_v9  ;;  %v627_v21 = vmul.f32 0.015625, %v547_v19  ;;  %v1083_v10 = vmul.f32 %v2573_v1, %v795_v12  ;;  %v772_v61 = vmul.f32 %v2614_v52, %v733_v56  ;;  %v3096_v12 = vld [vmem:[#allocation5_spill] sm:$0xff] }
 0x153   : > { %v642_v38 = vmul.f32 0.015625, %v592_v42  ;;  %v1809_v27 = vpop.eup %1808  ;;  %1832 = vrsqrt.f32 %v658_v14  ;;  %v757_v49 = vmul.f32 %v2614_v52, %v718_v54  ;;  %v1098_v26 = vmul.f32 %v2577_v13, %v810_v60 }
 0x154   : > { %v1811_v2 = vpop.eup %1810  ;;  %v659_v8 = vadd.f32 1e-05, %v627_v21  ;;  %v1114_v46 = vpack.c.bf16 %v1083_v10, %v1082_v16  ;;  %v719_v17 = vmul.f32 %v1809_v27, %v2223_v5  ;;  %v811_v1 = vadd.f32 %v2643_v28, %v772_v61 }
 0x155   : > { %v674_v63 = vadd.f32 1e-05, %v642_v38  ;;  %v2688_v32 = vpop.eup %1812  ;;  %v595_v45 = vpop.xlane.xlu1 %594  ;;  %v796_v37 = vadd.f32 %v2643_v28, %v757_v49  ;;  %v734_v23 = vmul.f32 %v1811_v2, %v2232_v55  ;;  %v3097_v38 = vld [vmem:[#allocation6_spill] sm:$0xff] }
 0x156   : > { %v550_v24 = vpop.xlane.xlu0 %549  ;;  %v2697_v35 = vpop.eup %1814  ;;  %1834 = vrsqrt.f32 %v659_v8  ;;  %v643_v25 = vmul.f32 0.015625, %v595_v45  ;;  %1603 = vmatprep.mubr.msk.bf16.mxu0 %vm330_vm0, %v1114_v46  ;;  %v758_v5 = vmul.f32 %v2614_v52, %v719_v17  ;;  %v1099_v11 = vmul.f32 %v2581_v59, %v811_v1  ;;  %v3098_v45 = vld [vmem:[#allocation7_spill] sm:$0xff] }
 0x157   : > { %v628_v39 = vmul.f32 0.015625, %v550_v24  ;;  %v1817_v51 = vpop.eup %1816  ;;  %1836 = vrsqrt.f32 %v674_v63  ;;  %v773_v55 = vmul.f32 %v2614_v52, %v734_v23  ;;  %v1084_v21 = vmul.f32 %v2587_v30, %v796_v37 }
 0x158   : > { %v1819_v9 = vpop.eup %1818  ;;  %v675_v20 = vadd.f32 1e-05, %v643_v25  ;;  %v797_v14 = vadd.f32 %v2643_v28, %v758_v5  ;;  %v735_v56 = vmul.f32 %v1817_v51, %v3096_v12  ;;  %v1122_v54 = vpack.c.bf16 %v1099_v11, %v1098_v26  ;;  %v3099_v25 = vld [vmem:[#allocation8_spill] sm:$0xff] }
 0x159   : > { %v660_v0 = vadd.f32 1e-05, %v628_v39  ;;  %v2706_v19 = vpop.eup %1820  ;;  %v553_v42 = vpop.xlane.xlu1 %552  ;;  %v720_v13 = vmul.f32 %v1819_v9, %v3097_v38  ;;  %v2711_v59 = vadd.f32 1.0, %v2627_v6  ;;  %v812_v30 = vadd.f32 %v2643_v28, %v773_v55 }
 0x15a   : > { %v598_v16 = vpop.xlane.xlu0 %597  ;;  %v2713_v10 = vpop.eup %1822  ;;  %1838 = vrsqrt.f32 %v675_v20  ;;  %v629_v27 = vmul.f32 0.015625, %v553_v42  ;;  %v1085_v60 = vmul.f32 %v2591_v3, %v797_v14  ;;  %1619 = vmatprep.mubr.msk.bf16.mxu1 %vm330_vm0, %v1122_v54  ;;  %v774_v2 = vmul.f32 %v2614_v52, %v735_v56  ;;  %v3100_v42 = vld [vmem:[#allocation9_spill] sm:$0xff] }
 0x15b   : > { %v644_v61 = vmul.f32 0.015625, %v598_v16  ;;  %v1825_v49 = vpop.eup %1824  ;;  %1840 = vrsqrt.f32 %v660_v0  ;;  %v759_v8 = vmul.f32 %v2614_v52, %v720_v13  ;;  %v1100_v9 = vmul.f32 %v2595_v7, %v812_v30 }
 0x15c   : > { %v1827_v63 = vpop.eup %1826  ;;  %v661_v6 = vadd.f32 1e-05, %v629_v27  ;;  %v1115_v17 = vpack.c.bf16 %v1085_v60, %v1084_v21  ;;  %v721_v24 = vmul.f32 %v1825_v49, %v3098_v45  ;;  %v813_v3 = vadd.f32 %v2643_v28, %v774_v2  ;;  %v3101_v27 = vld [vmem:[#allocation10_spill] sm:$0xff]  ;;  %v3103_v45 = vld [vmem:[#allocation11_spill] sm:$0xff] }
 0x15d   : > { %v676_v46 = vadd.f32 1e-05, %v644_v61  ;;  %v601_v1 = vpop.xlane.xlu1 %600  ;;  %v798_v23 = vadd.f32 %v2643_v28, %v759_v8  ;;  %v736_v39 = vmul.f32 %v1827_v63, %v3099_v25  ;;  %1842 = vrcp.f32 %v2679_v57  ;;  %v2725_v5 = vpop.eup %1828  ;;  %v3102_v60 = vld [vmem:[#allocation30_spill] sm:$0xff] }
 0x15e   : > { %v556_v37 = vpop.xlane.xlu0 %555  ;;  %1844 = vrsqrt.f32 %v661_v6  ;;  %v645_v51 = vmul.f32 0.015625, %v601_v1  ;;  %1604 = vmatmul.mubr.msk.bf16.vlgmr.msra.gmra.mxu0 %vm330_vm0, %v1115_v17  ;;  %v760_v11 = vmul.f32 %v2614_v52, %v721_v24  ;;  %v1101_v20 = vmul.f32 %v2599_v33, %v813_v3 }
 0x15f   : > { %v630_v26 = vmul.f32 0.015625, %v556_v37  ;;  %v1831_v55 = vpop.eup %1830  ;;  %1846 = vrsqrt.f32 %v676_v46  ;;  %v775_v0 = vmul.f32 %v2614_v52, %v736_v39  ;;  %v1086_v13 = vmul.f32 %v2603_v4, %v798_v23  ;;  %v3104_v23 = vld [vmem:[#allocation12_spill] sm:$0xff] }
 0x160   : > { %v1833_v14 = vpop.eup %1832  ;;  %v677_v12 = vadd.f32 1e-05, %v645_v51  ;;  %v799_v56 = vadd.f32 %v2643_v28, %v760_v11  ;;  %v737_v16 = vmul.f32 %v1831_v55, %v3100_v42  ;;  %v1123_v38 = vpack.c.bf16 %v1101_v20, %v1100_v9 }
 0x161   : > { %v662_v57 = vadd.f32 1e-05, %v630_v26  ;;  %v559_v54 = vpop.xlane.xlu1 %558  ;;  %v722_v61 = vmul.f32 %v1833_v14, %v3101_v27  ;;  %v2738_v7 = vmul.f32 %v2637_v31, %v3102_v60  ;;  %v814_v63 = vadd.f32 %v2643_v28, %v775_v0 }
 0x162   : > { %v604_v21 = vpop.xlane.xlu0 %603  ;;  %1848 = vrsqrt.f32 %v677_v12  ;;  %v631_v33 = vmul.f32 0.015625, %v559_v54  ;;  %v1087_v2 = vmul.f32 %v2609_v29, %v799_v56  ;;  %1620 = vmatmul.mubr.msk.bf16.vlgmr.msra.gmra.mxu1 %vm330_vm0, %v1123_v38  ;;  %v776_v8 = vmul.f32 %v2614_v52, %v737_v16  ;;  %v3106_v38 = vld [vmem:[#allocation14_spill] sm:$0xff] }
 0x163   : > { %v646_v49 = vmul.f32 0.015625, %v604_v21  ;;  %v1835_v30 = vpop.eup %1834  ;;  %1850 = vrsqrt.f32 %v662_v57  ;;  %v761_v4 = vmul.f32 %v2614_v52, %v722_v61  ;;  %v1102_v55 = vmul.f32 %v2618_v40, %v814_v63  ;;  %v3105_v57 = vld [vmem:[#allocation13_spill] sm:$0xff] }
 0x164   : > { %v1837_v6 = vpop.eup %1836  ;;  %v663_v46 = vadd.f32 1e-05, %v631_v33  ;;  %v1116_v31 = vpack.c.bf16 %v1087_v2, %v1086_v13  ;;  %v723_v24 = vmul.f32 %v1835_v30, %v3103_v45  ;;  %v815_v29 = vadd.f32 %v2643_v28, %v776_v8  ;;  %v3108_v45 = vld [vmem:[#allocation16_spill] sm:$0xff] }
 0x165   : > { %v678_v17 = vadd.f32 1e-05, %v646_v49  ;;  %v607_v1 = vpop.xlane.xlu1 %606  ;;  %v800_v3 = vadd.f32 %v2643_v28, %v761_v4  ;;  %v738_v25 = vmul.f32 %v1837_v6, %v3104_v23  ;;  %1852 = vrcp.f32 %v2711_v59  ;;  %v3107_v4 = vld [vmem:[#allocation15_spill] sm:$0xff] }
 0x166   : > { %v562_v37 = vpop.xlane.xlu0 %561  ;;  %1854 = vrsqrt.f32 %v663_v46  ;;  %v647_v39 = vmul.f32 0.015625, %v607_v1  ;;  %1607 = vmatprep.mubr.msk.bf16.mxu0 %vm330_vm0, %v1116_v31  ;;  %v762_v26 = vmul.f32 %v2614_v52, %v723_v24  ;;  %v1103_v9 = vmul.f32 %v2622_v62, %v815_v29  ;;  %v3109_v1 = vld [vmem:[#allocation31_spill] sm:$0xff] }
 0x167   : > { %v632_v51 = vmul.f32 0.015625, %v562_v37  ;;  %v1839_v11 = vpop.eup %1838  ;;  %1856 = vrsqrt.f32 %v678_v17  ;;  %v777_v20 = vmul.f32 %v2614_v52, %v738_v25  ;;  %v1088_v21 = vmul.f32 %v2631_v18, %v800_v3 }
 0x168   : > { %v1841_v0 = vpop.eup %1840  ;;  %v679_v14 = vadd.f32 1e-05, %v647_v39  ;;  %v801_v59 = vadd.f32 %v2643_v28, %v762_v26  ;;  %v739_v56 = vmul.f32 %v1839_v11, %v3105_v57  ;;  %v1124_v54 = vpack.c.bf16 %v1103_v9, %v1102_v55 }
 0x169   : > { %v664_v12 = vadd.f32 1e-05, %v632_v51  ;;  %v565_v42 = vpop.xlane.xlu1 %564  ;;  %v724_v13 = vmul.f32 %v1841_v0, %v3106_v38  ;;  %v984_v40 = vadd.f32 1.0, %v2657_v47  ;;  %v816_v2 = vadd.f32 %v2643_v28, %v777_v20  ;;  %v3110_v20 = vld [vmem:[#allocation17_spill] sm:$0xff] }
 0x16a   : > { %v610_v16 = vpop.xlane.xlu0 %609  ;;  %v2760_v27 = vpop.eup %1842  ;;  %1858 = vrsqrt.f32 %v679_v14  ;;  %v633_v62 = vmul.f32 0.015625, %v565_v42  ;;  %v1089_v60 = vmul.f32 %v2635_v44, %v801_v59  ;;  %1623 = vmatprep.mubr.msk.bf16.mxu1 %vm330_vm0, %v1124_v54  ;;  %v778_v49 = vmul.f32 %v2614_v52, %v739_v56  ;;  %v3111_v56 = vld [vmem:[#allocation18_spill] sm:$0xff] }
 0x16b   : > { %v648_v61 = vmul.f32 0.015625, %v610_v16  ;;  %v1845_v33 = vpop.eup %1844  ;;  %1860 = vrsqrt.f32 %v664_v12  ;;  %v763_v18 = vmul.f32 %v2614_v52, %v724_v13  ;;  %v2773_v37 = vmul.f32 %v2661_v41, %v3109_v1 }
 0x16c   : > { %v1847_v30 = vpop.eup %1846  ;;  %v665_v8 = vadd.f32 1e-05, %v633_v62  ;;  %v1117_v63 = vpack.c.bf16 %v1089_v60, %v1088_v21  ;;  %v725_v6 = vmul.f32 %v1845_v33, %v3107_v4  ;;  %v817_v44 = vadd.f32 %v2643_v28, %v778_v49  ;;  %v3112_v33 = vld [vmem:[#allocation19_spill] sm:$0xff] }
 0x16d   : > { %v680_v47 = vadd.f32 1e-05, %v648_v61  ;;  %v613_v46 = vpop.xlane.xlu1 %612  ;;  %v802_v31 = vadd.f32 %v2643_v28, %v763_v18  ;;  %v740_v24 = vmul.f32 %v1847_v30, %v3108_v45  ;;  %v1104_v39 = vmul.f32 %v2647_v15, %v816_v2  ;;  %v3113_v30 = vld [vmem:[#allocation20_spill] sm:$0xff] }
 0x16e   : > { %v568_v17 = vpop.xlane.xlu0 %567  ;;  %1862 = vrsqrt.f32 %v665_v8  ;;  %v649_v29 = vmul.f32 0.015625, %v613_v46  ;;  %1608 = vmatmul.mubr.msk.bf16.gmra.mxu0 %vm330_vm0, %v1117_v63  ;;  %v764_v23 = vmul.f32 %v2614_v52, %v725_v6  ;;  %v1105_v51 = vmul.f32 %v2651_v34, %v817_v44  ;;  %v3114_v6 = vld [vmem:[#allocation32_spill] sm:$0xff] }
 0x16f   : > { %v634_v3 = vmul.f32 0.015625, %v568_v17  ;;  %v1849_v25 = vpop.eup %1848  ;;  %1864 = vrsqrt.f32 %v680_v47  ;;  %v779_v26 = vmul.f32 %v2614_v52, %v740_v24  ;;  %v1090_v57 = vmul.f32 %v2654_v50, %v802_v31 }
 0x170   : > { %v1851_v11 = vpop.eup %1850  ;;  %v681_v55 = vadd.f32 1e-05, %v649_v29  ;;  %v803_v41 = vadd.f32 %v2643_v28, %v764_v23  ;;  %v741_v0 = vmul.f32 %v1849_v25, %v3110_v20  ;;  %v1125_v59 = vpack.c.bf16 %v1105_v51, %v1104_v39  ;;  %v3115_v29 = vld [vmem:[#allocation21_spill] sm:$0xff]  ;;  %v3117_v51 = vld [vmem:[#allocation22_spill] sm:$0xff] }
 0x171   : > { %v666_v9 = vadd.f32 1e-05, %v634_v3  ;;  %v571_v14 = vpop.xlane.xlu1 %570  ;;  %v726_v42 = vmul.f32 %v1851_v11, %v3111_v56  ;;  %1866 = vrcp.f32 %v984_v40  ;;  %v818_v13 = vadd.f32 %v2643_v28, %v779_v26  ;;  %v3116_v23 = vld [vmem:[#allocation33_spill] sm:$0xff] }
 0x172   : > { %v616_v12 = vpop.xlane.xlu0 %615  ;;  %v2784_v15 = vpop.eup %1852  ;;  %1868 = vrsqrt.f32 %v681_v55  ;;  %v635_v34 = vmul.f32 0.015625, %v571_v14  ;;  %v1091_v54 = vmul.f32 %v2667_v36, %v803_v41  ;;  %1624 = vmatmul.mubr.msk.bf16.gmra.mxu1 %vm330_vm0, %v1125_v59  ;;  %v780_v38 = vmul.f32 %v2614_v52, %v741_v0  ;;  %v3119_v14 = vld [vmem:[#allocation34_spill] sm:$0xff]  ;;  %v3120_v59 = vld [vmem:[#allocation35_spill] sm:$0xff] }
 0x173   : > { %v650_v16 = vmul.f32 0.015625, %v616_v12  ;;  %v1855_v21 = vpop.eup %1854  ;;  %1870 = vrsqrt.f32 %v666_v9  ;;  %v765_v50 = vmul.f32 %v2614_v52, %v726_v42  ;;  %v985_v47 = vadd.f32 1.0, %v2688_v32 }
 0x174   : > { %v1857_v62 = vpop.eup %1856  ;;  %v667_v61 = vadd.f32 1e-05, %v635_v34  ;;  %v1118_v60 = vpack.c.bf16 %v1091_v54, %v1090_v57  ;;  %v727_v49 = vmul.f32 %v1855_v21, %v3112_v33  ;;  %v819_v18 = vadd.f32 %v2643_v28, %v780_v38  ;;  %v3121_v57 = vld [vmem:[#allocation24_spill] sm:$0xff]  ;;  %v3124_v33 = vld [vmem:[#allocation37_spill] sm:$0xff] }
 0x175   : > { %v682_v40 = vadd.f32 1e-05, %v650_v16  ;;  %v619_v2 = vpop.xlane.xlu1 %618  ;;  %v804_v36 = vadd.f32 %v2643_v28, %v765_v50  ;;  %v742_v8 = vmul.f32 %v1857_v62, %v3113_v30  ;;  %v1076_v46 = vmul.f32 %v2674_v53, %v3114_v6 }
 0x176   : > { %1872 = vrsqrt.f32 %v667_v61  ;;  %v651_v63 = vmul.f32 0.015625, %v619_v2  ;;  %1611 = vmatprep.mubr.msk.bf16.mxu0 %vm330_vm0, %v1118_v60  ;;  %v766_v4 = vmul.f32 %v2614_v52, %v727_v49  ;;  %v1106_v44 = vmul.f32 %v2670_v43, %v818_v13  ;;  %v3122_v61 = vld [vmem:[#allocation25_spill] sm:$0xff]  ;;  %v3125_v2 = vld [vmem:[#allocation26_spill] sm:$0xff] }
 0x177   : > { %v1859_v17 = vpop.eup %1858  ;;  %1874 = vrsqrt.f32 %v682_v40  ;;  %v1107_v31 = vmul.f32 %v2695_v48, %v819_v18  ;;  %v781_v45 = vmul.f32 %v2614_v52, %v742_v8  ;;  %v1077_v25 = vmul.f32 %v2681_v58, %v3116_v23  ;;  %v3123_v40 = vld [vmem:[#allocation36_spill] sm:$0xff] }
 0x178   : > { %v1861_v24 = vpop.eup %1860  ;;  %v683_v1 = vadd.f32 1e-05, %v651_v63  ;;  %v805_v32 = vadd.f32 %v2643_v28, %v766_v4  ;;  %v743_v3 = vmul.f32 %v1859_v17, %v3115_v29  ;;  %v1092_v53 = vmul.f32 %v2738_v7, %v804_v36  ;;  %v3118_v7 = vld [vmem:[#allocation23_spill] sm:$0xff] }
 0x179   : > { %v1126_v39 = vpack.c.bf16 %v1107_v31, %v1106_v44  ;;  %v728_v26 = vmul.f32 %v1861_v24, %v3117_v51  ;;  %1876 = vrcp.f32 %v985_v47  ;;  %v820_v11 = vadd.f32 %v2643_v28, %v781_v45  ;;  %v3126_v17 = vld [vmem:[#allocation27_spill] sm:$0xff]  ;;  %v3128_v45 = vld [vmem:[#allocation38_spill] sm:$0xff] }
 0x17a   : > { %1878 = vrsqrt.f32 %v683_v1  ;;  %v1093_v43 = vmul.f32 %v2773_v37, %v805_v32  ;;  %v782_v48 = vmul.f32 %v2614_v52, %v743_v3  ;;  %v1062_v12 = vmul.f32 %v2697_v35, %v3119_v14  ;;  %v3129_v1 = vld [vmem:[#allocation39_spill] sm:$0xff] }
 0x17b   : > { %v1863_v55 = vpop.eup %1862  ;;  %1627 = vmatprep.mubr.msk.bf16.mxu1 %vm330_vm0, %v1126_v39  ;;  %v767_v9 = vmul.f32 %v2614_v52, %v728_v26  ;;  %v1063_v37 = vmul.f32 %v2706_v19, %v3120_v59  ;;  %v1108_v34 = vmul.f32 %v1076_v46, %v820_v11  ;;  %v1078_v60 = vmul.f32 %v2713_v10, %v3123_v40  ;;  %v3130_v26 = vld [vmem:[#allocation29_spill] sm:$0xff]  ;;  %v3131_v11 = vld [vmem:[#allocation40_spill] sm:$0xff] }
 0x17c   : > { %v1865_v41 = vpop.eup %1864  ;;  %v1119_v58 = vpack.c.bf16 %v1093_v43, %v1092_v53  ;;  %v821_v20 = vadd.f32 %v2643_v28, %v782_v48  ;;  %v729_v0 = vmul.f32 %v1863_v55, %v3118_v7  ;;  %v1079_v49 = vmul.f32 %v2725_v5, %v3124_v33  ;;  %v3127_v5 = vld [vmem:[#allocation28_spill] sm:$0xff]  ;;  %v1155_v33 = vld [vmem:[%s2862_s18 + $0x88] sm:$0xff] }
 0x17d   : > { %v744_v56 = vmul.f32 %v1865_v41, %v3121_v57  ;;  %v806_v21 = vadd.f32 %v2643_v28, %v767_v9  ;;  %v1064_v24 = vmul.f32 %v2760_v27, %v3128_v45  ;;  %v1065_v32 = vmul.f32 %v2784_v15, %v3129_v1 }
 0x17e   : > { %v1867_v42 = vpop.eup %1866  ;;  %1612 = vmatmul.mubr.msk.bf16.gmra.mxu0 %vm330_vm0, %v1119_v58  ;;  %v1109_v16 = vmul.f32 %v1077_v25, %v821_v20  ;;  %v768_v54 = vmul.f32 %v2614_v52, %v729_v0 }
 0x17f   : > { %v1869_v38 = vpop.eup %1868  ;;  %v783_v13 = vmul.f32 %v2614_v52, %v744_v56  ;;  %v1094_v36 = vmul.f32 %v1062_v12, %v806_v21  ;;  %v1080_v15 = vmul.f32 %v1867_v42, %v3131_v11  ;;  %v1141_v56 = vld [vmem:[%s2862_s18 + $0x18] sm:$0xff] }
 0x180   : > { %v1871_v50 = vpop.eup %1870  ;;  %v1127_v62 = vpack.c.bf16 %v1109_v16, %v1108_v34  ;;  %v807_v35 = vadd.f32 %v2643_v28, %v768_v54  ;;  %v745_v19 = vmul.f32 %v1869_v38, %v3122_v61  ;;  %v1156_v34 = vld [vmem:[%s2862_s18 + $0x90] sm:$0xff]  ;;  %v1139_v54 = vld [vmem:[%s2862_s18 + $0x8] sm:$0xff] }
 0x181   : > { %v730_v18 = vmul.f32 %v1871_v50, %v3125_v2  ;;  %v822_v47 = vadd.f32 %v2643_v28, %v783_v13  ;;  %v1154_v13 = vld [vmem:[%s2862_s18 + $0x80] sm:$0xff] }
 0x182   : > { %1628 = vmatmul.mubr.msk.bf16.gmra.mxu1 %vm330_vm0, %v1127_v62  ;;  %v1095_v30 = vmul.f32 %v1063_v37, %v807_v35  ;;  %v784_v8 = vmul.f32 %v2614_v52, %v745_v19  ;;  %v1157_v19 = vld [vmem:[%s2862_s18 + $0x98] sm:$0xff] }
 0x183   : > { %v1873_v63 = vpop.eup %1872  ;;  %v769_v4 = vmul.f32 %v2614_v52, %v730_v18  ;;  %v1110_v3 = vmul.f32 %v1078_v60, %v822_v47 }
 0x184   : > { %v1875_v6 = vpop.eup %1874  ;;  %v1120_v46 = vpack.c.bf16 %v1095_v30, %v1094_v36  ;;  %v823_v10 = vadd.f32 %v2643_v28, %v784_v8  ;;  %v731_v44 = vmul.f32 %v1873_v63, %v3126_v17  ;;  %v1144_v36 = vld [vmem:[%s2862_s18 + $0x30] sm:$0xff]  ;;  %v1142_v8 = vld [vmem:[%s2862_s18 + $0x20] sm:$0xff]  ;;  %v1143_v17 = vld [vmem:[%s2862_s18 + $0x28] sm:$0xff] }
 0x185   : > { %v746_v31 = vmul.f32 %v1875_v6, %v3127_v5  ;;  %v808_v39 = vadd.f32 %v2643_v28, %v769_v4  ;;  %v1145_v4 = vld [vmem:[%s2862_s18 + $0x38] sm:$0xff] }
 0x186   : > { %v1877_v29 = vpop.eup %1876  ;;  %1615 = vmatprep.mubr.msk.bf16.mxu0 %vm330_vm0, %v1120_v46  ;;  %v1111_v23 = vmul.f32 %v1079_v49, %v823_v10  ;;  %v770_v25 = vmul.f32 %v2614_v52, %v731_v44  ;;  %v1160_v46 = vld [vmem:[%s2862_s18 + $0xb0] sm:$0xff] }
 0x187   : > { %v1879_v53 = vpop.eup %1878  ;;  %v785_v51 = vmul.f32 %v2614_v52, %v746_v31  ;;  %v1081_v55 = vmul.f32 %v1877_v29, %v2562_v22  ;;  %v1096_v9 = vmul.f32 %v1064_v24, %v808_v39  ;;  %v1140_v22 = vld [vmem:[%s2862_s18 + $0x10] sm:$0xff]  ;;  %v1158_v31 = vld [vmem:[%s2862_s18 + $0xa0] sm:$0xff]  ;;  %v1161_v29 = vld [vmem:[%s2862_s18 + $0xb8] sm:$0xff] }
 0x188   : > { %v747_v43 = vmul.f32 %v1879_v53, %v3130_v26  ;;  %v1128_v48 = vpack.c.bf16 %v1111_v23, %v1110_v3  ;;  %v809_v27 = vadd.f32 %v2643_v28, %v770_v25  ;;  %v1159_v25 = vld [vmem:[%s2862_s18 + $0xa8] sm:$0xff]  ;;  %v1148_v26 = vld [vmem:[%s2862_s18 + $0x50] sm:$0xff] }
 0x189   : > { %v824_v20 = vadd.f32 %v2643_v28, %v785_v51 }
 0x18a   : > { %1631 = vmatprep.mubr.msk.bf16.mxu1 %vm330_vm0, %v1128_v48  ;;  %v1097_v41 = vmul.f32 %v1065_v32, %v809_v27  ;;  %v786_v58 = vmul.f32 %v2614_v52, %v747_v43  ;;  %v1146_v48 = vld [vmem:[%s2862_s18 + $0x40] sm:$0xff] }
 0x18b   : > { %v1112_v14 = vmul.f32 %v1080_v15, %v824_v20  ;;  %v1149_v15 = vld [vmem:[%s2862_s18 + $0x58] sm:$0xff]  ;;  %v1147_v20 = vld [vmem:[%s2862_s18 + $0x48] sm:$0xff] }
 0x18c   : > { %v1121_v7 = vpack.c.bf16 %v1097_v41, %v1096_v9  ;;  %v825_v0 = vadd.f32 %v2643_v28, %v786_v58  ;;  %v1138_v28 = vld [vmem:[%s2862_s18] sm:$0xff] }
 0x18e   : > { %1616 = vmatmul.mubr.msk.bf16.gmra.mxu0 %vm330_vm0, %v1121_v7  ;;  %v1113_v12 = vmul.f32 %v1081_v55, %v825_v0  ;;  %v1164_v55 = vld [vmem:[%s2862_s18 + $0xd0] sm:$0xff]  ;;  %v1162_v7 = vld [vmem:[%s2862_s18 + $0xc0] sm:$0xff] }
 0x190   : > { %v1129_v59 = vpack.c.bf16 %v1113_v12, %v1112_v14 }
 0x192   : > { %1632 = vmatmul.mubr.msk.bf16.gmra.mxu1 %vm330_vm0, %v1129_v59 }
 0x21e   : > { %v1605_v52 = vpop.f32.mrf.mxu0 }
 0x21f   : > { %v1285_v37 = vadd.f32 %v1605_v52, %v1140_v22  ;;  %v1165_v22 = vld [vmem:[%s2862_s18 + $0xd8] sm:$0xff] }
 0x220   : > { %v1276_v57 = vpop.f32.mrf.mxu0 }
 0x221   : > { %1406 = vst.msk [vmem:[%s2869_s20 + $0x10] sm:$0xff] %vm1403_vm1, %v1285_v37  ;;  %v1277_v42 = vadd.f32 %v1276_v57, %v1138_v28  ;;  %v1163_v57 = vld [vmem:[%s2862_s18 + $0xc8] sm:$0xff] }
 0x222   : > { %v1606_v16 = vpop.f32.mrf.mxu0  ;;  %v1621_v38 = vpop.f32.mrf.mxu1 }
 0x223   : > { %1404 = vst.msk [vmem:[%s2869_s20] sm:$0xff] %vm1403_vm1, %v1277_v42  ;;  %v1288_v21 = vadd.f32 %v1606_v16, %v1141_v56  ;;  %v1349_v50 = vadd.f32 %v1621_v38, %v1156_v34  ;;  %v1152_v16 = vld [vmem:[%s2862_s18 + $0x70] sm:$0xff] }
 0x224   : > { %v1279_v62 = vpop.f32.mrf.mxu0  ;;  %v1340_v61 = vpop.f32.mrf.mxu1 }
 0x225   : > { %1407 = vst.msk [vmem:[%s2869_s20 + $0x18] sm:$0xff] %vm1403_vm1, %v1288_v21  ;;  %v1280_v35 = vadd.f32 %v1279_v62, %v1139_v54  ;;  %1422 = vst.msk [vmem:[%s2869_s20 + $0x90] sm:$0xff] %vm1403_vm1, %v1349_v50  ;;  %v1341_v40 = vadd.f32 %v1340_v61, %v1154_v13  ;;  %v1150_v21 = vld [vmem:[%s2862_s18 + $0x60] sm:$0xff]  ;;  %v1153_v50 = vld [vmem:[%s2862_s18 + $0x78] sm:$0xff] }
 0x226   : > { %v1622_v60 = vpop.f32.mrf.mxu1  ;;  %v1168_v62 = vld [vmem:[%s2862_s18 + $0xf0] sm:$0xff] }
 0x227   : > { %1405 = vst.msk [vmem:[%s2869_s20 + $0x8] sm:$0xff] %vm1403_vm1, %v1280_v35  ;;  %1420 = vst.msk [vmem:[%s2869_s20 + $0x80] sm:$0xff] %vm1403_vm1, %v1341_v40  ;;  %v1352_v49 = vadd.f32 %v1622_v60, %v1157_v19  ;;  %v1151_v40 = vld [vmem:[%s2862_s18 + $0x68] sm:$0xff]  ;;  %v1166_v60 = vld [vmem:[%s2862_s18 + $0xe0] sm:$0xff] }
 0x228   : > { %v1343_v2 = vpop.f32.mrf.mxu1 }
 0x229   : > { %1423 = vst.msk [vmem:[%s2869_s20 + $0x98] sm:$0xff] %vm1403_vm1, %v1352_v49  ;;  %v1344_v18 = vadd.f32 %v1343_v2, %v1155_v33 }
 0x22b   : > { %1421 = vst.msk [vmem:[%s2869_s20 + $0x88] sm:$0xff] %vm1403_vm1, %v1344_v18 }
 0x22e   : > { %v1609_v30 = vpop.f32.mrf.mxu0 }
 0x22f   : > { %v1301_v47 = vadd.f32 %v1609_v30, %v1144_v36  ;;  %v1169_v36 = vld [vmem:[%s2862_s18 + $0xf8] sm:$0xff] }
 0x230   : > { %v1292_v63 = vpop.f32.mrf.mxu0 }
 0x231   : > { %1410 = vst.msk [vmem:[%s2869_s20 + $0x30] sm:$0xff] %vm1403_vm1, %v1301_v47  ;;  %v1293_v6 = vadd.f32 %v1292_v63, %v1142_v8  ;;  %v1167_v63 = vld [vmem:[%s2862_s18 + $0xe8] sm:$0xff] }
 0x232   : > { %v1610_v10 = vpop.f32.mrf.mxu0  ;;  %v1625_v5 = vpop.f32.mrf.mxu1 }
 0x233   : > { %1408 = vst.msk [vmem:[%s2869_s20 + $0x20] sm:$0xff] %vm1403_vm1, %v1293_v6  ;;  %v1304_v44 = vadd.f32 %v1610_v10, %v1145_v4  ;;  %v1365_v45 = vadd.f32 %v1625_v5, %v1160_v46 }
 0x234   : > { %v1295_v24 = vpop.f32.mrf.mxu0  ;;  %v1356_v32 = vpop.f32.mrf.mxu1 }
 0x235   : > { %1411 = vst.msk [vmem:[%s2869_s20 + $0x38] sm:$0xff] %vm1403_vm1, %v1304_v44  ;;  %v1296_v1 = vadd.f32 %v1295_v24, %v1143_v17  ;;  %1426 = vst.msk [vmem:[%s2869_s20 + $0xb0] sm:$0xff] %vm1403_vm1, %v1365_v45  ;;  %v1357_v3 = vadd.f32 %v1356_v32, %v1158_v31 }
 0x236   : > { %v1626_v23 = vpop.f32.mrf.mxu1 }
 0x237   : > { %1409 = vst.msk [vmem:[%s2869_s20 + $0x28] sm:$0xff] %vm1403_vm1, %v1296_v1  ;;  %1424 = vst.msk [vmem:[%s2869_s20 + $0xa0] sm:$0xff] %vm1403_vm1, %v1357_v3  ;;  %v1368_v39 = vadd.f32 %v1626_v23, %v1161_v29 }
 0x238   : > { %v1359_v53 = vpop.f32.mrf.mxu1 }
 0x239   : > { %1427 = vst.msk [vmem:[%s2869_s20 + $0xb8] sm:$0xff] %vm1403_vm1, %v1368_v39  ;;  %v1360_v51 = vadd.f32 %v1359_v53, %v1159_v25 }
 0x23b   : > { %1425 = vst.msk [vmem:[%s2869_s20 + $0xa8] sm:$0xff] %vm1403_vm1, %v1360_v51 }
 0x23e   : > { %v1613_v43 = vpop.f32.mrf.mxu0 }
 0x23f   : > { %v1317_v27 = vadd.f32 %v1613_v43, %v1148_v26 }
 0x240   : > { %v1308_v11 = vpop.f32.mrf.mxu0 }
 0x241   : > { %1414 = vst.msk [vmem:[%s2869_s20 + $0x50] sm:$0xff] %vm1403_vm1, %v1317_v27  ;;  %v1309_v9 = vadd.f32 %v1308_v11, %v1146_v48 }
 0x242   : > { %v1614_v41 = vpop.f32.mrf.mxu0  ;;  %v1629_v58 = vpop.f32.mrf.mxu1 }
 0x243   : > { %1412 = vst.msk [vmem:[%s2869_s20 + $0x40] sm:$0xff] %vm1403_vm1, %v1309_v9  ;;  %v1320_v0 = vadd.f32 %v1614_v41, %v1149_v15  ;;  %v1381_v14 = vadd.f32 %v1629_v58, %v1164_v55 }
 0x244   : > { %v1311_v12 = vpop.f32.mrf.mxu0  ;;  %v1372_v59 = vpop.f32.mrf.mxu1 }
 0x245   : > { %1415 = vst.msk [vmem:[%s2869_s20 + $0x58] sm:$0xff] %vm1403_vm1, %v1320_v0  ;;  %1430 = vst.msk [vmem:[%s2869_s20 + $0xd0] sm:$0xff] %vm1403_vm1, %v1381_v14  ;;  %v1312_v52 = vadd.f32 %v1311_v12, %v1147_v20  ;;  %v1373_v28 = vadd.f32 %v1372_v59, %v1162_v7 }
 0x246   : > { %v1630_v37 = vpop.f32.mrf.mxu1 }
 0x247   : > { %1413 = vst.msk [vmem:[%s2869_s20 + $0x48] sm:$0xff] %vm1403_vm1, %v1312_v52  ;;  %1428 = vst.msk [vmem:[%s2869_s20 + $0xc0] sm:$0xff] %vm1403_vm1, %v1373_v28  ;;  %v1384_v56 = vadd.f32 %v1630_v37, %v1165_v22 }
 0x248   : > { %v1375_v42 = vpop.f32.mrf.mxu1 }
 0x249   : > { %1431 = vst.msk [vmem:[%s2869_s20 + $0xd8] sm:$0xff] %vm1403_vm1, %v1384_v56  ;;  %v1376_v34 = vadd.f32 %v1375_v42, %v1163_v57 }
 0x24b   : > { %1429 = vst.msk [vmem:[%s2869_s20 + $0xc8] sm:$0xff] %vm1403_vm1, %v1376_v34 }
 0x24e   : > { %v1617_v54 = vpop.f32.mrf.mxu0 }
 0x24f   : > { %v1333_v38 = vadd.f32 %v1617_v54, %v1152_v16 }
 0x250   : > { %v1324_v13 = vpop.f32.mrf.mxu0 }
 0x251   : > { %1418 = vst.msk [vmem:[%s2869_s20 + $0x70] sm:$0xff] %vm1403_vm1, %v1333_v38  ;;  %v1325_v35 = vadd.f32 %v1324_v13, %v1150_v21 }
 0x252   : > { %v1618_v61 = vpop.f32.mrf.mxu0  ;;  %v1633_v19 = vpop.f32.mrf.mxu1 }
 0x253   : > { %1416 = vst.msk [vmem:[%s2869_s20 + $0x60] sm:$0xff] %vm1403_vm1, %v1325_v35  ;;  %v1336_v33 = vadd.f32 %v1618_v61, %v1153_v50  ;;  %v1397_v49 = vadd.f32 %v1633_v19, %v1168_v62 }
 0x254   : > { %v1327_v2 = vpop.f32.mrf.mxu0  ;;  %v1388_v18 = vpop.f32.mrf.mxu1 }
 0x255   : > { %1419 = vst.msk [vmem:[%s2869_s20 + $0x78] sm:$0xff] %vm1403_vm1, %v1336_v33  ;;  %1434 = vst.msk [vmem:[%s2869_s20 + $0xf0] sm:$0xff] %vm1403_vm1, %v1397_v49  ;;  %v1328_v30 = vadd.f32 %v1327_v2, %v1151_v40  ;;  %v1389_v8 = vadd.f32 %v1388_v18, %v1166_v60 }
 0x256   : > { %v1634_v47 = vpop.f32.mrf.mxu1 }
 0x257   : > { %1417 = vst.msk [vmem:[%s2869_s20 + $0x68] sm:$0xff] %vm1403_vm1, %v1328_v30  ;;  %1432 = vst.msk [vmem:[%s2869_s20 + $0xe0] sm:$0xff] %vm1403_vm1, %v1389_v8  ;;  %v1400_v4 = vadd.f32 %v1634_v47, %v1169_v36 }
 0x258   : > { %v1391_v6 = vpop.f32.mrf.mxu1 }
 0x259   : > { %1435 = vst.msk [vmem:[%s2869_s20 + $0xf8] sm:$0xff] %vm1403_vm1, %v1400_v4  ;;  %v1392_v46 = vadd.f32 %v1391_v6, %v1167_v63 }
 0x25b   : > { %1433 = vst.msk [vmem:[%s2869_s20 + $0xe8] sm:$0xff] %vm1403_vm1, %v1392_v46 }
 0x25c   : > { %1893 = shalt.err (!%p1890_p3)
}
 0x25d   : > { %s1894_s15 = scalar_lea.hbm %s2965_s9, 4096  ;;  %s1898_s18 = scalar_lea.hbm %s3021_s6, 8192 }
 0x25e   : > { %p1895_p4 = scmp.ne.s32.totalorder %s2965_s9, %s1894_s15  ;;  %p1899_p9 = scmp.lt.s32.totalorder %s2965_s9, %s3021_s6 }
 0x25f   : > { %p1900_p10 = scmp.lt.s32.totalorder %s1898_s18, %s1894_s15 }
 0x260   : > { %p1896_p7 = pnand %p1895_p4, %p2018_p5 }
 0x261   : > { %p1901_p11 = por %p1900_p10, %p1899_p9 }
 0x262   : > { %p1897_p8 = pneg %p1896_p7 }
 0x264   : > { %p1902_p12 = pnand %p1901_p11, %p1897_p8 }
 0x266   : > { %1905 = shalt.err (!%p1902_p12)
}
 0x267   : > { %s1943_s10 = smov 128   ;;  %s1944_s28 = smov 8  }
 0x268   : > { %1643 = dma.vmem_to_hbm [thread:$0]  (%p2018_p5), %s2967_s26, 4096, %s2965_s9, %s2975_s25, %s1943_s10, %s1943_s10, %s1944_s28  }
 0x269 PF: > { %p1649_p13 = scmp.ge.s32.totalorder %s1940_s24, 2  ;;  %s1465_s29 = sand.u32 1, %s1928_s21  }
 0x26a   : > { %s1466_s11 = scalar_lea.sflag [#allocation3], %s1465_s29 }
 0x26b   : > { %p1646_p0 = pnand %p1649_p13, %p2022_p6 }
 0x26d   : > { %p1647_p1 = pneg %p1646_p0 }
 0x26f   : > { %1923 = dma.done.wait (%p1647_p1), %s1466_s11, 4096  }
 0x270   : > { %1925 = vsyncadd (%p1647_p1), %s1466_s11, 4294963200  ;;  %p16_p2 = scmp.ge.s32.totalorder %s2005_s27, 4   ;;  %s3132_s21 = smov %s1932_s22 }
 0x271   : > { %s3133_s22 = smov %s1936_s23  ;;  %s3134_s23 = smov %s2016_s30 }
 0x272   : > { %s3135_s24 = smov %s2005_s27  ;;  %18 = sbr.rel (!%p16_p2) target bundleno = 3 (0x3), region = 85 }
 0x277   :  { %1471 = vsyncpa [#allocation3], 1 }
 0x278   :  { %1473 = vsyncpa [#allocation3 + $0x1], 1 }

</bundles_post_ra>
